<compile_context>
chip_gen: v7x
topology: tpu7x:2x2x1
jax: 0.10.0
libtpu: 0.0.40
codegen_flags: <defaults>
</compile_context>

<pallas_src>
import functools

import jax
import jax.numpy as jnp
from jax.experimental import pallas as pl
from jax.experimental.pallas import tpu as pltpu

# --------------------------- shrunk synthetic config -------------------------
CONV_LAYERS = ((16, 10, 5), (16, 3, 2), (16, 2, 2))   # (dim, kernel, stride)
CONV_DIM = 16
HIDDEN = 32
NUM_HEADS = 2
HEAD_DIM = HIDDEN // NUM_HEADS
FFN_DIM = 64
NUM_LAYERS_USED = 5          # hidden_states[5] == output of encoder layer 4
POS_CONV_KERNEL = 8
POS_CONV_GROUPS = 4
LN_EPS = 1e-5
WAVE_EPS = 1e-7

FRAME = 20                   # total conv stride product (5 * 2 * 2)
H_OUT = 128                  # lane-dense padded output width


# ------------------------------ in-kernel helpers ------------------------------
def _ln(x, g, b, eps=LN_EPS):
    m = jnp.mean(x, axis=-1, keepdims=True)
    v = jnp.mean(jnp.square(x - m), axis=-1, keepdims=True)
    return (x - m) * jax.lax.rsqrt(v + eps) * g + b


def _ln_gelu(y, g, b):
    # TODO(synk): HF "gelu" is the exact erf variant; the tanh approximation is
    # used in-kernel for guaranteed Mosaic elementwise lowering.
    return jax.nn.gelu(_ln(y, g, b), approximate=True)


def _shift_rows_up(a, delta):
    """result[r] = a[(r + delta) % rows] via an XLU sublane rotate (no VMEM
    copy from a concatenate).  Wrapped rows hold wrong data; callers either
    mask them or only consume rows whose source index is in range."""
    n = a.shape[0]
    d = delta % n
    if d == 0:
        return a
    return pltpu.roll(a, shift=n - d, axis=0)


# ------------------------------- fused Pallas kernel ---------------------------
def _xlsr_kernel(s_ref, audio_ref, w1_ref, w2_ref, w3_ref, cc_ref, ec_ref,
                 fpw_ref, wpos_ref, wqkv_ref, wo_ref, wff1_ref, wff2_ref,
                 cvec_ref, out_ref):
    """One batch element per grid step; the whole network stays in VMEM/vregs."""
    f32 = jnp.float32
    dotf = functools.partial(jnp.dot, preferred_element_type=f32)
    C = CONV_DIM
    H = HIDDEN
    s_real = s_ref[0]                                 # valid frame count (SMEM)

    # ---- Wav2Vec2FeatureExtractor: per-utterance zero-mean / unit-variance ----
    x = audio_ref[0].astype(f32)                      # (N, FRAME): all T samples
    N = x.shape[0]
    n_samp = N * x.shape[1]
    tot = jnp.sum(jnp.sum(x, axis=1, keepdims=True), axis=0, keepdims=True)
    xc = x - tot / n_samp
    var = jnp.sum(jnp.sum(xc * xc, axis=1, keepdims=True),
                  axis=0, keepdims=True) / n_samp
    x = xc * jax.lax.rsqrt(var + WAVE_EPS)

    b1 = cc_ref[0:1, :]; g1 = cc_ref[1:2, :]; e1 = cc_ref[2:3, :]
    b2 = cc_ref[3:4, :]; g2 = cc_ref[4:5, :]; e2 = cc_ref[5:6, :]
    b3 = cc_ref[6:7, :]; g3 = cc_ref[7:8, :]; e3 = cc_ref[8:9, :]
    fp_g = cc_ref[9:10, :]; fp_bln = cc_ref[10:11, :]

    # ---- conv block 1: kernel 10, stride 5 (4 polyphase outputs per row) ----
    # Host-padded weight variants (w1_ref[0..4]) keep every contraction 16-deep.
    xa = x[:, 0:16]
    xb = x[:, 4:20]
    xs = _shift_rows_up(x, 1)[:, 0:16]                # row m -> row m+1 samples
    p0 = _ln_gelu(dotf(xa, w1_ref[0]) + b1, g1, e1)                     # l = 4m
    p1 = _ln_gelu(dotf(xb, w1_ref[1]) + b1, g1, e1)                     # l = 4m+1
    p2 = _ln_gelu(dotf(xb, w1_ref[2]) + b1, g1, e1)                     # l = 4m+2
    p3 = _ln_gelu(dotf(xb, w1_ref[3]) + dotf(xs, w1_ref[4]) + b1, g1, e1)  # 4m+3

    # ---- conv block 2: kernel 3, stride 2 (even / odd output phases) ----
    p0n = _shift_rows_up(p0, 1)
    h2e = _ln_gelu(dotf(p0, w2_ref[0]) + dotf(p1, w2_ref[1])
                   + dotf(p2, w2_ref[2]) + b2, g2, e2)
    h2o = _ln_gelu(dotf(p2, w2_ref[0]) + dotf(p3, w2_ref[1])
                   + dotf(p0n, w2_ref[2]) + b2, g2, e2)

    # ---- conv block 3: kernel 2, stride 2 ----
    h3 = _ln_gelu(dotf(h2e, w3_ref[0]) + dotf(h2o, w3_ref[1]) + b3, g3, e3)  # (N,C)

    # ---- feature projection: LayerNorm(C) -> Linear(C -> H) ----
    fp_b = ec_ref[0:1, :]
    pos_b = ec_ref[1:2, :]
    h = dotf(_ln(h3, fp_g, fp_bln), fpw_ref[...]) + fp_b                 # (N, H)
    rows_h = jax.lax.broadcasted_iota(jnp.int32, (N, H), 0)
    h = jnp.where(rows_h < s_real, h, 0.0)            # zero padded frames

    # ---- positional grouped conv: single im2col matmul + GELU + residual ----
    K = POS_CONV_KERNEL
    pad = K // 2
    taps = []
    for k in range(K):                                 # static unroll, 8 taps
        delta = k - pad
        t = _shift_rows_up(h, delta)
        lo = max(0, -delta)
        hi = min(N, N - delta)
        if lo > 0 or hi < N:                           # zero wrapped rows
            t = jnp.where((rows_h >= lo) & (rows_h < hi), t, 0.0)
        taps.append(t)
    patch = jnp.concatenate(taps, axis=1)              # (N, K*H) lane concat
    h = h + jax.nn.gelu(dotf(patch, wpos_ref[...]) + pos_b, approximate=True)

    # ---- 5 x Wav2Vec2EncoderLayerStableLayerNorm (pre-LN) ----
    kmask = jax.lax.broadcasted_iota(jnp.int32, (N, N), 1) < s_real
    scale = HEAD_DIM ** -0.5
    for l in range(NUM_LAYERS_USED):                   # static unroll, 5 layers
        c = cvec_ref[l]                                # (8, 3H) stacked consts
        ln1_g = c[0:1, 0:H]; ln1_b = c[1:2, 0:H]
        ln2_g = c[2:3, 0:H]; ln2_b = c[3:4, 0:H]
        b_o = c[4:5, 0:H];   b_2 = c[5:6, 0:H]
        b_qkv = c[6:7, :]
        b_1 = c[7:8, 0:FFN_DIM]

        # -- self-attention: fused QKV matmul, heads merged into batched dots --
        hn = _ln(h, ln1_g, ln1_b)
        qkv = dotf(hn, wqkv_ref[l]) + b_qkv            # (N, 3H)
        q = qkv[:, 0:H] * scale
        kx = qkv[:, H:2 * H]
        vx = qkv[:, 2 * H:3 * H]
        qh = jnp.stack([q[:, i * HEAD_DIM:(i + 1) * HEAD_DIM]
                        for i in range(NUM_HEADS)], axis=0)        # (NH, N, Dh)
        kh = jnp.stack([kx[:, i * HEAD_DIM:(i + 1) * HEAD_DIM]
                        for i in range(NUM_HEADS)], axis=0)
        vh = jnp.stack([vx[:, i * HEAD_DIM:(i + 1) * HEAD_DIM]
                        for i in range(NUM_HEADS)], axis=0)
        sc = jnp.einsum('hqd,hkd->hqk', qh, kh,
                        preferred_element_type=f32)                # (NH, N, N)
        sc = jnp.where(kmask[None, :, :], sc, -1e30)   # mask padded key frames
        m = jnp.max(sc, axis=-1, keepdims=True)
        p = jnp.exp(sc - m)
        p = p * pl.reciprocal(jnp.sum(p, axis=-1, keepdims=True), approx=True)
        oh = jnp.einsum('hqk,hkd->hqd', p, vh,
                        preferred_element_type=f32)                # (NH, N, Dh)
        wo_l = wo_ref[l]
        attn = dotf(oh[0], wo_l[0:HEAD_DIM, :])        # head-merge folded into Wo
        for i in range(1, NUM_HEADS):
            attn = attn + dotf(oh[i], wo_l[i * HEAD_DIM:(i + 1) * HEAD_DIM, :])
        h = h + attn + b_o

        # -- feed-forward (GELU fused as epilogue of the first matmul) --
        hn = _ln(h, ln2_g, ln2_b)
        ff = jax.nn.gelu(dotf(hn, wff1_ref[l]) + b_1, approximate=True)
        h = h + dotf(ff, wff2_ref[l]) + b_2

    # ---- lane/sublane-dense output store: pad (N, H) -> (S_pad, 128) ----
    h = jnp.where(rows_h < s_real, h, 0.0)
    s_pad = out_ref.shape[1]
    h_out = out_ref.shape[2]
    if h_out > H:
        h = jnp.concatenate([h, jnp.zeros((N, h_out - H), f32)], axis=1)
    if s_pad > N:
        h = jnp.concatenate([h, jnp.zeros((s_pad - N, h_out), f32)], axis=0)
    out_ref[0] = h


# --------------------------- one-time weight packing ---------------------------
def pack_params(params):
    """Pack torch-layout params into a few lane-friendly arrays.  Runs ONCE at
    init, outside jit, so none of this work shows up in the forward pass."""
    cl = params["conv_layers"]

    # conv1 (Cin=1): (Cout, 1, 10) -> (10, Cout), then 5 host-padded polyphase
    # variants so every in-kernel matmul is tile-aligned and weights are only
    # indexed along the leading axis (no sub-(8,128) slicing in the kernel).
    w1 = jnp.transpose(cl[0]["w"], (2, 1, 0)).reshape(CONV_LAYERS[0][1], CONV_DIM)
    w1s = jnp.stack([
        jnp.pad(w1, ((0, 6), (0, 0))),           # phase 0 : x[:, 0:16]
        jnp.pad(w1, ((1, 5), (0, 0))),           # phase 1 : x[:, 4:20]
        jnp.pad(w1, ((6, 0), (0, 0))),           # phase 2 : x[:, 4:20]
        jnp.pad(w1[0:5], ((11, 0), (0, 0))),     # phase 3 head : x[:, 4:20]
        jnp.pad(w1[5:10], ((0, 11), (0, 0))),    # phase 3 tail : x_next[:, 0:16]
    ])
    # conv2 / conv3: (Cout, Cin, K) -> (K, Cin, Cout); taps index the lead axis.
    w2s = jnp.transpose(cl[1]["w"], (2, 1, 0))
    w3s = jnp.transpose(cl[2]["w"], (2, 1, 0))
    cconv = jnp.stack([cl[0]["b"], cl[0]["ln_g"], cl[0]["ln_b"],
                       cl[1]["b"], cl[1]["ln_g"], cl[1]["ln_b"],
                       cl[2]["b"], cl[2]["ln_g"], cl[2]["ln_b"],
                       params["fp_ln_g"], params["fp_ln_b"]])
    encc = jnp.stack([params["fp_b"], params["pos_b"]])

    # Grouped pos-conv weight (H, H//G, K) -> dense block-diagonal (K*H, H).
    H, K, G = HIDDEN, POS_CONV_KERNEL, POS_CONV_GROUPS
    gs = H // G
    pw = params["pos_w"]
    dense = []
    for k in range(K):
        groups = [jnp.pad(pw[g * gs:(g + 1) * gs, :, k].T,
                          ((0, 0), (g * gs, H - (g + 1) * gs)))
                  for g in range(G)]
        dense.append(jnp.concatenate(groups, axis=0))          # (H, H)
    wpos = jnp.stack(dense).reshape(K * H, H)

    lp = params["layers"]
    wqkv = jnp.stack([jnp.concatenate([p["wq"], p["wk"], p["wv"]], axis=1)
                      for p in lp])                             # (L, H, 3H)
    wo = jnp.stack([p["wo"] for p in lp])                       # (L, H, H)
    wff1 = jnp.stack([p["w1"] for p in lp])                     # (L, H, FFN)
    wff2 = jnp.stack([p["w2"] for p in lp])                     # (L, FFN, H)

    def row(v, width):
        return jnp.pad(v, (0, width - v.shape[0]))
    cvec = jnp.stack([
        jnp.stack([row(p["ln1_g"], 3 * H), row(p["ln1_b"], 3 * H),
                   row(p["ln2_g"], 3 * H), row(p["ln2_b"], 3 * H),
                   row(p["bo"], 3 * H), row(p["b2"], 3 * H),
                   jnp.concatenate([p["bq"], p["bk"], p["bv"]]),
                   row(p["b1"], 3 * H)])
        for p in lp])                                           # (L, 8, 3H)

    return (w1s, w2s, w3s, cconv, encc, params["fp_w"], wpos,
            wqkv, wo, wff1, wff2, cvec)


# ------------------------------ pallas_call wrapper ----------------------------
def xlsr_forward(packed, audio):
    """audio: (B, T) float32.  Returns Wav2Vec2Model(...).hidden_states[5]
    == output of transformer encoder layer index 4 (no final LayerNorm)."""
    (w1s, w2s, w3s, cconv, encc, fp_w, wpos,
     wqkv, wo, wff1, wff2, cvec) = packed

    B, T = audio.shape
    assert T % FRAME == 0 and T >= 2 * FRAME, "toy kernel expects T % 20 == 0"
    n_rows = T // FRAME
    s_real = n_rows - 1              # conv output length for this stride stack
    s_pad = ((n_rows + 7) // 8) * 8  # sublane-aligned padded sequence length
    audio_r = audio.reshape(B, n_rows, FRAME).astype(jnp.float32)
    s_arr = jnp.full((1,), s_real, jnp.int32)

    # NOTE: all weight blocks are grid-invariant; at these sizes (<1 MiB total)
    # default double-buffering is harmless, so pipeline_mode is left at default.
    grid_spec = pltpu.PrefetchScalarGridSpec(
        num_scalar_prefetch=1,
        grid=(B,),
        in_specs=[
            pl.BlockSpec((1, n_rows, FRAME), lambda b, s: (b, 0, 0)),
            pl.BlockSpec(w1s.shape, lambda b, s: (0, 0, 0)),
            pl.BlockSpec(w2s.shape, lambda b, s: (0, 0, 0)),
            pl.BlockSpec(w3s.shape, lambda b, s: (0, 0, 0)),
            pl.BlockSpec(cconv.shape, lambda b, s: (0, 0)),
            pl.BlockSpec(encc.shape, lambda b, s: (0, 0)),
            pl.BlockSpec(fp_w.shape, lambda b, s: (0, 0)),
            pl.BlockSpec(wpos.shape, lambda b, s: (0, 0)),
            pl.BlockSpec(wqkv.shape, lambda b, s: (0, 0, 0)),
            pl.BlockSpec(wo.shape, lambda b, s: (0, 0, 0)),
            pl.BlockSpec(wff1.shape, lambda b, s: (0, 0, 0)),
            pl.BlockSpec(wff2.shape, lambda b, s: (0, 0, 0)),
            pl.BlockSpec(cvec.shape, lambda b, s: (0, 0, 0)),
        ],
        out_specs=pl.BlockSpec((1, s_pad, H_OUT), lambda b, s: (b, 0, 0)),
    )

    out = pl.pallas_call(
        _xlsr_kernel,
        out_shape=jax.ShapeDtypeStruct((B, s_pad, H_OUT), jnp.float32),
        grid_spec=grid_spec,
        compiler_params=pltpu.CompilerParams(dimension_semantics=("parallel",)),
    )(s_arr, audio_r, w1s, w2s, w3s, cconv, encc, fp_w, wpos,
      wqkv, wo, wff1, wff2, cvec)

    return out[:, :s_real, :HIDDEN]


# --------------------------- pure-JAX reference (no Pallas) --------------------
def _reference_forward(params, audio):
    x = audio.astype(jnp.float32)
    mean = jnp.mean(x, axis=-1, keepdims=True)
    var = jnp.mean(jnp.square(x - mean), axis=-1, keepdims=True)
    x = (x - mean) / jnp.sqrt(var + WAVE_EPS)
    h = x[:, :, None]
    for lp, (_, kernel, stride) in zip(params["conv_layers"], CONV_LAYERS):
        B, L, Cin = h.shape
        Cout = lp["w"].shape[0]
        Lout = (L - kernel) // stride + 1
        idx = jnp.arange(Lout)[:, None] * stride + jnp.arange(kernel)[None, :]
        patches = h[:, idx, :].reshape(B, Lout, kernel * Cin)
        w2 = jnp.transpose(lp["w"], (2, 1, 0)).reshape(kernel * Cin, Cout)
        y = patches @ w2 + lp["b"]
        h = jax.nn.gelu(_ln(y, lp["ln_g"], lp["ln_b"]), approximate=True)
    h = _ln(h, params["fp_ln_g"], params["fp_ln_b"]) @ params["fp_w"] + params["fp_b"]
    B, S, H = h.shape
    K, G = POS_CONV_KERNEL, POS_CONV_GROUPS
    gs = H // G
    pad = K // 2
    hp = jnp.pad(h, ((0, 0), (pad, pad), (0, 0)))
    Lout = hp.shape[1] - K + 1
    idx = jnp.arange(Lout)[:, None] + jnp.arange(K)[None, :]
    outs = []
    for g in range(G):
        xg = hp[:, :, g * gs:(g + 1) * gs]
        w = params["pos_w"][g * gs:(g + 1) * gs]
        patches = xg[:, idx, :].reshape(B, Lout, K * gs)
        w2 = jnp.transpose(w, (2, 1, 0)).reshape(K * gs, gs)
        outs.append(patches @ w2 + params["pos_b"][g * gs:(g + 1) * gs])
    y = jnp.concatenate(outs, axis=-1)
    if K % 2 == 0:
        y = y[:, :-1, :]
    h = h + jax.nn.gelu(y, approximate=True)
    for p in params["layers"]:
        res = h
        hn = _ln(h, p["ln1_g"], p["ln1_b"])
        q = (hn @ p["wq"] + p["bq"]) * (HEAD_DIM ** -0.5)
        k = hn @ p["wk"] + p["bk"]
        v = hn @ p["wv"] + p["bv"]

        def heads(t):
            return t.reshape(B, S, NUM_HEADS, HEAD_DIM).transpose(0, 2, 1, 3)

        s = jnp.einsum("bhqd,bhkd->bhqk", heads(q), heads(k))
        pr = jax.nn.softmax(s, axis=-1)
        o = jnp.einsum("bhqk,bhkd->bhqd", pr, heads(v))
        o = o.transpose(0, 2, 1, 3).reshape(B, S, H)
        h = res + (o @ p["wo"] + p["bo"])
        hn = _ln(h, p["ln2_g"], p["ln2_b"])
        ff = jax.nn.gelu(hn @ p["w1"] + p["b1"], approximate=True)
        h = h + (ff @ p["w2"] + p["b2"])
    return h


# ------------------------ deterministic synthetic params ----------------------
def init_params(key):
    keys = iter(jax.random.split(key, 256))

    def w(shape, scale=0.02):
        return scale * jax.random.normal(next(keys), shape, jnp.float32)

    params = {}
    conv_layers = []
    cin = 1
    for (dim, kernel, _) in CONV_LAYERS:
        conv_layers.append({
            "w": w((dim, cin, kernel)),
            "b": jnp.zeros((dim,), jnp.float32),
            "ln_g": jnp.ones((dim,), jnp.float32),
            "ln_b": jnp.zeros((dim,), jnp.float32),
        })
        cin = dim
    params["conv_layers"] = conv_layers
    params["fp_ln_g"] = jnp.ones((CONV_DIM,), jnp.float32)
    params["fp_ln_b"] = jnp.zeros((CONV_DIM,), jnp.float32)
    params["fp_w"] = w((CONV_DIM, HIDDEN))       # stored (in, out)
    params["fp_b"] = jnp.zeros((HIDDEN,), jnp.float32)
    params["pos_w"] = w((HIDDEN, HIDDEN // POS_CONV_GROUPS, POS_CONV_KERNEL))
    params["pos_b"] = jnp.zeros((HIDDEN,), jnp.float32)
    layers = []
    for _ in range(NUM_LAYERS_USED):
        layers.append({
            "ln1_g": jnp.ones((HIDDEN,), jnp.float32),
            "ln1_b": jnp.zeros((HIDDEN,), jnp.float32),
            "wq": w((HIDDEN, HIDDEN)), "bq": jnp.zeros((HIDDEN,), jnp.float32),
            "wk": w((HIDDEN, HIDDEN)), "bk": jnp.zeros((HIDDEN,), jnp.float32),
            "wv": w((HIDDEN, HIDDEN)), "bv": jnp.zeros((HIDDEN,), jnp.float32),
            "wo": w((HIDDEN, HIDDEN)), "bo": jnp.zeros((HIDDEN,), jnp.float32),
            "ln2_g": jnp.ones((HIDDEN,), jnp.float32),
            "ln2_b": jnp.zeros((HIDDEN,), jnp.float32),
            "w1": w((HIDDEN, FFN_DIM)), "b1": jnp.zeros((FFN_DIM,), jnp.float32),
            "w2": w((FFN_DIM, HIDDEN)), "b2": jnp.zeros((HIDDEN,), jnp.float32),
        })
    params["layers"] = layers
    return params


if __name__ == "__main__":
    key = jax.random.PRNGKey(0)
    pkey, akey = jax.random.split(key)
    params = init_params(pkey)
    packed = pack_params(params)                 # once, outside the jitted fwd

    B, T = 2, 400                                # 400 samples -> 19 frames
    audio = jax.random.normal(akey, (B, T), jnp.float32)

    fwd = jax.jit(xlsr_forward)
    out = jax.block_until_ready(fwd(packed, audio))

    assert out.shape == (B, 19, HIDDEN), out.shape
    assert bool(jnp.all(jnp.isfinite(out)))

    # Validate the fused kernel against a pure-JAX reference of the same model.
    ref = _reference_forward(params, audio)
    err = float(jnp.max(jnp.abs(out - ref)))
    assert err < 5e-3, f"kernel/reference mismatch: max abs err = {err}"

    print("KERNEL_OK")
</pallas_src>

<mosaic_0001>
module attributes {stable_mosaic.version = 11 : i64} {
  func.func @_xlsr_kernel(%arg0: i32, %arg1: memref<1xi32, #tpu.memory_space<smem>>, %arg2: memref<1x20x20xf32, #tpu.memory_space<vmem>>, %arg3: memref<5x16x16xf32, #tpu.memory_space<vmem>>, %arg4: memref<3x16x16xf32, #tpu.memory_space<vmem>>, %arg5: memref<2x16x16xf32, #tpu.memory_space<vmem>>, %arg6: memref<11x16xf32, #tpu.memory_space<vmem>>, %arg7: memref<2x32xf32, #tpu.memory_space<vmem>>, %arg8: memref<16x32xf32, #tpu.memory_space<vmem>>, %arg9: memref<256x32xf32, #tpu.memory_space<vmem>>, %arg10: memref<5x32x96xf32, #tpu.memory_space<vmem>>, %arg11: memref<5x32x32xf32, #tpu.memory_space<vmem>>, %arg12: memref<5x32x64xf32, #tpu.memory_space<vmem>>, %arg13: memref<5x64x32xf32, #tpu.memory_space<vmem>>, %arg14: memref<5x8x96xf32, #tpu.memory_space<vmem>>, %arg15: memref<1x24x128xf32, #tpu.memory_space<vmem>>) attributes {dimension_semantics = [#tpu.dimension_semantics<parallel>], iteration_bounds = array<i64: 2>, scalar_prefetch = 1 : i64, scratch_operands = 0 : i64, tpu.core_type = #tpu.core_type<tc>, window_params = [{transform_indices = @transform_0, window_bounds = array<i64: 1, 20, 20>}, {pipeline_mode = #tpu.pipeline_mode<synchronous>, transform_indices = @transform_1, window_bounds = array<i64: 5, 16, 16>}, {pipeline_mode = #tpu.pipeline_mode<synchronous>, transform_indices = @transform_2, window_bounds = array<i64: 3, 16, 16>}, {pipeline_mode = #tpu.pipeline_mode<synchronous>, transform_indices = @transform_3, window_bounds = array<i64: 2, 16, 16>}, {pipeline_mode = #tpu.pipeline_mode<synchronous>, transform_indices = @transform_4, window_bounds = array<i64: 11, 16>}, {pipeline_mode = #tpu.pipeline_mode<synchronous>, transform_indices = @transform_5, window_bounds = array<i64: 2, 32>}, {pipeline_mode = #tpu.pipeline_mode<synchronous>, transform_indices = @transform_6, window_bounds = array<i64: 16, 32>}, {pipeline_mode = #tpu.pipeline_mode<synchronous>, transform_indices = @transform_7, window_bounds = array<i64: 256, 32>}, {pipeline_mode = #tpu.pipeline_mode<synchronous>, transform_indices = @transform_8, window_bounds = array<i64: 5, 32, 96>}, {pipeline_mode = #tpu.pipeline_mode<synchronous>, transform_indices = @transform_9, window_bounds = array<i64: 5, 32, 32>}, {pipeline_mode = #tpu.pipeline_mode<synchronous>, transform_indices = @transform_10, window_bounds = array<i64: 5, 32, 64>}, {pipeline_mode = #tpu.pipeline_mode<synchronous>, transform_indices = @transform_11, window_bounds = array<i64: 5, 64, 32>}, {pipeline_mode = #tpu.pipeline_mode<synchronous>, transform_indices = @transform_12, window_bounds = array<i64: 5, 8, 96>}, {transform_indices = @transform_13, window_bounds = array<i64: 1, 24, 128>}]} {
    %c0 = arith.constant 0 : index
    %0 = memref.load %arg1[%c0] : memref<1xi32, #tpu.memory_space<smem>>
    %c0_0 = arith.constant 0 : index
    %c0_1 = arith.constant 0 : index
    %c0_2 = arith.constant 0 : index
    %1 = vector.load %arg2[%c0_0, %c0_1, %c0_2] : memref<1x20x20xf32, #tpu.memory_space<vmem>>, vector<1x20x20xf32>
    %2 = vector.shape_cast %1 : vector<1x20x20xf32> to vector<20x20xf32>
    %cst = arith.constant dense<0.000000e+00> : vector<20xf32>
    %3 = vector.multi_reduction <add>, %2, %cst [1] : vector<20x20xf32> to vector<20xf32>
    %4 = vector.shape_cast %3 : vector<20xf32> to vector<20x1xf32>
    %cst_3 = arith.constant dense<0.000000e+00> : vector<1xf32>
    %5 = vector.multi_reduction <add>, %4, %cst_3 [0] : vector<20x1xf32> to vector<1xf32>
    %6 = vector.shape_cast %5 : vector<1xf32> to vector<1x1xf32>
    %cst_4 = arith.constant 4.000000e+02 : f32
    %7 = vector.broadcast %cst_4 : f32 to vector<1x1xf32>
    %8 = arith.divf %6, %7 : vector<1x1xf32>
    %9 = vector.broadcast %8 : vector<1x1xf32> to vector<20x20xf32>
    %10 = arith.subf %2, %9 : vector<20x20xf32>
    %11 = arith.mulf %10, %10 : vector<20x20xf32>
    %cst_5 = arith.constant dense<0.000000e+00> : vector<20xf32>
    %12 = vector.multi_reduction <add>, %11, %cst_5 [1] : vector<20x20xf32> to vector<20xf32>
    %13 = vector.shape_cast %12 : vector<20xf32> to vector<20x1xf32>
    %cst_6 = arith.constant dense<0.000000e+00> : vector<1xf32>
    %14 = vector.multi_reduction <add>, %13, %cst_6 [0] : vector<20x1xf32> to vector<1xf32>
    %15 = vector.shape_cast %14 : vector<1xf32> to vector<1x1xf32>
    %cst_7 = arith.constant 4.000000e+02 : f32
    %16 = vector.broadcast %cst_7 : f32 to vector<1x1xf32>
    %17 = arith.divf %15, %16 : vector<1x1xf32>
    %cst_8 = arith.constant 1.000000e-07 : f32
    %18 = vector.broadcast %cst_8 : f32 to vector<1x1xf32>
    %19 = arith.addf %17, %18 : vector<1x1xf32>
    %20 = math.rsqrt %19 : vector<1x1xf32>
    %21 = vector.broadcast %20 : vector<1x1xf32> to vector<20x20xf32>
    %22 = arith.mulf %10, %21 : vector<20x20xf32>
    %c0_9 = arith.constant 0 : index
    %c0_10 = arith.constant 0 : index
    %23 = vector.load %arg6[%c0_9, %c0_10] : memref<11x16xf32, #tpu.memory_space<vmem>>, vector<1x16xf32>
    %c1 = arith.constant 1 : index
    %c0_11 = arith.constant 0 : index
    %24 = vector.load %arg6[%c1, %c0_11] : memref<11x16xf32, #tpu.memory_space<vmem>>, vector<1x16xf32>
    %c2 = arith.constant 2 : index
    %c0_12 = arith.constant 0 : index
    %25 = vector.load %arg6[%c2, %c0_12] : memref<11x16xf32, #tpu.memory_space<vmem>>, vector<1x16xf32>
    %c3 = arith.constant 3 : index
    %c0_13 = arith.constant 0 : index
    %26 = vector.load %arg6[%c3, %c0_13] : memref<11x16xf32, #tpu.memory_space<vmem>>, vector<1x16xf32>
    %c4 = arith.constant 4 : index
    %c0_14 = arith.constant 0 : index
    %27 = vector.load %arg6[%c4, %c0_14] : memref<11x16xf32, #tpu.memory_space<vmem>>, vector<1x16xf32>
    %c5 = arith.constant 5 : index
    %c0_15 = arith.constant 0 : index
    %28 = vector.load %arg6[%c5, %c0_15] : memref<11x16xf32, #tpu.memory_space<vmem>>, vector<1x16xf32>
    %c6 = arith.constant 6 : index
    %c0_16 = arith.constant 0 : index
    %29 = vector.load %arg6[%c6, %c0_16] : memref<11x16xf32, #tpu.memory_space<vmem>>, vector<1x16xf32>
    %c7 = arith.constant 7 : index
    %c0_17 = arith.constant 0 : index
    %30 = vector.load %arg6[%c7, %c0_17] : memref<11x16xf32, #tpu.memory_space<vmem>>, vector<1x16xf32>
    %c8 = arith.constant 8 : index
    %c0_18 = arith.constant 0 : index
    %31 = vector.load %arg6[%c8, %c0_18] : memref<11x16xf32, #tpu.memory_space<vmem>>, vector<1x16xf32>
    %c9 = arith.constant 9 : index
    %c0_19 = arith.constant 0 : index
    %32 = vector.load %arg6[%c9, %c0_19] : memref<11x16xf32, #tpu.memory_space<vmem>>, vector<1x16xf32>
    %c10 = arith.constant 10 : index
    %c0_20 = arith.constant 0 : index
    %33 = vector.load %arg6[%c10, %c0_20] : memref<11x16xf32, #tpu.memory_space<vmem>>, vector<1x16xf32>
    %34 = vector.extract_strided_slice %22 {offsets = [0, 0], sizes = [20, 16], strides = [1, 1]} : vector<20x20xf32> to vector<20x16xf32>
    %35 = vector.extract_strided_slice %22 {offsets = [0, 4], sizes = [20, 16], strides = [1, 1]} : vector<20x20xf32> to vector<20x16xf32>
    %c19_i32 = arith.constant 19 : i32
    %36 = tpu.dynamic_rotate %22 by %c19_i32 dim 0 : vector<20x20xf32>, i32 -> vector<20x20xf32>
    %37 = vector.extract_strided_slice %36 {offsets = [0, 0], sizes = [20, 16], strides = [1, 1]} : vector<20x20xf32> to vector<20x16xf32>
    %c0_21 = arith.constant 0 : index
    %c0_22 = arith.constant 0 : index
    %c0_23 = arith.constant 0 : index
    %38 = vector.load %arg3[%c0_21, %c0_22, %c0_23] : memref<5x16x16xf32, #tpu.memory_space<vmem>>, vector<1x16x16xf32>
    %39 = vector.shape_cast %38 : vector<1x16x16xf32> to vector<16x16xf32>
    %cst_24 = arith.constant dense<0.000000e+00> : vector<20x16xf32>
    %40 = tpu.matmul %34, %39, %cst_24 {dimension_numbers = #tpu.dot_dimension_numbers<[1], [0], [0], [1], [0, 0, 1, 1], [], []>} : vector<20x16xf32>, vector<16x16xf32>, vector<20x16xf32> -> vector<20x16xf32>
    %41 = vector.broadcast %23 : vector<1x16xf32> to vector<20x16xf32>
    %42 = arith.addf %40, %41 : vector<20x16xf32>
    %cst_25 = arith.constant dense<0.000000e+00> : vector<20xf32>
    %43 = vector.multi_reduction <add>, %42, %cst_25 [1] : vector<20x16xf32> to vector<20xf32>
    %44 = vector.shape_cast %43 : vector<20xf32> to vector<20x1xf32>
    %cst_26 = arith.constant 1.600000e+01 : f32
    %45 = vector.broadcast %cst_26 : f32 to vector<20x1xf32>
    %46 = arith.divf %44, %45 : vector<20x1xf32>
    %47 = vector.broadcast %46 : vector<20x1xf32> to vector<20x16xf32>
    %48 = arith.subf %42, %47 : vector<20x16xf32>
    %49 = arith.mulf %48, %48 : vector<20x16xf32>
    %cst_27 = arith.constant dense<0.000000e+00> : vector<20xf32>
    %50 = vector.multi_reduction <add>, %49, %cst_27 [1] : vector<20x16xf32> to vector<20xf32>
    %51 = vector.shape_cast %50 : vector<20xf32> to vector<20x1xf32>
    %cst_28 = arith.constant 1.600000e+01 : f32
    %52 = vector.broadcast %cst_28 : f32 to vector<20x1xf32>
    %53 = arith.divf %51, %52 : vector<20x1xf32>
    %54 = vector.broadcast %46 : vector<20x1xf32> to vector<20x16xf32>
    %55 = arith.subf %42, %54 : vector<20x16xf32>
    %cst_29 = arith.constant 9.99999974E-6 : f32
    %56 = vector.broadcast %cst_29 : f32 to vector<20x1xf32>
    %57 = arith.addf %53, %56 : vector<20x1xf32>
    %58 = math.rsqrt %57 : vector<20x1xf32>
    %59 = vector.broadcast %58 : vector<20x1xf32> to vector<20x16xf32>
    %60 = arith.mulf %55, %59 : vector<20x16xf32>
    %61 = vector.broadcast %24 : vector<1x16xf32> to vector<20x16xf32>
    %62 = arith.mulf %60, %61 : vector<20x16xf32>
    %63 = vector.broadcast %25 : vector<1x16xf32> to vector<20x16xf32>
    %64 = arith.addf %62, %63 : vector<20x16xf32>
    %65 = arith.mulf %64, %64 : vector<20x16xf32>
    %66 = arith.mulf %64, %65 : vector<20x16xf32>
    %cst_30 = arith.constant 4.471500e-02 : f32
    %67 = vector.broadcast %cst_30 : f32 to vector<20x16xf32>
    %68 = arith.mulf %67, %66 : vector<20x16xf32>
    %69 = arith.addf %64, %68 : vector<20x16xf32>
    %cst_31 = arith.constant 0.797884583 : f32
    %70 = vector.broadcast %cst_31 : f32 to vector<20x16xf32>
    %71 = arith.mulf %70, %69 : vector<20x16xf32>
    %72 = math.tanh %71 : vector<20x16xf32>
    %cst_32 = arith.constant 1.000000e+00 : f32
    %73 = vector.broadcast %cst_32 : f32 to vector<20x16xf32>
    %74 = arith.addf %73, %72 : vector<20x16xf32>
    %cst_33 = arith.constant 5.000000e-01 : f32
    %75 = vector.broadcast %cst_33 : f32 to vector<20x16xf32>
    %76 = arith.mulf %75, %74 : vector<20x16xf32>
    %77 = arith.mulf %64, %76 : vector<20x16xf32>
    %c1_34 = arith.constant 1 : index
    %c0_35 = arith.constant 0 : index
    %c0_36 = arith.constant 0 : index
    %78 = vector.load %arg3[%c1_34, %c0_35, %c0_36] : memref<5x16x16xf32, #tpu.memory_space<vmem>>, vector<1x16x16xf32>
    %79 = vector.shape_cast %78 : vector<1x16x16xf32> to vector<16x16xf32>
    %cst_37 = arith.constant dense<0.000000e+00> : vector<20x16xf32>
    %80 = tpu.matmul %35, %79, %cst_37 {dimension_numbers = #tpu.dot_dimension_numbers<[1], [0], [0], [1], [0, 0, 1, 1], [], []>} : vector<20x16xf32>, vector<16x16xf32>, vector<20x16xf32> -> vector<20x16xf32>
    %81 = vector.broadcast %23 : vector<1x16xf32> to vector<20x16xf32>
    %82 = arith.addf %80, %81 : vector<20x16xf32>
    %cst_38 = arith.constant dense<0.000000e+00> : vector<20xf32>
    %83 = vector.multi_reduction <add>, %82, %cst_38 [1] : vector<20x16xf32> to vector<20xf32>
    %84 = vector.shape_cast %83 : vector<20xf32> to vector<20x1xf32>
    %cst_39 = arith.constant 1.600000e+01 : f32
    %85 = vector.broadcast %cst_39 : f32 to vector<20x1xf32>
    %86 = arith.divf %84, %85 : vector<20x1xf32>
    %87 = vector.broadcast %86 : vector<20x1xf32> to vector<20x16xf32>
    %88 = arith.subf %82, %87 : vector<20x16xf32>
    %89 = arith.mulf %88, %88 : vector<20x16xf32>
    %cst_40 = arith.constant dense<0.000000e+00> : vector<20xf32>
    %90 = vector.multi_reduction <add>, %89, %cst_40 [1] : vector<20x16xf32> to vector<20xf32>
    %91 = vector.shape_cast %90 : vector<20xf32> to vector<20x1xf32>
    %cst_41 = arith.constant 1.600000e+01 : f32
    %92 = vector.broadcast %cst_41 : f32 to vector<20x1xf32>
    %93 = arith.divf %91, %92 : vector<20x1xf32>
    %94 = vector.broadcast %86 : vector<20x1xf32> to vector<20x16xf32>
    %95 = arith.subf %82, %94 : vector<20x16xf32>
    %cst_42 = arith.constant 9.99999974E-6 : f32
    %96 = vector.broadcast %cst_42 : f32 to vector<20x1xf32>
    %97 = arith.addf %93, %96 : vector<20x1xf32>
    %98 = math.rsqrt %97 : vector<20x1xf32>
    %99 = vector.broadcast %98 : vector<20x1xf32> to vector<20x16xf32>
    %100 = arith.mulf %95, %99 : vector<20x16xf32>
    %101 = vector.broadcast %24 : vector<1x16xf32> to vector<20x16xf32>
    %102 = arith.mulf %100, %101 : vector<20x16xf32>
    %103 = vector.broadcast %25 : vector<1x16xf32> to vector<20x16xf32>
    %104 = arith.addf %102, %103 : vector<20x16xf32>
    %105 = arith.mulf %104, %104 : vector<20x16xf32>
    %106 = arith.mulf %104, %105 : vector<20x16xf32>
    %cst_43 = arith.constant 4.471500e-02 : f32
    %107 = vector.broadcast %cst_43 : f32 to vector<20x16xf32>
    %108 = arith.mulf %107, %106 : vector<20x16xf32>
    %109 = arith.addf %104, %108 : vector<20x16xf32>
    %cst_44 = arith.constant 0.797884583 : f32
    %110 = vector.broadcast %cst_44 : f32 to vector<20x16xf32>
    %111 = arith.mulf %110, %109 : vector<20x16xf32>
    %112 = math.tanh %111 : vector<20x16xf32>
    %cst_45 = arith.constant 1.000000e+00 : f32
    %113 = vector.broadcast %cst_45 : f32 to vector<20x16xf32>
    %114 = arith.addf %113, %112 : vector<20x16xf32>
    %cst_46 = arith.constant 5.000000e-01 : f32
    %115 = vector.broadcast %cst_46 : f32 to vector<20x16xf32>
    %116 = arith.mulf %115, %114 : vector<20x16xf32>
    %117 = arith.mulf %104, %116 : vector<20x16xf32>
    %c2_47 = arith.constant 2 : index
    %c0_48 = arith.constant 0 : index
    %c0_49 = arith.constant 0 : index
    %118 = vector.load %arg3[%c2_47, %c0_48, %c0_49] : memref<5x16x16xf32, #tpu.memory_space<vmem>>, vector<1x16x16xf32>
    %119 = vector.shape_cast %118 : vector<1x16x16xf32> to vector<16x16xf32>
    %cst_50 = arith.constant dense<0.000000e+00> : vector<20x16xf32>
    %120 = tpu.matmul %35, %119, %cst_50 {dimension_numbers = #tpu.dot_dimension_numbers<[1], [0], [0], [1], [0, 0, 1, 1], [], []>} : vector<20x16xf32>, vector<16x16xf32>, vector<20x16xf32> -> vector<20x16xf32>
    %121 = vector.broadcast %23 : vector<1x16xf32> to vector<20x16xf32>
    %122 = arith.addf %120, %121 : vector<20x16xf32>
    %cst_51 = arith.constant dense<0.000000e+00> : vector<20xf32>
    %123 = vector.multi_reduction <add>, %122, %cst_51 [1] : vector<20x16xf32> to vector<20xf32>
    %124 = vector.shape_cast %123 : vector<20xf32> to vector<20x1xf32>
    %cst_52 = arith.constant 1.600000e+01 : f32
    %125 = vector.broadcast %cst_52 : f32 to vector<20x1xf32>
    %126 = arith.divf %124, %125 : vector<20x1xf32>
    %127 = vector.broadcast %126 : vector<20x1xf32> to vector<20x16xf32>
    %128 = arith.subf %122, %127 : vector<20x16xf32>
    %129 = arith.mulf %128, %128 : vector<20x16xf32>
    %cst_53 = arith.constant dense<0.000000e+00> : vector<20xf32>
    %130 = vector.multi_reduction <add>, %129, %cst_53 [1] : vector<20x16xf32> to vector<20xf32>
    %131 = vector.shape_cast %130 : vector<20xf32> to vector<20x1xf32>
    %cst_54 = arith.constant 1.600000e+01 : f32
    %132 = vector.broadcast %cst_54 : f32 to vector<20x1xf32>
    %133 = arith.divf %131, %132 : vector<20x1xf32>
    %134 = vector.broadcast %126 : vector<20x1xf32> to vector<20x16xf32>
    %135 = arith.subf %122, %134 : vector<20x16xf32>
    %cst_55 = arith.constant 9.99999974E-6 : f32
    %136 = vector.broadcast %cst_55 : f32 to vector<20x1xf32>
    %137 = arith.addf %133, %136 : vector<20x1xf32>
    %138 = math.rsqrt %137 : vector<20x1xf32>
    %139 = vector.broadcast %138 : vector<20x1xf32> to vector<20x16xf32>
    %140 = arith.mulf %135, %139 : vector<20x16xf32>
    %141 = vector.broadcast %24 : vector<1x16xf32> to vector<20x16xf32>
    %142 = arith.mulf %140, %141 : vector<20x16xf32>
    %143 = vector.broadcast %25 : vector<1x16xf32> to vector<20x16xf32>
    %144 = arith.addf %142, %143 : vector<20x16xf32>
    %145 = arith.mulf %144, %144 : vector<20x16xf32>
    %146 = arith.mulf %144, %145 : vector<20x16xf32>
    %cst_56 = arith.constant 4.471500e-02 : f32
    %147 = vector.broadcast %cst_56 : f32 to vector<20x16xf32>
    %148 = arith.mulf %147, %146 : vector<20x16xf32>
    %149 = arith.addf %144, %148 : vector<20x16xf32>
    %cst_57 = arith.constant 0.797884583 : f32
    %150 = vector.broadcast %cst_57 : f32 to vector<20x16xf32>
    %151 = arith.mulf %150, %149 : vector<20x16xf32>
    %152 = math.tanh %151 : vector<20x16xf32>
    %cst_58 = arith.constant 1.000000e+00 : f32
    %153 = vector.broadcast %cst_58 : f32 to vector<20x16xf32>
    %154 = arith.addf %153, %152 : vector<20x16xf32>
    %cst_59 = arith.constant 5.000000e-01 : f32
    %155 = vector.broadcast %cst_59 : f32 to vector<20x16xf32>
    %156 = arith.mulf %155, %154 : vector<20x16xf32>
    %157 = arith.mulf %144, %156 : vector<20x16xf32>
    %c3_60 = arith.constant 3 : index
    %c0_61 = arith.constant 0 : index
    %c0_62 = arith.constant 0 : index
    %158 = vector.load %arg3[%c3_60, %c0_61, %c0_62] : memref<5x16x16xf32, #tpu.memory_space<vmem>>, vector<1x16x16xf32>
    %159 = vector.shape_cast %158 : vector<1x16x16xf32> to vector<16x16xf32>
    %cst_63 = arith.constant dense<0.000000e+00> : vector<20x16xf32>
    %160 = tpu.matmul %35, %159, %cst_63 {dimension_numbers = #tpu.dot_dimension_numbers<[1], [0], [0], [1], [0, 0, 1, 1], [], []>} : vector<20x16xf32>, vector<16x16xf32>, vector<20x16xf32> -> vector<20x16xf32>
    %c4_64 = arith.constant 4 : index
    %c0_65 = arith.constant 0 : index
    %c0_66 = arith.constant 0 : index
    %161 = vector.load %arg3[%c4_64, %c0_65, %c0_66] : memref<5x16x16xf32, #tpu.memory_space<vmem>>, vector<1x16x16xf32>
    %162 = vector.shape_cast %161 : vector<1x16x16xf32> to vector<16x16xf32>
    %cst_67 = arith.constant dense<0.000000e+00> : vector<20x16xf32>
    %163 = tpu.matmul %37, %162, %cst_67 {dimension_numbers = #tpu.dot_dimension_numbers<[1], [0], [0], [1], [0, 0, 1, 1], [], []>} : vector<20x16xf32>, vector<16x16xf32>, vector<20x16xf32> -> vector<20x16xf32>
    %164 = arith.addf %160, %163 : vector<20x16xf32>
    %165 = vector.broadcast %23 : vector<1x16xf32> to vector<20x16xf32>
    %166 = arith.addf %164, %165 : vector<20x16xf32>
    %cst_68 = arith.constant dense<0.000000e+00> : vector<20xf32>
    %167 = vector.multi_reduction <add>, %166, %cst_68 [1] : vector<20x16xf32> to vector<20xf32>
    %168 = vector.shape_cast %167 : vector<20xf32> to vector<20x1xf32>
    %cst_69 = arith.constant 1.600000e+01 : f32
    %169 = vector.broadcast %cst_69 : f32 to vector<20x1xf32>
    %170 = arith.divf %168, %169 : vector<20x1xf32>
    %171 = vector.broadcast %170 : vector<20x1xf32> to vector<20x16xf32>
    %172 = arith.subf %166, %171 : vector<20x16xf32>
    %173 = arith.mulf %172, %172 : vector<20x16xf32>
    %cst_70 = arith.constant dense<0.000000e+00> : vector<20xf32>
    %174 = vector.multi_reduction <add>, %173, %cst_70 [1] : vector<20x16xf32> to vector<20xf32>
    %175 = vector.shape_cast %174 : vector<20xf32> to vector<20x1xf32>
    %cst_71 = arith.constant 1.600000e+01 : f32
    %176 = vector.broadcast %cst_71 : f32 to vector<20x1xf32>
    %177 = arith.divf %175, %176 : vector<20x1xf32>
    %178 = vector.broadcast %170 : vector<20x1xf32> to vector<20x16xf32>
    %179 = arith.subf %166, %178 : vector<20x16xf32>
    %cst_72 = arith.constant 9.99999974E-6 : f32
    %180 = vector.broadcast %cst_72 : f32 to vector<20x1xf32>
    %181 = arith.addf %177, %180 : vector<20x1xf32>
    %182 = math.rsqrt %181 : vector<20x1xf32>
    %183 = vector.broadcast %182 : vector<20x1xf32> to vector<20x16xf32>
    %184 = arith.mulf %179, %183 : vector<20x16xf32>
    %185 = vector.broadcast %24 : vector<1x16xf32> to vector<20x16xf32>
    %186 = arith.mulf %184, %185 : vector<20x16xf32>
    %187 = vector.broadcast %25 : vector<1x16xf32> to vector<20x16xf32>
    %188 = arith.addf %186, %187 : vector<20x16xf32>
    %189 = arith.mulf %188, %188 : vector<20x16xf32>
    %190 = arith.mulf %188, %189 : vector<20x16xf32>
    %cst_73 = arith.constant 4.471500e-02 : f32
    %191 = vector.broadcast %cst_73 : f32 to vector<20x16xf32>
    %192 = arith.mulf %191, %190 : vector<20x16xf32>
    %193 = arith.addf %188, %192 : vector<20x16xf32>
    %cst_74 = arith.constant 0.797884583 : f32
    %194 = vector.broadcast %cst_74 : f32 to vector<20x16xf32>
    %195 = arith.mulf %194, %193 : vector<20x16xf32>
    %196 = math.tanh %195 : vector<20x16xf32>
    %cst_75 = arith.constant 1.000000e+00 : f32
    %197 = vector.broadcast %cst_75 : f32 to vector<20x16xf32>
    %198 = arith.addf %197, %196 : vector<20x16xf32>
    %cst_76 = arith.constant 5.000000e-01 : f32
    %199 = vector.broadcast %cst_76 : f32 to vector<20x16xf32>
    %200 = arith.mulf %199, %198 : vector<20x16xf32>
    %201 = arith.mulf %188, %200 : vector<20x16xf32>
    %c19_i32_77 = arith.constant 19 : i32
    %202 = tpu.dynamic_rotate %77 by %c19_i32_77 dim 0 : vector<20x16xf32>, i32 -> vector<20x16xf32>
    %c0_78 = arith.constant 0 : index
    %c0_79 = arith.constant 0 : index
    %c0_80 = arith.constant 0 : index
    %203 = vector.load %arg4[%c0_78, %c0_79, %c0_80] : memref<3x16x16xf32, #tpu.memory_space<vmem>>, vector<1x16x16xf32>
    %204 = vector.shape_cast %203 : vector<1x16x16xf32> to vector<16x16xf32>
    %cst_81 = arith.constant dense<0.000000e+00> : vector<20x16xf32>
    %205 = tpu.matmul %77, %204, %cst_81 {dimension_numbers = #tpu.dot_dimension_numbers<[1], [0], [0], [1], [0, 0, 1, 1], [], []>} : vector<20x16xf32>, vector<16x16xf32>, vector<20x16xf32> -> vector<20x16xf32>
    %c1_82 = arith.constant 1 : index
    %c0_83 = arith.constant 0 : index
    %c0_84 = arith.constant 0 : index
    %206 = vector.load %arg4[%c1_82, %c0_83, %c0_84] : memref<3x16x16xf32, #tpu.memory_space<vmem>>, vector<1x16x16xf32>
    %207 = vector.shape_cast %206 : vector<1x16x16xf32> to vector<16x16xf32>
    %cst_85 = arith.constant dense<0.000000e+00> : vector<20x16xf32>
    %208 = tpu.matmul %117, %207, %cst_85 {dimension_numbers = #tpu.dot_dimension_numbers<[1], [0], [0], [1], [0, 0, 1, 1], [], []>} : vector<20x16xf32>, vector<16x16xf32>, vector<20x16xf32> -> vector<20x16xf32>
    %209 = arith.addf %205, %208 : vector<20x16xf32>
    %c2_86 = arith.constant 2 : index
    %c0_87 = arith.constant 0 : index
    %c0_88 = arith.constant 0 : index
    %210 = vector.load %arg4[%c2_86, %c0_87, %c0_88] : memref<3x16x16xf32, #tpu.memory_space<vmem>>, vector<1x16x16xf32>
    %211 = vector.shape_cast %210 : vector<1x16x16xf32> to vector<16x16xf32>
    %cst_89 = arith.constant dense<0.000000e+00> : vector<20x16xf32>
    %212 = tpu.matmul %157, %211, %cst_89 {dimension_numbers = #tpu.dot_dimension_numbers<[1], [0], [0], [1], [0, 0, 1, 1], [], []>} : vector<20x16xf32>, vector<16x16xf32>, vector<20x16xf32> -> vector<20x16xf32>
    %213 = arith.addf %209, %212 : vector<20x16xf32>
    %214 = vector.broadcast %26 : vector<1x16xf32> to vector<20x16xf32>
    %215 = arith.addf %213, %214 : vector<20x16xf32>
    %cst_90 = arith.constant dense<0.000000e+00> : vector<20xf32>
    %216 = vector.multi_reduction <add>, %215, %cst_90 [1] : vector<20x16xf32> to vector<20xf32>
    %217 = vector.shape_cast %216 : vector<20xf32> to vector<20x1xf32>
    %cst_91 = arith.constant 1.600000e+01 : f32
    %218 = vector.broadcast %cst_91 : f32 to vector<20x1xf32>
    %219 = arith.divf %217, %218 : vector<20x1xf32>
    %220 = vector.broadcast %219 : vector<20x1xf32> to vector<20x16xf32>
    %221 = arith.subf %215, %220 : vector<20x16xf32>
    %222 = arith.mulf %221, %221 : vector<20x16xf32>
    %cst_92 = arith.constant dense<0.000000e+00> : vector<20xf32>
    %223 = vector.multi_reduction <add>, %222, %cst_92 [1] : vector<20x16xf32> to vector<20xf32>
    %224 = vector.shape_cast %223 : vector<20xf32> to vector<20x1xf32>
    %cst_93 = arith.constant 1.600000e+01 : f32
    %225 = vector.broadcast %cst_93 : f32 to vector<20x1xf32>
    %226 = arith.divf %224, %225 : vector<20x1xf32>
    %227 = vector.broadcast %219 : vector<20x1xf32> to vector<20x16xf32>
    %228 = arith.subf %215, %227 : vector<20x16xf32>
    %cst_94 = arith.constant 9.99999974E-6 : f32
    %229 = vector.broadcast %cst_94 : f32 to vector<20x1xf32>
    %230 = arith.addf %226, %229 : vector<20x1xf32>
    %231 = math.rsqrt %230 : vector<20x1xf32>
    %232 = vector.broadcast %231 : vector<20x1xf32> to vector<20x16xf32>
    %233 = arith.mulf %228, %232 : vector<20x16xf32>
    %234 = vector.broadcast %27 : vector<1x16xf32> to vector<20x16xf32>
    %235 = arith.mulf %233, %234 : vector<20x16xf32>
    %236 = vector.broadcast %28 : vector<1x16xf32> to vector<20x16xf32>
    %237 = arith.addf %235, %236 : vector<20x16xf32>
    %238 = arith.mulf %237, %237 : vector<20x16xf32>
    %239 = arith.mulf %237, %238 : vector<20x16xf32>
    %cst_95 = arith.constant 4.471500e-02 : f32
    %240 = vector.broadcast %cst_95 : f32 to vector<20x16xf32>
    %241 = arith.mulf %240, %239 : vector<20x16xf32>
    %242 = arith.addf %237, %241 : vector<20x16xf32>
    %cst_96 = arith.constant 0.797884583 : f32
    %243 = vector.broadcast %cst_96 : f32 to vector<20x16xf32>
    %244 = arith.mulf %243, %242 : vector<20x16xf32>
    %245 = math.tanh %244 : vector<20x16xf32>
    %cst_97 = arith.constant 1.000000e+00 : f32
    %246 = vector.broadcast %cst_97 : f32 to vector<20x16xf32>
    %247 = arith.addf %246, %245 : vector<20x16xf32>
    %cst_98 = arith.constant 5.000000e-01 : f32
    %248 = vector.broadcast %cst_98 : f32 to vector<20x16xf32>
    %249 = arith.mulf %248, %247 : vector<20x16xf32>
    %250 = arith.mulf %237, %249 : vector<20x16xf32>
    %c0_99 = arith.constant 0 : index
    %c0_100 = arith.constant 0 : index
    %c0_101 = arith.constant 0 : index
    %251 = vector.load %arg4[%c0_99, %c0_100, %c0_101] : memref<3x16x16xf32, #tpu.memory_space<vmem>>, vector<1x16x16xf32>
    %252 = vector.shape_cast %251 : vector<1x16x16xf32> to vector<16x16xf32>
    %cst_102 = arith.constant dense<0.000000e+00> : vector<20x16xf32>
    %253 = tpu.matmul %157, %252, %cst_102 {dimension_numbers = #tpu.dot_dimension_numbers<[1], [0], [0], [1], [0, 0, 1, 1], [], []>} : vector<20x16xf32>, vector<16x16xf32>, vector<20x16xf32> -> vector<20x16xf32>
    %c1_103 = arith.constant 1 : index
    %c0_104 = arith.constant 0 : index
    %c0_105 = arith.constant 0 : index
    %254 = vector.load %arg4[%c1_103, %c0_104, %c0_105] : memref<3x16x16xf32, #tpu.memory_space<vmem>>, vector<1x16x16xf32>
    %255 = vector.shape_cast %254 : vector<1x16x16xf32> to vector<16x16xf32>
    %cst_106 = arith.constant dense<0.000000e+00> : vector<20x16xf32>
    %256 = tpu.matmul %201, %255, %cst_106 {dimension_numbers = #tpu.dot_dimension_numbers<[1], [0], [0], [1], [0, 0, 1, 1], [], []>} : vector<20x16xf32>, vector<16x16xf32>, vector<20x16xf32> -> vector<20x16xf32>
    %257 = arith.addf %253, %256 : vector<20x16xf32>
    %c2_107 = arith.constant 2 : index
    %c0_108 = arith.constant 0 : index
    %c0_109 = arith.constant 0 : index
    %258 = vector.load %arg4[%c2_107, %c0_108, %c0_109] : memref<3x16x16xf32, #tpu.memory_space<vmem>>, vector<1x16x16xf32>
    %259 = vector.shape_cast %258 : vector<1x16x16xf32> to vector<16x16xf32>
    %cst_110 = arith.constant dense<0.000000e+00> : vector<20x16xf32>
    %260 = tpu.matmul %202, %259, %cst_110 {dimension_numbers = #tpu.dot_dimension_numbers<[1], [0], [0], [1], [0, 0, 1, 1], [], []>} : vector<20x16xf32>, vector<16x16xf32>, vector<20x16xf32> -> vector<20x16xf32>
    %261 = arith.addf %257, %260 : vector<20x16xf32>
    %262 = vector.broadcast %26 : vector<1x16xf32> to vector<20x16xf32>
    %263 = arith.addf %261, %262 : vector<20x16xf32>
    %cst_111 = arith.constant dense<0.000000e+00> : vector<20xf32>
    %264 = vector.multi_reduction <add>, %263, %cst_111 [1] : vector<20x16xf32> to vector<20xf32>
    %265 = vector.shape_cast %264 : vector<20xf32> to vector<20x1xf32>
    %cst_112 = arith.constant 1.600000e+01 : f32
    %266 = vector.broadcast %cst_112 : f32 to vector<20x1xf32>
    %267 = arith.divf %265, %266 : vector<20x1xf32>
    %268 = vector.broadcast %267 : vector<20x1xf32> to vector<20x16xf32>
    %269 = arith.subf %263, %268 : vector<20x16xf32>
    %270 = arith.mulf %269, %269 : vector<20x16xf32>
    %cst_113 = arith.constant dense<0.000000e+00> : vector<20xf32>
    %271 = vector.multi_reduction <add>, %270, %cst_113 [1] : vector<20x16xf32> to vector<20xf32>
    %272 = vector.shape_cast %271 : vector<20xf32> to vector<20x1xf32>
    %cst_114 = arith.constant 1.600000e+01 : f32
    %273 = vector.broadcast %cst_114 : f32 to vector<20x1xf32>
    %274 = arith.divf %272, %273 : vector<20x1xf32>
    %275 = vector.broadcast %267 : vector<20x1xf32> to vector<20x16xf32>
    %276 = arith.subf %263, %275 : vector<20x16xf32>
    %cst_115 = arith.constant 9.99999974E-6 : f32
    %277 = vector.broadcast %cst_115 : f32 to vector<20x1xf32>
    %278 = arith.addf %274, %277 : vector<20x1xf32>
    %279 = math.rsqrt %278 : vector<20x1xf32>
    %280 = vector.broadcast %279 : vector<20x1xf32> to vector<20x16xf32>
    %281 = arith.mulf %276, %280 : vector<20x16xf32>
    %282 = vector.broadcast %27 : vector<1x16xf32> to vector<20x16xf32>
    %283 = arith.mulf %281, %282 : vector<20x16xf32>
    %284 = vector.broadcast %28 : vector<1x16xf32> to vector<20x16xf32>
    %285 = arith.addf %283, %284 : vector<20x16xf32>
    %286 = arith.mulf %285, %285 : vector<20x16xf32>
    %287 = arith.mulf %285, %286 : vector<20x16xf32>
    %cst_116 = arith.constant 4.471500e-02 : f32
    %288 = vector.broadcast %cst_116 : f32 to vector<20x16xf32>
    %289 = arith.mulf %288, %287 : vector<20x16xf32>
    %290 = arith.addf %285, %289 : vector<20x16xf32>
    %cst_117 = arith.constant 0.797884583 : f32
    %291 = vector.broadcast %cst_117 : f32 to vector<20x16xf32>
    %292 = arith.mulf %291, %290 : vector<20x16xf32>
    %293 = math.tanh %292 : vector<20x16xf32>
    %cst_118 = arith.constant 1.000000e+00 : f32
    %294 = vector.broadcast %cst_118 : f32 to vector<20x16xf32>
    %295 = arith.addf %294, %293 : vector<20x16xf32>
    %cst_119 = arith.constant 5.000000e-01 : f32
    %296 = vector.broadcast %cst_119 : f32 to vector<20x16xf32>
    %297 = arith.mulf %296, %295 : vector<20x16xf32>
    %298 = arith.mulf %285, %297 : vector<20x16xf32>
    %c0_120 = arith.constant 0 : index
    %c0_121 = arith.constant 0 : index
    %c0_122 = arith.constant 0 : index
    %299 = vector.load %arg5[%c0_120, %c0_121, %c0_122] : memref<2x16x16xf32, #tpu.memory_space<vmem>>, vector<1x16x16xf32>
    %300 = vector.shape_cast %299 : vector<1x16x16xf32> to vector<16x16xf32>
    %cst_123 = arith.constant dense<0.000000e+00> : vector<20x16xf32>
    %301 = tpu.matmul %250, %300, %cst_123 {dimension_numbers = #tpu.dot_dimension_numbers<[1], [0], [0], [1], [0, 0, 1, 1], [], []>} : vector<20x16xf32>, vector<16x16xf32>, vector<20x16xf32> -> vector<20x16xf32>
    %c1_124 = arith.constant 1 : index
    %c0_125 = arith.constant 0 : index
    %c0_126 = arith.constant 0 : index
    %302 = vector.load %arg5[%c1_124, %c0_125, %c0_126] : memref<2x16x16xf32, #tpu.memory_space<vmem>>, vector<1x16x16xf32>
    %303 = vector.shape_cast %302 : vector<1x16x16xf32> to vector<16x16xf32>
    %cst_127 = arith.constant dense<0.000000e+00> : vector<20x16xf32>
    %304 = tpu.matmul %298, %303, %cst_127 {dimension_numbers = #tpu.dot_dimension_numbers<[1], [0], [0], [1], [0, 0, 1, 1], [], []>} : vector<20x16xf32>, vector<16x16xf32>, vector<20x16xf32> -> vector<20x16xf32>
    %305 = arith.addf %301, %304 : vector<20x16xf32>
    %306 = vector.broadcast %29 : vector<1x16xf32> to vector<20x16xf32>
    %307 = arith.addf %305, %306 : vector<20x16xf32>
    %cst_128 = arith.constant dense<0.000000e+00> : vector<20xf32>
    %308 = vector.multi_reduction <add>, %307, %cst_128 [1] : vector<20x16xf32> to vector<20xf32>
    %309 = vector.shape_cast %308 : vector<20xf32> to vector<20x1xf32>
    %cst_129 = arith.constant 1.600000e+01 : f32
    %310 = vector.broadcast %cst_129 : f32 to vector<20x1xf32>
    %311 = arith.divf %309, %310 : vector<20x1xf32>
    %312 = vector.broadcast %311 : vector<20x1xf32> to vector<20x16xf32>
    %313 = arith.subf %307, %312 : vector<20x16xf32>
    %314 = arith.mulf %313, %313 : vector<20x16xf32>
    %cst_130 = arith.constant dense<0.000000e+00> : vector<20xf32>
    %315 = vector.multi_reduction <add>, %314, %cst_130 [1] : vector<20x16xf32> to vector<20xf32>
    %316 = vector.shape_cast %315 : vector<20xf32> to vector<20x1xf32>
    %cst_131 = arith.constant 1.600000e+01 : f32
    %317 = vector.broadcast %cst_131 : f32 to vector<20x1xf32>
    %318 = arith.divf %316, %317 : vector<20x1xf32>
    %319 = vector.broadcast %311 : vector<20x1xf32> to vector<20x16xf32>
    %320 = arith.subf %307, %319 : vector<20x16xf32>
    %cst_132 = arith.constant 9.99999974E-6 : f32
    %321 = vector.broadcast %cst_132 : f32 to vector<20x1xf32>
    %322 = arith.addf %318, %321 : vector<20x1xf32>
    %323 = math.rsqrt %322 : vector<20x1xf32>
    %324 = vector.broadcast %323 : vector<20x1xf32> to vector<20x16xf32>
    %325 = arith.mulf %320, %324 : vector<20x16xf32>
    %326 = vector.broadcast %30 : vector<1x16xf32> to vector<20x16xf32>
    %327 = arith.mulf %325, %326 : vector<20x16xf32>
    %328 = vector.broadcast %31 : vector<1x16xf32> to vector<20x16xf32>
    %329 = arith.addf %327, %328 : vector<20x16xf32>
    %330 = arith.mulf %329, %329 : vector<20x16xf32>
    %331 = arith.mulf %329, %330 : vector<20x16xf32>
    %cst_133 = arith.constant 4.471500e-02 : f32
    %332 = vector.broadcast %cst_133 : f32 to vector<20x16xf32>
    %333 = arith.mulf %332, %331 : vector<20x16xf32>
    %334 = arith.addf %329, %333 : vector<20x16xf32>
    %cst_134 = arith.constant 0.797884583 : f32
    %335 = vector.broadcast %cst_134 : f32 to vector<20x16xf32>
    %336 = arith.mulf %335, %334 : vector<20x16xf32>
    %337 = math.tanh %336 : vector<20x16xf32>
    %cst_135 = arith.constant 1.000000e+00 : f32
    %338 = vector.broadcast %cst_135 : f32 to vector<20x16xf32>
    %339 = arith.addf %338, %337 : vector<20x16xf32>
    %cst_136 = arith.constant 5.000000e-01 : f32
    %340 = vector.broadcast %cst_136 : f32 to vector<20x16xf32>
    %341 = arith.mulf %340, %339 : vector<20x16xf32>
    %342 = arith.mulf %329, %341 : vector<20x16xf32>
    %c0_137 = arith.constant 0 : index
    %c0_138 = arith.constant 0 : index
    %343 = vector.load %arg7[%c0_137, %c0_138] : memref<2x32xf32, #tpu.memory_space<vmem>>, vector<1x32xf32>
    %c1_139 = arith.constant 1 : index
    %c0_140 = arith.constant 0 : index
    %344 = vector.load %arg7[%c1_139, %c0_140] : memref<2x32xf32, #tpu.memory_space<vmem>>, vector<1x32xf32>
    %cst_141 = arith.constant dense<0.000000e+00> : vector<20xf32>
    %345 = vector.multi_reduction <add>, %342, %cst_141 [1] : vector<20x16xf32> to vector<20xf32>
    %346 = vector.shape_cast %345 : vector<20xf32> to vector<20x1xf32>
    %cst_142 = arith.constant 1.600000e+01 : f32
    %347 = vector.broadcast %cst_142 : f32 to vector<20x1xf32>
    %348 = arith.divf %346, %347 : vector<20x1xf32>
    %349 = vector.broadcast %348 : vector<20x1xf32> to vector<20x16xf32>
    %350 = arith.subf %342, %349 : vector<20x16xf32>
    %351 = arith.mulf %350, %350 : vector<20x16xf32>
    %cst_143 = arith.constant dense<0.000000e+00> : vector<20xf32>
    %352 = vector.multi_reduction <add>, %351, %cst_143 [1] : vector<20x16xf32> to vector<20xf32>
    %353 = vector.shape_cast %352 : vector<20xf32> to vector<20x1xf32>
    %cst_144 = arith.constant 1.600000e+01 : f32
    %354 = vector.broadcast %cst_144 : f32 to vector<20x1xf32>
    %355 = arith.divf %353, %354 : vector<20x1xf32>
    %356 = vector.broadcast %348 : vector<20x1xf32> to vector<20x16xf32>
    %357 = arith.subf %342, %356 : vector<20x16xf32>
    %cst_145 = arith.constant 9.99999974E-6 : f32
    %358 = vector.broadcast %cst_145 : f32 to vector<20x1xf32>
    %359 = arith.addf %355, %358 : vector<20x1xf32>
    %360 = math.rsqrt %359 : vector<20x1xf32>
    %361 = vector.broadcast %360 : vector<20x1xf32> to vector<20x16xf32>
    %362 = arith.mulf %357, %361 : vector<20x16xf32>
    %363 = vector.broadcast %32 : vector<1x16xf32> to vector<20x16xf32>
    %364 = arith.mulf %362, %363 : vector<20x16xf32>
    %365 = vector.broadcast %33 : vector<1x16xf32> to vector<20x16xf32>
    %366 = arith.addf %364, %365 : vector<20x16xf32>
    %c0_146 = arith.constant 0 : index
    %c0_147 = arith.constant 0 : index
    %367 = vector.load %arg8[%c0_146, %c0_147] : memref<16x32xf32, #tpu.memory_space<vmem>>, vector<16x32xf32>
    %cst_148 = arith.constant dense<0.000000e+00> : vector<20x32xf32>
    %368 = tpu.matmul %366, %367, %cst_148 {dimension_numbers = #tpu.dot_dimension_numbers<[1], [0], [0], [1], [0, 0, 1, 1], [], []>} : vector<20x16xf32>, vector<16x32xf32>, vector<20x32xf32> -> vector<20x32xf32>
    %369 = vector.broadcast %343 : vector<1x32xf32> to vector<20x32xf32>
    %370 = arith.addf %368, %369 : vector<20x32xf32>
    %371 = tpu.iota {dimensions = array<i32: 0>} : vector<20x32xi32>
    %372 = vector.broadcast %0 : i32 to vector<20x32xi32>
    %373 = arith.cmpi slt, %371, %372 : vector<20x32xi32>
    %cst_149 = arith.constant 0.000000e+00 : f32
    %374 = vector.broadcast %cst_149 : f32 to vector<20x32xf32>
    %375 = arith.select %373, %370, %374 : vector<20x32xi1>, vector<20x32xf32>
    %c4_i32 = arith.constant 4 : i32
    %376 = tpu.dynamic_rotate %375 by %c4_i32 dim 0 : vector<20x32xf32>, i32 -> vector<20x32xf32>
    %c4_i32_150 = arith.constant 4 : i32
    %377 = vector.broadcast %c4_i32_150 : i32 to vector<20x32xi32>
    %378 = arith.cmpi sge, %371, %377 : vector<20x32xi32>
    %c20_i32 = arith.constant 20 : i32
    %379 = vector.broadcast %c20_i32 : i32 to vector<20x32xi32>
    %380 = arith.cmpi slt, %371, %379 : vector<20x32xi32>
    %381 = arith.andi %378, %380 : vector<20x32xi1>
    %cst_151 = arith.constant 0.000000e+00 : f32
    %382 = vector.broadcast %cst_151 : f32 to vector<20x32xf32>
    %383 = arith.select %381, %376, %382 : vector<20x32xi1>, vector<20x32xf32>
    %c3_i32 = arith.constant 3 : i32
    %384 = tpu.dynamic_rotate %375 by %c3_i32 dim 0 : vector<20x32xf32>, i32 -> vector<20x32xf32>
    %c3_i32_152 = arith.constant 3 : i32
    %385 = vector.broadcast %c3_i32_152 : i32 to vector<20x32xi32>
    %386 = arith.cmpi sge, %371, %385 : vector<20x32xi32>
    %c20_i32_153 = arith.constant 20 : i32
    %387 = vector.broadcast %c20_i32_153 : i32 to vector<20x32xi32>
    %388 = arith.cmpi slt, %371, %387 : vector<20x32xi32>
    %389 = arith.andi %386, %388 : vector<20x32xi1>
    %cst_154 = arith.constant 0.000000e+00 : f32
    %390 = vector.broadcast %cst_154 : f32 to vector<20x32xf32>
    %391 = arith.select %389, %384, %390 : vector<20x32xi1>, vector<20x32xf32>
    %c2_i32 = arith.constant 2 : i32
    %392 = tpu.dynamic_rotate %375 by %c2_i32 dim 0 : vector<20x32xf32>, i32 -> vector<20x32xf32>
    %c2_i32_155 = arith.constant 2 : i32
    %393 = vector.broadcast %c2_i32_155 : i32 to vector<20x32xi32>
    %394 = arith.cmpi sge, %371, %393 : vector<20x32xi32>
    %c20_i32_156 = arith.constant 20 : i32
    %395 = vector.broadcast %c20_i32_156 : i32 to vector<20x32xi32>
    %396 = arith.cmpi slt, %371, %395 : vector<20x32xi32>
    %397 = arith.andi %394, %396 : vector<20x32xi1>
    %cst_157 = arith.constant 0.000000e+00 : f32
    %398 = vector.broadcast %cst_157 : f32 to vector<20x32xf32>
    %399 = arith.select %397, %392, %398 : vector<20x32xi1>, vector<20x32xf32>
    %c1_i32 = arith.constant 1 : i32
    %400 = tpu.dynamic_rotate %375 by %c1_i32 dim 0 : vector<20x32xf32>, i32 -> vector<20x32xf32>
    %c1_i32_158 = arith.constant 1 : i32
    %401 = vector.broadcast %c1_i32_158 : i32 to vector<20x32xi32>
    %402 = arith.cmpi sge, %371, %401 : vector<20x32xi32>
    %c20_i32_159 = arith.constant 20 : i32
    %403 = vector.broadcast %c20_i32_159 : i32 to vector<20x32xi32>
    %404 = arith.cmpi slt, %371, %403 : vector<20x32xi32>
    %405 = arith.andi %402, %404 : vector<20x32xi1>
    %cst_160 = arith.constant 0.000000e+00 : f32
    %406 = vector.broadcast %cst_160 : f32 to vector<20x32xf32>
    %407 = arith.select %405, %400, %406 : vector<20x32xi1>, vector<20x32xf32>
    %c19_i32_161 = arith.constant 19 : i32
    %408 = tpu.dynamic_rotate %375 by %c19_i32_161 dim 0 : vector<20x32xf32>, i32 -> vector<20x32xf32>
    %c0_i32 = arith.constant 0 : i32
    %409 = vector.broadcast %c0_i32 : i32 to vector<20x32xi32>
    %410 = arith.cmpi sge, %371, %409 : vector<20x32xi32>
    %c19_i32_162 = arith.constant 19 : i32
    %411 = vector.broadcast %c19_i32_162 : i32 to vector<20x32xi32>
    %412 = arith.cmpi slt, %371, %411 : vector<20x32xi32>
    %413 = arith.andi %410, %412 : vector<20x32xi1>
    %cst_163 = arith.constant 0.000000e+00 : f32
    %414 = vector.broadcast %cst_163 : f32 to vector<20x32xf32>
    %415 = arith.select %413, %408, %414 : vector<20x32xi1>, vector<20x32xf32>
    %c18_i32 = arith.constant 18 : i32
    %416 = tpu.dynamic_rotate %375 by %c18_i32 dim 0 : vector<20x32xf32>, i32 -> vector<20x32xf32>
    %c0_i32_164 = arith.constant 0 : i32
    %417 = vector.broadcast %c0_i32_164 : i32 to vector<20x32xi32>
    %418 = arith.cmpi sge, %371, %417 : vector<20x32xi32>
    %c18_i32_165 = arith.constant 18 : i32
    %419 = vector.broadcast %c18_i32_165 : i32 to vector<20x32xi32>
    %420 = arith.cmpi slt, %371, %419 : vector<20x32xi32>
    %421 = arith.andi %418, %420 : vector<20x32xi1>
    %cst_166 = arith.constant 0.000000e+00 : f32
    %422 = vector.broadcast %cst_166 : f32 to vector<20x32xf32>
    %423 = arith.select %421, %416, %422 : vector<20x32xi1>, vector<20x32xf32>
    %c17_i32 = arith.constant 17 : i32
    %424 = tpu.dynamic_rotate %375 by %c17_i32 dim 0 : vector<20x32xf32>, i32 -> vector<20x32xf32>
    %c0_i32_167 = arith.constant 0 : i32
    %425 = vector.broadcast %c0_i32_167 : i32 to vector<20x32xi32>
    %426 = arith.cmpi sge, %371, %425 : vector<20x32xi32>
    %c17_i32_168 = arith.constant 17 : i32
    %427 = vector.broadcast %c17_i32_168 : i32 to vector<20x32xi32>
    %428 = arith.cmpi slt, %371, %427 : vector<20x32xi32>
    %429 = arith.andi %426, %428 : vector<20x32xi1>
    %cst_169 = arith.constant 0.000000e+00 : f32
    %430 = vector.broadcast %cst_169 : f32 to vector<20x32xf32>
    %431 = arith.select %429, %424, %430 : vector<20x32xi1>, vector<20x32xf32>
    %432 = tpu.concatenate %383, %391, %399, %407, %375, %415, %423, %431 in 1 : vector<20x32xf32>, vector<20x32xf32>, vector<20x32xf32>, vector<20x32xf32>, vector<20x32xf32>, vector<20x32xf32>, vector<20x32xf32>, vector<20x32xf32> -> vector<20x256xf32>
    %c0_170 = arith.constant 0 : index
    %c0_171 = arith.constant 0 : index
    %433 = vector.load %arg9[%c0_170, %c0_171] : memref<256x32xf32, #tpu.memory_space<vmem>>, vector<256x32xf32>
    %cst_172 = arith.constant dense<0.000000e+00> : vector<20x32xf32>
    %434 = tpu.matmul %432, %433, %cst_172 {dimension_numbers = #tpu.dot_dimension_numbers<[1], [0], [0], [1], [0, 0, 1, 1], [], []>} : vector<20x256xf32>, vector<256x32xf32>, vector<20x32xf32> -> vector<20x32xf32>
    %435 = vector.broadcast %344 : vector<1x32xf32> to vector<20x32xf32>
    %436 = arith.addf %434, %435 : vector<20x32xf32>
    %437 = arith.mulf %436, %436 : vector<20x32xf32>
    %438 = arith.mulf %436, %437 : vector<20x32xf32>
    %cst_173 = arith.constant 4.471500e-02 : f32
    %439 = vector.broadcast %cst_173 : f32 to vector<20x32xf32>
    %440 = arith.mulf %439, %438 : vector<20x32xf32>
    %441 = arith.addf %436, %440 : vector<20x32xf32>
    %cst_174 = arith.constant 0.797884583 : f32
    %442 = vector.broadcast %cst_174 : f32 to vector<20x32xf32>
    %443 = arith.mulf %442, %441 : vector<20x32xf32>
    %444 = math.tanh %443 : vector<20x32xf32>
    %cst_175 = arith.constant 1.000000e+00 : f32
    %445 = vector.broadcast %cst_175 : f32 to vector<20x32xf32>
    %446 = arith.addf %445, %444 : vector<20x32xf32>
    %cst_176 = arith.constant 5.000000e-01 : f32
    %447 = vector.broadcast %cst_176 : f32 to vector<20x32xf32>
    %448 = arith.mulf %447, %446 : vector<20x32xf32>
    %449 = arith.mulf %436, %448 : vector<20x32xf32>
    %450 = arith.addf %375, %449 : vector<20x32xf32>
    %451 = tpu.iota {dimensions = array<i32: 1>} : vector<20x20xi32>
    %452 = vector.broadcast %0 : i32 to vector<20x20xi32>
    %453 = arith.cmpi slt, %451, %452 : vector<20x20xi32>
    %c0_177 = arith.constant 0 : index
    %c0_178 = arith.constant 0 : index
    %c0_179 = arith.constant 0 : index
    %454 = vector.load %arg14[%c0_177, %c0_178, %c0_179] : memref<5x8x96xf32, #tpu.memory_space<vmem>>, vector<1x8x96xf32>
    %455 = vector.shape_cast %454 : vector<1x8x96xf32> to vector<8x96xf32>
    %456 = vector.extract_strided_slice %455 {offsets = [0, 0], sizes = [1, 32], strides = [1, 1]} : vector<8x96xf32> to vector<1x32xf32>
    %457 = vector.extract_strided_slice %455 {offsets = [1, 0], sizes = [1, 32], strides = [1, 1]} : vector<8x96xf32> to vector<1x32xf32>
    %458 = vector.extract_strided_slice %455 {offsets = [2, 0], sizes = [1, 32], strides = [1, 1]} : vector<8x96xf32> to vector<1x32xf32>
    %459 = vector.extract_strided_slice %455 {offsets = [3, 0], sizes = [1, 32], strides = [1, 1]} : vector<8x96xf32> to vector<1x32xf32>
    %460 = vector.extract_strided_slice %455 {offsets = [4, 0], sizes = [1, 32], strides = [1, 1]} : vector<8x96xf32> to vector<1x32xf32>
    %461 = vector.extract_strided_slice %455 {offsets = [5, 0], sizes = [1, 32], strides = [1, 1]} : vector<8x96xf32> to vector<1x32xf32>
    %462 = vector.extract_strided_slice %455 {offsets = [6, 0], sizes = [1, 96], strides = [1, 1]} : vector<8x96xf32> to vector<1x96xf32>
    %463 = vector.extract_strided_slice %455 {offsets = [7, 0], sizes = [1, 64], strides = [1, 1]} : vector<8x96xf32> to vector<1x64xf32>
    %cst_180 = arith.constant dense<0.000000e+00> : vector<20xf32>
    %464 = vector.multi_reduction <add>, %450, %cst_180 [1] : vector<20x32xf32> to vector<20xf32>
    %465 = vector.shape_cast %464 : vector<20xf32> to vector<20x1xf32>
    %cst_181 = arith.constant 3.200000e+01 : f32
    %466 = vector.broadcast %cst_181 : f32 to vector<20x1xf32>
    %467 = arith.divf %465, %466 : vector<20x1xf32>
    %468 = vector.broadcast %467 : vector<20x1xf32> to vector<20x32xf32>
    %469 = arith.subf %450, %468 : vector<20x32xf32>
    %470 = arith.mulf %469, %469 : vector<20x32xf32>
    %cst_182 = arith.constant dense<0.000000e+00> : vector<20xf32>
    %471 = vector.multi_reduction <add>, %470, %cst_182 [1] : vector<20x32xf32> to vector<20xf32>
    %472 = vector.shape_cast %471 : vector<20xf32> to vector<20x1xf32>
    %cst_183 = arith.constant 3.200000e+01 : f32
    %473 = vector.broadcast %cst_183 : f32 to vector<20x1xf32>
    %474 = arith.divf %472, %473 : vector<20x1xf32>
    %475 = vector.broadcast %467 : vector<20x1xf32> to vector<20x32xf32>
    %476 = arith.subf %450, %475 : vector<20x32xf32>
    %cst_184 = arith.constant 9.99999974E-6 : f32
    %477 = vector.broadcast %cst_184 : f32 to vector<20x1xf32>
    %478 = arith.addf %474, %477 : vector<20x1xf32>
    %479 = math.rsqrt %478 : vector<20x1xf32>
    %480 = vector.broadcast %479 : vector<20x1xf32> to vector<20x32xf32>
    %481 = arith.mulf %476, %480 : vector<20x32xf32>
    %482 = vector.broadcast %456 : vector<1x32xf32> to vector<20x32xf32>
    %483 = arith.mulf %481, %482 : vector<20x32xf32>
    %484 = vector.broadcast %457 : vector<1x32xf32> to vector<20x32xf32>
    %485 = arith.addf %483, %484 : vector<20x32xf32>
    %c0_185 = arith.constant 0 : index
    %c0_186 = arith.constant 0 : index
    %c0_187 = arith.constant 0 : index
    %486 = vector.load %arg10[%c0_185, %c0_186, %c0_187] : memref<5x32x96xf32, #tpu.memory_space<vmem>>, vector<1x32x96xf32>
    %487 = vector.shape_cast %486 : vector<1x32x96xf32> to vector<32x96xf32>
    %cst_188 = arith.constant dense<0.000000e+00> : vector<20x96xf32>
    %488 = tpu.matmul %485, %487, %cst_188 {dimension_numbers = #tpu.dot_dimension_numbers<[1], [0], [0], [1], [0, 0, 1, 1], [], []>} : vector<20x32xf32>, vector<32x96xf32>, vector<20x96xf32> -> vector<20x96xf32>
    %489 = vector.broadcast %462 : vector<1x96xf32> to vector<20x96xf32>
    %490 = arith.addf %488, %489 : vector<20x96xf32>
    %491 = vector.extract_strided_slice %490 {offsets = [0, 0], sizes = [20, 32], strides = [1, 1]} : vector<20x96xf32> to vector<20x32xf32>
    %cst_189 = arith.constant 2.500000e-01 : f32
    %492 = vector.broadcast %cst_189 : f32 to vector<20x32xf32>
    %493 = arith.mulf %491, %492 : vector<20x32xf32>
    %494 = vector.extract_strided_slice %490 {offsets = [0, 32], sizes = [20, 32], strides = [1, 1]} : vector<20x96xf32> to vector<20x32xf32>
    %495 = vector.extract_strided_slice %490 {offsets = [0, 64], sizes = [20, 32], strides = [1, 1]} : vector<20x96xf32> to vector<20x32xf32>
    %496 = vector.extract_strided_slice %493 {offsets = [0, 0], sizes = [20, 16], strides = [1, 1]} : vector<20x32xf32> to vector<20x16xf32>
    %497 = vector.extract_strided_slice %493 {offsets = [0, 16], sizes = [20, 16], strides = [1, 1]} : vector<20x32xf32> to vector<20x16xf32>
    %498 = vector.shape_cast %496 : vector<20x16xf32> to vector<1x20x16xf32>
    %499 = vector.shape_cast %497 : vector<20x16xf32> to vector<1x20x16xf32>
    %500 = tpu.concatenate %498, %499 in 0 : vector<1x20x16xf32>, vector<1x20x16xf32> -> vector<2x20x16xf32>
    %501 = vector.extract_strided_slice %494 {offsets = [0, 0], sizes = [20, 16], strides = [1, 1]} : vector<20x32xf32> to vector<20x16xf32>
    %502 = vector.extract_strided_slice %494 {offsets = [0, 16], sizes = [20, 16], strides = [1, 1]} : vector<20x32xf32> to vector<20x16xf32>
    %503 = vector.shape_cast %501 : vector<20x16xf32> to vector<1x20x16xf32>
    %504 = vector.shape_cast %502 : vector<20x16xf32> to vector<1x20x16xf32>
    %505 = tpu.concatenate %503, %504 in 0 : vector<1x20x16xf32>, vector<1x20x16xf32> -> vector<2x20x16xf32>
    %506 = vector.extract_strided_slice %495 {offsets = [0, 0], sizes = [20, 16], strides = [1, 1]} : vector<20x32xf32> to vector<20x16xf32>
    %507 = vector.extract_strided_slice %495 {offsets = [0, 16], sizes = [20, 16], strides = [1, 1]} : vector<20x32xf32> to vector<20x16xf32>
    %508 = vector.shape_cast %506 : vector<20x16xf32> to vector<1x20x16xf32>
    %509 = vector.shape_cast %507 : vector<20x16xf32> to vector<1x20x16xf32>
    %510 = tpu.concatenate %508, %509 in 0 : vector<1x20x16xf32>, vector<1x20x16xf32> -> vector<2x20x16xf32>
    "tpu.trace_start"() <{level = 10 : i32, message = "hqd,hkd->hqk"}> : () -> ()
    %cst_190 = arith.constant dense<0.000000e+00> : vector<2x20x20xf32>
    %511 = tpu.matmul %500, %505, %cst_190 {dimension_numbers = #tpu.dot_dimension_numbers<[2], [2], [1], [1], [0, 0, 0, 1, 1, 1], [0], [0]>} : vector<2x20x16xf32>, vector<2x20x16xf32>, vector<2x20x20xf32> -> vector<2x20x20xf32>
    "tpu.trace_stop"() : () -> ()
    %512 = vector.shape_cast %453 : vector<20x20xi1> to vector<1x20x20xi1>
    %cst_191 = arith.constant -1.000000e+30 : f32
    %513 = vector.shape_cast %512 : vector<1x20x20xi1> to vector<1x20x20xi1>
    %514 = vector.broadcast %513 : vector<1x20x20xi1> to vector<2x20x20xi1>
    %515 = vector.broadcast %cst_191 : f32 to vector<2x20x20xf32>
    %516 = arith.select %514, %511, %515 : vector<2x20x20xi1>, vector<2x20x20xf32>
    %cst_192 = arith.constant dense<0xFF800000> : vector<2x20xf32>
    %517 = vector.multi_reduction <maximumf>, %516, %cst_192 [2] : vector<2x20x20xf32> to vector<2x20xf32>
    %518 = vector.shape_cast %517 : vector<2x20xf32> to vector<2x20x1xf32>
    %519 = vector.broadcast %518 : vector<2x20x1xf32> to vector<2x20x20xf32>
    %520 = arith.subf %516, %519 : vector<2x20x20xf32>
    %521 = math.exp %520 : vector<2x20x20xf32>
    %cst_193 = arith.constant dense<0.000000e+00> : vector<2x20xf32>
    %522 = vector.multi_reduction <add>, %521, %cst_193 [2] : vector<2x20x20xf32> to vector<2x20xf32>
    %523 = vector.shape_cast %522 : vector<2x20xf32> to vector<2x20x1xf32>
    %524 = tpu.reciprocal %523 {approx = true} : vector<2x20x1xf32> -> vector<2x20x1xf32>
    %525 = vector.broadcast %524 : vector<2x20x1xf32> to vector<2x20x20xf32>
    %526 = arith.mulf %521, %525 : vector<2x20x20xf32>
    "tpu.trace_start"() <{level = 10 : i32, message = "hqk,hkd->hqd"}> : () -> ()
    %cst_194 = arith.constant dense<0.000000e+00> : vector<2x20x16xf32>
    %527 = tpu.matmul %526, %510, %cst_194 {dimension_numbers = #tpu.dot_dimension_numbers<[2], [1], [1], [2], [0, 0, 0, 1, 1, 2], [0], [0]>} : vector<2x20x20xf32>, vector<2x20x16xf32>, vector<2x20x16xf32> -> vector<2x20x16xf32>
    "tpu.trace_stop"() : () -> ()
    %c0_195 = arith.constant 0 : index
    %c0_196 = arith.constant 0 : index
    %c0_197 = arith.constant 0 : index
    %528 = vector.load %arg11[%c0_195, %c0_196, %c0_197] : memref<5x32x32xf32, #tpu.memory_space<vmem>>, vector<1x32x32xf32>
    %529 = vector.shape_cast %528 : vector<1x32x32xf32> to vector<32x32xf32>
    %530 = vector.extract_strided_slice %527 {offsets = [0, 0, 0], sizes = [1, 20, 16], strides = [1, 1, 1]} : vector<2x20x16xf32> to vector<1x20x16xf32>
    %531 = vector.shape_cast %530 : vector<1x20x16xf32> to vector<20x16xf32>
    %532 = vector.extract_strided_slice %529 {offsets = [0, 0], sizes = [16, 32], strides = [1, 1]} : vector<32x32xf32> to vector<16x32xf32>
    %cst_198 = arith.constant dense<0.000000e+00> : vector<20x32xf32>
    %533 = tpu.matmul %531, %532, %cst_198 {dimension_numbers = #tpu.dot_dimension_numbers<[1], [0], [0], [1], [0, 0, 1, 1], [], []>} : vector<20x16xf32>, vector<16x32xf32>, vector<20x32xf32> -> vector<20x32xf32>
    %534 = vector.extract_strided_slice %527 {offsets = [1, 0, 0], sizes = [1, 20, 16], strides = [1, 1, 1]} : vector<2x20x16xf32> to vector<1x20x16xf32>
    %535 = vector.shape_cast %534 : vector<1x20x16xf32> to vector<20x16xf32>
    %536 = vector.extract_strided_slice %529 {offsets = [16, 0], sizes = [16, 32], strides = [1, 1]} : vector<32x32xf32> to vector<16x32xf32>
    %cst_199 = arith.constant dense<0.000000e+00> : vector<20x32xf32>
    %537 = tpu.matmul %535, %536, %cst_199 {dimension_numbers = #tpu.dot_dimension_numbers<[1], [0], [0], [1], [0, 0, 1, 1], [], []>} : vector<20x16xf32>, vector<16x32xf32>, vector<20x32xf32> -> vector<20x32xf32>
    %538 = arith.addf %533, %537 : vector<20x32xf32>
    %539 = arith.addf %450, %538 : vector<20x32xf32>
    %540 = vector.broadcast %460 : vector<1x32xf32> to vector<20x32xf32>
    %541 = arith.addf %539, %540 : vector<20x32xf32>
    %cst_200 = arith.constant dense<0.000000e+00> : vector<20xf32>
    %542 = vector.multi_reduction <add>, %541, %cst_200 [1] : vector<20x32xf32> to vector<20xf32>
    %543 = vector.shape_cast %542 : vector<20xf32> to vector<20x1xf32>
    %cst_201 = arith.constant 3.200000e+01 : f32
    %544 = vector.broadcast %cst_201 : f32 to vector<20x1xf32>
    %545 = arith.divf %543, %544 : vector<20x1xf32>
    %546 = vector.broadcast %545 : vector<20x1xf32> to vector<20x32xf32>
    %547 = arith.subf %541, %546 : vector<20x32xf32>
    %548 = arith.mulf %547, %547 : vector<20x32xf32>
    %cst_202 = arith.constant dense<0.000000e+00> : vector<20xf32>
    %549 = vector.multi_reduction <add>, %548, %cst_202 [1] : vector<20x32xf32> to vector<20xf32>
    %550 = vector.shape_cast %549 : vector<20xf32> to vector<20x1xf32>
    %cst_203 = arith.constant 3.200000e+01 : f32
    %551 = vector.broadcast %cst_203 : f32 to vector<20x1xf32>
    %552 = arith.divf %550, %551 : vector<20x1xf32>
    %553 = vector.broadcast %545 : vector<20x1xf32> to vector<20x32xf32>
    %554 = arith.subf %541, %553 : vector<20x32xf32>
    %cst_204 = arith.constant 9.99999974E-6 : f32
    %555 = vector.broadcast %cst_204 : f32 to vector<20x1xf32>
    %556 = arith.addf %552, %555 : vector<20x1xf32>
    %557 = math.rsqrt %556 : vector<20x1xf32>
    %558 = vector.broadcast %557 : vector<20x1xf32> to vector<20x32xf32>
    %559 = arith.mulf %554, %558 : vector<20x32xf32>
    %560 = vector.broadcast %458 : vector<1x32xf32> to vector<20x32xf32>
    %561 = arith.mulf %559, %560 : vector<20x32xf32>
    %562 = vector.broadcast %459 : vector<1x32xf32> to vector<20x32xf32>
    %563 = arith.addf %561, %562 : vector<20x32xf32>
    %c0_205 = arith.constant 0 : index
    %c0_206 = arith.constant 0 : index
    %c0_207 = arith.constant 0 : index
    %564 = vector.load %arg12[%c0_205, %c0_206, %c0_207] : memref<5x32x64xf32, #tpu.memory_space<vmem>>, vector<1x32x64xf32>
    %565 = vector.shape_cast %564 : vector<1x32x64xf32> to vector<32x64xf32>
    %cst_208 = arith.constant dense<0.000000e+00> : vector<20x64xf32>
    %566 = tpu.matmul %563, %565, %cst_208 {dimension_numbers = #tpu.dot_dimension_numbers<[1], [0], [0], [1], [0, 0, 1, 1], [], []>} : vector<20x32xf32>, vector<32x64xf32>, vector<20x64xf32> -> vector<20x64xf32>
    %567 = vector.broadcast %463 : vector<1x64xf32> to vector<20x64xf32>
    %568 = arith.addf %566, %567 : vector<20x64xf32>
    %569 = arith.mulf %568, %568 : vector<20x64xf32>
    %570 = arith.mulf %568, %569 : vector<20x64xf32>
    %cst_209 = arith.constant 4.471500e-02 : f32
    %571 = vector.broadcast %cst_209 : f32 to vector<20x64xf32>
    %572 = arith.mulf %571, %570 : vector<20x64xf32>
    %573 = arith.addf %568, %572 : vector<20x64xf32>
    %cst_210 = arith.constant 0.797884583 : f32
    %574 = vector.broadcast %cst_210 : f32 to vector<20x64xf32>
    %575 = arith.mulf %574, %573 : vector<20x64xf32>
    %576 = math.tanh %575 : vector<20x64xf32>
    %cst_211 = arith.constant 1.000000e+00 : f32
    %577 = vector.broadcast %cst_211 : f32 to vector<20x64xf32>
    %578 = arith.addf %577, %576 : vector<20x64xf32>
    %cst_212 = arith.constant 5.000000e-01 : f32
    %579 = vector.broadcast %cst_212 : f32 to vector<20x64xf32>
    %580 = arith.mulf %579, %578 : vector<20x64xf32>
    %581 = arith.mulf %568, %580 : vector<20x64xf32>
    %c0_213 = arith.constant 0 : index
    %c0_214 = arith.constant 0 : index
    %c0_215 = arith.constant 0 : index
    %582 = vector.load %arg13[%c0_213, %c0_214, %c0_215] : memref<5x64x32xf32, #tpu.memory_space<vmem>>, vector<1x64x32xf32>
    %583 = vector.shape_cast %582 : vector<1x64x32xf32> to vector<64x32xf32>
    %cst_216 = arith.constant dense<0.000000e+00> : vector<20x32xf32>
    %584 = tpu.matmul %581, %583, %cst_216 {dimension_numbers = #tpu.dot_dimension_numbers<[1], [0], [0], [1], [0, 0, 1, 1], [], []>} : vector<20x64xf32>, vector<64x32xf32>, vector<20x32xf32> -> vector<20x32xf32>
    %585 = arith.addf %541, %584 : vector<20x32xf32>
    %586 = vector.broadcast %461 : vector<1x32xf32> to vector<20x32xf32>
    %587 = arith.addf %585, %586 : vector<20x32xf32>
    %c1_217 = arith.constant 1 : index
    %c0_218 = arith.constant 0 : index
    %c0_219 = arith.constant 0 : index
    %588 = vector.load %arg14[%c1_217, %c0_218, %c0_219] : memref<5x8x96xf32, #tpu.memory_space<vmem>>, vector<1x8x96xf32>
    %589 = vector.shape_cast %588 : vector<1x8x96xf32> to vector<8x96xf32>
    %590 = vector.extract_strided_slice %589 {offsets = [0, 0], sizes = [1, 32], strides = [1, 1]} : vector<8x96xf32> to vector<1x32xf32>
    %591 = vector.extract_strided_slice %589 {offsets = [1, 0], sizes = [1, 32], strides = [1, 1]} : vector<8x96xf32> to vector<1x32xf32>
    %592 = vector.extract_strided_slice %589 {offsets = [2, 0], sizes = [1, 32], strides = [1, 1]} : vector<8x96xf32> to vector<1x32xf32>
    %593 = vector.extract_strided_slice %589 {offsets = [3, 0], sizes = [1, 32], strides = [1, 1]} : vector<8x96xf32> to vector<1x32xf32>
    %594 = vector.extract_strided_slice %589 {offsets = [4, 0], sizes = [1, 32], strides = [1, 1]} : vector<8x96xf32> to vector<1x32xf32>
    %595 = vector.extract_strided_slice %589 {offsets = [5, 0], sizes = [1, 32], strides = [1, 1]} : vector<8x96xf32> to vector<1x32xf32>
    %596 = vector.extract_strided_slice %589 {offsets = [6, 0], sizes = [1, 96], strides = [1, 1]} : vector<8x96xf32> to vector<1x96xf32>
    %597 = vector.extract_strided_slice %589 {offsets = [7, 0], sizes = [1, 64], strides = [1, 1]} : vector<8x96xf32> to vector<1x64xf32>
    %cst_220 = arith.constant dense<0.000000e+00> : vector<20xf32>
    %598 = vector.multi_reduction <add>, %587, %cst_220 [1] : vector<20x32xf32> to vector<20xf32>
    %599 = vector.shape_cast %598 : vector<20xf32> to vector<20x1xf32>
    %cst_221 = arith.constant 3.200000e+01 : f32
    %600 = vector.broadcast %cst_221 : f32 to vector<20x1xf32>
    %601 = arith.divf %599, %600 : vector<20x1xf32>
    %602 = vector.broadcast %601 : vector<20x1xf32> to vector<20x32xf32>
    %603 = arith.subf %587, %602 : vector<20x32xf32>
    %604 = arith.mulf %603, %603 : vector<20x32xf32>
    %cst_222 = arith.constant dense<0.000000e+00> : vector<20xf32>
    %605 = vector.multi_reduction <add>, %604, %cst_222 [1] : vector<20x32xf32> to vector<20xf32>
    %606 = vector.shape_cast %605 : vector<20xf32> to vector<20x1xf32>
    %cst_223 = arith.constant 3.200000e+01 : f32
    %607 = vector.broadcast %cst_223 : f32 to vector<20x1xf32>
    %608 = arith.divf %606, %607 : vector<20x1xf32>
    %609 = vector.broadcast %601 : vector<20x1xf32> to vector<20x32xf32>
    %610 = arith.subf %587, %609 : vector<20x32xf32>
    %cst_224 = arith.constant 9.99999974E-6 : f32
    %611 = vector.broadcast %cst_224 : f32 to vector<20x1xf32>
    %612 = arith.addf %608, %611 : vector<20x1xf32>
    %613 = math.rsqrt %612 : vector<20x1xf32>
    %614 = vector.broadcast %613 : vector<20x1xf32> to vector<20x32xf32>
    %615 = arith.mulf %610, %614 : vector<20x32xf32>
    %616 = vector.broadcast %590 : vector<1x32xf32> to vector<20x32xf32>
    %617 = arith.mulf %615, %616 : vector<20x32xf32>
    %618 = vector.broadcast %591 : vector<1x32xf32> to vector<20x32xf32>
    %619 = arith.addf %617, %618 : vector<20x32xf32>
    %c1_225 = arith.constant 1 : index
    %c0_226 = arith.constant 0 : index
    %c0_227 = arith.constant 0 : index
    %620 = vector.load %arg10[%c1_225, %c0_226, %c0_227] : memref<5x32x96xf32, #tpu.memory_space<vmem>>, vector<1x32x96xf32>
    %621 = vector.shape_cast %620 : vector<1x32x96xf32> to vector<32x96xf32>
    %cst_228 = arith.constant dense<0.000000e+00> : vector<20x96xf32>
    %622 = tpu.matmul %619, %621, %cst_228 {dimension_numbers = #tpu.dot_dimension_numbers<[1], [0], [0], [1], [0, 0, 1, 1], [], []>} : vector<20x32xf32>, vector<32x96xf32>, vector<20x96xf32> -> vector<20x96xf32>
    %623 = vector.broadcast %596 : vector<1x96xf32> to vector<20x96xf32>
    %624 = arith.addf %622, %623 : vector<20x96xf32>
    %625 = vector.extract_strided_slice %624 {offsets = [0, 0], sizes = [20, 32], strides = [1, 1]} : vector<20x96xf32> to vector<20x32xf32>
    %cst_229 = arith.constant 2.500000e-01 : f32
    %626 = vector.broadcast %cst_229 : f32 to vector<20x32xf32>
    %627 = arith.mulf %625, %626 : vector<20x32xf32>
    %628 = vector.extract_strided_slice %624 {offsets = [0, 32], sizes = [20, 32], strides = [1, 1]} : vector<20x96xf32> to vector<20x32xf32>
    %629 = vector.extract_strided_slice %624 {offsets = [0, 64], sizes = [20, 32], strides = [1, 1]} : vector<20x96xf32> to vector<20x32xf32>
    %630 = vector.extract_strided_slice %627 {offsets = [0, 0], sizes = [20, 16], strides = [1, 1]} : vector<20x32xf32> to vector<20x16xf32>
    %631 = vector.extract_strided_slice %627 {offsets = [0, 16], sizes = [20, 16], strides = [1, 1]} : vector<20x32xf32> to vector<20x16xf32>
    %632 = vector.shape_cast %630 : vector<20x16xf32> to vector<1x20x16xf32>
    %633 = vector.shape_cast %631 : vector<20x16xf32> to vector<1x20x16xf32>
    %634 = tpu.concatenate %632, %633 in 0 : vector<1x20x16xf32>, vector<1x20x16xf32> -> vector<2x20x16xf32>
    %635 = vector.extract_strided_slice %628 {offsets = [0, 0], sizes = [20, 16], strides = [1, 1]} : vector<20x32xf32> to vector<20x16xf32>
    %636 = vector.extract_strided_slice %628 {offsets = [0, 16], sizes = [20, 16], strides = [1, 1]} : vector<20x32xf32> to vector<20x16xf32>
    %637 = vector.shape_cast %635 : vector<20x16xf32> to vector<1x20x16xf32>
    %638 = vector.shape_cast %636 : vector<20x16xf32> to vector<1x20x16xf32>
    %639 = tpu.concatenate %637, %638 in 0 : vector<1x20x16xf32>, vector<1x20x16xf32> -> vector<2x20x16xf32>
    %640 = vector.extract_strided_slice %629 {offsets = [0, 0], sizes = [20, 16], strides = [1, 1]} : vector<20x32xf32> to vector<20x16xf32>
    %641 = vector.extract_strided_slice %629 {offsets = [0, 16], sizes = [20, 16], strides = [1, 1]} : vector<20x32xf32> to vector<20x16xf32>
    %642 = vector.shape_cast %640 : vector<20x16xf32> to vector<1x20x16xf32>
    %643 = vector.shape_cast %641 : vector<20x16xf32> to vector<1x20x16xf32>
    %644 = tpu.concatenate %642, %643 in 0 : vector<1x20x16xf32>, vector<1x20x16xf32> -> vector<2x20x16xf32>
    "tpu.trace_start"() <{level = 10 : i32, message = "hqd,hkd->hqk"}> : () -> ()
    %cst_230 = arith.constant dense<0.000000e+00> : vector<2x20x20xf32>
    %645 = tpu.matmul %634, %639, %cst_230 {dimension_numbers = #tpu.dot_dimension_numbers<[2], [2], [1], [1], [0, 0, 0, 1, 1, 1], [0], [0]>} : vector<2x20x16xf32>, vector<2x20x16xf32>, vector<2x20x20xf32> -> vector<2x20x20xf32>
    "tpu.trace_stop"() : () -> ()
    %646 = vector.shape_cast %453 : vector<20x20xi1> to vector<1x20x20xi1>
    %cst_231 = arith.constant -1.000000e+30 : f32
    %647 = vector.shape_cast %646 : vector<1x20x20xi1> to vector<1x20x20xi1>
    %648 = vector.broadcast %647 : vector<1x20x20xi1> to vector<2x20x20xi1>
    %649 = vector.broadcast %cst_231 : f32 to vector<2x20x20xf32>
    %650 = arith.select %648, %645, %649 : vector<2x20x20xi1>, vector<2x20x20xf32>
    %cst_232 = arith.constant dense<0xFF800000> : vector<2x20xf32>
    %651 = vector.multi_reduction <maximumf>, %650, %cst_232 [2] : vector<2x20x20xf32> to vector<2x20xf32>
    %652 = vector.shape_cast %651 : vector<2x20xf32> to vector<2x20x1xf32>
    %653 = vector.broadcast %652 : vector<2x20x1xf32> to vector<2x20x20xf32>
    %654 = arith.subf %650, %653 : vector<2x20x20xf32>
    %655 = math.exp %654 : vector<2x20x20xf32>
    %cst_233 = arith.constant dense<0.000000e+00> : vector<2x20xf32>
    %656 = vector.multi_reduction <add>, %655, %cst_233 [2] : vector<2x20x20xf32> to vector<2x20xf32>
    %657 = vector.shape_cast %656 : vector<2x20xf32> to vector<2x20x1xf32>
    %658 = tpu.reciprocal %657 {approx = true} : vector<2x20x1xf32> -> vector<2x20x1xf32>
    %659 = vector.broadcast %658 : vector<2x20x1xf32> to vector<2x20x20xf32>
    %660 = arith.mulf %655, %659 : vector<2x20x20xf32>
    "tpu.trace_start"() <{level = 10 : i32, message = "hqk,hkd->hqd"}> : () -> ()
    %cst_234 = arith.constant dense<0.000000e+00> : vector<2x20x16xf32>
    %661 = tpu.matmul %660, %644, %cst_234 {dimension_numbers = #tpu.dot_dimension_numbers<[2], [1], [1], [2], [0, 0, 0, 1, 1, 2], [0], [0]>} : vector<2x20x20xf32>, vector<2x20x16xf32>, vector<2x20x16xf32> -> vector<2x20x16xf32>
    "tpu.trace_stop"() : () -> ()
    %c1_235 = arith.constant 1 : index
    %c0_236 = arith.constant 0 : index
    %c0_237 = arith.constant 0 : index
    %662 = vector.load %arg11[%c1_235, %c0_236, %c0_237] : memref<5x32x32xf32, #tpu.memory_space<vmem>>, vector<1x32x32xf32>
    %663 = vector.shape_cast %662 : vector<1x32x32xf32> to vector<32x32xf32>
    %664 = vector.extract_strided_slice %661 {offsets = [0, 0, 0], sizes = [1, 20, 16], strides = [1, 1, 1]} : vector<2x20x16xf32> to vector<1x20x16xf32>
    %665 = vector.shape_cast %664 : vector<1x20x16xf32> to vector<20x16xf32>
    %666 = vector.extract_strided_slice %663 {offsets = [0, 0], sizes = [16, 32], strides = [1, 1]} : vector<32x32xf32> to vector<16x32xf32>
    %cst_238 = arith.constant dense<0.000000e+00> : vector<20x32xf32>
    %667 = tpu.matmul %665, %666, %cst_238 {dimension_numbers = #tpu.dot_dimension_numbers<[1], [0], [0], [1], [0, 0, 1, 1], [], []>} : vector<20x16xf32>, vector<16x32xf32>, vector<20x32xf32> -> vector<20x32xf32>
    %668 = vector.extract_strided_slice %661 {offsets = [1, 0, 0], sizes = [1, 20, 16], strides = [1, 1, 1]} : vector<2x20x16xf32> to vector<1x20x16xf32>
    %669 = vector.shape_cast %668 : vector<1x20x16xf32> to vector<20x16xf32>
    %670 = vector.extract_strided_slice %663 {offsets = [16, 0], sizes = [16, 32], strides = [1, 1]} : vector<32x32xf32> to vector<16x32xf32>
    %cst_239 = arith.constant dense<0.000000e+00> : vector<20x32xf32>
    %671 = tpu.matmul %669, %670, %cst_239 {dimension_numbers = #tpu.dot_dimension_numbers<[1], [0], [0], [1], [0, 0, 1, 1], [], []>} : vector<20x16xf32>, vector<16x32xf32>, vector<20x32xf32> -> vector<20x32xf32>
    %672 = arith.addf %667, %671 : vector<20x32xf32>
    %673 = arith.addf %587, %672 : vector<20x32xf32>
    %674 = vector.broadcast %594 : vector<1x32xf32> to vector<20x32xf32>
    %675 = arith.addf %673, %674 : vector<20x32xf32>
    %cst_240 = arith.constant dense<0.000000e+00> : vector<20xf32>
    %676 = vector.multi_reduction <add>, %675, %cst_240 [1] : vector<20x32xf32> to vector<20xf32>
    %677 = vector.shape_cast %676 : vector<20xf32> to vector<20x1xf32>
    %cst_241 = arith.constant 3.200000e+01 : f32
    %678 = vector.broadcast %cst_241 : f32 to vector<20x1xf32>
    %679 = arith.divf %677, %678 : vector<20x1xf32>
    %680 = vector.broadcast %679 : vector<20x1xf32> to vector<20x32xf32>
    %681 = arith.subf %675, %680 : vector<20x32xf32>
    %682 = arith.mulf %681, %681 : vector<20x32xf32>
    %cst_242 = arith.constant dense<0.000000e+00> : vector<20xf32>
    %683 = vector.multi_reduction <add>, %682, %cst_242 [1] : vector<20x32xf32> to vector<20xf32>
    %684 = vector.shape_cast %683 : vector<20xf32> to vector<20x1xf32>
    %cst_243 = arith.constant 3.200000e+01 : f32
    %685 = vector.broadcast %cst_243 : f32 to vector<20x1xf32>
    %686 = arith.divf %684, %685 : vector<20x1xf32>
    %687 = vector.broadcast %679 : vector<20x1xf32> to vector<20x32xf32>
    %688 = arith.subf %675, %687 : vector<20x32xf32>
    %cst_244 = arith.constant 9.99999974E-6 : f32
    %689 = vector.broadcast %cst_244 : f32 to vector<20x1xf32>
    %690 = arith.addf %686, %689 : vector<20x1xf32>
    %691 = math.rsqrt %690 : vector<20x1xf32>
    %692 = vector.broadcast %691 : vector<20x1xf32> to vector<20x32xf32>
    %693 = arith.mulf %688, %692 : vector<20x32xf32>
    %694 = vector.broadcast %592 : vector<1x32xf32> to vector<20x32xf32>
    %695 = arith.mulf %693, %694 : vector<20x32xf32>
    %696 = vector.broadcast %593 : vector<1x32xf32> to vector<20x32xf32>
    %697 = arith.addf %695, %696 : vector<20x32xf32>
    %c1_245 = arith.constant 1 : index
    %c0_246 = arith.constant 0 : index
    %c0_247 = arith.constant 0 : index
    %698 = vector.load %arg12[%c1_245, %c0_246, %c0_247] : memref<5x32x64xf32, #tpu.memory_space<vmem>>, vector<1x32x64xf32>
    %699 = vector.shape_cast %698 : vector<1x32x64xf32> to vector<32x64xf32>
    %cst_248 = arith.constant dense<0.000000e+00> : vector<20x64xf32>
    %700 = tpu.matmul %697, %699, %cst_248 {dimension_numbers = #tpu.dot_dimension_numbers<[1], [0], [0], [1], [0, 0, 1, 1], [], []>} : vector<20x32xf32>, vector<32x64xf32>, vector<20x64xf32> -> vector<20x64xf32>
    %701 = vector.broadcast %597 : vector<1x64xf32> to vector<20x64xf32>
    %702 = arith.addf %700, %701 : vector<20x64xf32>
    %703 = arith.mulf %702, %702 : vector<20x64xf32>
    %704 = arith.mulf %702, %703 : vector<20x64xf32>
    %cst_249 = arith.constant 4.471500e-02 : f32
    %705 = vector.broadcast %cst_249 : f32 to vector<20x64xf32>
    %706 = arith.mulf %705, %704 : vector<20x64xf32>
    %707 = arith.addf %702, %706 : vector<20x64xf32>
    %cst_250 = arith.constant 0.797884583 : f32
    %708 = vector.broadcast %cst_250 : f32 to vector<20x64xf32>
    %709 = arith.mulf %708, %707 : vector<20x64xf32>
    %710 = math.tanh %709 : vector<20x64xf32>
    %cst_251 = arith.constant 1.000000e+00 : f32
    %711 = vector.broadcast %cst_251 : f32 to vector<20x64xf32>
    %712 = arith.addf %711, %710 : vector<20x64xf32>
    %cst_252 = arith.constant 5.000000e-01 : f32
    %713 = vector.broadcast %cst_252 : f32 to vector<20x64xf32>
    %714 = arith.mulf %713, %712 : vector<20x64xf32>
    %715 = arith.mulf %702, %714 : vector<20x64xf32>
    %c1_253 = arith.constant 1 : index
    %c0_254 = arith.constant 0 : index
    %c0_255 = arith.constant 0 : index
    %716 = vector.load %arg13[%c1_253, %c0_254, %c0_255] : memref<5x64x32xf32, #tpu.memory_space<vmem>>, vector<1x64x32xf32>
    %717 = vector.shape_cast %716 : vector<1x64x32xf32> to vector<64x32xf32>
    %cst_256 = arith.constant dense<0.000000e+00> : vector<20x32xf32>
    %718 = tpu.matmul %715, %717, %cst_256 {dimension_numbers = #tpu.dot_dimension_numbers<[1], [0], [0], [1], [0, 0, 1, 1], [], []>} : vector<20x64xf32>, vector<64x32xf32>, vector<20x32xf32> -> vector<20x32xf32>
    %719 = arith.addf %675, %718 : vector<20x32xf32>
    %720 = vector.broadcast %595 : vector<1x32xf32> to vector<20x32xf32>
    %721 = arith.addf %719, %720 : vector<20x32xf32>
    %c2_257 = arith.constant 2 : index
    %c0_258 = arith.constant 0 : index
    %c0_259 = arith.constant 0 : index
    %722 = vector.load %arg14[%c2_257, %c0_258, %c0_259] : memref<5x8x96xf32, #tpu.memory_space<vmem>>, vector<1x8x96xf32>
    %723 = vector.shape_cast %722 : vector<1x8x96xf32> to vector<8x96xf32>
    %724 = vector.extract_strided_slice %723 {offsets = [0, 0], sizes = [1, 32], strides = [1, 1]} : vector<8x96xf32> to vector<1x32xf32>
    %725 = vector.extract_strided_slice %723 {offsets = [1, 0], sizes = [1, 32], strides = [1, 1]} : vector<8x96xf32> to vector<1x32xf32>
    %726 = vector.extract_strided_slice %723 {offsets = [2, 0], sizes = [1, 32], strides = [1, 1]} : vector<8x96xf32> to vector<1x32xf32>
    %727 = vector.extract_strided_slice %723 {offsets = [3, 0], sizes = [1, 32], strides = [1, 1]} : vector<8x96xf32> to vector<1x32xf32>
    %728 = vector.extract_strided_slice %723 {offsets = [4, 0], sizes = [1, 32], strides = [1, 1]} : vector<8x96xf32> to vector<1x32xf32>
    %729 = vector.extract_strided_slice %723 {offsets = [5, 0], sizes = [1, 32], strides = [1, 1]} : vector<8x96xf32> to vector<1x32xf32>
    %730 = vector.extract_strided_slice %723 {offsets = [6, 0], sizes = [1, 96], strides = [1, 1]} : vector<8x96xf32> to vector<1x96xf32>
    %731 = vector.extract_strided_slice %723 {offsets = [7, 0], sizes = [1, 64], strides = [1, 1]} : vector<8x96xf32> to vector<1x64xf32>
    %cst_260 = arith.constant dense<0.000000e+00> : vector<20xf32>
    %732 = vector.multi_reduction <add>, %721, %cst_260 [1] : vector<20x32xf32> to vector<20xf32>
    %733 = vector.shape_cast %732 : vector<20xf32> to vector<20x1xf32>
    %cst_261 = arith.constant 3.200000e+01 : f32
    %734 = vector.broadcast %cst_261 : f32 to vector<20x1xf32>
    %735 = arith.divf %733, %734 : vector<20x1xf32>
    %736 = vector.broadcast %735 : vector<20x1xf32> to vector<20x32xf32>
    %737 = arith.subf %721, %736 : vector<20x32xf32>
    %738 = arith.mulf %737, %737 : vector<20x32xf32>
    %cst_262 = arith.constant dense<0.000000e+00> : vector<20xf32>
    %739 = vector.multi_reduction <add>, %738, %cst_262 [1] : vector<20x32xf32> to vector<20xf32>
    %740 = vector.shape_cast %739 : vector<20xf32> to vector<20x1xf32>
    %cst_263 = arith.constant 3.200000e+01 : f32
    %741 = vector.broadcast %cst_263 : f32 to vector<20x1xf32>
    %742 = arith.divf %740, %741 : vector<20x1xf32>
    %743 = vector.broadcast %735 : vector<20x1xf32> to vector<20x32xf32>
    %744 = arith.subf %721, %743 : vector<20x32xf32>
    %cst_264 = arith.constant 9.99999974E-6 : f32
    %745 = vector.broadcast %cst_264 : f32 to vector<20x1xf32>
    %746 = arith.addf %742, %745 : vector<20x1xf32>
    %747 = math.rsqrt %746 : vector<20x1xf32>
    %748 = vector.broadcast %747 : vector<20x1xf32> to vector<20x32xf32>
    %749 = arith.mulf %744, %748 : vector<20x32xf32>
    %750 = vector.broadcast %724 : vector<1x32xf32> to vector<20x32xf32>
    %751 = arith.mulf %749, %750 : vector<20x32xf32>
    %752 = vector.broadcast %725 : vector<1x32xf32> to vector<20x32xf32>
    %753 = arith.addf %751, %752 : vector<20x32xf32>
    %c2_265 = arith.constant 2 : index
    %c0_266 = arith.constant 0 : index
    %c0_267 = arith.constant 0 : index
    %754 = vector.load %arg10[%c2_265, %c0_266, %c0_267] : memref<5x32x96xf32, #tpu.memory_space<vmem>>, vector<1x32x96xf32>
    %755 = vector.shape_cast %754 : vector<1x32x96xf32> to vector<32x96xf32>
    %cst_268 = arith.constant dense<0.000000e+00> : vector<20x96xf32>
    %756 = tpu.matmul %753, %755, %cst_268 {dimension_numbers = #tpu.dot_dimension_numbers<[1], [0], [0], [1], [0, 0, 1, 1], [], []>} : vector<20x32xf32>, vector<32x96xf32>, vector<20x96xf32> -> vector<20x96xf32>
    %757 = vector.broadcast %730 : vector<1x96xf32> to vector<20x96xf32>
    %758 = arith.addf %756, %757 : vector<20x96xf32>
    %759 = vector.extract_strided_slice %758 {offsets = [0, 0], sizes = [20, 32], strides = [1, 1]} : vector<20x96xf32> to vector<20x32xf32>
    %cst_269 = arith.constant 2.500000e-01 : f32
    %760 = vector.broadcast %cst_269 : f32 to vector<20x32xf32>
    %761 = arith.mulf %759, %760 : vector<20x32xf32>
    %762 = vector.extract_strided_slice %758 {offsets = [0, 32], sizes = [20, 32], strides = [1, 1]} : vector<20x96xf32> to vector<20x32xf32>
    %763 = vector.extract_strided_slice %758 {offsets = [0, 64], sizes = [20, 32], strides = [1, 1]} : vector<20x96xf32> to vector<20x32xf32>
    %764 = vector.extract_strided_slice %761 {offsets = [0, 0], sizes = [20, 16], strides = [1, 1]} : vector<20x32xf32> to vector<20x16xf32>
    %765 = vector.extract_strided_slice %761 {offsets = [0, 16], sizes = [20, 16], strides = [1, 1]} : vector<20x32xf32> to vector<20x16xf32>
    %766 = vector.shape_cast %764 : vector<20x16xf32> to vector<1x20x16xf32>
    %767 = vector.shape_cast %765 : vector<20x16xf32> to vector<1x20x16xf32>
    %768 = tpu.concatenate %766, %767 in 0 : vector<1x20x16xf32>, vector<1x20x16xf32> -> vector<2x20x16xf32>
    %769 = vector.extract_strided_slice %762 {offsets = [0, 0], sizes = [20, 16], strides = [1, 1]} : vector<20x32xf32> to vector<20x16xf32>
    %770 = vector.extract_strided_slice %762 {offsets = [0, 16], sizes = [20, 16], strides = [1, 1]} : vector<20x32xf32> to vector<20x16xf32>
    %771 = vector.shape_cast %769 : vector<20x16xf32> to vector<1x20x16xf32>
    %772 = vector.shape_cast %770 : vector<20x16xf32> to vector<1x20x16xf32>
    %773 = tpu.concatenate %771, %772 in 0 : vector<1x20x16xf32>, vector<1x20x16xf32> -> vector<2x20x16xf32>
    %774 = vector.extract_strided_slice %763 {offsets = [0, 0], sizes = [20, 16], strides = [1, 1]} : vector<20x32xf32> to vector<20x16xf32>
    %775 = vector.extract_strided_slice %763 {offsets = [0, 16], sizes = [20, 16], strides = [1, 1]} : vector<20x32xf32> to vector<20x16xf32>
    %776 = vector.shape_cast %774 : vector<20x16xf32> to vector<1x20x16xf32>
    %777 = vector.shape_cast %775 : vector<20x16xf32> to vector<1x20x16xf32>
    %778 = tpu.concatenate %776, %777 in 0 : vector<1x20x16xf32>, vector<1x20x16xf32> -> vector<2x20x16xf32>
    "tpu.trace_start"() <{level = 10 : i32, message = "hqd,hkd->hqk"}> : () -> ()
    %cst_270 = arith.constant dense<0.000000e+00> : vector<2x20x20xf32>
    %779 = tpu.matmul %768, %773, %cst_270 {dimension_numbers = #tpu.dot_dimension_numbers<[2], [2], [1], [1], [0, 0, 0, 1, 1, 1], [0], [0]>} : vector<2x20x16xf32>, vector<2x20x16xf32>, vector<2x20x20xf32> -> vector<2x20x20xf32>
    "tpu.trace_stop"() : () -> ()
    %780 = vector.shape_cast %453 : vector<20x20xi1> to vector<1x20x20xi1>
    %cst_271 = arith.constant -1.000000e+30 : f32
    %781 = vector.shape_cast %780 : vector<1x20x20xi1> to vector<1x20x20xi1>
    %782 = vector.broadcast %781 : vector<1x20x20xi1> to vector<2x20x20xi1>
    %783 = vector.broadcast %cst_271 : f32 to vector<2x20x20xf32>
    %784 = arith.select %782, %779, %783 : vector<2x20x20xi1>, vector<2x20x20xf32>
    %cst_272 = arith.constant dense<0xFF800000> : vector<2x20xf32>
    %785 = vector.multi_reduction <maximumf>, %784, %cst_272 [2] : vector<2x20x20xf32> to vector<2x20xf32>
    %786 = vector.shape_cast %785 : vector<2x20xf32> to vector<2x20x1xf32>
    %787 = vector.broadcast %786 : vector<2x20x1xf32> to vector<2x20x20xf32>
    %788 = arith.subf %784, %787 : vector<2x20x20xf32>
    %789 = math.exp %788 : vector<2x20x20xf32>
    %cst_273 = arith.constant dense<0.000000e+00> : vector<2x20xf32>
    %790 = vector.multi_reduction <add>, %789, %cst_273 [2] : vector<2x20x20xf32> to vector<2x20xf32>
    %791 = vector.shape_cast %790 : vector<2x20xf32> to vector<2x20x1xf32>
    %792 = tpu.reciprocal %791 {approx = true} : vector<2x20x1xf32> -> vector<2x20x1xf32>
    %793 = vector.broadcast %792 : vector<2x20x1xf32> to vector<2x20x20xf32>
    %794 = arith.mulf %789, %793 : vector<2x20x20xf32>
    "tpu.trace_start"() <{level = 10 : i32, message = "hqk,hkd->hqd"}> : () -> ()
    %cst_274 = arith.constant dense<0.000000e+00> : vector<2x20x16xf32>
    %795 = tpu.matmul %794, %778, %cst_274 {dimension_numbers = #tpu.dot_dimension_numbers<[2], [1], [1], [2], [0, 0, 0, 1, 1, 2], [0], [0]>} : vector<2x20x20xf32>, vector<2x20x16xf32>, vector<2x20x16xf32> -> vector<2x20x16xf32>
    "tpu.trace_stop"() : () -> ()
    %c2_275 = arith.constant 2 : index
    %c0_276 = arith.constant 0 : index
    %c0_277 = arith.constant 0 : index
    %796 = vector.load %arg11[%c2_275, %c0_276, %c0_277] : memref<5x32x32xf32, #tpu.memory_space<vmem>>, vector<1x32x32xf32>
    %797 = vector.shape_cast %796 : vector<1x32x32xf32> to vector<32x32xf32>
    %798 = vector.extract_strided_slice %795 {offsets = [0, 0, 0], sizes = [1, 20, 16], strides = [1, 1, 1]} : vector<2x20x16xf32> to vector<1x20x16xf32>
    %799 = vector.shape_cast %798 : vector<1x20x16xf32> to vector<20x16xf32>
    %800 = vector.extract_strided_slice %797 {offsets = [0, 0], sizes = [16, 32], strides = [1, 1]} : vector<32x32xf32> to vector<16x32xf32>
    %cst_278 = arith.constant dense<0.000000e+00> : vector<20x32xf32>
    %801 = tpu.matmul %799, %800, %cst_278 {dimension_numbers = #tpu.dot_dimension_numbers<[1], [0], [0], [1], [0, 0, 1, 1], [], []>} : vector<20x16xf32>, vector<16x32xf32>, vector<20x32xf32> -> vector<20x32xf32>
    %802 = vector.extract_strided_slice %795 {offsets = [1, 0, 0], sizes = [1, 20, 16], strides = [1, 1, 1]} : vector<2x20x16xf32> to vector<1x20x16xf32>
    %803 = vector.shape_cast %802 : vector<1x20x16xf32> to vector<20x16xf32>
    %804 = vector.extract_strided_slice %797 {offsets = [16, 0], sizes = [16, 32], strides = [1, 1]} : vector<32x32xf32> to vector<16x32xf32>
    %cst_279 = arith.constant dense<0.000000e+00> : vector<20x32xf32>
    %805 = tpu.matmul %803, %804, %cst_279 {dimension_numbers = #tpu.dot_dimension_numbers<[1], [0], [0], [1], [0, 0, 1, 1], [], []>} : vector<20x16xf32>, vector<16x32xf32>, vector<20x32xf32> -> vector<20x32xf32>
    %806 = arith.addf %801, %805 : vector<20x32xf32>
    %807 = arith.addf %721, %806 : vector<20x32xf32>
    %808 = vector.broadcast %728 : vector<1x32xf32> to vector<20x32xf32>
    %809 = arith.addf %807, %808 : vector<20x32xf32>
    %cst_280 = arith.constant dense<0.000000e+00> : vector<20xf32>
    %810 = vector.multi_reduction <add>, %809, %cst_280 [1] : vector<20x32xf32> to vector<20xf32>
    %811 = vector.shape_cast %810 : vector<20xf32> to vector<20x1xf32>
    %cst_281 = arith.constant 3.200000e+01 : f32
    %812 = vector.broadcast %cst_281 : f32 to vector<20x1xf32>
    %813 = arith.divf %811, %812 : vector<20x1xf32>
    %814 = vector.broadcast %813 : vector<20x1xf32> to vector<20x32xf32>
    %815 = arith.subf %809, %814 : vector<20x32xf32>
    %816 = arith.mulf %815, %815 : vector<20x32xf32>
    %cst_282 = arith.constant dense<0.000000e+00> : vector<20xf32>
    %817 = vector.multi_reduction <add>, %816, %cst_282 [1] : vector<20x32xf32> to vector<20xf32>
    %818 = vector.shape_cast %817 : vector<20xf32> to vector<20x1xf32>
    %cst_283 = arith.constant 3.200000e+01 : f32
    %819 = vector.broadcast %cst_283 : f32 to vector<20x1xf32>
    %820 = arith.divf %818, %819 : vector<20x1xf32>
    %821 = vector.broadcast %813 : vector<20x1xf32> to vector<20x32xf32>
    %822 = arith.subf %809, %821 : vector<20x32xf32>
    %cst_284 = arith.constant 9.99999974E-6 : f32
    %823 = vector.broadcast %cst_284 : f32 to vector<20x1xf32>
    %824 = arith.addf %820, %823 : vector<20x1xf32>
    %825 = math.rsqrt %824 : vector<20x1xf32>
    %826 = vector.broadcast %825 : vector<20x1xf32> to vector<20x32xf32>
    %827 = arith.mulf %822, %826 : vector<20x32xf32>
    %828 = vector.broadcast %726 : vector<1x32xf32> to vector<20x32xf32>
    %829 = arith.mulf %827, %828 : vector<20x32xf32>
    %830 = vector.broadcast %727 : vector<1x32xf32> to vector<20x32xf32>
    %831 = arith.addf %829, %830 : vector<20x32xf32>
    %c2_285 = arith.constant 2 : index
    %c0_286 = arith.constant 0 : index
    %c0_287 = arith.constant 0 : index
    %832 = vector.load %arg12[%c2_285, %c0_286, %c0_287] : memref<5x32x64xf32, #tpu.memory_space<vmem>>, vector<1x32x64xf32>
    %833 = vector.shape_cast %832 : vector<1x32x64xf32> to vector<32x64xf32>
    %cst_288 = arith.constant dense<0.000000e+00> : vector<20x64xf32>
    %834 = tpu.matmul %831, %833, %cst_288 {dimension_numbers = #tpu.dot_dimension_numbers<[1], [0], [0], [1], [0, 0, 1, 1], [], []>} : vector<20x32xf32>, vector<32x64xf32>, vector<20x64xf32> -> vector<20x64xf32>
    %835 = vector.broadcast %731 : vector<1x64xf32> to vector<20x64xf32>
    %836 = arith.addf %834, %835 : vector<20x64xf32>
    %837 = arith.mulf %836, %836 : vector<20x64xf32>
    %838 = arith.mulf %836, %837 : vector<20x64xf32>
    %cst_289 = arith.constant 4.471500e-02 : f32
    %839 = vector.broadcast %cst_289 : f32 to vector<20x64xf32>
    %840 = arith.mulf %839, %838 : vector<20x64xf32>
    %841 = arith.addf %836, %840 : vector<20x64xf32>
    %cst_290 = arith.constant 0.797884583 : f32
    %842 = vector.broadcast %cst_290 : f32 to vector<20x64xf32>
    %843 = arith.mulf %842, %841 : vector<20x64xf32>
    %844 = math.tanh %843 : vector<20x64xf32>
    %cst_291 = arith.constant 1.000000e+00 : f32
    %845 = vector.broadcast %cst_291 : f32 to vector<20x64xf32>
    %846 = arith.addf %845, %844 : vector<20x64xf32>
    %cst_292 = arith.constant 5.000000e-01 : f32
    %847 = vector.broadcast %cst_292 : f32 to vector<20x64xf32>
    %848 = arith.mulf %847, %846 : vector<20x64xf32>
    %849 = arith.mulf %836, %848 : vector<20x64xf32>
    %c2_293 = arith.constant 2 : index
    %c0_294 = arith.constant 0 : index
    %c0_295 = arith.constant 0 : index
    %850 = vector.load %arg13[%c2_293, %c0_294, %c0_295] : memref<5x64x32xf32, #tpu.memory_space<vmem>>, vector<1x64x32xf32>
    %851 = vector.shape_cast %850 : vector<1x64x32xf32> to vector<64x32xf32>
    %cst_296 = arith.constant dense<0.000000e+00> : vector<20x32xf32>
    %852 = tpu.matmul %849, %851, %cst_296 {dimension_numbers = #tpu.dot_dimension_numbers<[1], [0], [0], [1], [0, 0, 1, 1], [], []>} : vector<20x64xf32>, vector<64x32xf32>, vector<20x32xf32> -> vector<20x32xf32>
    %853 = arith.addf %809, %852 : vector<20x32xf32>
    %854 = vector.broadcast %729 : vector<1x32xf32> to vector<20x32xf32>
    %855 = arith.addf %853, %854 : vector<20x32xf32>
    %c3_297 = arith.constant 3 : index
    %c0_298 = arith.constant 0 : index
    %c0_299 = arith.constant 0 : index
    %856 = vector.load %arg14[%c3_297, %c0_298, %c0_299] : memref<5x8x96xf32, #tpu.memory_space<vmem>>, vector<1x8x96xf32>
    %857 = vector.shape_cast %856 : vector<1x8x96xf32> to vector<8x96xf32>
    %858 = vector.extract_strided_slice %857 {offsets = [0, 0], sizes = [1, 32], strides = [1, 1]} : vector<8x96xf32> to vector<1x32xf32>
    %859 = vector.extract_strided_slice %857 {offsets = [1, 0], sizes = [1, 32], strides = [1, 1]} : vector<8x96xf32> to vector<1x32xf32>
    %860 = vector.extract_strided_slice %857 {offsets = [2, 0], sizes = [1, 32], strides = [1, 1]} : vector<8x96xf32> to vector<1x32xf32>
    %861 = vector.extract_strided_slice %857 {offsets = [3, 0], sizes = [1, 32], strides = [1, 1]} : vector<8x96xf32> to vector<1x32xf32>
    %862 = vector.extract_strided_slice %857 {offsets = [4, 0], sizes = [1, 32], strides = [1, 1]} : vector<8x96xf32> to vector<1x32xf32>
    %863 = vector.extract_strided_slice %857 {offsets = [5, 0], sizes = [1, 32], strides = [1, 1]} : vector<8x96xf32> to vector<1x32xf32>
    %864 = vector.extract_strided_slice %857 {offsets = [6, 0], sizes = [1, 96], strides = [1, 1]} : vector<8x96xf32> to vector<1x96xf32>
    %865 = vector.extract_strided_slice %857 {offsets = [7, 0], sizes = [1, 64], strides = [1, 1]} : vector<8x96xf32> to vector<1x64xf32>
    %cst_300 = arith.constant dense<0.000000e+00> : vector<20xf32>
    %866 = vector.multi_reduction <add>, %855, %cst_300 [1] : vector<20x32xf32> to vector<20xf32>
    %867 = vector.shape_cast %866 : vector<20xf32> to vector<20x1xf32>
    %cst_301 = arith.constant 3.200000e+01 : f32
    %868 = vector.broadcast %cst_301 : f32 to vector<20x1xf32>
    %869 = arith.divf %867, %868 : vector<20x1xf32>
    %870 = vector.broadcast %869 : vector<20x1xf32> to vector<20x32xf32>
    %871 = arith.subf %855, %870 : vector<20x32xf32>
    %872 = arith.mulf %871, %871 : vector<20x32xf32>
    %cst_302 = arith.constant dense<0.000000e+00> : vector<20xf32>
    %873 = vector.multi_reduction <add>, %872, %cst_302 [1] : vector<20x32xf32> to vector<20xf32>
    %874 = vector.shape_cast %873 : vector<20xf32> to vector<20x1xf32>
    %cst_303 = arith.constant 3.200000e+01 : f32
    %875 = vector.broadcast %cst_303 : f32 to vector<20x1xf32>
    %876 = arith.divf %874, %875 : vector<20x1xf32>
    %877 = vector.broadcast %869 : vector<20x1xf32> to vector<20x32xf32>
    %878 = arith.subf %855, %877 : vector<20x32xf32>
    %cst_304 = arith.constant 9.99999974E-6 : f32
    %879 = vector.broadcast %cst_304 : f32 to vector<20x1xf32>
    %880 = arith.addf %876, %879 : vector<20x1xf32>
    %881 = math.rsqrt %880 : vector<20x1xf32>
    %882 = vector.broadcast %881 : vector<20x1xf32> to vector<20x32xf32>
    %883 = arith.mulf %878, %882 : vector<20x32xf32>
    %884 = vector.broadcast %858 : vector<1x32xf32> to vector<20x32xf32>
    %885 = arith.mulf %883, %884 : vector<20x32xf32>
    %886 = vector.broadcast %859 : vector<1x32xf32> to vector<20x32xf32>
    %887 = arith.addf %885, %886 : vector<20x32xf32>
    %c3_305 = arith.constant 3 : index
    %c0_306 = arith.constant 0 : index
    %c0_307 = arith.constant 0 : index
    %888 = vector.load %arg10[%c3_305, %c0_306, %c0_307] : memref<5x32x96xf32, #tpu.memory_space<vmem>>, vector<1x32x96xf32>
    %889 = vector.shape_cast %888 : vector<1x32x96xf32> to vector<32x96xf32>
    %cst_308 = arith.constant dense<0.000000e+00> : vector<20x96xf32>
    %890 = tpu.matmul %887, %889, %cst_308 {dimension_numbers = #tpu.dot_dimension_numbers<[1], [0], [0], [1], [0, 0, 1, 1], [], []>} : vector<20x32xf32>, vector<32x96xf32>, vector<20x96xf32> -> vector<20x96xf32>
    %891 = vector.broadcast %864 : vector<1x96xf32> to vector<20x96xf32>
    %892 = arith.addf %890, %891 : vector<20x96xf32>
    %893 = vector.extract_strided_slice %892 {offsets = [0, 0], sizes = [20, 32], strides = [1, 1]} : vector<20x96xf32> to vector<20x32xf32>
    %cst_309 = arith.constant 2.500000e-01 : f32
    %894 = vector.broadcast %cst_309 : f32 to vector<20x32xf32>
    %895 = arith.mulf %893, %894 : vector<20x32xf32>
    %896 = vector.extract_strided_slice %892 {offsets = [0, 32], sizes = [20, 32], strides = [1, 1]} : vector<20x96xf32> to vector<20x32xf32>
    %897 = vector.extract_strided_slice %892 {offsets = [0, 64], sizes = [20, 32], strides = [1, 1]} : vector<20x96xf32> to vector<20x32xf32>
    %898 = vector.extract_strided_slice %895 {offsets = [0, 0], sizes = [20, 16], strides = [1, 1]} : vector<20x32xf32> to vector<20x16xf32>
    %899 = vector.extract_strided_slice %895 {offsets = [0, 16], sizes = [20, 16], strides = [1, 1]} : vector<20x32xf32> to vector<20x16xf32>
    %900 = vector.shape_cast %898 : vector<20x16xf32> to vector<1x20x16xf32>
    %901 = vector.shape_cast %899 : vector<20x16xf32> to vector<1x20x16xf32>
    %902 = tpu.concatenate %900, %901 in 0 : vector<1x20x16xf32>, vector<1x20x16xf32> -> vector<2x20x16xf32>
    %903 = vector.extract_strided_slice %896 {offsets = [0, 0], sizes = [20, 16], strides = [1, 1]} : vector<20x32xf32> to vector<20x16xf32>
    %904 = vector.extract_strided_slice %896 {offsets = [0, 16], sizes = [20, 16], strides = [1, 1]} : vector<20x32xf32> to vector<20x16xf32>
    %905 = vector.shape_cast %903 : vector<20x16xf32> to vector<1x20x16xf32>
    %906 = vector.shape_cast %904 : vector<20x16xf32> to vector<1x20x16xf32>
    %907 = tpu.concatenate %905, %906 in 0 : vector<1x20x16xf32>, vector<1x20x16xf32> -> vector<2x20x16xf32>
    %908 = vector.extract_strided_slice %897 {offsets = [0, 0], sizes = [20, 16], strides = [1, 1]} : vector<20x32xf32> to vector<20x16xf32>
    %909 = vector.extract_strided_slice %897 {offsets = [0, 16], sizes = [20, 16], strides = [1, 1]} : vector<20x32xf32> to vector<20x16xf32>
    %910 = vector.shape_cast %908 : vector<20x16xf32> to vector<1x20x16xf32>
    %911 = vector.shape_cast %909 : vector<20x16xf32> to vector<1x20x16xf32>
    %912 = tpu.concatenate %910, %911 in 0 : vector<1x20x16xf32>, vector<1x20x16xf32> -> vector<2x20x16xf32>
    "tpu.trace_start"() <{level = 10 : i32, message = "hqd,hkd->hqk"}> : () -> ()
    %cst_310 = arith.constant dense<0.000000e+00> : vector<2x20x20xf32>
    %913 = tpu.matmul %902, %907, %cst_310 {dimension_numbers = #tpu.dot_dimension_numbers<[2], [2], [1], [1], [0, 0, 0, 1, 1, 1], [0], [0]>} : vector<2x20x16xf32>, vector<2x20x16xf32>, vector<2x20x20xf32> -> vector<2x20x20xf32>
    "tpu.trace_stop"() : () -> ()
    %914 = vector.shape_cast %453 : vector<20x20xi1> to vector<1x20x20xi1>
    %cst_311 = arith.constant -1.000000e+30 : f32
    %915 = vector.shape_cast %914 : vector<1x20x20xi1> to vector<1x20x20xi1>
    %916 = vector.broadcast %915 : vector<1x20x20xi1> to vector<2x20x20xi1>
    %917 = vector.broadcast %cst_311 : f32 to vector<2x20x20xf32>
    %918 = arith.select %916, %913, %917 : vector<2x20x20xi1>, vector<2x20x20xf32>
    %cst_312 = arith.constant dense<0xFF800000> : vector<2x20xf32>
    %919 = vector.multi_reduction <maximumf>, %918, %cst_312 [2] : vector<2x20x20xf32> to vector<2x20xf32>
    %920 = vector.shape_cast %919 : vector<2x20xf32> to vector<2x20x1xf32>
    %921 = vector.broadcast %920 : vector<2x20x1xf32> to vector<2x20x20xf32>
    %922 = arith.subf %918, %921 : vector<2x20x20xf32>
    %923 = math.exp %922 : vector<2x20x20xf32>
    %cst_313 = arith.constant dense<0.000000e+00> : vector<2x20xf32>
    %924 = vector.multi_reduction <add>, %923, %cst_313 [2] : vector<2x20x20xf32> to vector<2x20xf32>
    %925 = vector.shape_cast %924 : vector<2x20xf32> to vector<2x20x1xf32>
    %926 = tpu.reciprocal %925 {approx = true} : vector<2x20x1xf32> -> vector<2x20x1xf32>
    %927 = vector.broadcast %926 : vector<2x20x1xf32> to vector<2x20x20xf32>
    %928 = arith.mulf %923, %927 : vector<2x20x20xf32>
    "tpu.trace_start"() <{level = 10 : i32, message = "hqk,hkd->hqd"}> : () -> ()
    %cst_314 = arith.constant dense<0.000000e+00> : vector<2x20x16xf32>
    %929 = tpu.matmul %928, %912, %cst_314 {dimension_numbers = #tpu.dot_dimension_numbers<[2], [1], [1], [2], [0, 0, 0, 1, 1, 2], [0], [0]>} : vector<2x20x20xf32>, vector<2x20x16xf32>, vector<2x20x16xf32> -> vector<2x20x16xf32>
    "tpu.trace_stop"() : () -> ()
    %c3_315 = arith.constant 3 : index
    %c0_316 = arith.constant 0 : index
    %c0_317 = arith.constant 0 : index
    %930 = vector.load %arg11[%c3_315, %c0_316, %c0_317] : memref<5x32x32xf32, #tpu.memory_space<vmem>>, vector<1x32x32xf32>
    %931 = vector.shape_cast %930 : vector<1x32x32xf32> to vector<32x32xf32>
    %932 = vector.extract_strided_slice %929 {offsets = [0, 0, 0], sizes = [1, 20, 16], strides = [1, 1, 1]} : vector<2x20x16xf32> to vector<1x20x16xf32>
    %933 = vector.shape_cast %932 : vector<1x20x16xf32> to vector<20x16xf32>
    %934 = vector.extract_strided_slice %931 {offsets = [0, 0], sizes = [16, 32], strides = [1, 1]} : vector<32x32xf32> to vector<16x32xf32>
    %cst_318 = arith.constant dense<0.000000e+00> : vector<20x32xf32>
    %935 = tpu.matmul %933, %934, %cst_318 {dimension_numbers = #tpu.dot_dimension_numbers<[1], [0], [0], [1], [0, 0, 1, 1], [], []>} : vector<20x16xf32>, vector<16x32xf32>, vector<20x32xf32> -> vector<20x32xf32>
    %936 = vector.extract_strided_slice %929 {offsets = [1, 0, 0], sizes = [1, 20, 16], strides = [1, 1, 1]} : vector<2x20x16xf32> to vector<1x20x16xf32>
    %937 = vector.shape_cast %936 : vector<1x20x16xf32> to vector<20x16xf32>
    %938 = vector.extract_strided_slice %931 {offsets = [16, 0], sizes = [16, 32], strides = [1, 1]} : vector<32x32xf32> to vector<16x32xf32>
    %cst_319 = arith.constant dense<0.000000e+00> : vector<20x32xf32>
    %939 = tpu.matmul %937, %938, %cst_319 {dimension_numbers = #tpu.dot_dimension_numbers<[1], [0], [0], [1], [0, 0, 1, 1], [], []>} : vector<20x16xf32>, vector<16x32xf32>, vector<20x32xf32> -> vector<20x32xf32>
    %940 = arith.addf %935, %939 : vector<20x32xf32>
    %941 = arith.addf %855, %940 : vector<20x32xf32>
    %942 = vector.broadcast %862 : vector<1x32xf32> to vector<20x32xf32>
    %943 = arith.addf %941, %942 : vector<20x32xf32>
    %cst_320 = arith.constant dense<0.000000e+00> : vector<20xf32>
    %944 = vector.multi_reduction <add>, %943, %cst_320 [1] : vector<20x32xf32> to vector<20xf32>
    %945 = vector.shape_cast %944 : vector<20xf32> to vector<20x1xf32>
    %cst_321 = arith.constant 3.200000e+01 : f32
    %946 = vector.broadcast %cst_321 : f32 to vector<20x1xf32>
    %947 = arith.divf %945, %946 : vector<20x1xf32>
    %948 = vector.broadcast %947 : vector<20x1xf32> to vector<20x32xf32>
    %949 = arith.subf %943, %948 : vector<20x32xf32>
    %950 = arith.mulf %949, %949 : vector<20x32xf32>
    %cst_322 = arith.constant dense<0.000000e+00> : vector<20xf32>
    %951 = vector.multi_reduction <add>, %950, %cst_322 [1] : vector<20x32xf32> to vector<20xf32>
    %952 = vector.shape_cast %951 : vector<20xf32> to vector<20x1xf32>
    %cst_323 = arith.constant 3.200000e+01 : f32
    %953 = vector.broadcast %cst_323 : f32 to vector<20x1xf32>
    %954 = arith.divf %952, %953 : vector<20x1xf32>
    %955 = vector.broadcast %947 : vector<20x1xf32> to vector<20x32xf32>
    %956 = arith.subf %943, %955 : vector<20x32xf32>
    %cst_324 = arith.constant 9.99999974E-6 : f32
    %957 = vector.broadcast %cst_324 : f32 to vector<20x1xf32>
    %958 = arith.addf %954, %957 : vector<20x1xf32>
    %959 = math.rsqrt %958 : vector<20x1xf32>
    %960 = vector.broadcast %959 : vector<20x1xf32> to vector<20x32xf32>
    %961 = arith.mulf %956, %960 : vector<20x32xf32>
    %962 = vector.broadcast %860 : vector<1x32xf32> to vector<20x32xf32>
    %963 = arith.mulf %961, %962 : vector<20x32xf32>
    %964 = vector.broadcast %861 : vector<1x32xf32> to vector<20x32xf32>
    %965 = arith.addf %963, %964 : vector<20x32xf32>
    %c3_325 = arith.constant 3 : index
    %c0_326 = arith.constant 0 : index
    %c0_327 = arith.constant 0 : index
    %966 = vector.load %arg12[%c3_325, %c0_326, %c0_327] : memref<5x32x64xf32, #tpu.memory_space<vmem>>, vector<1x32x64xf32>
    %967 = vector.shape_cast %966 : vector<1x32x64xf32> to vector<32x64xf32>
    %cst_328 = arith.constant dense<0.000000e+00> : vector<20x64xf32>
    %968 = tpu.matmul %965, %967, %cst_328 {dimension_numbers = #tpu.dot_dimension_numbers<[1], [0], [0], [1], [0, 0, 1, 1], [], []>} : vector<20x32xf32>, vector<32x64xf32>, vector<20x64xf32> -> vector<20x64xf32>
    %969 = vector.broadcast %865 : vector<1x64xf32> to vector<20x64xf32>
    %970 = arith.addf %968, %969 : vector<20x64xf32>
    %971 = arith.mulf %970, %970 : vector<20x64xf32>
    %972 = arith.mulf %970, %971 : vector<20x64xf32>
    %cst_329 = arith.constant 4.471500e-02 : f32
    %973 = vector.broadcast %cst_329 : f32 to vector<20x64xf32>
    %974 = arith.mulf %973, %972 : vector<20x64xf32>
    %975 = arith.addf %970, %974 : vector<20x64xf32>
    %cst_330 = arith.constant 0.797884583 : f32
    %976 = vector.broadcast %cst_330 : f32 to vector<20x64xf32>
    %977 = arith.mulf %976, %975 : vector<20x64xf32>
    %978 = math.tanh %977 : vector<20x64xf32>
    %cst_331 = arith.constant 1.000000e+00 : f32
    %979 = vector.broadcast %cst_331 : f32 to vector<20x64xf32>
    %980 = arith.addf %979, %978 : vector<20x64xf32>
    %cst_332 = arith.constant 5.000000e-01 : f32
    %981 = vector.broadcast %cst_332 : f32 to vector<20x64xf32>
    %982 = arith.mulf %981, %980 : vector<20x64xf32>
    %983 = arith.mulf %970, %982 : vector<20x64xf32>
    %c3_333 = arith.constant 3 : index
    %c0_334 = arith.constant 0 : index
    %c0_335 = arith.constant 0 : index
    %984 = vector.load %arg13[%c3_333, %c0_334, %c0_335] : memref<5x64x32xf32, #tpu.memory_space<vmem>>, vector<1x64x32xf32>
    %985 = vector.shape_cast %984 : vector<1x64x32xf32> to vector<64x32xf32>
    %cst_336 = arith.constant dense<0.000000e+00> : vector<20x32xf32>
    %986 = tpu.matmul %983, %985, %cst_336 {dimension_numbers = #tpu.dot_dimension_numbers<[1], [0], [0], [1], [0, 0, 1, 1], [], []>} : vector<20x64xf32>, vector<64x32xf32>, vector<20x32xf32> -> vector<20x32xf32>
    %987 = arith.addf %943, %986 : vector<20x32xf32>
    %988 = vector.broadcast %863 : vector<1x32xf32> to vector<20x32xf32>
    %989 = arith.addf %987, %988 : vector<20x32xf32>
    %c4_337 = arith.constant 4 : index
    %c0_338 = arith.constant 0 : index
    %c0_339 = arith.constant 0 : index
    %990 = vector.load %arg14[%c4_337, %c0_338, %c0_339] : memref<5x8x96xf32, #tpu.memory_space<vmem>>, vector<1x8x96xf32>
    %991 = vector.shape_cast %990 : vector<1x8x96xf32> to vector<8x96xf32>
    %992 = vector.extract_strided_slice %991 {offsets = [0, 0], sizes = [1, 32], strides = [1, 1]} : vector<8x96xf32> to vector<1x32xf32>
    %993 = vector.extract_strided_slice %991 {offsets = [1, 0], sizes = [1, 32], strides = [1, 1]} : vector<8x96xf32> to vector<1x32xf32>
    %994 = vector.extract_strided_slice %991 {offsets = [2, 0], sizes = [1, 32], strides = [1, 1]} : vector<8x96xf32> to vector<1x32xf32>
    %995 = vector.extract_strided_slice %991 {offsets = [3, 0], sizes = [1, 32], strides = [1, 1]} : vector<8x96xf32> to vector<1x32xf32>
    %996 = vector.extract_strided_slice %991 {offsets = [4, 0], sizes = [1, 32], strides = [1, 1]} : vector<8x96xf32> to vector<1x32xf32>
    %997 = vector.extract_strided_slice %991 {offsets = [5, 0], sizes = [1, 32], strides = [1, 1]} : vector<8x96xf32> to vector<1x32xf32>
    %998 = vector.extract_strided_slice %991 {offsets = [6, 0], sizes = [1, 96], strides = [1, 1]} : vector<8x96xf32> to vector<1x96xf32>
    %999 = vector.extract_strided_slice %991 {offsets = [7, 0], sizes = [1, 64], strides = [1, 1]} : vector<8x96xf32> to vector<1x64xf32>
    %cst_340 = arith.constant dense<0.000000e+00> : vector<20xf32>
    %1000 = vector.multi_reduction <add>, %989, %cst_340 [1] : vector<20x32xf32> to vector<20xf32>
    %1001 = vector.shape_cast %1000 : vector<20xf32> to vector<20x1xf32>
    %cst_341 = arith.constant 3.200000e+01 : f32
    %1002 = vector.broadcast %cst_341 : f32 to vector<20x1xf32>
    %1003 = arith.divf %1001, %1002 : vector<20x1xf32>
    %1004 = vector.broadcast %1003 : vector<20x1xf32> to vector<20x32xf32>
    %1005 = arith.subf %989, %1004 : vector<20x32xf32>
    %1006 = arith.mulf %1005, %1005 : vector<20x32xf32>
    %cst_342 = arith.constant dense<0.000000e+00> : vector<20xf32>
    %1007 = vector.multi_reduction <add>, %1006, %cst_342 [1] : vector<20x32xf32> to vector<20xf32>
    %1008 = vector.shape_cast %1007 : vector<20xf32> to vector<20x1xf32>
    %cst_343 = arith.constant 3.200000e+01 : f32
    %1009 = vector.broadcast %cst_343 : f32 to vector<20x1xf32>
    %1010 = arith.divf %1008, %1009 : vector<20x1xf32>
    %1011 = vector.broadcast %1003 : vector<20x1xf32> to vector<20x32xf32>
    %1012 = arith.subf %989, %1011 : vector<20x32xf32>
    %cst_344 = arith.constant 9.99999974E-6 : f32
    %1013 = vector.broadcast %cst_344 : f32 to vector<20x1xf32>
    %1014 = arith.addf %1010, %1013 : vector<20x1xf32>
    %1015 = math.rsqrt %1014 : vector<20x1xf32>
    %1016 = vector.broadcast %1015 : vector<20x1xf32> to vector<20x32xf32>
    %1017 = arith.mulf %1012, %1016 : vector<20x32xf32>
    %1018 = vector.broadcast %992 : vector<1x32xf32> to vector<20x32xf32>
    %1019 = arith.mulf %1017, %1018 : vector<20x32xf32>
    %1020 = vector.broadcast %993 : vector<1x32xf32> to vector<20x32xf32>
    %1021 = arith.addf %1019, %1020 : vector<20x32xf32>
    %c4_345 = arith.constant 4 : index
    %c0_346 = arith.constant 0 : index
    %c0_347 = arith.constant 0 : index
    %1022 = vector.load %arg10[%c4_345, %c0_346, %c0_347] : memref<5x32x96xf32, #tpu.memory_space<vmem>>, vector<1x32x96xf32>
    %1023 = vector.shape_cast %1022 : vector<1x32x96xf32> to vector<32x96xf32>
    %cst_348 = arith.constant dense<0.000000e+00> : vector<20x96xf32>
    %1024 = tpu.matmul %1021, %1023, %cst_348 {dimension_numbers = #tpu.dot_dimension_numbers<[1], [0], [0], [1], [0, 0, 1, 1], [], []>} : vector<20x32xf32>, vector<32x96xf32>, vector<20x96xf32> -> vector<20x96xf32>
    %1025 = vector.broadcast %998 : vector<1x96xf32> to vector<20x96xf32>
    %1026 = arith.addf %1024, %1025 : vector<20x96xf32>
    %1027 = vector.extract_strided_slice %1026 {offsets = [0, 0], sizes = [20, 32], strides = [1, 1]} : vector<20x96xf32> to vector<20x32xf32>
    %cst_349 = arith.constant 2.500000e-01 : f32
    %1028 = vector.broadcast %cst_349 : f32 to vector<20x32xf32>
    %1029 = arith.mulf %1027, %1028 : vector<20x32xf32>
    %1030 = vector.extract_strided_slice %1026 {offsets = [0, 32], sizes = [20, 32], strides = [1, 1]} : vector<20x96xf32> to vector<20x32xf32>
    %1031 = vector.extract_strided_slice %1026 {offsets = [0, 64], sizes = [20, 32], strides = [1, 1]} : vector<20x96xf32> to vector<20x32xf32>
    %1032 = vector.extract_strided_slice %1029 {offsets = [0, 0], sizes = [20, 16], strides = [1, 1]} : vector<20x32xf32> to vector<20x16xf32>
    %1033 = vector.extract_strided_slice %1029 {offsets = [0, 16], sizes = [20, 16], strides = [1, 1]} : vector<20x32xf32> to vector<20x16xf32>
    %1034 = vector.shape_cast %1032 : vector<20x16xf32> to vector<1x20x16xf32>
    %1035 = vector.shape_cast %1033 : vector<20x16xf32> to vector<1x20x16xf32>
    %1036 = tpu.concatenate %1034, %1035 in 0 : vector<1x20x16xf32>, vector<1x20x16xf32> -> vector<2x20x16xf32>
    %1037 = vector.extract_strided_slice %1030 {offsets = [0, 0], sizes = [20, 16], strides = [1, 1]} : vector<20x32xf32> to vector<20x16xf32>
    %1038 = vector.extract_strided_slice %1030 {offsets = [0, 16], sizes = [20, 16], strides = [1, 1]} : vector<20x32xf32> to vector<20x16xf32>
    %1039 = vector.shape_cast %1037 : vector<20x16xf32> to vector<1x20x16xf32>
    %1040 = vector.shape_cast %1038 : vector<20x16xf32> to vector<1x20x16xf32>
    %1041 = tpu.concatenate %1039, %1040 in 0 : vector<1x20x16xf32>, vector<1x20x16xf32> -> vector<2x20x16xf32>
    %1042 = vector.extract_strided_slice %1031 {offsets = [0, 0], sizes = [20, 16], strides = [1, 1]} : vector<20x32xf32> to vector<20x16xf32>
    %1043 = vector.extract_strided_slice %1031 {offsets = [0, 16], sizes = [20, 16], strides = [1, 1]} : vector<20x32xf32> to vector<20x16xf32>
    %1044 = vector.shape_cast %1042 : vector<20x16xf32> to vector<1x20x16xf32>
    %1045 = vector.shape_cast %1043 : vector<20x16xf32> to vector<1x20x16xf32>
    %1046 = tpu.concatenate %1044, %1045 in 0 : vector<1x20x16xf32>, vector<1x20x16xf32> -> vector<2x20x16xf32>
    "tpu.trace_start"() <{level = 10 : i32, message = "hqd,hkd->hqk"}> : () -> ()
    %cst_350 = arith.constant dense<0.000000e+00> : vector<2x20x20xf32>
    %1047 = tpu.matmul %1036, %1041, %cst_350 {dimension_numbers = #tpu.dot_dimension_numbers<[2], [2], [1], [1], [0, 0, 0, 1, 1, 1], [0], [0]>} : vector<2x20x16xf32>, vector<2x20x16xf32>, vector<2x20x20xf32> -> vector<2x20x20xf32>
    "tpu.trace_stop"() : () -> ()
    %1048 = vector.shape_cast %453 : vector<20x20xi1> to vector<1x20x20xi1>
    %cst_351 = arith.constant -1.000000e+30 : f32
    %1049 = vector.shape_cast %1048 : vector<1x20x20xi1> to vector<1x20x20xi1>
    %1050 = vector.broadcast %1049 : vector<1x20x20xi1> to vector<2x20x20xi1>
    %1051 = vector.broadcast %cst_351 : f32 to vector<2x20x20xf32>
    %1052 = arith.select %1050, %1047, %1051 : vector<2x20x20xi1>, vector<2x20x20xf32>
    %cst_352 = arith.constant dense<0xFF800000> : vector<2x20xf32>
    %1053 = vector.multi_reduction <maximumf>, %1052, %cst_352 [2] : vector<2x20x20xf32> to vector<2x20xf32>
    %1054 = vector.shape_cast %1053 : vector<2x20xf32> to vector<2x20x1xf32>
    %1055 = vector.broadcast %1054 : vector<2x20x1xf32> to vector<2x20x20xf32>
    %1056 = arith.subf %1052, %1055 : vector<2x20x20xf32>
    %1057 = math.exp %1056 : vector<2x20x20xf32>
    %cst_353 = arith.constant dense<0.000000e+00> : vector<2x20xf32>
    %1058 = vector.multi_reduction <add>, %1057, %cst_353 [2] : vector<2x20x20xf32> to vector<2x20xf32>
    %1059 = vector.shape_cast %1058 : vector<2x20xf32> to vector<2x20x1xf32>
    %1060 = tpu.reciprocal %1059 {approx = true} : vector<2x20x1xf32> -> vector<2x20x1xf32>
    %1061 = vector.broadcast %1060 : vector<2x20x1xf32> to vector<2x20x20xf32>
    %1062 = arith.mulf %1057, %1061 : vector<2x20x20xf32>
    "tpu.trace_start"() <{level = 10 : i32, message = "hqk,hkd->hqd"}> : () -> ()
    %cst_354 = arith.constant dense<0.000000e+00> : vector<2x20x16xf32>
    %1063 = tpu.matmul %1062, %1046, %cst_354 {dimension_numbers = #tpu.dot_dimension_numbers<[2], [1], [1], [2], [0, 0, 0, 1, 1, 2], [0], [0]>} : vector<2x20x20xf32>, vector<2x20x16xf32>, vector<2x20x16xf32> -> vector<2x20x16xf32>
    "tpu.trace_stop"() : () -> ()
    %c4_355 = arith.constant 4 : index
    %c0_356 = arith.constant 0 : index
    %c0_357 = arith.constant 0 : index
    %1064 = vector.load %arg11[%c4_355, %c0_356, %c0_357] : memref<5x32x32xf32, #tpu.memory_space<vmem>>, vector<1x32x32xf32>
    %1065 = vector.shape_cast %1064 : vector<1x32x32xf32> to vector<32x32xf32>
    %1066 = vector.extract_strided_slice %1063 {offsets = [0, 0, 0], sizes = [1, 20, 16], strides = [1, 1, 1]} : vector<2x20x16xf32> to vector<1x20x16xf32>
    %1067 = vector.shape_cast %1066 : vector<1x20x16xf32> to vector<20x16xf32>
    %1068 = vector.extract_strided_slice %1065 {offsets = [0, 0], sizes = [16, 32], strides = [1, 1]} : vector<32x32xf32> to vector<16x32xf32>
    %cst_358 = arith.constant dense<0.000000e+00> : vector<20x32xf32>
    %1069 = tpu.matmul %1067, %1068, %cst_358 {dimension_numbers = #tpu.dot_dimension_numbers<[1], [0], [0], [1], [0, 0, 1, 1], [], []>} : vector<20x16xf32>, vector<16x32xf32>, vector<20x32xf32> -> vector<20x32xf32>
    %1070 = vector.extract_strided_slice %1063 {offsets = [1, 0, 0], sizes = [1, 20, 16], strides = [1, 1, 1]} : vector<2x20x16xf32> to vector<1x20x16xf32>
    %1071 = vector.shape_cast %1070 : vector<1x20x16xf32> to vector<20x16xf32>
    %1072 = vector.extract_strided_slice %1065 {offsets = [16, 0], sizes = [16, 32], strides = [1, 1]} : vector<32x32xf32> to vector<16x32xf32>
    %cst_359 = arith.constant dense<0.000000e+00> : vector<20x32xf32>
    %1073 = tpu.matmul %1071, %1072, %cst_359 {dimension_numbers = #tpu.dot_dimension_numbers<[1], [0], [0], [1], [0, 0, 1, 1], [], []>} : vector<20x16xf32>, vector<16x32xf32>, vector<20x32xf32> -> vector<20x32xf32>
    %1074 = arith.addf %1069, %1073 : vector<20x32xf32>
    %1075 = arith.addf %989, %1074 : vector<20x32xf32>
    %1076 = vector.broadcast %996 : vector<1x32xf32> to vector<20x32xf32>
    %1077 = arith.addf %1075, %1076 : vector<20x32xf32>
    %cst_360 = arith.constant dense<0.000000e+00> : vector<20xf32>
    %1078 = vector.multi_reduction <add>, %1077, %cst_360 [1] : vector<20x32xf32> to vector<20xf32>
    %1079 = vector.shape_cast %1078 : vector<20xf32> to vector<20x1xf32>
    %cst_361 = arith.constant 3.200000e+01 : f32
    %1080 = vector.broadcast %cst_361 : f32 to vector<20x1xf32>
    %1081 = arith.divf %1079, %1080 : vector<20x1xf32>
    %1082 = vector.broadcast %1081 : vector<20x1xf32> to vector<20x32xf32>
    %1083 = arith.subf %1077, %1082 : vector<20x32xf32>
    %1084 = arith.mulf %1083, %1083 : vector<20x32xf32>
    %cst_362 = arith.constant dense<0.000000e+00> : vector<20xf32>
    %1085 = vector.multi_reduction <add>, %1084, %cst_362 [1] : vector<20x32xf32> to vector<20xf32>
    %1086 = vector.shape_cast %1085 : vector<20xf32> to vector<20x1xf32>
    %cst_363 = arith.constant 3.200000e+01 : f32
    %1087 = vector.broadcast %cst_363 : f32 to vector<20x1xf32>
    %1088 = arith.divf %1086, %1087 : vector<20x1xf32>
    %1089 = vector.broadcast %1081 : vector<20x1xf32> to vector<20x32xf32>
    %1090 = arith.subf %1077, %1089 : vector<20x32xf32>
    %cst_364 = arith.constant 9.99999974E-6 : f32
    %1091 = vector.broadcast %cst_364 : f32 to vector<20x1xf32>
    %1092 = arith.addf %1088, %1091 : vector<20x1xf32>
    %1093 = math.rsqrt %1092 : vector<20x1xf32>
    %1094 = vector.broadcast %1093 : vector<20x1xf32> to vector<20x32xf32>
    %1095 = arith.mulf %1090, %1094 : vector<20x32xf32>
    %1096 = vector.broadcast %994 : vector<1x32xf32> to vector<20x32xf32>
    %1097 = arith.mulf %1095, %1096 : vector<20x32xf32>
    %1098 = vector.broadcast %995 : vector<1x32xf32> to vector<20x32xf32>
    %1099 = arith.addf %1097, %1098 : vector<20x32xf32>
    %c4_365 = arith.constant 4 : index
    %c0_366 = arith.constant 0 : index
    %c0_367 = arith.constant 0 : index
    %1100 = vector.load %arg12[%c4_365, %c0_366, %c0_367] : memref<5x32x64xf32, #tpu.memory_space<vmem>>, vector<1x32x64xf32>
    %1101 = vector.shape_cast %1100 : vector<1x32x64xf32> to vector<32x64xf32>
    %cst_368 = arith.constant dense<0.000000e+00> : vector<20x64xf32>
    %1102 = tpu.matmul %1099, %1101, %cst_368 {dimension_numbers = #tpu.dot_dimension_numbers<[1], [0], [0], [1], [0, 0, 1, 1], [], []>} : vector<20x32xf32>, vector<32x64xf32>, vector<20x64xf32> -> vector<20x64xf32>
    %1103 = vector.broadcast %999 : vector<1x64xf32> to vector<20x64xf32>
    %1104 = arith.addf %1102, %1103 : vector<20x64xf32>
    %1105 = arith.mulf %1104, %1104 : vector<20x64xf32>
    %1106 = arith.mulf %1104, %1105 : vector<20x64xf32>
    %cst_369 = arith.constant 4.471500e-02 : f32
    %1107 = vector.broadcast %cst_369 : f32 to vector<20x64xf32>
    %1108 = arith.mulf %1107, %1106 : vector<20x64xf32>
    %1109 = arith.addf %1104, %1108 : vector<20x64xf32>
    %cst_370 = arith.constant 0.797884583 : f32
    %1110 = vector.broadcast %cst_370 : f32 to vector<20x64xf32>
    %1111 = arith.mulf %1110, %1109 : vector<20x64xf32>
    %1112 = math.tanh %1111 : vector<20x64xf32>
    %cst_371 = arith.constant 1.000000e+00 : f32
    %1113 = vector.broadcast %cst_371 : f32 to vector<20x64xf32>
    %1114 = arith.addf %1113, %1112 : vector<20x64xf32>
    %cst_372 = arith.constant 5.000000e-01 : f32
    %1115 = vector.broadcast %cst_372 : f32 to vector<20x64xf32>
    %1116 = arith.mulf %1115, %1114 : vector<20x64xf32>
    %1117 = arith.mulf %1104, %1116 : vector<20x64xf32>
    %c4_373 = arith.constant 4 : index
    %c0_374 = arith.constant 0 : index
    %c0_375 = arith.constant 0 : index
    %1118 = vector.load %arg13[%c4_373, %c0_374, %c0_375] : memref<5x64x32xf32, #tpu.memory_space<vmem>>, vector<1x64x32xf32>
    %1119 = vector.shape_cast %1118 : vector<1x64x32xf32> to vector<64x32xf32>
    %cst_376 = arith.constant dense<0.000000e+00> : vector<20x32xf32>
    %1120 = tpu.matmul %1117, %1119, %cst_376 {dimension_numbers = #tpu.dot_dimension_numbers<[1], [0], [0], [1], [0, 0, 1, 1], [], []>} : vector<20x64xf32>, vector<64x32xf32>, vector<20x32xf32> -> vector<20x32xf32>
    %1121 = arith.addf %1077, %1120 : vector<20x32xf32>
    %1122 = vector.broadcast %997 : vector<1x32xf32> to vector<20x32xf32>
    %1123 = arith.addf %1121, %1122 : vector<20x32xf32>
    %1124 = vector.broadcast %0 : i32 to vector<20x32xi32>
    %1125 = arith.cmpi slt, %371, %1124 : vector<20x32xi32>
    %cst_377 = arith.constant 0.000000e+00 : f32
    %1126 = vector.broadcast %cst_377 : f32 to vector<20x32xf32>
    %1127 = arith.select %1125, %1123, %1126 : vector<20x32xi1>, vector<20x32xf32>
    %cst_378 = arith.constant 0.000000e+00 : f32
    %1128 = vector.broadcast %cst_378 : f32 to vector<20x96xf32>
    %1129 = tpu.concatenate %1127, %1128 in 1 : vector<20x32xf32>, vector<20x96xf32> -> vector<20x128xf32>
    %cst_379 = arith.constant 0.000000e+00 : f32
    %1130 = vector.broadcast %cst_379 : f32 to vector<4x128xf32>
    %1131 = tpu.concatenate %1129, %1130 in 0 : vector<20x128xf32>, vector<4x128xf32> -> vector<24x128xf32>
    %c0_380 = arith.constant 0 : index
    %c0_381 = arith.constant 0 : index
    %c0_382 = arith.constant 0 : index
    %1132 = vector.load %arg15[%c0_380, %c0_381, %c0_382] : memref<1x24x128xf32, #tpu.memory_space<vmem>>, vector<1x24x128xf32>
    %1133 = vector.shape_cast %1132 : vector<1x24x128xf32> to vector<24x128xf32>
    %1134 = vector.shape_cast %1131 : vector<24x128xf32> to vector<1x24x128xf32>
    tpu.vector_store %arg15[%c0_380, %c0_381, %c0_382], %1134 {strides = array<i32>} : memref<1x24x128xf32, #tpu.memory_space<vmem>>, vector<1x24x128xf32>,
    return
  }
  func.func @transform_0(%arg0: i32, %arg1: memref<1xi32, #tpu.memory_space<smem>>) -> (i32, i32, i32) {
    %c0_i32 = arith.constant 0 : i32
    %c0_i32_0 = arith.constant 0 : i32
    %c0_i32_1 = arith.constant 0 : i32
    return %arg0, %c0_i32, %c0_i32_0 : i32, i32, i32
  }
  func.func @transform_1(%arg0: i32, %arg1: memref<1xi32, #tpu.memory_space<smem>>) -> (i32, i32, i32) {
    %c0_i32 = arith.constant 0 : i32
    %c0_i32_0 = arith.constant 0 : i32
    %c0_i32_1 = arith.constant 0 : i32
    %c0_i32_2 = arith.constant 0 : i32
    return %c0_i32, %c0_i32_0, %c0_i32_1 : i32, i32, i32
  }
  func.func @transform_2(%arg0: i32, %arg1: memref<1xi32, #tpu.memory_space<smem>>) -> (i32, i32, i32) {
    %c0_i32 = arith.constant 0 : i32
    %c0_i32_0 = arith.constant 0 : i32
    %c0_i32_1 = arith.constant 0 : i32
    %c0_i32_2 = arith.constant 0 : i32
    return %c0_i32, %c0_i32_0, %c0_i32_1 : i32, i32, i32
  }
  func.func @transform_3(%arg0: i32, %arg1: memref<1xi32, #tpu.memory_space<smem>>) -> (i32, i32, i32) {
    %c0_i32 = arith.constant 0 : i32
    %c0_i32_0 = arith.constant 0 : i32
    %c0_i32_1 = arith.constant 0 : i32
    %c0_i32_2 = arith.constant 0 : i32
    return %c0_i32, %c0_i32_0, %c0_i32_1 : i32, i32, i32
  }
  func.func @transform_4(%arg0: i32, %arg1: memref<1xi32, #tpu.memory_space<smem>>) -> (i32, i32) {
    %c0_i32 = arith.constant 0 : i32
    %c0_i32_0 = arith.constant 0 : i32
    %c0_i32_1 = arith.constant 0 : i32
    return %c0_i32, %c0_i32_0 : i32, i32
  }
  func.func @transform_5(%arg0: i32, %arg1: memref<1xi32, #tpu.memory_space<smem>>) -> (i32, i32) {
    %c0_i32 = arith.constant 0 : i32
    %c0_i32_0 = arith.constant 0 : i32
    %c0_i32_1 = arith.constant 0 : i32
    return %c0_i32, %c0_i32_0 : i32, i32
  }
  func.func @transform_6(%arg0: i32, %arg1: memref<1xi32, #tpu.memory_space<smem>>) -> (i32, i32) {
    %c0_i32 = arith.constant 0 : i32
    %c0_i32_0 = arith.constant 0 : i32
    %c0_i32_1 = arith.constant 0 : i32
    return %c0_i32, %c0_i32_0 : i32, i32
  }
  func.func @transform_7(%arg0: i32, %arg1: memref<1xi32, #tpu.memory_space<smem>>) -> (i32, i32) {
    %c0_i32 = arith.constant 0 : i32
    %c0_i32_0 = arith.constant 0 : i32
    %c0_i32_1 = arith.constant 0 : i32
    return %c0_i32, %c0_i32_0 : i32, i32
  }
  func.func @transform_8(%arg0: i32, %arg1: memref<1xi32, #tpu.memory_space<smem>>) -> (i32, i32, i32) {
    %c0_i32 = arith.constant 0 : i32
    %c0_i32_0 = arith.constant 0 : i32
    %c0_i32_1 = arith.constant 0 : i32
    %c0_i32_2 = arith.constant 0 : i32
    return %c0_i32, %c0_i32_0, %c0_i32_1 : i32, i32, i32
  }
  func.func @transform_9(%arg0: i32, %arg1: memref<1xi32, #tpu.memory_space<smem>>) -> (i32, i32, i32) {
    %c0_i32 = arith.constant 0 : i32
    %c0_i32_0 = arith.constant 0 : i32
    %c0_i32_1 = arith.constant 0 : i32
    %c0_i32_2 = arith.constant 0 : i32
    return %c0_i32, %c0_i32_0, %c0_i32_1 : i32, i32, i32
  }
  func.func @transform_10(%arg0: i32, %arg1: memref<1xi32, #tpu.memory_space<smem>>) -> (i32, i32, i32) {
    %c0_i32 = arith.constant 0 : i32
    %c0_i32_0 = arith.constant 0 : i32
    %c0_i32_1 = arith.constant 0 : i32
    %c0_i32_2 = arith.constant 0 : i32
    return %c0_i32, %c0_i32_0, %c0_i32_1 : i32, i32, i32
  }
  func.func @transform_11(%arg0: i32, %arg1: memref<1xi32, #tpu.memory_space<smem>>) -> (i32, i32, i32) {
    %c0_i32 = arith.constant 0 : i32
    %c0_i32_0 = arith.constant 0 : i32
    %c0_i32_1 = arith.constant 0 : i32
    %c0_i32_2 = arith.constant 0 : i32
    return %c0_i32, %c0_i32_0, %c0_i32_1 : i32, i32, i32
  }
  func.func @transform_12(%arg0: i32, %arg1: memref<1xi32, #tpu.memory_space<smem>>) -> (i32, i32, i32) {
    %c0_i32 = arith.constant 0 : i32
    %c0_i32_0 = arith.constant 0 : i32
    %c0_i32_1 = arith.constant 0 : i32
    %c0_i32_2 = arith.constant 0 : i32
    return %c0_i32, %c0_i32_0, %c0_i32_1 : i32, i32, i32
  }
  func.func @transform_13(%arg0: i32, %arg1: memref<1xi32, #tpu.memory_space<smem>>) -> (i32, i32, i32) {
    %c0_i32 = arith.constant 0 : i32
    %c0_i32_0 = arith.constant 0 : i32
    %c0_i32_1 = arith.constant 0 : i32
    return %arg0, %c0_i32, %c0_i32_0 : i32, i32, i32
  }
}

</mosaic_0001>

<bundles_post_ra>
// kernel: xlsr_forward.1
= control target key start
LH: loop header
LB: loop body
LE: loop exit
PB: predicated region body
PF: predicated region fallthrough
CT: control target
= control target key end

     0   :  { %s13547_s0 = inlined_call_operand.<no memory space> [shape: s32[1], index: 0, kind: input, shape index: {}]   ;;  %s13548_s1 = inlined_call_operand.vmem [shape: f32[2,20,20], index: 1, kind: input, shape index: {}]   ;;  %s13549_s2 = inlined_call_operand.vmem [shape: f32[5,16,16], index: 2, kind: input, shape index: {}]   ;;  %s13550_s3 = inlined_call_operand.vmem [shape: f32[3,16,16], index: 3, kind: input, shape index: {}]   ;;  %s13551_s4 = inlined_call_operand.hbm [shape: f32[2,16,16], index: 4, kind: input, shape index: {}]   ;;  %s13552_s5 = inlined_call_operand.hbm [shape: f32[11,16], index: 5, kind: input, shape index: {}]   ;;  %s13553_s6 = inlined_call_operand.vmem [shape: f32[2,32], index: 6, kind: input, shape index: {}]   ;;  %s13554_s7 = inlined_call_operand.hbm [shape: f32[16,32], index: 7, kind: input, shape index: {}]   ;;  %s13555_s8 = inlined_call_operand.vmem [shape: f32[256,32], index: 8, kind: input, shape index: {}]   ;;  %s13556_s9 = inlined_call_operand.vmem [shape: f32[5,32,96], index: 9, kind: input, shape index: {}]   ;;  %s13557_s10 = inlined_call_operand.vmem [shape: f32[5,32,32], index: 10, kind: input, shape index: {}]   ;;  %s13558_s11 = inlined_call_operand.vmem [shape: f32[5,32,64], index: 11, kind: input, shape index: {}]   ;;  %s13559_s12 = inlined_call_operand.vmem [shape: f32[5,64,32], index: 12, kind: input, shape index: {}]   ;;  %s13560_s13 = inlined_call_operand.vmem [shape: f32[5,8,96], index: 13, kind: input, shape index: {}]   ;;  %s13561_s14 = inlined_call_operand.vmem [shape: f32[2,24,128], index: 14, kind: output, shape index: {}]  }
   0x1   :  { %13565 = sst [smem:[#allocation12_spill]] %s13561_s14 }
   0x2   :  { %19 = sst [smem:[#allocation3]] %s13547_s0 }
   0x3   :  { %20 = vsyncpa [#allocation5], 0 }
   0x4   :  { %21 = vsyncpa [#allocation7], 0  ;;  %s11177_s15 = smov 0  }
   0x5 LB: > { %13566 = sst [smem:[#allocation11_spill]] %s11084_s15  ;;  %s11183_s16 = sadd.s32 4294967295, %s11084_s15   ;;  %s11084_s15 = sphi %s11177_s15, %s27_s15  }
   0x6   : > { %p8510_p0 = scmp.ge.s32.totalorder %s11084_s15, 1  ;;  %p336_p1 = scmp.lt.s32.totalorder %s11084_s15, 3 }
   0x7   : > { %p13562_p2 = scmp.eq.s32.totalorder %s11183_s16, 0  ;;  %s11086_s17 = smov [#allocation6]  }
   0x8   : > { %p11188_p3 = pnand %p8510_p0, %p336_p1  ;;  %s367_s18 = sshll.u32 %s11086_s17, 4  ;;  %s368_s18 = int_to_ptr.vmem [resolvable:$true] %s367_s18 }
   0x9   : > { %s11087_s19 = smov [#allocation4]   ;;  %s11088_s22 = smov [#allocation8]  }
   0xa   : > { %s13567_s0 = scalar_select %p11188_p3, 1, 0 }
   0xb   : > { %p10471_p4 = pneg %p11188_p3  ;;  %s354_s20 = sshll.u32 %s11087_s19, 4  ;;  %s11200_s20 = int_to_ptr.vmem [resolvable:$true] %s354_s20 }
   0xc   : > { %s383_s23 = sshll.u32 %s11088_s22, 4  ;;  %s10986_s26 = scalar_lea.hbm %s13552_s5, 256  ;;  %s11202_s23 = int_to_ptr.vmem [resolvable:$true] %s383_s23 }
   0xd   : > { %p11196_p5 = pnand %p13562_p2, %p10471_p4  ;;  %p10987_p6 = scmp.ne.s32.totalorder %s13552_s5, %s10986_s26 }
   0xe   : > { %p10993_p10 = scmp.lt.u32.totalorder %s10986_s26, %s13552_s5 }
   0xf   : > { %p11212_p7 = pneg %p11196_p5 }
  0x11   : > { %p10989_p8 = pnand %p11212_p7, %p10987_p6 }
  0x13   : > { %p10990_p9 = pneg %p10989_p8 }
  0x15   : > { %p10995_p11 = pnand %p10993_p10, %p10990_p9 }
  0x17   : > { %10998 = shalt.err (!%p10995_p11)
}
  0x18   : > { %s10999_s19 = scalar_lea.vmem %s368_s18, 256  ;;  %p11007_p1 = scmp.lt.s32.totalorder %s368_s18, %s368_s18 }
  0x19   : > { %p11000_p12 = scmp.ne.s32.totalorder %s368_s18, %s10999_s19  ;;  %p11008_p4 = scmp.lt.s32.totalorder %s10999_s19, %s10999_s19 }
  0x1b   : > { %p11002_p13 = pnand %p11000_p12, %p11212_p7  ;;  %p11009_p2 = por %p11008_p4, %p11007_p1 }
  0x1d   : > { %p11003_p0 = pneg %p11002_p13 }
  0x1f   : > { %p11010_p3 = pnand %p11009_p2, %p11003_p0 }
  0x21   : > { %11013 = shalt.err (!%p11010_p3)
}
  0x22   : > { %s11089_s22 = smov 128   ;;  %s11090_s24 = smov 8  }
  0x23   : > { %10477 = dma.hbm_to_vmem [thread:$0]  (!%p11196_p5), %s13552_s5, 256, %s368_s18, [#allocation7], %s11089_s22, %s11089_s22, %s11090_s24  }
  0x24   : > { %s11014_s30 = scalar_lea.hbm %s13551_s4, 512 }
  0x25   : > { %p11015_p2 = scmp.ne.s32.totalorder %s13551_s4, %s11014_s30  ;;  %p11021_p8 = scmp.lt.u32.totalorder %s11014_s30, %s13551_s4 }
  0x27   : > { %p11017_p3 = pnand %p11015_p2, %p11212_p7 }
  0x29   : > { %p11018_p6 = pneg %p11017_p3 }
  0x2b   : > { %p11023_p9 = pnand %p11021_p8, %p11018_p6 }
  0x2d   : > { %11026 = shalt.err (!%p11023_p9)
}
  0x2e   : > { %s11027_s18 = scalar_lea.vmem %s11200_s20, 512  ;;  %p11035_p13 = scmp.lt.s32.totalorder %s11200_s20, %s11200_s20 }
  0x2f   : > { %p11028_p10 = scmp.ne.s32.totalorder %s11200_s20, %s11027_s18  ;;  %p11036_p0 = scmp.lt.s32.totalorder %s11027_s18, %s11027_s18 }
  0x31   : > { %p11030_p11 = pnand %p11028_p10, %p11212_p7  ;;  %p11037_p1 = por %p11036_p0, %p11035_p13 }
  0x33   : > { %p11031_p12 = pneg %p11030_p11 }
  0x35   : > { %p11038_p4 = pnand %p11037_p1, %p11031_p12 }
  0x37   : > { %11041 = shalt.err (!%p11038_p4)
}
  0x38   : > { %10474 = dma.hbm_to_vmem [thread:$0]  (!%p11196_p5), %s13551_s4, 512, %s11200_s20, [#allocation5], %s11089_s22, %s11089_s22, %s11090_s24  }
  0x39   : > { %s11042_s27 = scalar_lea.hbm %s13554_s7, 256 }
  0x3a   : > { %p11043_p2 = scmp.ne.s32.totalorder %s13554_s7, %s11042_s27  ;;  %p11049_p8 = scmp.lt.u32.totalorder %s11042_s27, %s13554_s7 }
  0x3c   : > { %p11045_p3 = pnand %p11043_p2, %p11212_p7 }
  0x3e   : > { %p11046_p6 = pneg %p11045_p3 }
  0x40   : > { %p11051_p9 = pnand %p11049_p8, %p11046_p6 }
  0x42   : > { %11054 = shalt.err (!%p11051_p9)
}
  0x43   : > { %s11055_s20 = scalar_lea.vmem %s11202_s23, 256  ;;  %p11063_p13 = scmp.lt.s32.totalorder %s11202_s23, %s11202_s23 }
  0x44   : > { %p11056_p10 = scmp.ne.s32.totalorder %s11202_s23, %s11055_s20  ;;  %p11064_p0 = scmp.lt.s32.totalorder %s11055_s20, %s11055_s20 }
  0x46   : > { %p11058_p11 = pnand %p11056_p10, %p11212_p7  ;;  %p11065_p1 = por %p11064_p0, %p11063_p13 }
  0x48   : > { %p11059_p12 = pneg %p11058_p11 }
  0x4a   : > { %p11066_p4 = pnand %p11065_p1, %p11059_p12 }
  0x4c   : > { %11069 = shalt.err (!%p11066_p4)
}
  0x4d   : > { %10480 = dma.hbm_to_vmem [thread:$0]  (!%p11196_p5), %s13554_s7, 256, %s11202_s23, [#allocation7], %s11089_s22, %s11089_s22, %s11090_s24  }
  0x4e   : > { %p13570_p2 = scmp.ne.s32.totalorder %s13567_s0, 0 }
  0x4f   : > { %p13571_p7 = scmp.eq.s32.totalorder (!%p13570_p2), %s11183_s16, 0 }
  0x50   : > { %425 = sbr.rel (%p13570_p2) target bundleno = 15756 (0x3d8c), region = 72 }
  0x57   : > { %11075 = dma.done.wait (%p13571_p7), [#allocation5], 512   ;;  %p13572_p3 = pmov %p13571_p7 }
  0x59   : > { %11077 = vsyncadd (%p13572_p3), [#allocation5], 4294966784  ;;  %p13573_p6 = pmov %p13572_p3 }
  0x5a   : > { %p13574_p8 = pmov %p13572_p3 }
  0x5b   : > { %11079 = dma.done.wait (%p13573_p6), [#allocation7], 512  }
  0x5c   : > { %11081 = vsyncadd (%p13574_p8), [#allocation7], 4294966784  ;;  %p477_p9 = scmp.lt.s32.totalorder %s11183_s16, 1  ;;  %vm491_vm0 = vcmask 162816   ;;  %vm498_vm1 = vcmask 158720   ;;  %vm503_vm2 = vcmask 1043456  }
  0x5d   : > { %v558_v28 = vld [vmem:[%s13549_s2] sm:$0xff]  ;;  %v559_v29 = vld [vmem:[%s13549_s2 + $0x8] sm:$0xff]  ;;  %v11091_v30 = vmov 0.0|0.0   ;;  %vm11092_vm3 = vmmov 0   ;;  %v11093_v32 = vmov 0.0   ;;  %v8527_v33 = vld [vmem:[%s13549_s2 + $0x10] sm:$0xff] }
  0x5e   : > { %s13582_s16 = smov (!%p477_p9, %s11183_s16), 1  ;;  %10162 = vmatprep.subr.bf16.mxu0 %v11091_v30  ;;  %v10163_v31 = vpack.c.bf16 %v559_v29, %v558_v28  ;;  %9259 = vmatprep.mubr.msk.f32.mxu0 %vm11092_vm3, %v11093_v32  ;;  %v8528_v34 = vld [vmem:[%s13549_s2 + $0x18] sm:$0xff]  ;;  %vm564_vm4 = vcmask 130048   ;;  %vm1065_vm5 = vcmask 1046528   ;;  %vm555_vm6 = vcmask 1047556   ;;  %s11094_s17 = smov 124  }
  0x5f   : > { %s10458_s0 = smul.u32 24, %s13582_s16  ;;  %10456 = vmatprep.subr.bf16.mxu1 %v11091_v30  ;;  %9275 = vmatprep.mubr.msk.f32.mxu1 %vm11092_vm3, %v11093_v32  ;;  %v10166_v35 = vpack.c.bf16 %v8528_v34, %v8527_v33  ;;  %v8532_v61 = vld [vmem:[%s13549_s2 + $0x20] sm:$0xff]  ;;  %v8533_v62 = vld [vmem:[%s13549_s2 + $0x28] sm:$0xff]  ;;  %vm660_vm7 = vcmask 125952   ;;  %s487_s24 = sld [smem:[#allocation3]]  ;;  %vm2493_vm11 = vcmask 1045504  }
  0x60   : > { %10164 = vmatpush3.bf16.msra.mxu0 %v10163_v31  ;;  %v8539_v63 = vld [vmem:[%s13549_s2 + $0x40] sm:$0xff]  ;;  %vm2511_vm12 = vcmask 1044480   ;;  %s11095_s26 = smov 64   ;;  %s11096_s27 = smov 32  }
  0x61   : > { %s481_s29 = scalar_lea.vmem %s13548_s1, %s10458_s0  ;;  %10165 = vmatprep.subr.bf16.mxu0 %v11091_v30  ;;  %10457 = vmatpush3.bf16.msra.mxu1 %v10166_v35  ;;  %s11097_s28 = smov 96  }
  0x62   : > { %v488_v0 = vld [vmem:[%s481_s29] sm:$0xff]  ;;  %v489_v1 = vld [vmem:[%s481_s29 + $0x8] sm:$0xff]  ;;  %v490_v2 = vld [vmem:[%s481_s29 + $0x10] sm:$0xf]  ;;  %10171 = vmatprep.subr.bf16.mxu1 %v11091_v30  ;;  %s11098_s25 = smov 112  }
  0x63   : > { %v492_v3 = vsel %vm491_vm0, %v488_v0, 0.0  ;;  %v499_v4 = vsel %vm498_vm1, %v490_v2, 0.0  ;;  %v495_v5 = vsel %vm491_vm0, %v489_v1, 0.0 }
  0x64   : > { %493 = vadd.xlane.f32.xlu0 %v492_v3  ;;  %500 = vadd.xlane.f32.xlu1 %v499_v4 }
  0x68   : > { %496 = vadd.xlane.f32.xlu0 %v495_v5  ;;  %v8537_v5 = vld [vmem:[%s13549_s2 + $0x30] sm:$0xff] }
  0xf1   : > { %v494_v6 = vpop.xlane.xlu0 %493  ;;  %v501_v7 = vpop.xlane.xlu1 %500 }
  0xf2   : > { %v504_v9 = vsel %vm503_vm2, %v501_v7, 0.0 }
  0xf5   : > { %v497_v8 = vpop.xlane.xlu0 %496 }
  0xf6   : > { %v502_v10 = vadd.f32 %v497_v8, %v494_v6  ;;  %v8538_v6 = vld [vmem:[%s13549_s2 + $0x38] sm:$0xff] }
  0xf7   : > { %v10175_v7 = vpack.c.bf16 %v8538_v6, %v8537_v5 }
  0xf8   : > { %v505_v11 = vadd.f32 %v504_v9, %v502_v10  ;;  %v11401_v9 = vld [vmem:[#allocation6] ss:$0 sm:$0xff] }
  0xfa   : > { %v506_v12 = vrot.slane %v505_v11, 4 }
  0xfc   : > { %v507_v13 = vadd.f32 %v506_v12, %v505_v11 }
  0xfe   : > { %v508_v14 = vrot.slane %v507_v13, 2 }
 0x100   : > { %v509_v15 = vadd.f32 %v508_v14, %v507_v13 }
 0x102   : > { %v510_v16 = vrot.slane %v509_v15, 1 }
 0x104   : > { %v511_v17 = vadd.f32 %v510_v16, %v509_v15 }
 0x106   : > { %v513_v18 = vmul.f32 0.0025, %v511_v17 }
 0x108   : > { %v515_v19 = vsub.f32 %v489_v1, %v513_v18  ;;  %v514_v20 = vsub.f32 %v488_v0, %v513_v18  ;;  %v516_v21 = vsub.f32 %v490_v2, %v513_v18  ;;  %v8540_v0 = vld [vmem:[%s13549_s2 + $0x48] sm:$0xff]  ;;  %v10169_v1 = vpack.c.bf16 %v8533_v62, %v8532_v61 }
 0x109   : > { %v10172_v2 = vpack.c.bf16 %v8540_v0, %v8539_v63 }
 0x10a   : > { %v518_v22 = vmul.f32 %v515_v19, %v515_v19  ;;  %v517_v23 = vmul.f32 %v514_v20, %v514_v20  ;;  %v519_v26 = vmul.f32 %v516_v21, %v516_v21 }
 0x10c   : > { %v523_v24 = vsel %vm491_vm0, %v518_v22, 0.0  ;;  %v520_v25 = vsel %vm491_vm0, %v517_v23, 0.0  ;;  %v526_v27 = vsel %vm498_vm1, %v519_v26, 0.0 }
 0x10d   : > { %524 = vadd.xlane.f32.xlu0 %v523_v24  ;;  %521 = vadd.xlane.f32.xlu1 %v520_v25 }
 0x111   : > { %527 = vadd.xlane.f32.xlu1 %v526_v27 }
 0x19a   : > { %v522_v36 = vpop.xlane.xlu1 %521  ;;  %v525_v37 = vpop.xlane.xlu0 %524 }
 0x19b   : > { %v529_v38 = vadd.f32 %v525_v37, %v522_v36 }
 0x19e   : > { %v528_v39 = vpop.xlane.xlu1 %527 }
 0x19f   : > { %v530_v40 = vsel %vm503_vm2, %v528_v39, 0.0 }
 0x1a0   : > { %v531_v41 = vadd.f32 %v530_v40, %v529_v38 }
 0x1a2   : > { %v532_v42 = vrot.slane %v531_v41, 4 }
 0x1a4   : > { %v533_v43 = vadd.f32 %v532_v42, %v531_v41 }
 0x1a6   : > { %v534_v44 = vrot.slane %v533_v43, 2 }
 0x1a8   : > { %v535_v45 = vadd.f32 %v534_v44, %v533_v43 }
 0x1aa   : > { %v536_v46 = vrot.slane %v535_v45, 1 }
 0x1ac   : > { %v537_v47 = vadd.f32 %v536_v46, %v535_v45 }
 0x1ae   : > { %v538_v48 = vmul.f32 0.0025, %v537_v47 }
 0x1b0   : > { %v539_v49 = vadd.f32 1e-07, %v538_v48 }
 0x1b2   : > { %10678 = vrsqrt.f32 %v539_v49 }
 0x1bc   : > { %v10679_v50 = vpop.eup %10678 }
 0x1bd   : > { %v542_v51 = vmul.f32 %v10679_v50, %v515_v19  ;;  %v541_v52 = vmul.f32 %v10679_v50, %v514_v20  ;;  %v543_v54 = vmul.f32 %v10679_v50, %v516_v21 }
 0x1bf   : > { %741 = vrot.lane.b32.xlu1 %v542_v51, %s11094_s17  ;;  %v1067_v53 = vrot.slane %v542_v51, 1  ;;  %739 = vrot.lane.b32.xlu0 %v541_v52, %s11094_s17  ;;  %v1066_v55 = vrot.slane %v541_v52, 1  ;;  %v556_v56 = vrot.slane %v541_v52, 4 }
 0x1c0   : > { %9260 = vmatmul.mubr.msk.f32.vlgmr.msra.gmra.mrb[0].mxu0 %vm564_vm4, %v541_v52 }
 0x1c1   : > { %9262 = vmatprep.mubr.msk.f32.mxu0 %vm11092_vm3, %v11093_v32  ;;  %10167 = vmatpush3.bf16.msra.mxu0 %v10166_v35  ;;  %v1068_v57 = vsel %vm1065_vm5, %v1066_v55, %v1067_v53  ;;  %v557_v58 = vsel %vm555_vm6, %v556_v56, %v543_v54 }
 0x1c2   : > { %10168 = vmatprep.subr.bf16.mxu0 %v11091_v30  ;;  %v1069_v59 = vrot.slane %v557_v58, 1 }
 0x1c3   : > { %743 = vrot.lane.b32.xlu1 %v543_v54, %s11094_s17 }
 0x1c4   : > { %9263 = vmatmul.mubr.msk.f32.gmra.mrb[2].mxu0 %vm564_vm4, %v542_v51  ;;  %v1070_v60 = vsel %vm1065_vm5, %v1067_v53, %v1069_v59 }
 0x1c5   : > { %9265 = vmatprep.mubr.msk.f32.mxu0 %vm11092_vm3, %v11093_v32 }
 0x1c8   : > { %9266 = vmatmul.mubr.msk.f32.gmra.mrb[4].mxu0 %vm564_vm4, %v543_v54 }
 0x1c9   : > { %9272 = vmatprep.mubr.msk.f32.mxu0 %vm11092_vm3, %v11093_v32 }
 0x231   : > { %v742_v3 = vpop.permute.xlu1 %741  ;;  %v740_v4 = vpop.permute.xlu0 %739 }
 0x232   : > { %9273 = vmatmul.mubr.msk.f32.vlgmr.msra.gmra.mrb[6].mxu0 %vm564_vm4, %v740_v4  ;;  %9276 = vmatmul.mubr.msk.f32.vlgmr.msra.gmra.mrb[0].mxu1 %vm564_vm4, %v742_v3 }
 0x233   : > { %10170 = vmatpush3.bf16.msra.mxu0 %v10169_v1  ;;  %9278 = vmatprep.mubr.msk.f32.mxu1 %vm11092_vm3, %v11093_v32 }
 0x234   : > { %9285 = vmatprep.mubr.msk.f32.mxu0 %vm11092_vm3, %v11093_v32  ;;  %10173 = vmatpush3.bf16.msra.mxu1 %v10172_v2 }
 0x235   : > { %v744_v8 = vpop.permute.xlu1 %743  ;;  %10174 = vmatprep.subr.bf16.mxu0 %v11091_v30  ;;  %10177 = vmatprep.subr.bf16.mxu1 %v11091_v30 }
 0x236   : > { %9279 = vmatmul.mubr.msk.f32.gmra.mrb[2].mxu1 %vm564_vm4, %v744_v8  ;;  %9286 = vmatmul.mubr.msk.f32.vlgmr.msra.gmra.mrb[8].mxu0 %vm564_vm4, %v740_v4 }
 0x237   : > { %9288 = vmatprep.mubr.msk.f32.mxu0 %vm11092_vm3, %v11093_v32  ;;  %9298 = vmatprep.mubr.msk.f32.mxu1 %vm11092_vm3, %v11093_v32 }
 0x238   : > { %10176 = vmatpush3.bf16.msra.mxu0 %v10175_v7 }
 0x239   : > { %10180 = vmatprep.subr.bf16.mxu0 %v11091_v30 }
 0x23a   : > { %9289 = vmatmul.mubr.msk.f32.gmra.mrb[10].mxu0 %vm564_vm4, %v742_v3  ;;  %9299 = vmatmul.mubr.msk.f32.vlgmr.msra.gmra.mrb[4].mxu1 %vm564_vm4, %v1068_v57 }
 0x23b   : > { %9291 = vmatprep.mubr.msk.f32.mxu0 %vm11092_vm3, %v11093_v32  ;;  %9301 = vmatprep.mubr.msk.f32.mxu1 %vm11092_vm3, %v11093_v32 }
 0x23e   : > { %9292 = vmatmul.mubr.msk.f32.gmra.mrb[12].mxu0 %vm564_vm4, %v744_v8  ;;  %9302 = vmatmul.mubr.msk.f32.gmra.mrb[6].mxu1 %vm564_vm4, %v1070_v60 }
 0x23f   : > { %9304 = vmatprep.mubr.msk.f32.mxu1 %vm11092_vm3, %v11093_v32  ;;  %9311 = vmatprep.mubr.msk.f32.mxu0 %vm11092_vm3, %v11093_v32 }
 0x242   : > { %9305 = vmatmul.mubr.msk.f32.gmra.mrb[8].mxu1 %vm564_vm4, %v1069_v59  ;;  %9312 = vmatmul.mubr.msk.f32.vlgmr.msra.gmra.mrb[14].mxu0 %vm564_vm4, %v740_v4 }
 0x243   : > { %9314 = vmatprep.mubr.msk.f32.mxu0 %vm11092_vm3, %v11093_v32  ;;  %9324 = vmatprep.mubr.msk.f32.mxu1 %vm11092_vm3, %v11093_v32 }
 0x246   : > { %9315 = vmatmul.mubr.msk.f32.gmra.mrb[16].mxu0 %vm564_vm4, %v742_v3 }
 0x247   : > { %9317 = vmatprep.mubr.msk.f32.mxu0 %vm11092_vm3, %v11093_v32 }
 0x24a   : > { %9318 = vmatmul.mubr.msk.f32.gmra.mrb[18].mxu0 %vm564_vm4, %v744_v8 }
 0x24b   : > { %9337 = vmatprep.mubr.msk.f32.mxu0 %vm11092_vm3, %v11093_v32 }
 0x293   : > { %v640_v10 = vpop.f32.mrb[0].mxu0 }
 0x294   : > { %v11404_v11 = vadd.f32 %v11401_v9, %v640_v10  ;;  %v9261_v12 = vpop.f32.mrb[1].mxu0 }
 0x295   : > { %v1315_v12 = vld [vmem:[%s13550_s3 + $0x8] sm:$0xff] }
 0x296   : > { %v654_v13 = vsel %vm564_vm4, %v11404_v11, 0.0 }
 0x297   : > { %655 = vadd.xlane.f32.xlu0 %v654_v13  ;;  %v645_v14 = vpop.f32.mrb[2].mxu0 }
 0x298   : > { %v9264_v15 = vpop.f32.mrb[3].mxu0  ;;  %v11415_v24 = vadd.f32 %v11401_v9, %v645_v14 }
 0x29a   : > { %v657_v36 = vsel %vm564_vm4, %v11415_v24, 0.0 }
 0x29b   : > { %v650_v16 = vpop.f32.mrb[4].mxu0 }
 0x29c   : > { %v9267_v17 = vpop.f32.mrb[5].mxu0  ;;  %v11425_v34 = vadd.f32 %v11401_v9, %v650_v16 }
 0x29e   : > { %v661_v43 = vsel %vm660_vm7, %v11425_v34, 0.0 }
 0x305   : > { %v817_v18 = vpop.f32.mrb[6].mxu0  ;;  %v822_v19 = vpop.f32.mrb[0].mxu1 }
 0x306   : > { %v11409_v20 = vadd.f32 %v11401_v9, %v817_v18  ;;  %v11412_v21 = vadd.f32 %v11401_v9, %v822_v19  ;;  %v9274_v22 = vpop.f32.mrb[7].mxu0  ;;  %v9277_v23 = vpop.f32.mrb[1].mxu1 }
 0x308   : > { %v834_v25 = vsel %vm564_vm4, %v11412_v21, 0.0  ;;  %v831_v26 = vsel %vm564_vm4, %v11409_v20, 0.0 }
 0x309   : > { %v827_v27 = vpop.f32.mrb[2].mxu1  ;;  %835 = vadd.xlane.f32.xlu0 %v834_v25  ;;  %832 = vadd.xlane.f32.xlu1 %v831_v26  ;;  %v972_v28 = vpop.f32.mrb[8].mxu0 }
 0x30a   : > { %v11422_v29 = vadd.f32 %v11401_v9, %v827_v27  ;;  %v9280_v31 = vpop.f32.mrb[3].mxu1  ;;  %v9287_v33 = vpop.f32.mrb[9].mxu0  ;;  %v11428_v35 = vadd.f32 %v11401_v9, %v972_v28 }
 0x30c   : > { %v837_v37 = vsel %vm660_vm7, %v11422_v29, 0.0  ;;  %v986_v44 = vsel %vm564_vm4, %v11428_v35, 0.0 }
 0x30d   : > { %v1143_v38 = vpop.f32.mrb[4].mxu1  ;;  %658 = vadd.xlane.f32.xlu0 %v657_v36  ;;  %838 = vadd.xlane.f32.xlu1 %v837_v37  ;;  %v977_v39 = vpop.f32.mrb[10].mxu0 }
 0x30e   : > { %v9290_v40 = vpop.f32.mrb[11].mxu0  ;;  %v9300_v41 = vpop.f32.mrb[5].mxu1  ;;  %v11435_v42 = vadd.f32 %v11401_v9, %v977_v39 }
 0x310   : > { %v989_v50 = vsel %vm564_vm4, %v11435_v42, 0.0 }
 0x311   : > { %662 = vadd.xlane.f32.xlu0 %v661_v43  ;;  %987 = vadd.xlane.f32.xlu1 %v986_v44  ;;  %v982_v45 = vpop.f32.mrb[12].mxu0  ;;  %v1148_v46 = vpop.f32.mrb[6].mxu1 }
 0x312   : > { %v9293_v47 = vpop.f32.mrb[13].mxu0  ;;  %v9303_v48 = vpop.f32.mrb[7].mxu1  ;;  %v11442_v49 = vadd.f32 %v11401_v9, %v982_v45 }
 0x314   : > { %v992_v56 = vsel %vm660_vm7, %v11442_v49, 0.0 }
 0x315   : > { %990 = vadd.xlane.f32.xlu1 %v989_v50  ;;  %v1153_v51 = vpop.f32.mrb[8].mxu1  ;;  %v1223_v52 = vpop.f32.mrb[14].mxu0 }
 0x316   : > { %v1224_v53 = vadd.f32 %v1223_v52, %v1143_v38  ;;  %v9306_v54 = vpop.f32.mrb[9].mxu1  ;;  %v9313_v55 = vpop.f32.mrb[15].mxu0 }
 0x318   : > { %v11449_v57 = vadd.f32 %v11401_v9, %v1224_v53 }
 0x319   : > { %993 = vadd.xlane.f32.xlu1 %v992_v56  ;;  %v1228_v58 = vpop.f32.mrb[16].mxu0 }
 0x31a   : > { %v1229_v59 = vadd.f32 %v1228_v58, %v1148_v46  ;;  %v9316_v60 = vpop.f32.mrb[17].mxu0  ;;  %v1240_v61 = vsel %vm564_vm4, %v11449_v57, 0.0 }
 0x31b   : > { %1241 = vadd.xlane.f32.xlu0 %v1240_v61 }
 0x31c   : > { %v11454_v62 = vadd.f32 %v11401_v9, %v1229_v59 }
 0x31d   : > { %v1233_v63 = vpop.f32.mrb[18].mxu0 }
 0x31e   : > { %v1234_v0 = vadd.f32 %v1233_v63, %v1153_v51  ;;  %v9319_v1 = vpop.f32.mrb[19].mxu0  ;;  %v1243_v2 = vsel %vm564_vm4, %v11454_v62, 0.0 }
 0x31f   : > { %1244 = vadd.xlane.f32.xlu0 %v1243_v2 }
 0x320   : > { %v11459_v3 = vadd.f32 %v11401_v9, %v1234_v0  ;;  %v1314_v9 = vld [vmem:[%s13550_s3] sm:$0xff] }
 0x321   : > { %v11475_v13 = vpack.c.bf16 %v1315_v12, %v1314_v9 }
 0x322   : > { %v1246_v4 = vsel %vm660_vm7, %v11459_v3, 0.0 }
 0x323   : > { %1247 = vadd.xlane.f32.xlu0 %v1246_v4  ;;  %10182 = vmatpush3.bf16.msra.mxu0 %v11475_v13 }
 0x324   : > { %v656_v5 = vpop.xlane.xlu0 %655  ;;  %10186 = vmatprep.subr.bf16.mxu0 %v11091_v30 }
 0x325   : > { %v665_v6 = vmul.f32 0.0625, %v656_v5 }
 0x327   : > { %v11464_v7 = vsub.f32 %v11404_v11, %v665_v6 }
 0x329   : > { %v671_v8 = vmul.f32 %v11464_v7, %v11464_v7 }
 0x32b   : > { %v674_v10 = vsel %vm564_vm4, %v671_v8, 0.0 }
 0x32c   : > { %675 = vadd.xlane.f32.xlu0 %v674_v10 }
 0x396   : > { %v836_v11 = vpop.xlane.xlu0 %835  ;;  %v833_v14 = vpop.xlane.xlu1 %832 }
 0x397   : > { %v841_v15 = vmul.f32 0.0625, %v836_v11  ;;  %v840_v16 = vmul.f32 0.0625, %v833_v14  ;;  %v11545_v11 = vld [vmem:[#allocation6 + $0x1] ss:$0 sm:$0xff] }
 0x399   : > { %v11480_v17 = vsub.f32 %v11412_v21, %v841_v15  ;;  %v11483_v18 = vsub.f32 %v11409_v20, %v840_v16 }
 0x39a   : > { %v659_v19 = vpop.xlane.xlu0 %658  ;;  %v839_v22 = vpop.xlane.xlu1 %838 }
 0x39b   : > { %v666_v23 = vmul.f32 0.0625, %v659_v19  ;;  %v842_v25 = vmul.f32 0.0625, %v839_v22  ;;  %v846_v26 = vmul.f32 %v11483_v18, %v11483_v18  ;;  %v847_v27 = vmul.f32 %v11480_v17, %v11480_v17 }
 0x39d   : > { %v11490_v28 = vsub.f32 %v11415_v24, %v666_v23  ;;  %v11493_v31 = vsub.f32 %v11422_v29, %v842_v25  ;;  %v849_v21 = vsel %vm564_vm4, %v846_v26, 0.0  ;;  %v852_v39 = vsel %vm564_vm4, %v847_v27, 0.0  ;;  %v8547_v27 = vld [vmem:[%s13550_s3 + $0x10] sm:$0xff] }
 0x39e   : > { %v663_v20 = vpop.xlane.xlu0 %662  ;;  %v988_v33 = vpop.xlane.xlu1 %987  ;;  %850 = vadd.xlane.f32.xlu1 %v849_v21  ;;  %v8548_v21 = vld [vmem:[%s13550_s3 + $0x18] sm:$0xff] }
 0x39f   : > { %v667_v36 = vmul.f32 0.0625, %v663_v20  ;;  %v995_v37 = vmul.f32 0.0625, %v988_v33  ;;  %v672_v38 = vmul.f32 %v11490_v28, %v11490_v28  ;;  %v848_v41 = vmul.f32 %v11493_v31, %v11493_v31 }
 0x3a1   : > { %v11500_v40 = vsub.f32 %v11425_v34, %v667_v36  ;;  %v11503_v24 = vsub.f32 %v11428_v35, %v995_v37  ;;  %v677_v29 = vsel %vm564_vm4, %v672_v38, 0.0  ;;  %v855_v34 = vsel %vm660_vm7, %v848_v41, 0.0 }
 0x3a2   : > { %v991_v43 = vpop.xlane.xlu1 %990  ;;  %853 = vadd.xlane.f32.xlu1 %v852_v39  ;;  %678 = vadd.xlane.f32.xlu0 %v677_v29 }
 0x3a3   : > { %v996_v44 = vmul.f32 0.0625, %v991_v43  ;;  %v673_v45 = vmul.f32 %v11500_v40, %v11500_v40  ;;  %v1001_v47 = vmul.f32 %v11503_v24, %v11503_v24 }
 0x3a5   : > { %v11511_v46 = vsub.f32 %v11435_v42, %v996_v44  ;;  %v680_v35 = vsel %vm660_vm7, %v673_v45, 0.0  ;;  %v1004_v54 = vsel %vm564_vm4, %v1001_v47, 0.0 }
 0x3a6   : > { %856 = vadd.xlane.f32.xlu1 %v855_v34  ;;  %v994_v48 = vpop.xlane.xlu1 %993  ;;  %681 = vadd.xlane.f32.xlu0 %v680_v35 }
 0x3a7   : > { %v997_v50 = vmul.f32 0.0625, %v994_v48  ;;  %v1002_v42 = vmul.f32 %v11511_v46, %v11511_v46 }
 0x3a8   : > { %v1242_v51 = vpop.xlane.xlu0 %1241 }
 0x3a9   : > { %v11518_v52 = vsub.f32 %v11442_v49, %v997_v50  ;;  %v1249_v53 = vmul.f32 0.0625, %v1242_v51  ;;  %v1007_v59 = vsel %vm564_vm4, %v1002_v42, 0.0 }
 0x3aa   : > { %1005 = vadd.xlane.f32.xlu1 %v1004_v54 }
 0x3ab   : > { %v11524_v55 = vsub.f32 %v11449_v57, %v1249_v53  ;;  %v1003_v49 = vmul.f32 %v11518_v52, %v11518_v52 }
 0x3ac   : > { %v1245_v56 = vpop.xlane.xlu0 %1244 }
 0x3ad   : > { %v1250_v58 = vmul.f32 0.0625, %v1245_v56  ;;  %v1255_v60 = vmul.f32 %v11524_v55, %v11524_v55  ;;  %v1010_v1 = vsel %vm660_vm7, %v1003_v49, 0.0 }
 0x3ae   : > { %1008 = vadd.xlane.f32.xlu1 %v1007_v59 }
 0x3af   : > { %v11532_v61 = vsub.f32 %v11454_v62, %v1250_v58  ;;  %v1258_v63 = vsel %vm564_vm4, %v1255_v60, 0.0 }
 0x3b0   : > { %1259 = vadd.xlane.f32.xlu0 %v1258_v63  ;;  %v1248_v0 = vpop.xlane.xlu0 %1247 }
 0x3b1   : > { %v1251_v57 = vmul.f32 0.0625, %v1248_v0  ;;  %v1256_v2 = vmul.f32 %v11532_v61, %v11532_v61 }
 0x3b2   : > { %1011 = vadd.xlane.f32.xlu1 %v1010_v1 }
 0x3b3   : > { %v11539_v4 = vsub.f32 %v11459_v3, %v1251_v57  ;;  %v1261_v5 = vsel %vm564_vm4, %v1256_v2, 0.0  ;;  %v11548_v3 = vld [vmem:[#allocation6 + $0x2] ss:$0 sm:$0xff] }
 0x3b4   : > { %1262 = vadd.xlane.f32.xlu0 %v1261_v5 }
 0x3b5   : > { %v1257_v62 = vmul.f32 %v11539_v4, %v11539_v4 }
 0x3b7   : > { %v1264_v6 = vsel %vm660_vm7, %v1257_v62, 0.0 }
 0x3b8   : > { %1265 = vadd.xlane.f32.xlu0 %v1264_v6 }
 0x3b9   : > { %v676_v8 = vpop.xlane.xlu0 %675 }
 0x3ba   : > { %v683_v10 = vmul.f32 0.0625, %v676_v8 }
 0x3bc   : > { %v686_v9 = vadd.f32 1e-05, %v683_v10 }
 0x3be   : > { %10680 = vrsqrt.f32 %v686_v9 }
 0x3c8   : > { %v10681_v12 = vpop.eup %10680 }
 0x3c9   : > { %v692_v14 = vmul.f32 %v10681_v12, %v11464_v7  ;;  %v10178_v7 = vpack.c.bf16 %v8548_v21, %v8547_v27 }
 0x3cb   : > { %v699_v15 = vmul.f32 %v11545_v11, %v692_v14  ;;  %10179 = vmatpush3.bf16.msra.mxu1 %v10178_v7 }
 0x3cc   : > { %10183 = vmatprep.subr.bf16.mxu1 %v11091_v30 }
 0x3cd   : > { %v706_v16 = vadd.f32 %v11548_v3, %v699_v15 }
 0x3cf   : > { %v709_v19 = vmul.f32 %v706_v16, %v706_v16 }
 0x3d1   : > { %v712_v22 = vmul.f32 %v709_v19, %v706_v16 }
 0x3d3   : > { %v715_v23 = vmul.f32 0.044715, %v712_v22 }
 0x3d5   : > { %v718_v25 = vadd.f32 %v715_v23, %v706_v16 }
 0x3d7   : > { %v721_v26 = vmul.f32 0.7978846, %v718_v25 }
 0x3d9   : > { %10682 = vtanh.f32 %v721_v26 }
 0x3e3   : > { %v10683_v20 = vpop.eup %10682 }
 0x3e4   : > { %v727_v33 = vadd.f32 1.0, %v10683_v20 }
 0x3e6   : > { %v730_v36 = vmul.f32 0.5, %v727_v33 }
 0x3e8   : > { %v11559_v37 = vmul.f32 %v730_v36, %v706_v16 }
 0x3ea   : > { %9338 = vmatmul.mubr.msk.f32.vlgmr.msra.gmra.mrb[20].mxu0 %vm564_vm4, %v11559_v37 }
 0x3eb   : > { %9340 = vmatprep.mubr.msk.f32.mxu0 %vm11092_vm3, %v11093_v32  ;;  %10188 = vmatpush3.bf16.msra.mxu0 %v10178_v7 }
 0x3ec   : > { %10192 = vmatprep.subr.bf16.mxu0 %v11091_v30 }
 0x42b   : > { %v851_v38 = vpop.xlane.xlu1 %850 }
 0x42c   : > { %v858_v39 = vmul.f32 0.0625, %v851_v38 }
 0x42e   : > { %v861_v29 = vadd.f32 1e-05, %v858_v39 }
 0x42f   : > { %v854_v41 = vpop.xlane.xlu1 %853  ;;  %v679_v43 = vpop.xlane.xlu0 %678 }
 0x430   : > { %10684 = vrsqrt.f32 %v861_v29  ;;  %v859_v44 = vmul.f32 0.0625, %v854_v41  ;;  %v684_v45 = vmul.f32 0.0625, %v679_v43 }
 0x432   : > { %v862_v34 = vadd.f32 1e-05, %v859_v44  ;;  %v687_v35 = vadd.f32 1e-05, %v684_v45 }
 0x433   : > { %v857_v47 = vpop.xlane.xlu1 %856  ;;  %v682_v48 = vpop.xlane.xlu0 %681 }
 0x434   : > { %10686 = vrsqrt.f32 %v862_v34  ;;  %v860_v50 = vmul.f32 0.0625, %v857_v47  ;;  %v685_v51 = vmul.f32 0.0625, %v682_v48 }
 0x435   : > { %10688 = vrsqrt.f32 %v687_v35 }
 0x436   : > { %v863_v53 = vadd.f32 1e-05, %v860_v50  ;;  %v688_v54 = vadd.f32 1e-05, %v685_v51 }
 0x437   : > { %v1006_v42 = vpop.xlane.xlu1 %1005 }
 0x438   : > { %10690 = vrsqrt.f32 %v863_v53  ;;  %v1013_v56 = vmul.f32 0.0625, %v1006_v42 }
 0x439   : > { %10692 = vrsqrt.f32 %v688_v54 }
 0x43a   : > { %v10685_v58 = vpop.eup %10684  ;;  %v1016_v59 = vadd.f32 1e-05, %v1013_v56 }
 0x43b   : > { %v867_v60 = vmul.f32 %v10685_v58, %v11483_v18  ;;  %v1009_v49 = vpop.xlane.xlu1 %1008 }
 0x43c   : > { %10694 = vrsqrt.f32 %v1016_v59  ;;  %v1014_v63 = vmul.f32 0.0625, %v1009_v49 }
 0x43d   : > { %v870_v0 = vmul.f32 %v11545_v11, %v867_v60  ;;  %v1260_v57 = vpop.xlane.xlu0 %1259 }
 0x43e   : > { %v10687_v1 = vpop.eup %10686  ;;  %v1017_v2 = vadd.f32 1e-05, %v1014_v63  ;;  %v1267_v5 = vmul.f32 0.0625, %v1260_v57 }
 0x43f   : > { %v10689_v62 = vpop.eup %10688  ;;  %v11569_v6 = vadd.f32 %v11548_v3, %v870_v0  ;;  %v868_v8 = vmul.f32 %v10687_v1, %v11480_v17  ;;  %v1012_v10 = vpop.xlane.xlu1 %1011 }
 0x440   : > { %v693_v9 = vmul.f32 %v10689_v62, %v11490_v28  ;;  %10696 = vrsqrt.f32 %v1017_v2  ;;  %v1270_v18 = vadd.f32 1e-05, %v1267_v5  ;;  %v1015_v12 = vmul.f32 0.0625, %v1012_v10 }
 0x441   : > { %v876_v14 = vmul.f32 %v11569_v6, %v11569_v6  ;;  %v871_v15 = vmul.f32 %v11545_v11, %v868_v8  ;;  %v1263_v16 = vpop.xlane.xlu0 %1262 }
 0x442   : > { %v10691_v19 = vpop.eup %10690  ;;  %v700_v22 = vmul.f32 %v11545_v11, %v693_v9  ;;  %10698 = vrsqrt.f32 %v1270_v18  ;;  %v1018_v23 = vadd.f32 1e-05, %v1015_v12  ;;  %v1268_v25 = vmul.f32 0.0625, %v1263_v16 }
 0x443   : > { %v10693_v26 = vpop.eup %10692  ;;  %v879_v17 = vmul.f32 %v876_v14, %v11569_v6  ;;  %v869_v28 = vmul.f32 %v10691_v19, %v11493_v31  ;;  %v11580_v27 = vadd.f32 %v11548_v3, %v871_v15 }
 0x444   : > { %v694_v21 = vmul.f32 %v10693_v26, %v11500_v40  ;;  %10700 = vrsqrt.f32 %v1018_v23  ;;  %v1271_v7 = vadd.f32 1e-05, %v1268_v25  ;;  %v11584_v20 = vadd.f32 %v11548_v3, %v700_v22 }
 0x445   : > { %v872_v33 = vmul.f32 %v11545_v11, %v869_v28  ;;  %v1266_v36 = vpop.xlane.xlu0 %1265  ;;  %v882_v38 = vmul.f32 0.044715, %v879_v17  ;;  %v877_v39 = vmul.f32 %v11580_v27, %v11580_v27 }
 0x446   : > { %v10695_v29 = vpop.eup %10694  ;;  %v701_v31 = vmul.f32 %v11545_v11, %v694_v21  ;;  %10702 = vrsqrt.f32 %v1271_v7  ;;  %v1269_v41 = vmul.f32 0.0625, %v1266_v36  ;;  %v710_v40 = vmul.f32 %v11584_v20, %v11584_v20 }
 0x447   : > { %v1022_v43 = vmul.f32 %v10695_v29, %v11503_v24  ;;  %v885_v44 = vadd.f32 %v882_v38, %v11569_v6  ;;  %v880_v45 = vmul.f32 %v877_v39, %v11580_v27  ;;  %v11596_v34 = vadd.f32 %v11548_v3, %v872_v33 }
 0x448   : > { %v1272_v35 = vadd.f32 1e-05, %v1269_v41  ;;  %v713_v47 = vmul.f32 %v710_v40, %v11584_v20  ;;  %v11600_v48 = vadd.f32 %v11548_v3, %v701_v31 }
 0x449   : > { %v1025_v50 = vmul.f32 %v11545_v11, %v1022_v43  ;;  %v888_v51 = vmul.f32 0.7978846, %v885_v44  ;;  %v883_v53 = vmul.f32 0.044715, %v880_v45  ;;  %v878_v24 = vmul.f32 %v11596_v34, %v11596_v34  ;;  %v8555_v43 = vld [vmem:[%s13550_s3 + $0x20] sm:$0xff]  ;;  %v8556_v44 = vld [vmem:[%s13550_s3 + $0x28] sm:$0xff] }
 0x44a   : > { %v10697_v54 = vpop.eup %10696  ;;  %10704 = vrsqrt.f32 %v1272_v35  ;;  %v716_v42 = vmul.f32 0.044715, %v713_v47  ;;  %v711_v56 = vmul.f32 %v11600_v48, %v11600_v48 }
 0x44b   : > { %v11608_v58 = vadd.f32 %v11548_v3, %v1025_v50  ;;  %v1023_v59 = vmul.f32 %v10697_v54, %v11511_v46  ;;  %10706 = vtanh.f32 %v888_v51  ;;  %v886_v60 = vadd.f32 %v883_v53, %v11580_v27 }
 0x44c   : > { %v10699_v49 = vpop.eup %10698  ;;  %v719_v63 = vadd.f32 %v716_v42, %v11584_v20  ;;  %v881_v0 = vmul.f32 %v878_v24, %v11596_v34  ;;  %v714_v57 = vmul.f32 %v711_v56, %v11600_v48  ;;  %v11660_v56 = vpack.c.bf16 %v8556_v44, %v8555_v43 }
 0x44d   : > { %v1031_v1 = vmul.f32 %v11608_v58, %v11608_v58  ;;  %v1026_v2 = vmul.f32 %v11545_v11, %v1023_v59  ;;  %v1276_v5 = vmul.f32 %v10699_v49, %v11524_v55  ;;  %v889_v62 = vmul.f32 0.7978846, %v886_v60 }
 0x44e   : > { %v10701_v8 = vpop.eup %10700  ;;  %v722_v46 = vmul.f32 0.7978846, %v719_v63  ;;  %v884_v10 = vmul.f32 0.044715, %v881_v0  ;;  %v717_v9 = vmul.f32 0.044715, %v714_v57 }
 0x44f   : > { %v1034_v18 = vmul.f32 %v1031_v1, %v11608_v58  ;;  %v1279_v12 = vmul.f32 %v11545_v11, %v1276_v5  ;;  %v1024_v14 = vmul.f32 %v10701_v8, %v11518_v52  ;;  %10708 = vtanh.f32 %v889_v62 }
 0x450   : > { %v10703_v15 = vpop.eup %10702  ;;  %10710 = vtanh.f32 %v722_v46  ;;  %v887_v16 = vadd.f32 %v884_v10, %v11596_v34  ;;  %v720_v19 = vadd.f32 %v717_v9, %v11600_v48  ;;  %v11625_v55 = vadd.f32 %v11548_v3, %v1026_v2 }
 0x451   : > { %v11628_v22 = vadd.f32 %v11548_v3, %v1279_v12  ;;  %v1027_v23 = vmul.f32 %v11545_v11, %v1024_v14  ;;  %v1277_v25 = vmul.f32 %v10703_v15, %v11532_v61  ;;  %v1037_v26 = vmul.f32 0.044715, %v1034_v18 }
 0x452   : > { %v890_v17 = vmul.f32 0.7978846, %v887_v16  ;;  %v723_v52 = vmul.f32 0.7978846, %v720_v19  ;;  %v1032_v28 = vmul.f32 %v11625_v55, %v11625_v55 }
 0x453   : > { %v1285_v21 = vmul.f32 %v11628_v22, %v11628_v22  ;;  %v1280_v7 = vmul.f32 %v11545_v11, %v1277_v25  ;;  %v1040_v33 = vadd.f32 %v1037_v26, %v11608_v58  ;;  %v11639_v36 = vadd.f32 %v11548_v3, %v1027_v23 }
 0x454   : > { %v10705_v38 = vpop.eup %10704  ;;  %10712 = vtanh.f32 %v890_v17  ;;  %v1035_v61 = vmul.f32 %v1032_v28, %v11625_v55 }
 0x455   : > { %v10707_v39 = vpop.eup %10706  ;;  %v1288_v29 = vmul.f32 %v1285_v21, %v11628_v22  ;;  %v1278_v31 = vmul.f32 %v10705_v38, %v11539_v4  ;;  %10714 = vtanh.f32 %v723_v52  ;;  %v1043_v41 = vmul.f32 0.7978846, %v1040_v33 }
 0x456   : > { %v894_v40 = vadd.f32 1.0, %v10707_v39  ;;  %v1038_v45 = vmul.f32 0.044715, %v1035_v61  ;;  %v1033_v35 = vmul.f32 %v11639_v36, %v11639_v36  ;;  %v11653_v47 = vadd.f32 %v11548_v3, %v1280_v7 }
 0x457   : > { %v1281_v4 = vmul.f32 %v11545_v11, %v1278_v31  ;;  %10716 = vtanh.f32 %v1043_v41  ;;  %v1291_v50 = vmul.f32 0.044715, %v1288_v29 }
 0x458   : > { %v897_v51 = vmul.f32 0.5, %v894_v40  ;;  %v1041_v53 = vadd.f32 %v1038_v45, %v11625_v55  ;;  %v1036_v24 = vmul.f32 %v1033_v35, %v11639_v36  ;;  %v1286_v54 = vmul.f32 %v11653_v47, %v11653_v47 }
 0x459   : > { %v10709_v42 = vpop.eup %10708  ;;  %v1294_v59 = vadd.f32 %v1291_v50, %v11628_v22  ;;  %v11664_v60 = vadd.f32 %v11548_v3, %v1281_v4 }
 0x45a   : > { %v10711_v49 = vpop.eup %10710  ;;  %v900_v11 = vmul.f32 %v897_v51, %v11569_v6  ;;  %v895_v63 = vadd.f32 1.0, %v10709_v42  ;;  %v1044_v0 = vmul.f32 0.7978846, %v1041_v53  ;;  %v1039_v57 = vmul.f32 0.044715, %v1036_v24 }
 0x45b   : > { %v728_v1 = vadd.f32 1.0, %v10711_v49  ;;  %v1297_v2 = vmul.f32 0.7978846, %v1294_v59  ;;  %v1289_v5 = vmul.f32 %v1286_v54, %v11653_v47  ;;  %v1287_v62 = vmul.f32 %v11664_v60, %v11664_v60 }
 0x45c   : > { %9325 = vmatmul.mubr.msk.f32.vlgmr.msra.gmra.mrb[10].mxu1 %vm564_vm4, %v900_v11  ;;  %v898_v8 = vmul.f32 0.5, %v895_v63  ;;  %10718 = vtanh.f32 %v1044_v0  ;;  %v1042_v3 = vadd.f32 %v1039_v57, %v11639_v36  ;;  %v1312_v24 = vrot.slane %v11559_v37, 4 }
 0x45d   : > { %9327 = vmatprep.mubr.msk.f32.mxu1 %vm11092_vm3, %v11093_v32  ;;  %v731_v6 = vmul.f32 0.5, %v728_v1  ;;  %10185 = vmatpush3.bf16.msra.mxu1 %v11660_v56  ;;  %10720 = vtanh.f32 %v1297_v2  ;;  %v1292_v46 = vmul.f32 0.044715, %v1289_v5  ;;  %v1290_v10 = vmul.f32 %v1287_v62, %v11664_v60 }
 0x45e   : > { %v10713_v9 = vpop.eup %10712  ;;  %v901_v18 = vmul.f32 %v898_v8, %v11580_v27  ;;  %v1045_v12 = vmul.f32 0.7978846, %v1042_v3  ;;  %10189 = vmatprep.subr.bf16.mxu1 %v11091_v30  ;;  %v1849_v42 = vrot.slane %v11559_v37, 1 }
 0x45f   : > { %v10715_v14 = vpop.eup %10714  ;;  %v11679_v15 = vmul.f32 %v731_v6, %v11584_v20  ;;  %v896_v16 = vadd.f32 1.0, %v10713_v9  ;;  %v1295_v19 = vadd.f32 %v1292_v46, %v11653_v47  ;;  %v1293_v23 = vmul.f32 0.044715, %v1290_v10 }
 0x460   : > { %9328 = vmatmul.mubr.msk.f32.gmra.mrb[12].mxu1 %vm564_vm4, %v901_v18  ;;  %v729_v25 = vadd.f32 1.0, %v10715_v14  ;;  %10722 = vtanh.f32 %v1045_v12  ;;  %v8560_v18 = vld [vmem:[#allocation6 + $0x3] ss:$0 sm:$0xff] }
 0x461   : > { %v10717_v26 = vpop.eup %10716  ;;  %9341 = vmatmul.mubr.msk.f32.gmra.mrb[22].mxu0 %vm564_vm4, %v11679_v15  ;;  %9330 = vmatprep.mubr.msk.f32.mxu1 %vm11092_vm3, %v11093_v32  ;;  %v899_v27 = vmul.f32 0.5, %v896_v16  ;;  %v1298_v17 = vmul.f32 0.7978846, %v1295_v19  ;;  %v1296_v20 = vadd.f32 %v1293_v23, %v11664_v60 }
 0x462   : > { %9343 = vmatprep.mubr.msk.f32.mxu0 %vm11092_vm3, %v11093_v32  ;;  %v732_v52 = vmul.f32 0.5, %v729_v25  ;;  %v1049_v28 = vadd.f32 1.0, %v10717_v26 }
 0x463   : > { %v902_v21 = vmul.f32 %v899_v27, %v11596_v34  ;;  %10724 = vtanh.f32 %v1298_v17  ;;  %v1299_v7 = vmul.f32 0.7978846, %v1296_v20 }
 0x464   : > { %v735_v33 = vmul.f32 %v732_v52, %v11600_v48  ;;  %v1052_v38 = vmul.f32 0.5, %v1049_v28 }
 0x465   : > { %9331 = vmatmul.mubr.msk.f32.gmra.mrb[14].mxu1 %vm564_vm4, %v902_v21  ;;  %10726 = vtanh.f32 %v1299_v7 }
 0x466   : > { %v10719_v61 = vpop.eup %10718  ;;  %9344 = vmatmul.mubr.msk.f32.gmra.mrb[24].mxu0 %vm564_vm4, %v735_v33  ;;  %9350 = vmatprep.mubr.msk.f32.mxu1 %vm11092_vm3, %v11093_v32  ;;  %v1055_v39 = vmul.f32 %v1052_v38, %v11608_v58  ;;  %v1313_v54 = vsel %vm555_vm6, %v1312_v24, %v735_v33 }
 0x467   : > { %v10721_v29 = vpop.eup %10720  ;;  %v1050_v31 = vadd.f32 1.0, %v10719_v61  ;;  %9363 = vmatprep.mubr.msk.f32.mxu0 %vm11092_vm3, %v11093_v32  ;;  %v1852_v59 = vrot.slane %v1313_v54, 1 }
 0x468   : > { %v1303_v34 = vadd.f32 1.0, %v10721_v29 }
 0x469   : > { %9351 = vmatmul.mubr.msk.f32.vlgmr.msra.gmra.mrb[16].mxu1 %vm564_vm4, %v1055_v39  ;;  %v1053_v48 = vmul.f32 0.5, %v1050_v31 }
 0x46a   : > { %v10723_v41 = vpop.eup %10722  ;;  %9353 = vmatprep.mubr.msk.f32.mxu1 %vm11092_vm3, %v11093_v32  ;;  %v1306_v40 = vmul.f32 0.5, %v1303_v34  ;;  %10191 = vmatpush3.bf16.msra.mxu1 %v11475_v13 }
 0x46b   : > { %v1056_v43 = vmul.f32 %v1053_v48, %v11625_v55  ;;  %v1051_v44 = vadd.f32 1.0, %v10723_v41  ;;  %10195 = vmatprep.subr.bf16.mxu1 %v11091_v30 }
 0x46c   : > { %v1309_v58 = vmul.f32 %v1306_v40, %v11628_v22 }
 0x46d   : > { %v10725_v45 = vpop.eup %10724  ;;  %9354 = vmatmul.mubr.msk.f32.gmra.mrb[18].mxu1 %vm564_vm4, %v1056_v43  ;;  %v1054_v35 = vmul.f32 0.5, %v1051_v44 }
 0x46e   : > { %9364 = vmatmul.mubr.msk.f32.vlgmr.msra.gmra.mrb[26].mxu0 %vm564_vm4, %v1309_v58  ;;  %9356 = vmatprep.mubr.msk.f32.mxu1 %vm11092_vm3, %v11093_v32  ;;  %v1304_v4 = vadd.f32 1.0, %v10725_v45 }
 0x46f   : > { %v10727_v50 = vpop.eup %10726  ;;  %v1057_v13 = vmul.f32 %v1054_v35, %v11639_v36  ;;  %9366 = vmatprep.mubr.msk.f32.mxu0 %vm11092_vm3, %v11093_v32  ;;  %10194 = vmatpush3.bf16.msra.mxu0 %v11660_v56 }
 0x470   : > { %v1307_v55 = vmul.f32 0.5, %v1304_v4  ;;  %v1305_v22 = vadd.f32 1.0, %v10727_v50  ;;  %10198 = vmatprep.subr.bf16.mxu0 %v11091_v30 }
 0x471   : > { %9357 = vmatmul.mubr.msk.f32.gmra.mrb[20].mxu1 %vm564_vm4, %v1057_v13 }
 0x472   : > { %v1310_v51 = vmul.f32 %v1307_v55, %v11653_v47  ;;  %9376 = vmatprep.mubr.msk.f32.mxu1 %vm11092_vm3, %v11093_v32  ;;  %v1308_v53 = vmul.f32 0.5, %v1305_v22  ;;  %v1850_v47 = vrot.slane %v11679_v15, 1 }
 0x474   : > { %9367 = vmatmul.mubr.msk.f32.gmra.mrb[28].mxu0 %vm564_vm4, %v1310_v51  ;;  %v1311_v36 = vmul.f32 %v1308_v53, %v11664_v60  ;;  %v1851_v56 = vsel %vm1065_vm5, %v1849_v42, %v1850_v47  ;;  %v1853_v60 = vsel %vm1065_vm5, %v1850_v47, %v1852_v59 }
 0x475   : > { %9377 = vmatmul.mubr.msk.f32.vlgmr.msra.gmra.mrb[22].mxu1 %vm564_vm4, %v1055_v39  ;;  %9369 = vmatprep.mubr.msk.f32.mxu0 %vm11092_vm3, %v11093_v32 }
 0x476   : > { %9379 = vmatprep.mubr.msk.f32.mxu1 %vm11092_vm3, %v11093_v32 }
 0x478   : > { %9370 = vmatmul.mubr.msk.f32.gmra.mrb[30].mxu0 %vm564_vm4, %v1311_v36 }
 0x479   : > { %9380 = vmatmul.mubr.msk.f32.gmra.mrb[24].mxu1 %vm564_vm4, %v1056_v43  ;;  %9389 = vmatprep.mubr.msk.f32.mxu0 %vm11092_vm3, %v11093_v32 }
 0x47a   : > { %9382 = vmatprep.mubr.msk.f32.mxu1 %vm11092_vm3, %v11093_v32 }
 0x47c   : > { %9390 = vmatmul.mubr.msk.f32.vlgmr.msra.gmra.mrb[32].mxu0 %vm564_vm4, %v1851_v56 }
 0x47d   : > { %9383 = vmatmul.mubr.msk.f32.gmra.mrb[26].mxu1 %vm564_vm4, %v1057_v13  ;;  %9392 = vmatprep.mubr.msk.f32.mxu0 %vm11092_vm3, %v11093_v32 }
 0x47e   : > { %9402 = vmatprep.mubr.msk.f32.mxu1 %vm11092_vm3, %v11093_v32 }
 0x480   : > { %9393 = vmatmul.mubr.msk.f32.gmra.mrb[34].mxu0 %vm564_vm4, %v1853_v60 }
 0x481   : > { %9395 = vmatprep.mubr.msk.f32.mxu0 %vm11092_vm3, %v11093_v32 }
 0x484   : > { %9396 = vmatmul.mubr.msk.f32.gmra.mrb[36].mxu0 %vm564_vm4, %v1852_v59 }
 0x485   : > { %9415 = vmatprep.mubr.msk.f32.mxu0 %vm11092_vm3, %v11093_v32 }
 0x4bd   : > { %v1483_v37 = vpop.f32.mrb[20].mxu0 }
 0x4be   : > { %v9339_v49 = vpop.f32.mrb[21].mxu0 }
 0x52f   : > { %v1394_v11 = vpop.f32.mrb[10].mxu1 }
 0x530   : > { %v1484_v63 = vadd.f32 %v1483_v37, %v1394_v11  ;;  %v9326_v0 = vpop.f32.mrb[11].mxu1 }
 0x533   : > { %v1399_v57 = vpop.f32.mrb[12].mxu1 }
 0x534   : > { %v1488_v1 = vpop.f32.mrb[22].mxu0  ;;  %v9329_v2 = vpop.f32.mrb[13].mxu1 }
 0x535   : > { %v1489_v5 = vadd.f32 %v1488_v1, %v1399_v57  ;;  %v9342_v62 = vpop.f32.mrb[23].mxu0 }
 0x538   : > { %v1404_v8 = vpop.f32.mrb[14].mxu1 }
 0x539   : > { %v1493_v3 = vpop.f32.mrb[24].mxu0  ;;  %v9332_v6 = vpop.f32.mrb[15].mxu1 }
 0x53a   : > { %v1494_v46 = vadd.f32 %v1493_v3, %v1404_v8  ;;  %v9345_v10 = vpop.f32.mrb[25].mxu0 }
 0x53c   : > { %v1575_v9 = vpop.f32.mrb[16].mxu1 }
 0x53d   : > { %v1589_v12 = vadd.f32 %v1575_v9, %v1484_v63  ;;  %v9352_v14 = vpop.f32.mrb[17].mxu1 }
 0x53f   : > { %v1596_v15 = vadd.f32 %v8560_v18, %v1589_v12 }
 0x540   : > { %v1580_v16 = vpop.f32.mrb[18].mxu1 }
 0x541   : > { %v1590_v19 = vadd.f32 %v1580_v16, %v1489_v5  ;;  %v9355_v23 = vpop.f32.mrb[19].mxu1  ;;  %v1754_v25 = vpop.f32.mrb[26].mxu0  ;;  %v1599_v26 = vsel %vm564_vm4, %v1596_v15, 0.0 }
 0x542   : > { %1600 = vadd.xlane.f32.xlu1 %v1599_v26  ;;  %v9365_v27 = vpop.f32.mrb[27].mxu0 }
 0x543   : > { %v1597_v17 = vadd.f32 %v8560_v18, %v1590_v19 }
 0x544   : > { %v1585_v20 = vpop.f32.mrb[20].mxu1 }
 0x545   : > { %v1591_v52 = vadd.f32 %v1585_v20, %v1494_v46  ;;  %v9358_v28 = vpop.f32.mrb[21].mxu1  ;;  %v1602_v21 = vsel %vm564_vm4, %v1597_v17, 0.0 }
 0x546   : > { %1603 = vadd.xlane.f32.xlu1 %v1602_v21  ;;  %v2018_v28 = vld [vmem:[#allocation4] sm:$0xff]  ;;  %v2019_v21 = vld [vmem:[#allocation4 + $0x8] sm:$0xff] }
 0x547   : > { %v1759_v7 = vpop.f32.mrb[28].mxu0  ;;  %v1598_v33 = vadd.f32 %v8560_v18, %v1591_v52 }
 0x548   : > { %v9368_v38 = vpop.f32.mrb[29].mxu0  ;;  %v1834_v61 = vpop.f32.mrb[22].mxu1 }
 0x549   : > { %v1835_v39 = vadd.f32 %v1834_v61, %v1754_v25  ;;  %v9378_v29 = vpop.f32.mrb[23].mxu1  ;;  %v1605_v31 = vsel %vm660_vm7, %v1598_v33, 0.0  ;;  %v2022_v38 = vld [vmem:[#allocation4 + $0x18] sm:$0xff] }
 0x54a   : > { %1606 = vadd.xlane.f32.xlu1 %v1605_v31 }
 0x54b   : > { %v1764_v34 = vpop.f32.mrb[30].mxu0 }
 0x54c   : > { %v9371_v48 = vpop.f32.mrb[31].mxu0  ;;  %v1839_v41 = vpop.f32.mrb[24].mxu1 }
 0x54d   : > { %v1840_v40 = vadd.f32 %v1839_v41, %v1759_v7  ;;  %v9381_v43 = vpop.f32.mrb[25].mxu1  ;;  %v10199_v7 = vpack.c.bf16 %v2019_v21, %v2018_v28 }
 0x54f   : > { %v1926_v44 = vpop.f32.mrb[32].mxu0  ;;  %10200 = vmatpush3.bf16.msra.mxu0 %v10199_v7 }
 0x550   : > { %v1940_v58 = vadd.f32 %v1926_v44, %v1835_v39  ;;  %v9391_v45 = vpop.f32.mrb[33].mxu0  ;;  %v1844_v35 = vpop.f32.mrb[26].mxu1 }
 0x551   : > { %v1845_v4 = vadd.f32 %v1844_v35, %v1764_v34  ;;  %v9384_v50 = vpop.f32.mrb[27].mxu1  ;;  %v8561_v45 = vld [vmem:[#allocation6 + $0x4] ss:$0 sm:$0xff] }
 0x552   : > { %v1943_v13 = vadd.f32 %v8560_v18, %v1940_v58 }
 0x553   : > { %v1931_v55 = vpop.f32.mrb[34].mxu0 }
 0x554   : > { %v1941_v22 = vadd.f32 %v1931_v55, %v1840_v40  ;;  %v9394_v51 = vpop.f32.mrb[35].mxu0  ;;  %v1946_v53 = vsel %vm564_vm4, %v1943_v13, 0.0 }
 0x555   : > { %1947 = vadd.xlane.f32.xlu0 %v1946_v53 }
 0x556   : > { %v1944_v36 = vadd.f32 %v8560_v18, %v1941_v22 }
 0x557   : > { %v1936_v24 = vpop.f32.mrb[36].mxu0 }
 0x558   : > { %v1942_v47 = vadd.f32 %v1936_v24, %v1845_v4  ;;  %v9397_v54 = vpop.f32.mrb[37].mxu0  ;;  %v1949_v42 = vsel %vm564_vm4, %v1944_v36, 0.0  ;;  %v8562_v4 = vld [vmem:[#allocation6 + $0x5] ss:$0 sm:$0xff] }
 0x559   : > { %1950 = vadd.xlane.f32.xlu0 %v1949_v42 }
 0x55a   : > { %v1945_v56 = vadd.f32 %v8560_v18, %v1942_v47 }
 0x55c   : > { %v1952_v59 = vsel %vm660_vm7, %v1945_v56, 0.0 }
 0x55d   : > { %1953 = vadd.xlane.f32.xlu0 %v1952_v59 }
 0x5cf   : > { %v1601_v60 = vpop.xlane.xlu1 %1600 }
 0x5d0   : > { %v1608_v37 = vmul.f32 0.0625, %v1601_v60 }
 0x5d2   : > { %v1611_v49 = vsub.f32 %v1596_v15, %v1608_v37 }
 0x5d3   : > { %v1604_v11 = vpop.xlane.xlu1 %1603 }
 0x5d4   : > { %v1609_v63 = vmul.f32 0.0625, %v1604_v11  ;;  %v1614_v0 = vmul.f32 %v1611_v49, %v1611_v49 }
 0x5d6   : > { %v1612_v57 = vsub.f32 %v1597_v17, %v1609_v63  ;;  %v1617_v1 = vsel %vm564_vm4, %v1614_v0, 0.0 }
 0x5d7   : > { %1618 = vadd.xlane.f32.xlu1 %v1617_v1  ;;  %v1607_v2 = vpop.xlane.xlu1 %1606 }
 0x5d8   : > { %v1610_v5 = vmul.f32 0.0625, %v1607_v2  ;;  %v1615_v62 = vmul.f32 %v1612_v57, %v1612_v57 }
 0x5da   : > { %v1613_v8 = vsub.f32 %v1598_v33, %v1610_v5  ;;  %v1620_v3 = vsel %vm564_vm4, %v1615_v62, 0.0  ;;  %v2021_v33 = vld [vmem:[#allocation4 + $0x10] sm:$0xff] }
 0x5db   : > { %1621 = vadd.xlane.f32.xlu1 %v1620_v3  ;;  %v10196_v61 = vpack.c.bf16 %v2022_v38, %v2021_v33 }
 0x5dc   : > { %v1616_v6 = vmul.f32 %v1613_v8, %v1613_v8 }
 0x5dd   : > { %10197 = vmatpush3.bf16.msra.mxu1 %v10196_v61 }
 0x5de   : > { %v1623_v46 = vsel %vm660_vm7, %v1616_v6, 0.0  ;;  %10201 = vmatprep.subr.bf16.mxu1 %v11091_v30 }
 0x5df   : > { %1624 = vadd.xlane.f32.xlu1 %v1623_v46 }
 0x5e2   : > { %v1948_v10 = vpop.xlane.xlu0 %1947 }
 0x5e3   : > { %v1955_v9 = vmul.f32 0.0625, %v1948_v10 }
 0x5e5   : > { %v11759_v18 = vsub.f32 %v1943_v13, %v1955_v9 }
 0x5e6   : > { %v1951_v12 = vpop.xlane.xlu0 %1950 }
 0x5e7   : > { %v1956_v14 = vmul.f32 0.0625, %v1951_v12  ;;  %v1961_v15 = vmul.f32 %v11759_v18, %v11759_v18 }
 0x5e9   : > { %v11763_v16 = vsub.f32 %v1944_v36, %v1956_v14  ;;  %v1964_v19 = vsel %vm564_vm4, %v1961_v15, 0.0 }
 0x5ea   : > { %1965 = vadd.xlane.f32.xlu0 %v1964_v19  ;;  %v1954_v23 = vpop.xlane.xlu0 %1953 }
 0x5eb   : > { %v1957_v25 = vmul.f32 0.0625, %v1954_v23  ;;  %v1962_v26 = vmul.f32 %v11763_v16, %v11763_v16 }
 0x5ed   : > { %v11768_v27 = vsub.f32 %v1945_v56, %v1957_v25  ;;  %v1967_v17 = vsel %vm564_vm4, %v1962_v26, 0.0 }
 0x5ee   : > { %1968 = vadd.xlane.f32.xlu0 %v1967_v17 }
 0x5ef   : > { %v1963_v20 = vmul.f32 %v11768_v27, %v11768_v27 }
 0x5f1   : > { %v1970_v52 = vsel %vm660_vm7, %v1963_v20, 0.0 }
 0x5f2   : > { %1971 = vadd.xlane.f32.xlu0 %v1970_v52 }
 0x664   : > { %v1619_v39 = vpop.xlane.xlu1 %1618 }
 0x665   : > { %v1626_v29 = vmul.f32 0.0625, %v1619_v39 }
 0x667   : > { %v1629_v31 = vadd.f32 1e-05, %v1626_v29 }
 0x668   : > { %v1622_v34 = vpop.xlane.xlu1 %1621 }
 0x669   : > { %10728 = vrsqrt.f32 %v1629_v31  ;;  %v1627_v48 = vmul.f32 0.0625, %v1622_v34 }
 0x66b   : > { %v1630_v41 = vadd.f32 1e-05, %v1627_v48 }
 0x66c   : > { %v1625_v40 = vpop.xlane.xlu1 %1624 }
 0x66d   : > { %10730 = vrsqrt.f32 %v1630_v41  ;;  %v1628_v43 = vmul.f32 0.0625, %v1625_v40 }
 0x66f   : > { %v1631_v44 = vadd.f32 1e-05, %v1628_v43 }
 0x671   : > { %10732 = vrsqrt.f32 %v1631_v44 }
 0x673   : > { %v10729_v58 = vpop.eup %10728 }
 0x674   : > { %v1635_v35 = vmul.f32 %v10729_v58, %v1611_v49 }
 0x676   : > { %v1642_v50 = vmul.f32 %v8561_v45, %v1635_v35 }
 0x677   : > { %v10731_v13 = vpop.eup %10730  ;;  %v1966_v55 = vpop.xlane.xlu0 %1965 }
 0x678   : > { %v1649_v22 = vadd.f32 %v8562_v4, %v1642_v50  ;;  %v1636_v51 = vmul.f32 %v10731_v13, %v1612_v57  ;;  %v1973_v53 = vmul.f32 0.0625, %v1966_v55 }
 0x67a   : > { %v1652_v36 = vmul.f32 %v1649_v22, %v1649_v22  ;;  %v1643_v24 = vmul.f32 %v8561_v45, %v1636_v51  ;;  %v1976_v47 = vadd.f32 1e-05, %v1973_v53 }
 0x67b   : > { %v10733_v54 = vpop.eup %10732  ;;  %v1969_v42 = vpop.xlane.xlu0 %1968 }
 0x67c   : > { %v1655_v56 = vmul.f32 %v1652_v36, %v1649_v22  ;;  %v1637_v59 = vmul.f32 %v10733_v54, %v1613_v8  ;;  %10734 = vrsqrt.f32 %v1976_v47  ;;  %v1974_v60 = vmul.f32 0.0625, %v1969_v42 }
 0x67d   : > { %v1650_v37 = vadd.f32 %v8562_v4, %v1643_v24 }
 0x67e   : > { %v1644_v11 = vmul.f32 %v8561_v45, %v1637_v59  ;;  %v1977_v63 = vadd.f32 1e-05, %v1974_v60  ;;  %v1658_v49 = vmul.f32 0.044715, %v1655_v56 }
 0x67f   : > { %v1972_v0 = vpop.xlane.xlu0 %1971  ;;  %v1653_v1 = vmul.f32 %v1650_v37, %v1650_v37 }
 0x680   : > { %10736 = vrsqrt.f32 %v1977_v63  ;;  %v1975_v2 = vmul.f32 0.0625, %v1972_v0  ;;  %v1661_v5 = vadd.f32 %v1658_v49, %v1649_v22  ;;  %v1651_v57 = vadd.f32 %v8562_v4, %v1644_v11 }
 0x681   : > { %v1656_v62 = vmul.f32 %v1653_v1, %v1650_v37 }
 0x682   : > { %v1978_v3 = vadd.f32 1e-05, %v1975_v2  ;;  %v1664_v6 = vmul.f32 0.7978846, %v1661_v5  ;;  %v1654_v46 = vmul.f32 %v1651_v57, %v1651_v57 }
 0x683   : > { %v1659_v10 = vmul.f32 0.044715, %v1656_v62 }
 0x684   : > { %10738 = vrsqrt.f32 %v1978_v3  ;;  %v1657_v9 = vmul.f32 %v1654_v46, %v1651_v57 }
 0x685   : > { %10740 = vtanh.f32 %v1664_v6  ;;  %v1662_v8 = vadd.f32 %v1659_v10, %v1650_v37 }
 0x686   : > { %v10735_v12 = vpop.eup %10734  ;;  %v1660_v14 = vmul.f32 0.044715, %v1657_v9 }
 0x687   : > { %v1982_v15 = vmul.f32 %v10735_v12, %v11759_v18  ;;  %v1665_v19 = vmul.f32 0.7978846, %v1662_v8  ;;  %v8578_v12 = vld [vmem:[#allocation6 + $0x6] ss:$0 sm:$0xff] }
 0x688   : > { %v1663_v23 = vadd.f32 %v1660_v14, %v1651_v57 }
 0x689   : > { %v1985_v25 = vmul.f32 %v8561_v45, %v1982_v15  ;;  %10742 = vtanh.f32 %v1665_v19 }
 0x68a   : > { %v10737_v26 = vpop.eup %10736  ;;  %v1666_v17 = vmul.f32 0.7978846, %v1663_v23 }
 0x68b   : > { %v1988_v20 = vadd.f32 %v8562_v4, %v1985_v25  ;;  %v1983_v52 = vmul.f32 %v10737_v26, %v11763_v16 }
 0x68c   : > { %10744 = vtanh.f32 %v1666_v17 }
 0x68d   : > { %v1991_v28 = vmul.f32 %v1988_v20, %v1988_v20  ;;  %v1986_v21 = vmul.f32 %v8561_v45, %v1983_v52 }
 0x68e   : > { %v10739_v7 = vpop.eup %10738 }
 0x68f   : > { %v10741_v33 = vpop.eup %10740  ;;  %v1994_v38 = vmul.f32 %v1991_v28, %v1988_v20  ;;  %v1984_v61 = vmul.f32 %v10739_v7, %v11768_v27  ;;  %v1989_v39 = vadd.f32 %v8562_v4, %v1986_v21 }
 0x690   : > { %v1670_v29 = vadd.f32 1.0, %v10741_v33 }
 0x691   : > { %v1987_v18 = vmul.f32 %v8561_v45, %v1984_v61  ;;  %v1997_v31 = vmul.f32 0.044715, %v1994_v38  ;;  %v1992_v34 = vmul.f32 %v1989_v39, %v1989_v39 }
 0x692   : > { %v1673_v48 = vmul.f32 0.5, %v1670_v29 }
 0x693   : > { %v10743_v41 = vpop.eup %10742  ;;  %v2000_v40 = vadd.f32 %v1997_v31, %v1988_v20  ;;  %v1995_v43 = vmul.f32 %v1992_v34, %v1989_v39  ;;  %v1990_v44 = vadd.f32 %v8562_v4, %v1987_v18 }
 0x694   : > { %v1676_v58 = vmul.f32 %v1673_v48, %v1649_v22  ;;  %v1671_v16 = vadd.f32 1.0, %v10743_v41 }
 0x695   : > { %v2003_v35 = vmul.f32 0.7978846, %v2000_v40  ;;  %v1998_v50 = vmul.f32 0.044715, %v1995_v43  ;;  %v1993_v13 = vmul.f32 %v1990_v44, %v1990_v44 }
 0x696   : > { %v10745_v55 = vpop.eup %10744  ;;  %9416 = vmatmul.mubr.msk.f32.vlgmr.msra.gmra.mrb[38].mxu0 %vm564_vm4, %v1676_v58  ;;  %v1674_v51 = vmul.f32 0.5, %v1671_v16 }
 0x697   : > { %9418 = vmatprep.mubr.msk.f32.mxu0 %vm11092_vm3, %v11093_v32  ;;  %v1672_v27 = vadd.f32 1.0, %v10745_v55  ;;  %10746 = vtanh.f32 %v2003_v35  ;;  %v2001_v45 = vadd.f32 %v1998_v50, %v1989_v39  ;;  %v1996_v53 = vmul.f32 %v1993_v13, %v1990_v44 }
 0x698   : > { %v1677_v36 = vmul.f32 %v1674_v51, %v1650_v37 }
 0x699   : > { %v1675_v24 = vmul.f32 0.5, %v1672_v27  ;;  %v2004_v47 = vmul.f32 0.7978846, %v2001_v45  ;;  %v1999_v4 = vmul.f32 0.044715, %v1996_v53 }
 0x69a   : > { %9419 = vmatmul.mubr.msk.f32.gmra.mrb[40].mxu0 %vm564_vm4, %v1677_v36 }
 0x69b   : > { %9421 = vmatprep.mubr.msk.f32.mxu0 %vm11092_vm3, %v11093_v32  ;;  %v1678_v22 = vmul.f32 %v1675_v24, %v1651_v57  ;;  %10748 = vtanh.f32 %v2004_v47  ;;  %v2002_v54 = vadd.f32 %v1999_v4, %v1990_v44 }
 0x69d   : > { %v2005_v42 = vmul.f32 0.7978846, %v2002_v54 }
 0x69e   : > { %9422 = vmatmul.mubr.msk.f32.gmra.mrb[42].mxu0 %vm564_vm4, %v1678_v22  ;;  %v8579_v22 = vld [vmem:[#allocation6 + $0x7] ss:$0 sm:$0xff] }
 0x69f   : > { %10750 = vtanh.f32 %v2005_v42  ;;  %v8580_v42 = vld [vmem:[#allocation6 + $0x8] ss:$0 sm:$0xff] }
 0x6a1   : > { %v10747_v56 = vpop.eup %10746 }
 0x6a2   : > { %v2009_v59 = vadd.f32 1.0, %v10747_v56 }
 0x6a4   : > { %v2012_v60 = vmul.f32 0.5, %v2009_v59 }
 0x6a5   : > { %v10749_v11 = vpop.eup %10748 }
 0x6a6   : > { %v2015_v37 = vmul.f32 %v2012_v60, %v1988_v20  ;;  %v2010_v63 = vadd.f32 1.0, %v10749_v11 }
 0x6a8   : > { %9403 = vmatmul.mubr.msk.f32.vlgmr.msra.gmra.mrb[28].mxu1 %vm564_vm4, %v2015_v37  ;;  %v2013_v49 = vmul.f32 0.5, %v2010_v63 }
 0x6a9   : > { %v10751_v0 = vpop.eup %10750  ;;  %9405 = vmatprep.mubr.msk.f32.mxu1 %vm11092_vm3, %v11093_v32 }
 0x6aa   : > { %v2016_v1 = vmul.f32 %v2013_v49, %v1989_v39  ;;  %v2011_v2 = vadd.f32 1.0, %v10751_v0 }
 0x6ac   : > { %9406 = vmatmul.mubr.msk.f32.gmra.mrb[30].mxu1 %vm564_vm4, %v2016_v1  ;;  %v2014_v5 = vmul.f32 0.5, %v2011_v2 }
 0x6ad   : > { %9408 = vmatprep.mubr.msk.f32.mxu1 %vm11092_vm3, %v11093_v32 }
 0x6ae   : > { %v2017_v57 = vmul.f32 %v2014_v5, %v1990_v44 }
 0x6b0   : > { %9409 = vmatmul.mubr.msk.f32.gmra.mrb[32].mxu1 %vm564_vm4, %v2017_v57 }
 0x6b1   : > { %9428 = vmatprep.mubr.msk.f32.mxu1 %vm11092_vm3, %v11093_v32 }
 0x769   : > { %v2187_v62 = vpop.f32.mrb[38].mxu0 }
 0x76a   : > { %v9417_v3 = vpop.f32.mrb[39].mxu0 }
 0x76d   : > { %v2192_v6 = vpop.f32.mrb[40].mxu0 }
 0x76e   : > { %v9420_v46 = vpop.f32.mrb[41].mxu0 }
 0x771   : > { %v2197_v10 = vpop.f32.mrb[42].mxu0 }
 0x772   : > { %v9423_v9 = vpop.f32.mrb[43].mxu0 }
 0x77b   : > { %v2098_v8 = vpop.f32.mrb[28].mxu1 }
 0x77c   : > { %v2188_v14 = vadd.f32 %v2187_v62, %v2098_v8  ;;  %v9404_v15 = vpop.f32.mrb[29].mxu1 }
 0x77e   : > { %v2205_v19 = vadd.f32 %v8578_v12, %v2188_v14 }
 0x77f   : > { %v2103_v23 = vpop.f32.mrb[30].mxu1 }
 0x780   : > { %v2193_v25 = vadd.f32 %v2192_v6, %v2103_v23  ;;  %v9407_v26 = vpop.f32.mrb[31].mxu1  ;;  %v2208_v17 = vsel %vm564_vm4, %v2205_v19, 0.0 }
 0x781   : > { %2209 = vadd.xlane.f32.xlu1 %v2208_v17 }
 0x782   : > { %v2206_v20 = vadd.f32 %v8578_v12, %v2193_v25 }
 0x783   : > { %v2108_v52 = vpop.f32.mrb[32].mxu1 }
 0x784   : > { %v2198_v28 = vadd.f32 %v2197_v10, %v2108_v52  ;;  %v9410_v21 = vpop.f32.mrb[33].mxu1  ;;  %v2211_v7 = vsel %vm564_vm4, %v2206_v20, 0.0 }
 0x785   : > { %2212 = vadd.xlane.f32.xlu0 %v2211_v7 }
 0x786   : > { %v2207_v33 = vadd.f32 %v8578_v12, %v2198_v28 }
 0x788   : > { %v2214_v38 = vsel %vm660_vm7, %v2207_v33, 0.0 }
 0x789   : > { %2215 = vadd.xlane.f32.xlu1 %v2214_v38 }
 0x80e   : > { %v2210_v61 = vpop.xlane.xlu1 %2209 }
 0x80f   : > { %v2217_v39 = vmul.f32 0.0625, %v2210_v61 }
 0x811   : > { %v2220_v29 = vsub.f32 %v2205_v19, %v2217_v39 }
 0x812   : > { %v2213_v18 = vpop.xlane.xlu0 %2212 }
 0x813   : > { %v2218_v31 = vmul.f32 0.0625, %v2213_v18  ;;  %v2223_v34 = vmul.f32 %v2220_v29, %v2220_v29 }
 0x815   : > { %v2221_v48 = vsub.f32 %v2206_v20, %v2218_v31  ;;  %v2226_v41 = vsel %vm564_vm4, %v2223_v34, 0.0 }
 0x816   : > { %2227 = vadd.xlane.f32.xlu0 %v2226_v41  ;;  %v2216_v40 = vpop.xlane.xlu1 %2215 }
 0x817   : > { %v2219_v43 = vmul.f32 0.0625, %v2216_v40  ;;  %v2224_v44 = vmul.f32 %v2221_v48, %v2221_v48 }
 0x819   : > { %v2222_v58 = vsub.f32 %v2207_v33, %v2219_v43  ;;  %v2229_v16 = vsel %vm564_vm4, %v2224_v44, 0.0 }
 0x81a   : > { %2230 = vadd.xlane.f32.xlu1 %v2229_v16 }
 0x81b   : > { %v2225_v35 = vmul.f32 %v2222_v58, %v2222_v58 }
 0x81d   : > { %v2232_v50 = vsel %vm660_vm7, %v2225_v35, 0.0 }
 0x81e   : > { %2233 = vadd.xlane.f32.xlu0 %v2232_v50 }
 0x8a3   : > { %v2228_v13 = vpop.xlane.xlu0 %2227 }
 0x8a4   : > { %v2235_v55 = vmul.f32 0.0625, %v2228_v13 }
 0x8a6   : > { %v2238_v51 = vadd.f32 1e-05, %v2235_v55 }
 0x8a7   : > { %v2231_v27 = vpop.xlane.xlu1 %2230 }
 0x8a8   : > { %10752 = vrsqrt.f32 %v2238_v51  ;;  %v2236_v45 = vmul.f32 0.0625, %v2231_v27 }
 0x8aa   : > { %v2239_v53 = vadd.f32 1e-05, %v2236_v45 }
 0x8ab   : > { %v2234_v36 = vpop.xlane.xlu0 %2233 }
 0x8ac   : > { %10754 = vrsqrt.f32 %v2239_v53  ;;  %v2237_v24 = vmul.f32 0.0625, %v2234_v36  ;;  %v2343_v36 = vld [vmem:[#allocation8] sm:$0xff] }
 0x8ae   : > { %v2240_v47 = vadd.f32 1e-05, %v2237_v24  ;;  %v2344_v24 = vld [vmem:[#allocation8 + $0x8] sm:$0xff] }
 0x8b0   : > { %10756 = vrsqrt.f32 %v2240_v47  ;;  %v10202_v47 = vpack.c.bf16 %v2344_v24, %v2343_v36  ;;  %v2679_v24 = vld [vmem:[%s13555_s8 + $0x50] sm:$0xff] }
 0x8b2   : > { %v10753_v4 = vpop.eup %10752  ;;  %10203 = vmatpush3.bf16.msra.mxu1 %v10202_v47  ;;  %v2680_v47 = vld [vmem:[%s13555_s8 + $0x58] sm:$0xff] }
 0x8b3   : > { %v2244_v54 = vmul.f32 %v10753_v4, %v2220_v29  ;;  %10236 = vmatprep.subr.bf16.mxu1 %v11091_v30 }
 0x8b5   : > { %v2251_v56 = vmul.f32 %v8579_v22, %v2244_v54 }
 0x8b6   : > { %v10755_v59 = vpop.eup %10754 }
 0x8b7   : > { %v2245_v60 = vmul.f32 %v10755_v59, %v2221_v48  ;;  %v2258_v11 = vadd.f32 %v8580_v42, %v2251_v56 }
 0x8b9   : > { %v2261_v37 = vmul.f32 %v2258_v11, %v2258_v11  ;;  %v2252_v63 = vmul.f32 %v8579_v22, %v2245_v60 }
 0x8ba   : > { %v10757_v49 = vpop.eup %10756 }
 0x8bb   : > { %v2246_v0 = vmul.f32 %v10757_v49, %v2222_v58  ;;  %v2264_v1 = vmul.f32 %v2261_v37, %v2258_v11  ;;  %v2259_v2 = vadd.f32 %v8580_v42, %v2252_v63  ;;  %v8581_v49 = vld [vmem:[#allocation6 + $0x9] ss:$0 sm:$0xff] }
 0x8bd   : > { %v2267_v5 = vmul.f32 0.044715, %v2264_v1  ;;  %v2262_v57 = vmul.f32 %v2259_v2, %v2259_v2  ;;  %v2253_v62 = vmul.f32 %v8579_v22, %v2246_v0  ;;  %v8582_v1 = vld [vmem:[#allocation6 + $0xa] ss:$0 sm:$0xff] }
 0x8bf   : > { %v2270_v3 = vadd.f32 %v2267_v5, %v2258_v11  ;;  %v2265_v6 = vmul.f32 %v2262_v57, %v2259_v2  ;;  %v2260_v46 = vadd.f32 %v8580_v42, %v2253_v62 }
 0x8c1   : > { %v2273_v10 = vmul.f32 0.7978846, %v2270_v3  ;;  %v2268_v9 = vmul.f32 0.044715, %v2265_v6  ;;  %v2263_v8 = vmul.f32 %v2260_v46, %v2260_v46 }
 0x8c3   : > { %10758 = vtanh.f32 %v2273_v10  ;;  %v2271_v12 = vadd.f32 %v2268_v9, %v2259_v2  ;;  %v2266_v14 = vmul.f32 %v2263_v8, %v2260_v46 }
 0x8c5   : > { %v2274_v15 = vmul.f32 0.7978846, %v2271_v12  ;;  %v2269_v19 = vmul.f32 0.044715, %v2266_v14  ;;  %v2438_v12 = vlaneseq }
 0x8c7   : > { %10760 = vtanh.f32 %v2274_v15  ;;  %v2272_v23 = vadd.f32 %v2269_v19, %v2260_v46  ;;  %v2816_v14 = vand.u32 127, %v2438_v12  ;;  %v11816_v15 = vstv %s487_s24 }
 0x8c9   : > { %v2275_v25 = vmul.f32 0.7978846, %v2272_v23  ;;  %vm11819_vm8 = vcmp.lt.s32.totalorder %v2816_v14, %v11816_v15  ;;  %v2685_v23 = vld [vmem:[%s13555_s8 + $0x80] sm:$0xff] }
 0x8cb   : > { %10762 = vtanh.f32 %v2275_v25  ;;  %v2686_v25 = vld [vmem:[%s13555_s8 + $0x88] sm:$0xff] }
 0x8cd   : > { %v10759_v26 = vpop.eup %10758 }
 0x8ce   : > { %v2279_v17 = vadd.f32 1.0, %v10759_v26  ;;  %v2669_v26 = vld [vmem:[%s13555_s8] sm:$0xff] }
 0x8d0   : > { %v2282_v20 = vmul.f32 0.5, %v2279_v17  ;;  %v10204_v17 = vpack.c.bf16 %v2686_v25, %v2685_v23 }
 0x8d1   : > { %v10761_v52 = vpop.eup %10760 }
 0x8d2   : > { %v2285_v28 = vmul.f32 %v2282_v20, %v2258_v11  ;;  %v2280_v21 = vadd.f32 1.0, %v10761_v52  ;;  %v2670_v20 = vld [vmem:[%s13555_s8 + $0x8] sm:$0xff]  ;;  %v2687_v52 = vld [vmem:[%s13555_s8 + $0x90] sm:$0xff]  ;;  %10205 = vmatprep.subr.bf16.mxu0 %v10204_v17  ;;  %v2700_v17 = vld [vmem:[%s13555_s8 + $0xf8] sm:$0xff] }
 0x8d4   : > { %v2290_v7 = vsel %vm564_vm4, %v2285_v28, 0.0  ;;  %v2283_v33 = vmul.f32 0.5, %v2280_v21  ;;  %v10206_v21 = vpack.c.bf16 %v2670_v20, %v2669_v26  ;;  %v2699_v26 = vld [vmem:[%s13555_s8 + $0xf0] sm:$0xff] }
 0x8d5   : > { %v10763_v38 = vpop.eup %10762  ;;  %2291 = vadd.xlane.f32.xlu1 %v2290_v7 }
 0x8d6   : > { %v2286_v61 = vmul.f32 %v2283_v33, %v2259_v2  ;;  %v2281_v39 = vadd.f32 1.0, %v10763_v38  ;;  %v2671_v33 = vld [vmem:[%s13555_s8 + $0x10] sm:$0xff]  ;;  %v2672_v38 = vld [vmem:[%s13555_s8 + $0x18] sm:$0xff]  ;;  %10207 = vmatpush3.bf16.msra.mxu0 %v10206_v21 }
 0x8d8   : > { %v2293_v29 = vsel %vm564_vm4, %v2286_v61, 0.0  ;;  %v2284_v18 = vmul.f32 0.5, %v2281_v39  ;;  %v2690_v39 = vld [vmem:[%s13555_s8 + $0xa8] sm:$0xff] }
 0x8d9   : > { %2294 = vadd.xlane.f32.xlu0 %v2293_v29  ;;  %v10210_v29 = vpack.c.bf16 %v2672_v38, %v2671_v33 }
 0x8da   : > { %v2287_v31 = vmul.f32 %v2284_v18, %v2260_v46 }
 0x8dc   : > { %v2296_v34 = vsel %vm660_vm7, %v2287_v31, 0.0 }
 0x8dd   : > { %2297 = vadd.xlane.f32.xlu1 %v2296_v34  ;;  %v2674_v34 = vld [vmem:[%s13555_s8 + $0x28] sm:$0xff] }
 0x962   : > { %v2292_v48 = vpop.xlane.xlu1 %2291 }
 0x963   : > { %v2299_v41 = vmul.f32 0.0625, %v2292_v48  ;;  %v2691_v48 = vld [vmem:[%s13555_s8 + $0xb0] sm:$0xff] }
 0x965   : > { %v2302_v40 = vsub.f32 %v2285_v28, %v2299_v41  ;;  %v2688_v28 = vld [vmem:[%s13555_s8 + $0x98] sm:$0xff] }
 0x966   : > { %v2295_v43 = vpop.xlane.xlu0 %2294  ;;  %v10208_v7 = vpack.c.bf16 %v2688_v28, %v2687_v52  ;;  %v2692_v41 = vld [vmem:[%s13555_s8 + $0xb8] sm:$0xff] }
 0x967   : > { %v2300_v44 = vmul.f32 0.0625, %v2295_v43  ;;  %v2305_v58 = vmul.f32 %v2302_v40, %v2302_v40  ;;  %v10216_v43 = vpack.c.bf16 %v2692_v41, %v2691_v48  ;;  %v2684_v48 = vld [vmem:[%s13555_s8 + $0x78] sm:$0xff] }
 0x968   : > { %10209 = vmatprep.subr.bf16.mxu0 %v10208_v7 }
 0x969   : > { %v2303_v16 = vsub.f32 %v2286_v61, %v2300_v44  ;;  %v2308_v35 = vsel %vm564_vm4, %v2305_v58, 0.0  ;;  %v2689_v61 = vld [vmem:[%s13555_s8 + $0xa0] sm:$0xff]  ;;  %10211 = vmatpush3.bf16.msra.mxu0 %v10210_v29  ;;  %v2675_v44 = vld [vmem:[%s13555_s8 + $0x30] sm:$0xff]  ;;  %v2676_v58 = vld [vmem:[%s13555_s8 + $0x38] sm:$0xff] }
 0x96a   : > { %2309 = vadd.xlane.f32.xlu0 %v2308_v35  ;;  %v2298_v50 = vpop.xlane.xlu1 %2297  ;;  %v10212_v18 = vpack.c.bf16 %v2690_v39, %v2689_v61  ;;  %v2694_v35 = vld [vmem:[%s13555_s8 + $0xc8] sm:$0xff]  ;;  %v10232_v61 = vpack.c.bf16 %v2700_v17, %v2699_v26 }
 0x96b   : > { %v2301_v13 = vmul.f32 0.0625, %v2298_v50  ;;  %v2306_v55 = vmul.f32 %v2303_v16, %v2303_v16  ;;  %v10218_v50 = vpack.c.bf16 %v2676_v58, %v2675_v44 }
 0x96c   : > { %10213 = vmatprep.subr.bf16.mxu0 %v10212_v18 }
 0x96d   : > { %v2304_v51 = vsub.f32 %v2287_v31, %v2301_v13  ;;  %v2311_v27 = vsel %vm564_vm4, %v2306_v55, 0.0  ;;  %v2673_v31 = vld [vmem:[%s13555_s8 + $0x20] sm:$0xff] }
 0x96e   : > { %2312 = vadd.xlane.f32.xlu1 %v2311_v27  ;;  %v2677_v55 = vld [vmem:[%s13555_s8 + $0x40] sm:$0xff]  ;;  %v2695_v27 = vld [vmem:[%s13555_s8 + $0xd0] sm:$0xff] }
 0x96f   : > { %v2307_v45 = vmul.f32 %v2304_v51, %v2304_v51 }
 0x971   : > { %v2314_v53 = vsel %vm660_vm7, %v2307_v45, 0.0  ;;  %v2696_v45 = vld [vmem:[%s13555_s8 + $0xd8] sm:$0xff] }
 0x972   : > { %2315 = vadd.xlane.f32.xlu0 %v2314_v53  ;;  %v10224_v36 = vpack.c.bf16 %v2696_v45, %v2695_v27 }
 0x9f7   : > { %v2310_v4 = vpop.xlane.xlu0 %2309 }
 0x9f8   : > { %v2317_v22 = vmul.f32 0.0625, %v2310_v4  ;;  %v10226_v4 = vpack.c.bf16 %v2680_v47, %v2679_v24 }
 0x9fa   : > { %v2320_v54 = vadd.f32 1e-05, %v2317_v22  ;;  %v8583_v22 = vld [vmem:[%s13553_s6] ss:$0 sm:$0xff] }
 0x9fb   : > { %v2313_v42 = vpop.xlane.xlu1 %2312 }
 0x9fc   : > { %10764 = vrsqrt.f32 %v2320_v54  ;;  %v2318_v56 = vmul.f32 0.0625, %v2313_v42  ;;  %v11898_v54 = vshrl.u32 %v2438_v12, 7 }
 0x9fe   : > { %v2321_v59 = vadd.f32 1e-05, %v2318_v56  ;;  %v11901_v56 = vadd.s32 8, %v11898_v54  ;;  %vm2443_vm9 = vcmp.lt.s32.totalorder %v11898_v54, %v11816_v15  ;;  %vm2487_vm14 = vcmp.ge.s32.totalorder %v11898_v54, 2 }
 0x9ff   : > { %v2316_v60 = vpop.xlane.xlu0 %2315  ;;  %vm2467_vm15 = vcmp.ge.s32.totalorder %v11898_v54, 3  ;;  %vm2505_vm7 = vcmp.ge.s32.totalorder %v11898_v54, 1 }
 0xa00   : > { %10766 = vrsqrt.f32 %v2321_v59  ;;  %v2319_v11 = vmul.f32 0.0625, %v2316_v60  ;;  %vm2444_vm10 = vcmp.lt.s32.totalorder %v11901_v56, %v11816_v15 }
 0xa02   : > { %v2322_v37 = vadd.f32 1e-05, %v2319_v11 }
 0xa04   : > { %10768 = vrsqrt.f32 %v2322_v37  ;;  %v11908_v37 = vadd.s32 16, %v11898_v54 }
 0xa06   : > { %v10765_v63 = vpop.eup %10764  ;;  %vm2445_vm13 = vcmp.lt.s32.totalorder %v11908_v37, %v11816_v15 }
 0xa07   : > { %v2326_v0 = vmul.f32 %v10765_v63, %v2302_v40  ;;  %v10214_v40 = vpack.c.bf16 %v2674_v34, %v2673_v31  ;;  %v2683_v34 = vld [vmem:[%s13555_s8 + $0x70] sm:$0xff] }
 0xa09   : > { %v2333_v2 = vmul.f32 %v8581_v49, %v2326_v0  ;;  %10215 = vmatpush3.bf16.msra.mxu0 %v10214_v40 }
 0xa0a   : > { %v10767_v5 = vpop.eup %10766  ;;  %10217 = vmatprep.subr.bf16.mxu0 %v10216_v43 }
 0xa0b   : > { %v2340_v57 = vadd.f32 %v8582_v1, %v2333_v2  ;;  %v2327_v62 = vmul.f32 %v10767_v5, %v2303_v16  ;;  %v2693_v16 = vld [vmem:[%s13555_s8 + $0xc0] sm:$0xff] }
 0xa0c   : > { %v10220_v13 = vpack.c.bf16 %v2694_v35, %v2693_v16 }
 0xa0d   : > { %9429 = vmatmul.mubr.msk.f32.vlgmr.msra.gmra.mrb[34].mxu1 %vm564_vm4, %v2340_v57  ;;  %v2334_v3 = vmul.f32 %v8581_v49, %v2327_v62  ;;  %10219 = vmatpush3.bf16.msra.mxu0 %v10218_v50  ;;  %v2697_v62 = vld [vmem:[%s13555_s8 + $0xe0] sm:$0xff] }
 0xa0e   : > { %v10769_v6 = vpop.eup %10768  ;;  %9431 = vmatprep.mubr.msk.f32.mxu1 %vm11092_vm3, %v11093_v32  ;;  %10221 = vmatprep.subr.bf16.mxu0 %v10220_v13 }
 0xa0f   : > { %v2341_v46 = vadd.f32 %v8582_v1, %v2334_v3  ;;  %v2328_v10 = vmul.f32 %v10769_v6, %v2304_v51  ;;  %v2678_v51 = vld [vmem:[%s13555_s8 + $0x48] sm:$0xff] }
 0xa10   : > { %v10222_v53 = vpack.c.bf16 %v2678_v51, %v2677_v55  ;;  %v10234_v51 = vpack.c.bf16 %v2684_v48, %v2683_v34 }
 0xa11   : > { %9432 = vmatmul.mubr.msk.f32.gmra.mrb[36].mxu1 %vm564_vm4, %v2341_v46  ;;  %v2335_v9 = vmul.f32 %v8581_v49, %v2328_v10  ;;  %v2698_v10 = vld [vmem:[%s13555_s8 + $0xe8] sm:$0xff] }
 0xa12   : > { %9434 = vmatprep.mubr.msk.f32.mxu1 %vm11092_vm3, %v11093_v32  ;;  %10223 = vmatpush3.bf16.msra.mxu0 %v10222_v53  ;;  %v10228_v33 = vpack.c.bf16 %v2698_v10, %v2697_v62 }
 0xa13   : > { %v2342_v8 = vadd.f32 %v8582_v1, %v2335_v9  ;;  %10225 = vmatprep.subr.bf16.mxu0 %v10224_v36  ;;  %v2681_v9 = vld [vmem:[%s13555_s8 + $0x60] sm:$0xff] }
 0xa15   : > { %9435 = vmatmul.mubr.msk.f32.gmra.mrb[38].mxu1 %vm564_vm4, %v2342_v8  ;;  %v2682_v8 = vld [vmem:[%s13555_s8 + $0x68] sm:$0xff] }
 0xa16   : > { %9445 = vmatprep.mubr.msk.f32.mxu1 %vm11092_vm3, %v11093_v32  ;;  %10227 = vmatpush3.bf16.msra.mxu0 %v10226_v4  ;;  %v10230_v38 = vpack.c.bf16 %v2682_v8, %v2681_v9 }
 0xa17   : > { %10229 = vmatprep.subr.bf16.mxu0 %v10228_v33 }
 0xa1a   : > { %10231 = vmatpush3.bf16.msra.mxu0 %v10230_v38 }
 0xa1b   : > { %10233 = vmatprep.subr.bf16.mxu0 %v10232_v61 }
 0xa1e   : > { %10235 = vmatpush3.bf16.msra.mxu0 %v10234_v51 }
 0xa1f   : > { %10250 = vmatprep.subr.bf16.mxu0 %v11091_v30 }
 0xae0   : > { %v2424_v42 = vpop.f32.mrb[34].mxu1 }
 0xae1   : > { %v2425_v59 = vadd.f32 %v8583_v22, %v2424_v42  ;;  %v9430_v60 = vpop.f32.mrb[35].mxu1 }
 0xae3   : > { %v11913_v63 = vsel %vm2443_vm9, %v2425_v59, 0.0 }
 0xae4   : > { %v2429_v11 = vpop.f32.mrb[36].mxu1  ;;  %v2449_v57 = vrot.slane %v11913_v63, 4  ;;  %v2550_v46 = vrot.slane %v11913_v63, 2  ;;  %v2534_v23 = vrot.slane %v11913_v63, 1  ;;  %v2566_v53 = vrot.slane %v11913_v63, 3 }
 0xae5   : > { %v2430_v49 = vadd.f32 %v8583_v22, %v2429_v11  ;;  %v9433_v0 = vpop.f32.mrb[37].mxu1 }
 0xae7   : > { %v11918_v1 = vsel %vm2444_vm10, %v2430_v49, 0.0 }
 0xae8   : > { %v2451_v2 = vrot.slane %v11918_v1, 4  ;;  %v2434_v5 = vpop.f32.mrb[38].mxu1  ;;  %v2551_v14 = vrot.slane %v11918_v1, 2  ;;  %v2535_v25 = vrot.slane %v11918_v1, 1  ;;  %v2567_v43 = vrot.slane %v11918_v1, 3 }
 0xae9   : > { %v2435_v3 = vadd.f32 %v8583_v22, %v2434_v5  ;;  %v9436_v6 = vpop.f32.mrb[39].mxu1 }
 0xaea   : > { %v11940_v12 = vsel %vm555_vm6, %v2451_v2, %v2449_v57  ;;  %v2552_v41 = vsel %vm2493_vm11, %v2550_v46, %v2551_v14  ;;  %v2536_v40 = vsel %vm1065_vm5, %v2534_v23, %v2535_v25  ;;  %v2568_v22 = vsel %vm2511_vm12, %v2566_v53, %v2567_v43 }
 0xaeb   : > { %v11954_v20 = vsel %vm2445_vm13, %v2435_v3, 0.0  ;;  %v2495_v52 = vrot.slane %v11940_v12, 2  ;;  %v2477_v28 = vrot.slane %v11940_v12, 1  ;;  %v2513_v21 = vrot.slane %v11940_v12, 3 }
 0xaec   : > { %v11961_v7 = vsel %vm555_vm6, %v2449_v57, %v11954_v20 }
 0xaed   : > { %v2452_v39 = vrot.slane %v11961_v7, 4  ;;  %v2494_v29 = vrot.slane %v11961_v7, 2  ;;  %v2476_v18 = vrot.slane %v11961_v7, 1  ;;  %v2512_v31 = vrot.slane %v11961_v7, 3 }
 0xaef   : > { %v2496_v44 = vsel %vm2493_vm11, %v2494_v29, %v2495_v52  ;;  %v2478_v58 = vsel %vm1065_vm5, %v2476_v18, %v2477_v28  ;;  %v2514_v16 = vsel %vm2511_vm12, %v2512_v31, %v2513_v21  ;;  %v2454_v35 = vsel %vm555_vm6, %v2452_v39, %v2451_v2 }
 0xaf0   : > { %v2502_v50 = vsel %vm2487_vm14, %v2496_v44, 0.0  ;;  %v2484_v13 = vsel %vm2467_vm15, %v2478_v58, 0.0  ;;  %v2515_v55 = vrot.slane %v2454_v35, 3  ;;  %v2520_v36 = vsel %vm2505_vm7, %v2514_v16, 0.0 }
 0xaf1   : > { %v10513_v27 = vpack.i.bf16 %v2502_v50, %v2552_v41  ;;  %v10508_v45 = vpack.i.bf16 %v2484_v13, %v2536_v40  ;;  %v2497_v47 = vrot.slane %v2454_v35, 2  ;;  %v2479_v4 = vrot.slane %v2454_v35, 1 }
 0xaf2   : > { %v2516_v24 = vsel %vm2511_vm12, %v2513_v21, %v2515_v55  ;;  %vm2460_vm6 = vcmp.lt.s32.totalorder %v11908_v37, 20  ;;  %v2569_v42 = vsel %vm2511_vm12, %v2567_v43, %v2512_v31  ;;  %v10518_v59 = vpack.i.bf16 %v2520_v36, %v2568_v22 }
 0xaf3   : > { %10514 = vrot.lane.b32.xlu0 %v10513_v27, %s11095_s26  ;;  %10509 = vrot.lane.b32.xlu1 %v10508_v45, %s11096_s27  ;;  %v10533_v60 = vpack.i.bf16 %v2516_v24, %v2569_v42  ;;  %vm2546_vm14 = vcmp.lt.s32.totalorder %v11908_v37, 18  ;;  %v2504_v11 = vsel %vm2460_vm6, %v2497_v47, 0.0  ;;  %v2480_v49 = vsel %vm1065_vm5, %v2477_v28, %v2479_v4 }
 0xaf4   : > { %v12003_v0 = vsel %vm2460_vm6, %v2454_v35, 0.0  ;;  %v2559_v2 = vsel %vm2546_vm14, %v2494_v29, 0.0  ;;  %v2537_v5 = vsel %vm1065_vm5, %v2535_v25, %v2476_v18  ;;  %v2498_v3 = vsel %vm2493_vm11, %v2495_v52, %v2497_v47 }
 0xaf5   : > { %v10543_v57 = vpack.i.bf16 %v2504_v11, %v2559_v2  ;;  %v10523_v62 = vpack.i.bf16 %v2480_v49, %v2537_v5  ;;  %v2553_v6 = vsel %vm2493_vm11, %v2551_v14, %v2494_v29  ;;  %vm2528_vm12 = vcmp.lt.s32.totalorder %v11908_v37, 19 }
 0xaf6   : > { %v10528_v46 = vpack.i.bf16 %v2498_v3, %v2553_v6  ;;  %v2486_v10 = vsel %vm2460_vm6, %v2479_v4, 0.0  ;;  %v2543_v9 = vsel %vm2528_vm12, %v2476_v18, 0.0  ;;  %vm2562_vm5 = vcmp.lt.s32.totalorder %v11908_v37, 17  ;;  %vm12142_vm12 = vmpackc.low %vm564_vm4, %vm564_vm4 }
 0xaf7   : > { %10519 = vrot.lane.b32.xlu1 %v10518_v59, %s11097_s28  ;;  %10534 = vrot.lane.b32.xlu0 %v10533_v60, %s11097_s28  ;;  %v10538_v8 = vpack.i.bf16 %v2486_v10, %v2543_v9  ;;  %v2522_v23 = vsel %vm2460_vm6, %v2515_v55, 0.0  ;;  %v2575_v25 = vsel %vm2562_vm5, %v2512_v31, 0.0  ;;  %vm2455_vm11 = vcmp.ge.s32.totalorder %v11898_v54, 4 }
 0xaf8   : > { %v10548_v26 = vpack.i.bf16 %v2522_v23, %v2575_v25  ;;  %vm2648_vm15 = vcmask 261120   ;;  %v2464_v38 = vsel %vm2455_vm11, %v11961_v7, 0.0  ;;  %vm2652_vm7 = vcmask 523264  }
 0xaf9   : > { %vm2656_vm6 = vcmask 785408   ;;  %vm2825_vm14 = vcmask 257024  }
 0xafb   : > { %10544 = vrot.lane.b32.xlu0 %v10543_v57, %s11095_s26  ;;  %10524 = vrot.lane.b32.xlu1 %v10523_v62, %s11096_s27 }
 0xaff   : > { %10529 = vrot.lane.b32.xlu1 %v10528_v46, %s11095_s26 }
 0xb03   : > { %10539 = vrot.lane.b32.xlu1 %v10538_v8, %s11096_s27 }
 0xb07   : > { %10549 = vrot.lane.b32.xlu1 %v10548_v26, %s11097_s28 }
 0xb65   : > { %v10515_v14 = vpop.permute.xlu0 %10514  ;;  %v10510_v17 = vpop.permute.xlu1 %10509 }
 0xb66   : > { %v10512_v52 = vunpack.i.h.bf16 %v10510_v17  ;;  %v10511_v28 = vunpack.i.l.bf16 %v10510_v17  ;;  %v10517_v21 = vunpack.i.h.bf16 %v10515_v14  ;;  %v10516_v33 = vunpack.i.l.bf16 %v10515_v14 }
 0xb68   : > { %v2649_v61 = vsel %vm2648_vm15, %v2464_v38, %v10512_v52  ;;  %v2660_v39 = vsel %vm2648_vm15, %v11913_v63, %v10511_v28 }
 0xb69   : > { %v10520_v29 = vpop.permute.xlu1 %10519  ;;  %v2663_v34 = vsel %vm2652_vm7, %v2660_v39, %v10516_v33  ;;  %v2653_v48 = vsel %vm2652_vm7, %v2649_v61, %v10517_v21  ;;  %v10535_v58 = vpop.permute.xlu0 %10534 }
 0xb6a   : > { %v10522_v18 = vunpack.i.h.bf16 %v10520_v29  ;;  %v10521_v31 = vunpack.i.l.bf16 %v10520_v29  ;;  %v10537_v13 = vunpack.i.h.bf16 %v10535_v58  ;;  %v10536_v55 = vunpack.i.l.bf16 %v10535_v58 }
 0xb6c   : > { %v2666_v41 = vsel %vm2656_vm6, %v2663_v34, %v10521_v31  ;;  %v2657_v40 = vsel %vm2656_vm6, %v2653_v48, %v10522_v18 }
 0xb6d   : > { %2769 = vmatprep.mubr.f32.mxu0 %v2666_v41  ;;  %v10525_v7 = vpop.permute.xlu1 %10524  ;;  %v10545_v4 = vpop.permute.xlu0 %10544 }
 0xb6e   : > { %2770 = vmatmul.mubr.f32.vlgmr.msra.gmra.mrb[44].mxu0 %v2657_v40  ;;  %v10527_v43 = vunpack.i.h.bf16 %v10525_v7  ;;  %v10526_v44 = vunpack.i.l.bf16 %v10525_v7  ;;  %v10547_v60 = vunpack.i.h.bf16 %v10545_v4  ;;  %v10546_v11 = vunpack.i.l.bf16 %v10545_v4 }
 0xb70   : > { %v2661_v51 = vsel %vm2648_vm15, %v11918_v1, %v10526_v44  ;;  %v2650_v27 = vsel %vm2648_vm15, %v11940_v12, %v10527_v43 }
 0xb71   : > { %v10530_v16 = vpop.permute.xlu1 %10529 }
 0xb72   : > { %v10532_v35 = vunpack.i.h.bf16 %v10530_v16  ;;  %v10531_v50 = vunpack.i.l.bf16 %v10530_v16 }
 0xb74   : > { %v2664_v45 = vsel %vm2652_vm7, %v2661_v51, %v10531_v50  ;;  %v2654_v53 = vsel %vm2652_vm7, %v2650_v27, %v10532_v35 }
 0xb75   : > { %v10540_v36 = vpop.permute.xlu1 %10539  ;;  %v2667_v24 = vsel %vm2656_vm6, %v2664_v45, %v10536_v55  ;;  %v2658_v47 = vsel %vm2656_vm6, %v2654_v53, %v10537_v13 }
 0xb76   : > { %v10542_v22 = vunpack.i.h.bf16 %v10540_v36  ;;  %v10541_v42 = vunpack.i.l.bf16 %v10540_v36  ;;  %2774 = vmatprep.mubr.f32.mxu0 %v2667_v24 }
 0xb77   : > { %2775 = vmatmul.mubr.f32.gmra.mrb[46].mxu0 %v2658_v47 }
 0xb78   : > { %v2662_v59 = vsel %vm2648_vm15, %v11954_v20, %v10541_v42  ;;  %v2651_v12 = vsel %vm2648_vm15, %v12003_v0, %v10542_v22  ;;  %v8587_v0 = vld [vmem:[%s13553_s6 + $0x1] ss:$0 sm:$0xff] }
 0xb79   : > { %v10550_v49 = vpop.permute.xlu1 %10549  ;;  %v2665_v57 = vsel %vm2652_vm7, %v2662_v59, %v10546_v11  ;;  %v2655_v62 = vsel %vm2652_vm7, %v2651_v12, %v10547_v60 }
 0xb7a   : > { %v10552_v2 = vunpack.i.h.bf16 %v10550_v49  ;;  %v10551_v5 = vunpack.i.l.bf16 %v10550_v49 }
 0xb7c   : > { %v2668_v3 = vsel %vm2656_vm6, %v2665_v57, %v10551_v5  ;;  %v2659_v6 = vsel %vm2656_vm6, %v2655_v62, %v10552_v2 }
 0xb7d   : > { %2779 = vmatprep.mubr.f32.mxu0 %v2668_v3 }
 0xb7e   : > { %2780 = vmatmul.mubr.f32.gmra.mrb[48].mxu0 %v2659_v6 }
 0xb7f   : > { %9490 = vmatprep.mubr.msk.f32.mxu0 %vm11092_vm3, %v11093_v32 }
 0xc41   : > { %v8951_v46 = vpop.f32.mrb[44].mxu0 }
 0xc42   : > { %v8952_v10 = vpop.f32.mrb[45].mxu0 }
 0xc43   : > { %v8953_v9 = vadd.f32 %v8952_v10, %v8951_v46 }
 0xc45   : > { %v2772_v8 = vadd.f32 %v8953_v9, %v8587_v0 }
 0xc47   : > { %v2785_v23 = vmul.f32 %v2772_v8, %v2772_v8 }
 0xc49   : > { %v2788_v25 = vmul.f32 %v2785_v23, %v2772_v8  ;;  %v2875_v23 = vld [vmem:[%s13556_s9 + $0x8] sm:$0xff] }
 0xc4a   : > { %v8954_v26 = vpop.f32.mrb[46].mxu0 }
 0xc4b   : > { %v2791_v14 = vmul.f32 0.044715, %v2788_v25  ;;  %v8955_v17 = vpop.f32.mrb[47].mxu0 }
 0xc4c   : > { %v8956_v52 = vadd.f32 %v8955_v17, %v8954_v26  ;;  %v2876_v26 = vld [vmem:[%s13556_s9 + $0x10] sm:$0xff] }
 0xc4d   : > { %v2794_v28 = vadd.f32 %v2791_v14, %v2772_v8  ;;  %v2877_v14 = vld [vmem:[%s13556_s9 + $0x18] sm:$0xff] }
 0xc4e   : > { %v2777_v21 = vadd.f32 %v8956_v52, %v8587_v0  ;;  %v10240_v17 = vpack.c.bf16 %v2877_v14, %v2876_v26 }
 0xc4f   : > { %v2797_v33 = vmul.f32 0.7978846, %v2794_v28 }
 0xc50   : > { %v2786_v38 = vmul.f32 %v2777_v21, %v2777_v21 }
 0xc51   : > { %10770 = vtanh.f32 %v2797_v33  ;;  %v8957_v61 = vpop.f32.mrb[48].mxu0 }
 0xc52   : > { %v2789_v39 = vmul.f32 %v2786_v38, %v2777_v21  ;;  %v8958_v29 = vpop.f32.mrb[49].mxu0  ;;  %v12089_v38 = vsub.s32 0, %v11898_v54 }
 0xc53   : > { %v8959_v18 = vadd.f32 %v8958_v29, %v8957_v61 }
 0xc54   : > { %v2792_v31 = vmul.f32 0.044715, %v2789_v39  ;;  %v12094_v39 = vld [vmem:[%s13560_s13] sm:$0xff] }
 0xc55   : > { %v2782_v34 = vadd.f32 %v8959_v18, %v8587_v0  ;;  %v12097_v18 = vsub.s32 1, %v11898_v54 }
 0xc56   : > { %v2795_v48 = vadd.f32 %v2792_v31, %v2777_v21  ;;  %v2863_v31 = vrot.slane %v12094_v39, %v12089_v38 }
 0xc57   : > { %v2787_v41 = vmul.f32 %v2782_v34, %v2782_v34 }
 0xc58   : > { %v2798_v40 = vmul.f32 0.7978846, %v2795_v48 }
 0xc59   : > { %v2790_v7 = vmul.f32 %v2787_v41, %v2782_v34 }
 0xc5a   : > { %10772 = vtanh.f32 %v2798_v40  ;;  %v2870_v40 = vrot.slane %v12094_v39, %v12097_v18 }
 0xc5b   : > { %v10771_v43 = vpop.eup %10770  ;;  %v2793_v44 = vmul.f32 0.044715, %v2790_v7 }
 0xc5c   : > { %v2803_v58 = vadd.f32 1.0, %v10771_v43 }
 0xc5d   : > { %v2796_v16 = vadd.f32 %v2793_v44, %v2782_v34 }
 0xc5e   : > { %v2806_v35 = vmul.f32 0.5, %v2803_v58 }
 0xc5f   : > { %v2799_v50 = vmul.f32 0.7978846, %v2796_v16 }
 0xc60   : > { %v2809_v13 = vmul.f32 %v2806_v35, %v2772_v8  ;;  %v2874_v8 = vld [vmem:[%s13556_s9] sm:$0xff] }
 0xc61   : > { %10774 = vtanh.f32 %v2799_v50  ;;  %v10237_v25 = vpack.c.bf16 %v2875_v23, %v2874_v8 }
 0xc62   : > { %v12054_v55 = vadd.f32 %v2809_v13, %v11913_v63 }
 0xc63   : > { %10238 = vmatpush3.bf16.msra.mxu1 %v10237_v25 }
 0xc64   : > { %v10773_v51 = vpop.eup %10772  ;;  %v2819_v27 = vsel %vm2648_vm15, %v12054_v55, 0.0  ;;  %10239 = vmatprep.subr.bf16.mxu1 %v11091_v30 }
 0xc65   : > { %2820 = vadd.xlane.f32.xlu0 %v2819_v27  ;;  %v2804_v45 = vadd.f32 1.0, %v10773_v51 }
 0xc67   : > { %v2807_v53 = vmul.f32 0.5, %v2804_v45  ;;  %10241 = vmatpush3.bf16.msra.mxu1 %v10240_v17 }
 0xc68   : > { %10242 = vmatprep.subr.bf16.mxu1 %v11091_v30 }
 0xc69   : > { %v2810_v36 = vmul.f32 %v2807_v53, %v2777_v21 }
 0xc6b   : > { %v10775_v24 = vpop.eup %10774  ;;  %v12059_v47 = vadd.f32 %v2810_v36, %v11918_v1 }
 0xc6c   : > { %v2805_v4 = vadd.f32 1.0, %v10775_v24 }
 0xc6d   : > { %v2822_v22 = vsel %vm2648_vm15, %v12059_v47, 0.0 }
 0xc6e   : > { %2823 = vadd.xlane.f32.xlu1 %v2822_v22  ;;  %v2808_v42 = vmul.f32 0.5, %v2805_v4  ;;  %v12113_v4 = vsub.s32 6, %v11898_v54 }
 0xc70   : > { %v2811_v63 = vmul.f32 %v2808_v42, %v2782_v34  ;;  %v2881_v22 = vrot.slane %v12094_v39, %v12113_v4 }
 0xc72   : > { %v12064_v59 = vadd.f32 %v2811_v63, %v11954_v20 }
 0xc74   : > { %v2826_v12 = vsel %vm2825_vm14, %v12064_v59, 0.0 }
 0xc75   : > { %2827 = vadd.xlane.f32.xlu0 %v2826_v12 }
 0xcf2   : > { %v2821_v60 = vpop.xlane.xlu0 %2820 }
 0xcf3   : > { %v2830_v11 = vmul.f32 0.03125, %v2821_v60 }
 0xcf5   : > { %v2833_v1 = vsub.f32 %v12054_v55, %v2830_v11 }
 0xcf7   : > { %v2836_v49 = vmul.f32 %v2833_v1, %v2833_v1 }
 0xcf9   : > { %v2839_v2 = vsel %vm2648_vm15, %v2836_v49, 0.0 }
 0xcfa   : > { %2840 = vadd.xlane.f32.xlu0 %v2839_v2 }
 0xcfb   : > { %v2824_v5 = vpop.xlane.xlu1 %2823 }
 0xcfc   : > { %v2831_v57 = vmul.f32 0.03125, %v2824_v5 }
 0xcfe   : > { %v2834_v62 = vsub.f32 %v12059_v47, %v2831_v57 }
 0xd00   : > { %v2837_v3 = vmul.f32 %v2834_v62, %v2834_v62 }
 0xd02   : > { %v2828_v6 = vpop.xlane.xlu0 %2827  ;;  %v2842_v20 = vsel %vm2648_vm15, %v2837_v3, 0.0 }
 0xd03   : > { %v2832_v46 = vmul.f32 0.03125, %v2828_v6  ;;  %2843 = vadd.xlane.f32.xlu0 %v2842_v20 }
 0xd05   : > { %v2835_v0 = vsub.f32 %v12064_v59, %v2832_v46 }
 0xd07   : > { %v2838_v10 = vmul.f32 %v2835_v0, %v2835_v0 }
 0xd09   : > { %v2845_v9 = vsel %vm2825_vm14, %v2838_v10, 0.0 }
 0xd0a   : > { %2846 = vadd.xlane.f32.xlu1 %v2845_v9 }
 0xd87   : > { %v2841_v52 = vpop.xlane.xlu0 %2840 }
 0xd88   : > { %v2848_v28 = vmul.f32 0.03125, %v2841_v52 }
 0xd8a   : > { %v2851_v21 = vadd.f32 1e-05, %v2848_v28 }
 0xd8c   : > { %10776 = vrsqrt.f32 %v2851_v21 }
 0xd90   : > { %v2844_v33 = vpop.xlane.xlu0 %2843 }
 0xd91   : > { %v2849_v61 = vmul.f32 0.03125, %v2844_v33 }
 0xd93   : > { %v2852_v29 = vadd.f32 1e-05, %v2849_v61 }
 0xd95   : > { %10778 = vrsqrt.f32 %v2852_v29 }
 0xd96   : > { %v10777_v34 = vpop.eup %10776 }
 0xd97   : > { %v2857_v48 = vmul.f32 %v10777_v34, %v2833_v1  ;;  %v2847_v41 = vpop.xlane.xlu1 %2846 }
 0xd98   : > { %v2850_v7 = vmul.f32 0.03125, %v2847_v41 }
 0xd99   : > { %v2864_v43 = vmul.f32 %v2863_v31, %v2857_v48 }
 0xd9a   : > { %v2853_v44 = vadd.f32 1e-05, %v2850_v7 }
 0xd9b   : > { %v2871_v58 = vadd.f32 %v2870_v40, %v2864_v43 }
 0xd9c   : > { %10780 = vrsqrt.f32 %v2853_v44 }
 0xd9d   : > { %9446 = vmatmul.mubr.msk.f32.vlgmr.msra.gmra.mrb[40].mxu1 %vm2648_vm15, %v2871_v58 }
 0xd9e   : > { %9448 = vmatprep.mubr.msk.f32.mxu1 %vm11092_vm3, %v11093_v32 }
 0xd9f   : > { %v10779_v16 = vpop.eup %10778 }
 0xda0   : > { %v2858_v35 = vmul.f32 %v10779_v16, %v2834_v62 }
 0xda2   : > { %v2865_v50 = vmul.f32 %v2863_v31, %v2858_v35 }
 0xda4   : > { %v2872_v13 = vadd.f32 %v2870_v40, %v2865_v50 }
 0xda6   : > { %v10781_v51 = vpop.eup %10780  ;;  %9449 = vmatmul.mubr.msk.f32.gmra.mrb[42].mxu1 %vm2648_vm15, %v2872_v13 }
 0xda7   : > { %9451 = vmatprep.mubr.msk.f32.mxu1 %vm11092_vm3, %v11093_v32  ;;  %v2859_v27 = vmul.f32 %v10781_v51, %v2835_v0 }
 0xda9   : > { %v2866_v45 = vmul.f32 %v2863_v31, %v2859_v27 }
 0xdab   : > { %v2873_v53 = vadd.f32 %v2870_v40, %v2866_v45 }
 0xdad   : > { %9452 = vmatmul.mubr.msk.f32.gmra.mrb[44].mxu1 %vm2648_vm15, %v2873_v53 }
 0xdae   : > { %9460 = vmatprep.mubr.msk.f32.mxu1 %vm11092_vm3, %v11093_v32 }
 0xe70   : > { %v2957_v36 = vpop.f32.mrb[40].mxu1 }
 0xe71   : > { %v9447_v24 = vpop.f32.mrb[41].mxu1  ;;  %v2958_v63 = vadd.f32 %v2957_v36, %v2881_v22 }
 0xe73   : > { %v2971_v62 = vmul.f32 0.25, %v2958_v63 }
 0xe79   : > { %v2962_v42 = vpop.f32.mrb[42].mxu1 }
 0xe7a   : > { %v2963_v12 = vadd.f32 %v2962_v42, %v2881_v22  ;;  %v9450_v60 = vpop.f32.mrb[43].mxu1 }
 0xe7c   : > { %v12117_v11 = vpack.i.bf16 %v2963_v12, %v2958_v63  ;;  %v2972_v3 = vmul.f32 0.25, %v2963_v12 }
 0xe7e   : > { %10554 = vrot.lane.b32.xlu0 %v12117_v11, %s11098_s25 }
 0xe80   : > { %v2967_v1 = vpop.f32.mrb[44].mxu1 }
 0xe81   : > { %v12121_v49 = vadd.f32 %v2967_v1, %v2881_v22  ;;  %v9453_v2 = vpop.f32.mrb[45].mxu1 }
 0xe83   : > { %2990 = vrot.lane.b32.xlu1 %v12121_v49, %s11098_s25  ;;  %v2973_v0 = vmul.f32 0.25, %v12121_v49 }
 0xe87   : > { %10559 = vrot.lane.b32.xlu1 %v12117_v11, %s11097_s28 }
 0xe8b   : > { %2996 = vrot.lane.b32.xlu1 %v12121_v49, %s11097_s28 }
 0xef0   : > { %v12129_v5 = vpop.permute.xlu0 %10554 }
 0xef1   : > { %10564 = vrot.lane.b32.xlu0 %v12129_v5, %s11097_s28 }
 0xef5   : > { %v12133_v57 = vpop.permute.xlu1 %2990  ;;  %2977 = vrot.lane.b32.xlu0 %v2971_v62, %s11098_s25 }
 0xef6   : > { %3094 = vrot.lane.b32.xlu1 %v12133_v57, %s11097_s28 }
 0xef9   : > { %v10560_v6 = vpop.permute.xlu1 %10559  ;;  %2981 = vrot.lane.b32.xlu0 %v2973_v0, %s11098_s25 }
 0xefa   : > { %v10562_v20 = vunpack.i.h.bf16 %v10560_v6  ;;  %v10561_v46 = vunpack.i.l.bf16 %v10560_v6  ;;  %2979 = vrot.lane.b32.xlu1 %v2972_v3, %s11098_s25 }
 0xefc   : > { %v10243_v9 = vpack.c.bf16 %v10562_v20, %v10561_v46 }
 0xefd   : > { %v2997_v8 = vpop.permute.xlu1 %2996 }
 0xefe   : > { %10245 = vmatpush3.bf16.xpose.msk.msra.mxu1 %vm12142_vm12, %v10243_v9 }
 0xeff   : > { %9458 = vmatprep.subr.mxu1 %v11093_v32 }
 0xf06   : > { %9459 = vmatpush3.xpose.msk.msra.mxu1 %vm564_vm4, %v2997_v8 }
 0xf07   : > { %10246 = vmatprep.subr.bf16.mxu1 %v11091_v30 }
 0xf09   : > { %9461 = vmatmul.mubr.msk.f32.vlgmr.msra.gmra.mrb[46].mxu1 %vm564_vm4, %v2971_v62 }
 0xf0a   : > { %9463 = vmatprep.mubr.msk.f32.mxu1 %vm11092_vm3, %v11093_v32 }
 0xf0d   : > { %9464 = vmatmul.mubr.msk.f32.gmra.mrb[48].mxu1 %vm564_vm4, %v2972_v3 }
 0xf0e   : > { %9466 = vmatprep.mubr.msk.f32.mxu1 %vm11092_vm3, %v11093_v32 }
 0xf11   : > { %9467 = vmatmul.mubr.msk.f32.gmra.mrb[50].mxu1 %vm564_vm4, %v2973_v0 }
 0xf12   : > { %9475 = vmatprep.mubr.msk.f32.mxu1 %vm11092_vm3, %v11093_v32 }
 0xf63   : > { %v10565_v23 = vpop.permute.xlu0 %10564 }
 0xf64   : > { %v10567_v25 = vunpack.i.h.bf16 %v10565_v23  ;;  %v10566_v26 = vunpack.i.l.bf16 %v10565_v23 }
 0xf66   : > { %v10247_v14 = vpack.c.bf16 %v10567_v25, %v10566_v26 }
 0xf67   : > { %v2978_v52 = vpop.permute.xlu0 %2977 }
 0xf68   : > { %10249 = vmatpush3.bf16.xpose.msk.msra.mxu1 %vm12142_vm12, %v10247_v14  ;;  %v3095_v17 = vpop.permute.xlu1 %3094 }
 0xf69   : > { %9473 = vmatprep.subr.mxu1 %v11093_v32 }
 0xf6b   : > { %v2982_v21 = vpop.permute.xlu0 %2981 }
 0xf6c   : > { %v2980_v28 = vpop.permute.xlu1 %2979 }
 0xf70   : > { %9474 = vmatpush3.xpose.msk.msra.mxu1 %vm564_vm4, %v3095_v17 }
 0xf71   : > { %10253 = vmatprep.subr.bf16.mxu1 %v11091_v30 }
 0xf73   : > { %9476 = vmatmul.mubr.msk.f32.vlgmr.msra.gmra.mrb[52].mxu1 %vm564_vm4, %v2978_v52 }
 0xf74   : > { %9478 = vmatprep.mubr.msk.f32.mxu1 %vm11092_vm3, %v11093_v32 }
 0xf77   : > { %9479 = vmatmul.mubr.msk.f32.gmra.mrb[54].mxu1 %vm564_vm4, %v2980_v28 }
 0xf78   : > { %9481 = vmatprep.mubr.msk.f32.mxu1 %vm11092_vm3, %v11093_v32 }
 0xf7b   : > { %9482 = vmatmul.mubr.msk.f32.gmra.mrb[56].mxu1 %vm564_vm4, %v2982_v21 }
 0xf7c   : > { %9505 = vmatprep.mubr.msk.f32.mxu1 %vm11092_vm3, %v11093_v32 }
 0xfdc   : > { %v3076_v33 = vpop.f32.mrb[46].mxu1 }
 0xfdd   : > { %v3190_v61 = vsel %vm11819_vm8, %v3076_v33, -1e+30  ;;  %v9462_v29 = vpop.f32.mrb[47].mxu1 }
 0xfde   : > { %v3196_v31 = vsel %vm491_vm0, %v3190_v61, -inf }
 0xfdf   : > { %3197 = vmax.xlane.f32.xlu1 %v3196_v31 }
 0xfe0   : > { %v3081_v34 = vpop.f32.mrb[48].mxu1 }
 0xfe1   : > { %v3191_v48 = vsel %vm11819_vm8, %v3081_v34, -1e+30  ;;  %v9465_v41 = vpop.f32.mrb[49].mxu1 }
 0xfe2   : > { %v3199_v40 = vsel %vm491_vm0, %v3191_v48, -inf }
 0xfe3   : > { %3200 = vmax.xlane.f32.xlu0 %v3199_v40 }
 0xfe4   : > { %v3086_v7 = vpop.f32.mrb[50].mxu1 }
 0xfe5   : > { %v3192_v43 = vsel %vm11819_vm8, %v3086_v7, -1e+30  ;;  %v9468_v44 = vpop.f32.mrb[51].mxu1 }
 0xfe6   : > { %v3202_v58 = vsel %vm498_vm1, %v3192_v43, -inf }
 0xfe7   : > { %3203 = vmax.xlane.f32.xlu1 %v3202_v58 }
 0xff8   : > { %10569 = vrot.lane.b32.xlu1 %v12117_v11, %s11095_s26 }
0x1046   : > { %v3174_v16 = vpop.f32.mrb[52].mxu1 }
0x1047   : > { %v3193_v35 = vsel %vm11819_vm8, %v3174_v16, -1e+30  ;;  %v9477_v50 = vpop.f32.mrb[53].mxu1 }
0x1048   : > { %v3205_v13 = vsel %vm491_vm0, %v3193_v35, -inf }
0x1049   : > { %3206 = vmax.xlane.f32.xlu0 %v3205_v13 }
0x104a   : > { %v3179_v51 = vpop.f32.mrb[54].mxu1 }
0x104b   : > { %v3194_v27 = vsel %vm11819_vm8, %v3179_v51, -1e+30  ;;  %v9480_v45 = vpop.f32.mrb[55].mxu1 }
0x104c   : > { %v3208_v53 = vsel %vm491_vm0, %v3194_v27, -inf }
0x104d   : > { %3209 = vmax.xlane.f32.xlu0 %v3208_v53  ;;  %v3462_v53 = vld [vmem:[%s13557_s10 + $0x10] sm:$0xff] }
0x104e   : > { %v3184_v36 = vpop.f32.mrb[56].mxu1 }
0x104f   : > { %v3195_v24 = vsel %vm11819_vm8, %v3184_v36, -1e+30  ;;  %v9483_v22 = vpop.f32.mrb[57].mxu1  ;;  %v3463_v36 = vld [vmem:[%s13557_s10 + $0x18] sm:$0xff] }
0x1050   : > { %v3211_v42 = vsel %vm498_vm1, %v3195_v24, -inf }
0x1051   : > { %3212 = vmax.xlane.f32.xlu0 %v3211_v42 }
0x106c   : > { %v3198_v63 = vpop.xlane.xlu1 %3197 }
0x106d   : > { %v3214_v12 = vsub.f32 %v3190_v61, %v3198_v63 }
0x106f   : > { %v3220_v60 = vmul.f32 1.442695, %v3214_v12 }
0x1070   : > { %v3201_v11 = vpop.xlane.xlu0 %3200 }
0x1071   : > { %10782 = vpow2.f32 %v3220_v60  ;;  %v3215_v1 = vsub.f32 %v3191_v48, %v3201_v11 }
0x1073   : > { %v3222_v2 = vmul.f32 1.442695, %v3215_v1 }
0x1074   : > { %v3204_v62 = vpop.xlane.xlu1 %3203 }
0x1075   : > { %10784 = vpow2.f32 %v3222_v2  ;;  %v3216_v3 = vsub.f32 %v3192_v43, %v3204_v62  ;;  %v3460_v2 = vld [vmem:[%s13557_s10] sm:$0xff]  ;;  %v3461_v62 = vld [vmem:[%s13557_s10 + $0x8] sm:$0xff] }
0x1077   : > { %v3224_v6 = vmul.f32 1.442695, %v3216_v3 }
0x1078   : > { %v10570_v20 = vpop.permute.xlu1 %10569 }
0x1079   : > { %10786 = vpow2.f32 %v3224_v6  ;;  %v10572_v46 = vunpack.i.h.bf16 %v10570_v20  ;;  %v10571_v0 = vunpack.i.l.bf16 %v10570_v20  ;;  %v10260_v6 = vpack.c.bf16 %v3461_v62, %v3460_v2 }
0x107b   : > { %v10783_v9 = vpop.eup %10782  ;;  %v10251_v8 = vpack.c.bf16 %v10572_v46, %v10571_v0 }
0x107c   : > { %v3232_v23 = vsel %vm491_vm0, %v10783_v9, 0.0 }
0x107d   : > { %3233 = vadd.xlane.f32.xlu1 %v3232_v23  ;;  %10252 = vmatpush3.bf16.msra.mxu0 %v10251_v8 }
0x107e   : > { %9488 = vmatprep.subr.mxu0 %v11093_v32 }
0x107f   : > { %v10785_v25 = vpop.eup %10784 }
0x1080   : > { %v3235_v26 = vsel %vm491_vm0, %v10785_v25, 0.0 }
0x1081   : > { %3236 = vadd.xlane.f32.xlu1 %v3235_v26 }
0x1083   : > { %v10787_v14 = vpop.eup %10786 }
0x1084   : > { %v3238_v17 = vsel %vm498_vm1, %v10787_v14, 0.0 }
0x1085   : > { %3239 = vadd.xlane.f32.xlu1 %v3238_v17 }
0x1096   : > { %3266 = vrot.lane.b32.xlu1 %v12121_v49, %s11095_s26 }
0x109a   : > { %3365 = vrot.lane.b32.xlu1 %v12133_v57, %s11095_s26 }
0x10d6   : > { %v3207_v52 = vpop.xlane.xlu0 %3206 }
0x10d7   : > { %v3217_v28 = vsub.f32 %v3193_v35, %v3207_v52 }
0x10d9   : > { %v3226_v21 = vmul.f32 1.442695, %v3217_v28 }
0x10da   : > { %v3210_v33 = vpop.xlane.xlu0 %3209 }
0x10db   : > { %10788 = vpow2.f32 %v3226_v21  ;;  %v3218_v61 = vsub.f32 %v3194_v27, %v3210_v33 }
0x10dd   : > { %v3228_v29 = vmul.f32 1.442695, %v3218_v61 }
0x10de   : > { %v3213_v31 = vpop.xlane.xlu0 %3212 }
0x10df   : > { %10790 = vpow2.f32 %v3228_v29  ;;  %v3219_v34 = vsub.f32 %v3195_v24, %v3213_v31  ;;  %v10257_v24 = vpack.c.bf16 %v3463_v36, %v3462_v53 }
0x10e1   : > { %v3230_v48 = vmul.f32 1.442695, %v3219_v34 }
0x10e3   : > { %10792 = vpow2.f32 %v3230_v48 }
0x10e5   : > { %v10789_v41 = vpop.eup %10788 }
0x10e6   : > { %v3241_v40 = vsel %vm491_vm0, %v10789_v41, 0.0 }
0x10e7   : > { %3242 = vadd.xlane.f32.xlu0 %v3241_v40 }
0x10e9   : > { %v10791_v49 = vpop.eup %10790 }
0x10ea   : > { %v3244_v7 = vsel %vm491_vm0, %v10791_v49, 0.0 }
0x10eb   : > { %3245 = vadd.xlane.f32.xlu0 %v3244_v7 }
0x10ed   : > { %v10793_v57 = vpop.eup %10792 }
0x10ee   : > { %v3247_v43 = vsel %vm498_vm1, %v10793_v57, 0.0 }
0x10ef   : > { %3248 = vadd.xlane.f32.xlu0 %v3247_v43  ;;  %v12264_v43 = vsub.s32 4, %v11898_v54 }
0x1105   : > { %10574 = vrot.lane.b32.xlu0 %v12129_v5, %s11095_s26 }
0x110a   : > { %v3234_v44 = vpop.xlane.xlu1 %3233 }
0x110b   : > { %10794 = vrcp.f32 %v3234_v44 }
0x110e   : > { %v3237_v58 = vpop.xlane.xlu1 %3236 }
0x110f   : > { %10796 = vrcp.f32 %v3237_v58 }
0x1112   : > { %v3240_v16 = vpop.xlane.xlu1 %3239 }
0x1113   : > { %10798 = vrcp.f32 %v3240_v16  ;;  %v3648_v16 = vrot.slane %v12094_v39, %v12264_v43 }
0x1115   : > { %v10795_v35 = vpop.eup %10794 }
0x1116   : > { %v3256_v50 = vmul.f32 %v10795_v35, %v10783_v9  ;;  %v3267_v13 = vpop.permute.xlu1 %3266 }
0x1117   : > { %9489 = vmatpush3.msk.msra.mxu0 %vm503_vm2, %v3267_v13 }
0x1118   : > { %9491 = vmatmul.mubr.msk.f32.vlgmr.msra.gmra.mrb[50].mxu0 %vm491_vm0, %v3256_v50  ;;  %10256 = vmatprep.subr.bf16.mxu0 %v11091_v30 }
0x1119   : > { %v10797_v51 = vpop.eup %10796  ;;  %9493 = vmatprep.mubr.msk.f32.mxu0 %vm11092_vm3, %v11093_v32  ;;  %10258 = vmatpush3.bf16.msra.mxu0 %v10257_v24 }
0x111a   : > { %v3257_v5 = vmul.f32 %v10797_v51, %v10785_v25  ;;  %10262 = vmatprep.subr.bf16.mxu0 %v11091_v30  ;;  %v3366_v20 = vpop.permute.xlu1 %3365 }
0x111c   : > { %9494 = vmatmul.mubr.msk.f32.gmra.mrb[52].mxu0 %vm491_vm0, %v3257_v5 }
0x111d   : > { %v10799_v27 = vpop.eup %10798  ;;  %9496 = vmatprep.mubr.msk.f32.mxu0 %vm11092_vm3, %v11093_v32 }
0x111e   : > { %v3258_v45 = vmul.f32 %v10799_v27, %v10787_v14 }
0x1120   : > { %9497 = vmatmul.mubr.msk.f32.gmra.mrb[54].mxu0 %vm491_vm0, %v3258_v45 }
0x1121   : > { %9518 = vmatprep.mubr.msk.f32.mxu0 %vm11092_vm3, %v11093_v32 }
0x1174   : > { %v3243_v22 = vpop.xlane.xlu0 %3242 }
0x1175   : > { %10800 = vrcp.f32 %v3243_v22 }
0x1178   : > { %v3246_v42 = vpop.xlane.xlu0 %3245 }
0x1179   : > { %10802 = vrcp.f32 %v3246_v42 }
0x117c   : > { %v3249_v63 = vpop.xlane.xlu0 %3248 }
0x117d   : > { %10804 = vrcp.f32 %v3249_v63 }
0x117f   : > { %v10801_v3 = vpop.eup %10800 }
0x1180   : > { %v10575_v12 = vpop.permute.xlu0 %10574  ;;  %v3259_v46 = vmul.f32 %v10801_v3, %v10789_v41 }
0x1181   : > { %v10577_v60 = vunpack.i.h.bf16 %v10575_v12  ;;  %v10576_v11 = vunpack.i.l.bf16 %v10575_v12 }
0x1183   : > { %v10254_v1 = vpack.c.bf16 %v10577_v60, %v10576_v11  ;;  %v10803_v0 = vpop.eup %10802 }
0x1184   : > { %v3260_v9 = vmul.f32 %v10803_v0, %v10791_v49 }
0x1185   : > { %10255 = vmatpush3.bf16.msra.mxu1 %v10254_v1 }
0x1186   : > { %9503 = vmatprep.subr.mxu1 %v11093_v32 }
0x1187   : > { %v10805_v8 = vpop.eup %10804 }
0x1188   : > { %v3261_v23 = vmul.f32 %v10805_v8, %v10793_v57 }
0x1189   : > { %9504 = vmatpush3.msk.msra.mxu1 %vm503_vm2, %v3366_v20 }
0x118a   : > { %9506 = vmatmul.mubr.msk.f32.vlgmr.msra.gmra.mrb[58].mxu1 %vm491_vm0, %v3259_v46  ;;  %10259 = vmatprep.subr.bf16.mxu1 %v11091_v30 }
0x118b   : > { %9508 = vmatprep.mubr.msk.f32.mxu1 %vm11092_vm3, %v11093_v32  ;;  %10261 = vmatpush3.bf16.msra.mxu1 %v10260_v6 }
0x118c   : > { %10268 = vmatprep.subr.bf16.mxu1 %v11091_v30 }
0x118e   : > { %9509 = vmatmul.mubr.msk.f32.gmra.mrb[60].mxu1 %vm491_vm0, %v3260_v9 }
0x118f   : > { %9511 = vmatprep.mubr.msk.f32.mxu1 %vm11092_vm3, %v11093_v32 }
0x1192   : > { %9512 = vmatmul.mubr.msk.f32.gmra.mrb[62].mxu1 %vm491_vm0, %v3261_v23 }
0x1193   : > { %9531 = vmatprep.mubr.msk.f32.mxu1 %vm11092_vm3, %v11093_v32 }
0x11eb   : > { %v3347_v25 = vpop.f32.mrb[50].mxu0 }
0x11ec   : > { %v9492_v26 = vpop.f32.mrb[51].mxu0  ;;  %9532 = vmatmul.mubr.msk.f32.vlgmr.msra.gmra.mrb[64].mxu1 %vm564_vm4, %v3347_v25 }
0x11ed   : > { %9534 = vmatprep.mubr.msk.f32.mxu1 %vm11092_vm3, %v11093_v32  ;;  %v3705_v26 = vld [vmem:[%s13558_s11] sm:$0xff] }
0x11ef   : > { %v3352_v14 = vpop.f32.mrb[52].mxu0 }
0x11f0   : > { %v9495_v17 = vpop.f32.mrb[53].mxu0  ;;  %9535 = vmatmul.mubr.msk.f32.gmra.mrb[66].mxu1 %vm564_vm4, %v3352_v14  ;;  %v3706_v14 = vld [vmem:[%s13558_s11 + $0x8] sm:$0xff] }
0x11f1   : > { %9537 = vmatprep.mubr.msk.f32.mxu1 %vm11092_vm3, %v11093_v32  ;;  %v3707_v17 = vld [vmem:[%s13558_s11 + $0x10] sm:$0xff] }
0x11f3   : > { %v3357_v52 = vpop.f32.mrb[54].mxu0 }
0x11f4   : > { %v9498_v28 = vpop.f32.mrb[55].mxu0  ;;  %9538 = vmatmul.mubr.msk.f32.gmra.mrb[68].mxu1 %vm564_vm4, %v3357_v52  ;;  %v10263_v52 = vpack.c.bf16 %v3706_v14, %v3705_v26 }
0x11f5   : > { %9573 = vmatprep.mubr.msk.f32.mxu1 %vm11092_vm3, %v11093_v32  ;;  %v3708_v28 = vld [vmem:[%s13558_s11 + $0x18] sm:$0xff] }
0x125d   : > { %v3446_v21 = vpop.f32.mrb[58].mxu1 }
0x125e   : > { %v9507_v33 = vpop.f32.mrb[59].mxu1  ;;  %9519 = vmatmul.mubr.msk.f32.vlgmr.msra.gmra.mrb[56].mxu0 %vm564_vm4, %v3446_v21  ;;  %v10266_v21 = vpack.c.bf16 %v3708_v28, %v3707_v17 }
0x125f   : > { %9521 = vmatprep.mubr.msk.f32.mxu0 %vm11092_vm3, %v11093_v32  ;;  %10264 = vmatpush3.bf16.msra.mxu0 %v10263_v52 }
0x1260   : > { %10265 = vmatprep.subr.bf16.mxu0 %v11091_v30 }
0x1261   : > { %v3451_v61 = vpop.f32.mrb[60].mxu1 }
0x1262   : > { %v9510_v29 = vpop.f32.mrb[61].mxu1  ;;  %9522 = vmatmul.mubr.msk.f32.gmra.mrb[58].mxu0 %vm564_vm4, %v3451_v61 }
0x1263   : > { %9524 = vmatprep.mubr.msk.f32.mxu0 %vm11092_vm3, %v11093_v32  ;;  %10267 = vmatpush3.bf16.msra.mxu0 %v10266_v21 }
0x1264   : > { %10280 = vmatprep.subr.bf16.mxu0 %v11091_v30 }
0x1265   : > { %v3456_v31 = vpop.f32.mrb[62].mxu1 }
0x1266   : > { %v9513_v34 = vpop.f32.mrb[63].mxu1  ;;  %9525 = vmatmul.mubr.msk.f32.gmra.mrb[60].mxu0 %vm564_vm4, %v3456_v31 }
0x1267   : > { %9548 = vmatprep.mubr.msk.f32.mxu0 %vm11092_vm3, %v11093_v32 }
0x12bf   : > { %v3628_v48 = vpop.f32.mrb[64].mxu1 }
0x12c0   : > { %v9533_v41 = vpop.f32.mrb[65].mxu1 }
0x12c3   : > { %v3633_v40 = vpop.f32.mrb[66].mxu1 }
0x12c4   : > { %v9536_v49 = vpop.f32.mrb[67].mxu1 }
0x12c5   : > { %v12304_v49 = vsub.s32 2, %v11898_v54 }
0x12c7   : > { %v3638_v7 = vpop.f32.mrb[68].mxu1 }
0x12c8   : > { %v9539_v57 = vpop.f32.mrb[69].mxu1 }
0x12c9   : > { %v12307_v57 = vsub.s32 3, %v11898_v54 }
0x1331   : > { %v3539_v44 = vpop.f32.mrb[56].mxu0 }
0x1332   : > { %v3629_v58 = vadd.f32 %v3628_v48, %v3539_v44  ;;  %v9520_v35 = vpop.f32.mrb[57].mxu0  ;;  %v3694_v44 = vrot.slane %v12094_v39, %v12304_v49 }
0x1333   : > { %v3701_v35 = vrot.slane %v12094_v39, %v12307_v57 }
0x1334   : > { %v3642_v50 = vadd.f32 %v3629_v58, %v12054_v55 }
0x1335   : > { %v3544_v13 = vpop.f32.mrb[58].mxu0 }
0x1336   : > { %v12269_v51 = vadd.f32 %v3648_v16, %v3642_v50  ;;  %v3634_v5 = vadd.f32 %v3633_v40, %v3544_v13  ;;  %v9523_v27 = vpop.f32.mrb[59].mxu0 }
0x1338   : > { %v3643_v45 = vadd.f32 %v3634_v5, %v12059_v47  ;;  %v3652_v53 = vsel %vm2648_vm15, %v12269_v51, 0.0 }
0x1339   : > { %v3549_v36 = vpop.f32.mrb[60].mxu0  ;;  %3653 = vadd.xlane.f32.xlu1 %v3652_v53 }
0x133a   : > { %v12274_v24 = vadd.f32 %v3648_v16, %v3643_v45  ;;  %v3639_v22 = vadd.f32 %v3638_v7, %v3549_v36  ;;  %v9526_v42 = vpop.f32.mrb[61].mxu0 }
0x133c   : > { %v3644_v63 = vadd.f32 %v3639_v22, %v12064_v59  ;;  %v3655_v55 = vsel %vm2648_vm15, %v12274_v24, 0.0 }
0x133d   : > { %3656 = vadd.xlane.f32.xlu0 %v3655_v55  ;;  %v3829_v55 = vld [vmem:[%s13559_s12] sm:$0xff] }
0x133e   : > { %v12279_v12 = vadd.f32 %v3648_v16, %v3644_v63 }
0x1340   : > { %v3658_v47 = vsel %vm2825_vm14, %v12279_v12, 0.0 }
0x1341   : > { %3659 = vadd.xlane.f32.xlu0 %v3658_v47  ;;  %v3830_v47 = vld [vmem:[%s13559_s12 + $0x8] sm:$0xff] }
0x13c6   : > { %v3654_v60 = vpop.xlane.xlu1 %3653 }
0x13c7   : > { %v3661_v11 = vmul.f32 0.03125, %v3654_v60  ;;  %v10269_v60 = vpack.c.bf16 %v3830_v47, %v3829_v55 }
0x13c9   : > { %v3664_v1 = vsub.f32 %v12269_v51, %v3661_v11  ;;  %10270 = vmatpush3.bf16.msra.mxu1 %v10269_v60  ;;  %v3831_v11 = vld [vmem:[%s13559_s12 + $0x10] sm:$0xff] }
0x13ca   : > { %v3657_v2 = vpop.xlane.xlu0 %3656  ;;  %10271 = vmatprep.subr.bf16.mxu1 %v11091_v30 }
0x13cb   : > { %v3662_v62 = vmul.f32 0.03125, %v3657_v2  ;;  %v3667_v3 = vmul.f32 %v3664_v1, %v3664_v1 }
0x13cd   : > { %v3665_v6 = vsub.f32 %v12274_v24, %v3662_v62  ;;  %v3670_v59 = vsel %vm2648_vm15, %v3667_v3, 0.0  ;;  %v3833_v62 = vld [vmem:[%s13559_s12 + $0x20] sm:$0xff]  ;;  %v3834_v3 = vld [vmem:[%s13559_s12 + $0x28] sm:$0xff] }
0x13ce   : > { %3671 = vadd.xlane.f32.xlu0 %v3670_v59  ;;  %v3660_v20 = vpop.xlane.xlu0 %3659  ;;  %v3835_v59 = vld [vmem:[%s13559_s12 + $0x30] sm:$0xff] }
0x13cf   : > { %v3663_v46 = vmul.f32 0.03125, %v3660_v20  ;;  %v3668_v0 = vmul.f32 %v3665_v6, %v3665_v6  ;;  %v3836_v20 = vld [vmem:[%s13559_s12 + $0x38] sm:$0xff] }
0x13d1   : > { %v3666_v9 = vsub.f32 %v12279_v12, %v3663_v46  ;;  %v3673_v8 = vsel %vm2648_vm15, %v3668_v0, 0.0  ;;  %v10278_v46 = vpack.c.bf16 %v3836_v20, %v3835_v59  ;;  %v12351_v0 = vsub.s32 7, %v11898_v54 }
0x13d2   : > { %3674 = vadd.xlane.f32.xlu1 %v3673_v8 }
0x13d3   : > { %v3669_v23 = vmul.f32 %v3666_v9, %v3666_v9 }
0x13d5   : > { %v3676_v25 = vsel %vm2825_vm14, %v3669_v23, 0.0 }
0x13d6   : > { %3677 = vadd.xlane.f32.xlu0 %v3676_v25 }
0x145b   : > { %v3672_v33 = vpop.xlane.xlu0 %3671 }
0x145c   : > { %v3679_v61 = vmul.f32 0.03125, %v3672_v33 }
0x145e   : > { %v3682_v29 = vadd.f32 1e-05, %v3679_v61 }
0x145f   : > { %v3675_v31 = vpop.xlane.xlu1 %3674 }
0x1460   : > { %10806 = vrsqrt.f32 %v3682_v29  ;;  %v3680_v34 = vmul.f32 0.03125, %v3675_v31 }
0x1462   : > { %v3683_v48 = vadd.f32 1e-05, %v3680_v34 }
0x1463   : > { %v3678_v41 = vpop.xlane.xlu0 %3677 }
0x1464   : > { %10808 = vrsqrt.f32 %v3683_v48  ;;  %v3681_v40 = vmul.f32 0.03125, %v3678_v41 }
0x1466   : > { %v3684_v7 = vadd.f32 1e-05, %v3681_v40 }
0x1468   : > { %10810 = vrsqrt.f32 %v3684_v7 }
0x146a   : > { %v10807_v58 = vpop.eup %10806 }
0x146b   : > { %v3688_v16 = vmul.f32 %v10807_v58, %v3664_v1  ;;  %v3832_v1 = vld [vmem:[%s13559_s12 + $0x18] sm:$0xff] }
0x146c   : > { %v10272_v2 = vpack.c.bf16 %v3832_v1, %v3831_v11  ;;  %v12365_v1 = vsub.s32 5, %v11898_v54 }
0x146d   : > { %v3695_v50 = vmul.f32 %v3694_v44, %v3688_v16 }
0x146e   : > { %v10809_v13 = vpop.eup %10808  ;;  %10273 = vmatpush3.bf16.msra.mxu1 %v10272_v2  ;;  %v3932_v2 = vrot.slane %v12094_v39, %v12365_v1 }
0x146f   : > { %v3702_v5 = vadd.f32 %v3701_v35, %v3695_v50  ;;  %v3689_v27 = vmul.f32 %v10809_v13, %v3665_v6  ;;  %10274 = vmatprep.subr.bf16.mxu1 %v11091_v30  ;;  %v10275_v6 = vpack.c.bf16 %v3834_v3, %v3833_v62 }
0x1471   : > { %9549 = vmatmul.mubr.msk.f32.vlgmr.msra.gmra.mrb[62].mxu0 %vm2648_vm15, %v3702_v5  ;;  %v3696_v45 = vmul.f32 %v3694_v44, %v3689_v27 }
0x1472   : > { %v10811_v53 = vpop.eup %10810  ;;  %9551 = vmatprep.mubr.msk.f32.mxu0 %vm11092_vm3, %v11093_v32  ;;  %10276 = vmatpush3.bf16.msra.mxu1 %v10275_v6 }
0x1473   : > { %v3703_v36 = vadd.f32 %v3701_v35, %v3696_v45  ;;  %v3690_v22 = vmul.f32 %v10811_v53, %v3666_v9  ;;  %10277 = vmatprep.subr.bf16.mxu1 %v11091_v30  ;;  %v3712_v9 = vrot.slane %v12094_v39, %v12351_v0 }
0x1475   : > { %9552 = vmatmul.mubr.msk.f32.gmra.mrb[64].mxu0 %vm2648_vm15, %v3703_v36  ;;  %v3697_v42 = vmul.f32 %v3694_v44, %v3690_v22 }
0x1476   : > { %9554 = vmatprep.mubr.msk.f32.mxu0 %vm11092_vm3, %v11093_v32  ;;  %10279 = vmatpush3.bf16.msra.mxu1 %v10278_v46 }
0x1477   : > { %v3704_v63 = vadd.f32 %v3701_v35, %v3697_v42  ;;  %10286 = vmatprep.subr.bf16.mxu1 %v11091_v30 }
0x1479   : > { %9555 = vmatmul.mubr.msk.f32.gmra.mrb[66].mxu0 %vm2648_vm15, %v3704_v63 }
0x147a   : > { %9590 = vmatprep.mubr.msk.f32.mxu0 %vm11092_vm3, %v11093_v32 }
0x1544   : > { %v3788_v8 = vpop.f32.mrb[62].mxu0 }
0x1545   : > { %v3789_v23 = vadd.f32 %v3788_v8, %v3712_v9  ;;  %v9550_v25 = vpop.f32.mrb[63].mxu0 }
0x1547   : > { %v3802_v26 = vmul.f32 %v3789_v23, %v3789_v23 }
0x1548   : > { %v3793_v14 = vpop.f32.mrb[64].mxu0 }
0x1549   : > { %v3805_v17 = vmul.f32 %v3802_v26, %v3789_v23  ;;  %v3794_v52 = vadd.f32 %v3793_v14, %v3712_v9  ;;  %v9553_v28 = vpop.f32.mrb[65].mxu0 }
0x154b   : > { %v3808_v21 = vmul.f32 0.044715, %v3805_v17  ;;  %v3803_v33 = vmul.f32 %v3794_v52, %v3794_v52 }
0x154c   : > { %v3798_v61 = vpop.f32.mrb[66].mxu0 }
0x154d   : > { %v3811_v29 = vadd.f32 %v3808_v21, %v3789_v23  ;;  %v3806_v31 = vmul.f32 %v3803_v33, %v3794_v52  ;;  %v3799_v34 = vadd.f32 %v3798_v61, %v3712_v9  ;;  %v9556_v48 = vpop.f32.mrb[67].mxu0 }
0x154f   : > { %v3814_v41 = vmul.f32 0.7978846, %v3811_v29  ;;  %v3809_v40 = vmul.f32 0.044715, %v3806_v31  ;;  %v3804_v7 = vmul.f32 %v3799_v34, %v3799_v34 }
0x1551   : > { %10812 = vtanh.f32 %v3814_v41  ;;  %v3812_v44 = vadd.f32 %v3809_v40, %v3794_v52  ;;  %v3807_v58 = vmul.f32 %v3804_v7, %v3799_v34 }
0x1553   : > { %v3815_v16 = vmul.f32 0.7978846, %v3812_v44  ;;  %v3810_v35 = vmul.f32 0.044715, %v3807_v58  ;;  %v8624_v58 = vld [vmem:[%s13556_s9 + $0x20] sm:$0xff] }
0x1555   : > { %10814 = vtanh.f32 %v3815_v16  ;;  %v3813_v50 = vadd.f32 %v3810_v35, %v3799_v34  ;;  %v8625_v16 = vld [vmem:[%s13556_s9 + $0x28] sm:$0xff]  ;;  %v8626_v35 = vld [vmem:[%s13556_s9 + $0x30] sm:$0xff] }
0x1557   : > { %v3816_v13 = vmul.f32 0.7978846, %v3813_v50  ;;  %v10281_v50 = vpack.c.bf16 %v8625_v16, %v8624_v58 }
0x1559   : > { %10816 = vtanh.f32 %v3816_v13  ;;  %v8627_v13 = vld [vmem:[%s13556_s9 + $0x38] sm:$0xff]  ;;  %10282 = vmatpush3.bf16.msra.mxu0 %v10281_v50 }
0x155a   : > { %10283 = vmatprep.subr.bf16.mxu0 %v11091_v30 }
0x155b   : > { %v10813_v5 = vpop.eup %10812 }
0x155c   : > { %v3820_v27 = vadd.f32 1.0, %v10813_v5  ;;  %v10284_v5 = vpack.c.bf16 %v8627_v13, %v8626_v35 }
0x155e   : > { %v3823_v45 = vmul.f32 0.5, %v3820_v27  ;;  %10285 = vmatpush3.bf16.msra.mxu0 %v10284_v5 }
0x155f   : > { %v10815_v53 = vpop.eup %10814  ;;  %10290 = vmatprep.subr.bf16.mxu0 %v11091_v30 }
0x1560   : > { %v3826_v36 = vmul.f32 %v3823_v45, %v3789_v23  ;;  %v3821_v22 = vadd.f32 1.0, %v10815_v53 }
0x1562   : > { %9574 = vmatmul.mubr.msk.f32.vlgmr.msra.gmra.mrb[70].mxu1 %vm2652_vm7, %v3826_v36  ;;  %v3824_v42 = vmul.f32 0.5, %v3821_v22 }
0x1563   : > { %v10817_v63 = vpop.eup %10816  ;;  %9576 = vmatprep.mubr.msk.f32.mxu1 %vm11092_vm3, %v11093_v32 }
0x1564   : > { %v3827_v55 = vmul.f32 %v3824_v42, %v3794_v52  ;;  %v3822_v47 = vadd.f32 1.0, %v10817_v63 }
0x1566   : > { %9577 = vmatmul.mubr.msk.f32.gmra.mrb[72].mxu1 %vm2652_vm7, %v3827_v55  ;;  %v3825_v60 = vmul.f32 0.5, %v3822_v47  ;;  %v12407_v47 = vld [vmem:[%s13560_s13 + $0x8] sm:$0xff] }
0x1567   : > { %9579 = vmatprep.mubr.msk.f32.mxu1 %vm11092_vm3, %v11093_v32 }
0x1568   : > { %v3828_v11 = vmul.f32 %v3825_v60, %v3799_v34 }
0x156a   : > { %9580 = vmatmul.mubr.msk.f32.gmra.mrb[74].mxu1 %vm2652_vm7, %v3828_v11  ;;  %v3980_v11 = vrot.slane %v12407_v47, %v12089_v38 }
0x156b   : > { %9605 = vmatprep.mubr.msk.f32.mxu1 %vm11092_vm3, %v11093_v32 }
0x1635   : > { %v3912_v62 = vpop.f32.mrb[70].mxu1 }
0x1636   : > { %v3926_v3 = vadd.f32 %v3912_v62, %v12269_v51  ;;  %v9575_v6 = vpop.f32.mrb[71].mxu1 }
0x1638   : > { %v12370_v59 = vadd.f32 %v3932_v2, %v3926_v3  ;;  %v3987_v3 = vrot.slane %v12407_v47, %v12097_v18 }
0x1639   : > { %v3917_v20 = vpop.f32.mrb[72].mxu1 }
0x163a   : > { %v3927_v46 = vadd.f32 %v3917_v20, %v12274_v24  ;;  %v9578_v9 = vpop.f32.mrb[73].mxu1  ;;  %v3938_v8 = vsel %vm2648_vm15, %v12370_v59, 0.0 }
0x163b   : > { %3939 = vadd.xlane.f32.xlu1 %v3938_v8 }
0x163c   : > { %v12375_v23 = vadd.f32 %v3932_v2, %v3927_v46 }
0x163d   : > { %v3922_v25 = vpop.f32.mrb[74].mxu1 }
0x163e   : > { %v3928_v26 = vadd.f32 %v3922_v25, %v12279_v12  ;;  %v9581_v39 = vpop.f32.mrb[75].mxu1  ;;  %v3941_v51 = vsel %vm2648_vm15, %v12375_v23, 0.0 }
0x163f   : > { %3942 = vadd.xlane.f32.xlu0 %v3941_v51 }
0x1640   : > { %v12380_v14 = vadd.f32 %v3932_v2, %v3928_v26 }
0x1642   : > { %v3944_v24 = vsel %vm2825_vm14, %v12380_v14, 0.0 }
0x1643   : > { %3945 = vadd.xlane.f32.xlu1 %v3944_v24 }
0x16c8   : > { %v3940_v17 = vpop.xlane.xlu1 %3939 }
0x16c9   : > { %v3947_v52 = vmul.f32 0.03125, %v3940_v17 }
0x16cb   : > { %v3950_v28 = vsub.f32 %v12370_v59, %v3947_v52  ;;  %v3999_v52 = vrot.slane %v12407_v47, %v12113_v4 }
0x16cc   : > { %v3943_v21 = vpop.xlane.xlu0 %3942 }
0x16cd   : > { %v3948_v33 = vmul.f32 0.03125, %v3943_v21  ;;  %v3953_v61 = vmul.f32 %v3950_v28, %v3950_v28 }
0x16cf   : > { %v3951_v12 = vsub.f32 %v12375_v23, %v3948_v33  ;;  %v3956_v29 = vsel %vm2648_vm15, %v3953_v61, 0.0 }
0x16d0   : > { %3957 = vadd.xlane.f32.xlu0 %v3956_v29  ;;  %v3946_v31 = vpop.xlane.xlu1 %3945 }
0x16d1   : > { %v3949_v34 = vmul.f32 0.03125, %v3946_v31  ;;  %v3954_v48 = vmul.f32 %v3951_v12, %v3951_v12 }
0x16d3   : > { %v3952_v41 = vsub.f32 %v12380_v14, %v3949_v34  ;;  %v3959_v40 = vsel %vm2648_vm15, %v3954_v48, 0.0 }
0x16d4   : > { %3960 = vadd.xlane.f32.xlu1 %v3959_v40 }
0x16d5   : > { %v3955_v7 = vmul.f32 %v3952_v41, %v3952_v41 }
0x16d7   : > { %v3962_v44 = vsel %vm2825_vm14, %v3955_v7, 0.0 }
0x16d8   : > { %3963 = vadd.xlane.f32.xlu0 %v3962_v44 }
0x175d   : > { %v3958_v27 = vpop.xlane.xlu0 %3957 }
0x175e   : > { %v3965_v45 = vmul.f32 0.03125, %v3958_v27 }
0x1760   : > { %v3968_v53 = vadd.f32 1e-05, %v3965_v45 }
0x1761   : > { %v3961_v36 = vpop.xlane.xlu1 %3960 }
0x1762   : > { %10818 = vrsqrt.f32 %v3968_v53  ;;  %v3966_v22 = vmul.f32 0.03125, %v3961_v36 }
0x1764   : > { %v3969_v42 = vadd.f32 1e-05, %v3966_v22 }
0x1765   : > { %v3964_v63 = vpop.xlane.xlu0 %3963 }
0x1766   : > { %10820 = vrsqrt.f32 %v3969_v42  ;;  %v3967_v55 = vmul.f32 0.03125, %v3964_v63 }
0x1768   : > { %v3970_v60 = vadd.f32 1e-05, %v3967_v55 }
0x176a   : > { %10822 = vrsqrt.f32 %v3970_v60 }
0x176c   : > { %v10819_v2 = vpop.eup %10818 }
0x176d   : > { %v3974_v62 = vmul.f32 %v10819_v2, %v3950_v28 }
0x176f   : > { %v3981_v6 = vmul.f32 %v3980_v11, %v3974_v62 }
0x1770   : > { %v10821_v20 = vpop.eup %10820 }
0x1771   : > { %v3988_v46 = vadd.f32 %v3987_v3, %v3981_v6  ;;  %v3975_v9 = vmul.f32 %v10821_v20, %v3951_v12 }
0x1773   : > { %9591 = vmatmul.mubr.msk.f32.vlgmr.msra.gmra.mrb[68].mxu0 %vm2648_vm15, %v3988_v46  ;;  %v3982_v8 = vmul.f32 %v3980_v11, %v3975_v9 }
0x1774   : > { %v10823_v25 = vpop.eup %10822  ;;  %9593 = vmatprep.mubr.msk.f32.mxu0 %vm11092_vm3, %v11093_v32 }
0x1775   : > { %v3989_v26 = vadd.f32 %v3987_v3, %v3982_v8  ;;  %v3976_v39 = vmul.f32 %v10823_v25, %v3952_v41 }
0x1777   : > { %9594 = vmatmul.mubr.msk.f32.gmra.mrb[70].mxu0 %vm2648_vm15, %v3989_v26  ;;  %v3983_v51 = vmul.f32 %v3980_v11, %v3976_v39 }
0x1778   : > { %9596 = vmatprep.mubr.msk.f32.mxu0 %vm11092_vm3, %v11093_v32 }
0x1779   : > { %v3990_v24 = vadd.f32 %v3987_v3, %v3983_v51 }
0x177b   : > { %9597 = vmatmul.mubr.msk.f32.gmra.mrb[72].mxu0 %vm2648_vm15, %v3990_v24 }
0x177c   : > { %9620 = vmatprep.mubr.msk.f32.mxu0 %vm11092_vm3, %v11093_v32 }
0x1846   : > { %v4075_v17 = vpop.f32.mrb[68].mxu0 }
0x1847   : > { %v9592_v28 = vpop.f32.mrb[69].mxu0  ;;  %v4076_v33 = vadd.f32 %v4075_v17, %v3999_v52 }
0x1849   : > { %v4089_v50 = vmul.f32 0.25, %v4076_v33 }
0x184a   : > { %v4080_v21 = vpop.f32.mrb[70].mxu0 }
0x184b   : > { %v4081_v61 = vadd.f32 %v4080_v21, %v3999_v52  ;;  %v9595_v12 = vpop.f32.mrb[71].mxu0 }
0x184d   : > { %v12424_v29 = vpack.i.bf16 %v4081_v61, %v4076_v33  ;;  %v4090_v16 = vmul.f32 0.25, %v4081_v61 }
0x184e   : > { %v4085_v31 = vpop.f32.mrb[72].mxu0 }
0x184f   : > { %v12426_v34 = vadd.f32 %v4085_v31, %v3999_v52  ;;  %10579 = vrot.lane.b32.xlu1 %v12424_v29, %s11098_s25  ;;  %v9598_v48 = vpop.f32.mrb[73].mxu0 }
0x1851   : > { %4108 = vrot.lane.b32.xlu0 %v12426_v34, %s11098_s25  ;;  %v4091_v13 = vmul.f32 0.25, %v12426_v34 }
0x1853   : > { %10584 = vrot.lane.b32.xlu1 %v12424_v29, %s11097_s28 }
0x18c1   : > { %v12434_v41 = vpop.permute.xlu1 %10579 }
0x18c2   : > { %10589 = vrot.lane.b32.xlu1 %v12434_v41, %s11097_s28 }
0x18c3   : > { %v12436_v40 = vpop.permute.xlu0 %4108 }
0x18c4   : > { %4212 = vrot.lane.b32.xlu0 %v12436_v40, %s11097_s28 }
0x18c5   : > { %v10585_v7 = vpop.permute.xlu1 %10584 }
0x18c6   : > { %v10587_v44 = vunpack.i.h.bf16 %v10585_v7  ;;  %v10586_v58 = vunpack.i.l.bf16 %v10585_v7  ;;  %4114 = vrot.lane.b32.xlu1 %v12426_v34, %s11097_s28 }
0x18c8   : > { %v10287_v35 = vpack.c.bf16 %v10587_v44, %v10586_v58  ;;  %4097 = vrot.lane.b32.xlu0 %v4090_v16, %s11098_s25 }
0x18ca   : > { %10289 = vmatpush3.bf16.xpose.msk.msra.mxu1 %vm12142_vm12, %v10287_v35  ;;  %4095 = vrot.lane.b32.xlu1 %v4089_v50, %s11098_s25 }
0x18cb   : > { %9603 = vmatprep.subr.mxu1 %v11093_v32 }
0x18ce   : > { %4099 = vrot.lane.b32.xlu1 %v4091_v13, %s11098_s25 }
0x1934   : > { %v10590_v5 = vpop.permute.xlu1 %10589 }
0x1935   : > { %v10592_v27 = vunpack.i.h.bf16 %v10590_v5  ;;  %v10591_v45 = vunpack.i.l.bf16 %v10590_v5 }
0x1936   : > { %v4213_v22 = vpop.permute.xlu0 %4212 }
0x1937   : > { %v10291_v53 = vpack.c.bf16 %v10592_v27, %v10591_v45 }
0x1938   : > { %v4115_v36 = vpop.permute.xlu1 %4114 }
0x1939   : > { %9604 = vmatpush3.xpose.msk.msra.mxu1 %vm564_vm4, %v4115_v36  ;;  %10293 = vmatpush3.bf16.xpose.msk.msra.mxu0 %vm12142_vm12, %v10291_v53 }
0x193a   : > { %9618 = vmatprep.subr.mxu0 %v11093_v32  ;;  %10294 = vmatprep.subr.bf16.mxu1 %v11091_v30  ;;  %v4098_v63 = vpop.permute.xlu0 %4097 }
0x193c   : > { %9606 = vmatmul.mubr.msk.f32.vlgmr.msra.gmra.mrb[76].mxu1 %vm564_vm4, %v4089_v50  ;;  %v4096_v42 = vpop.permute.xlu1 %4095 }
0x193d   : > { %9608 = vmatprep.mubr.msk.f32.mxu1 %vm11092_vm3, %v11093_v32 }
0x1940   : > { %9609 = vmatmul.mubr.msk.f32.gmra.mrb[78].mxu1 %vm564_vm4, %v4090_v16  ;;  %v4100_v55 = vpop.permute.xlu1 %4099 }
0x1941   : > { %9619 = vmatpush3.xpose.msk.msra.mxu0 %vm564_vm4, %v4213_v22  ;;  %9611 = vmatprep.mubr.msk.f32.mxu1 %vm11092_vm3, %v11093_v32 }
0x1942   : > { %10297 = vmatprep.subr.bf16.mxu0 %v11091_v30 }
0x1944   : > { %9612 = vmatmul.mubr.msk.f32.gmra.mrb[80].mxu1 %vm564_vm4, %v4091_v13  ;;  %9621 = vmatmul.mubr.msk.f32.vlgmr.msra.gmra.mrb[74].mxu0 %vm564_vm4, %v4096_v42 }
0x1945   : > { %9623 = vmatprep.mubr.msk.f32.mxu0 %vm11092_vm3, %v11093_v32  ;;  %9635 = vmatprep.mubr.msk.f32.mxu1 %vm11092_vm3, %v11093_v32 }
0x1948   : > { %9624 = vmatmul.mubr.msk.f32.gmra.mrb[76].mxu0 %vm564_vm4, %v4098_v63 }
0x1949   : > { %9626 = vmatprep.mubr.msk.f32.mxu0 %vm11092_vm3, %v11093_v32 }
0x194c   : > { %9627 = vmatmul.mubr.msk.f32.gmra.mrb[78].mxu0 %vm564_vm4, %v4100_v55 }
0x194d   : > { %9650 = vmatprep.mubr.msk.f32.mxu0 %vm11092_vm3, %v11093_v32 }
0x1a0f   : > { %v4194_v60 = vpop.f32.mrb[76].mxu1 }
0x1a10   : > { %v4306_v11 = vsel %vm11819_vm8, %v4194_v60, -1e+30  ;;  %v9607_v2 = vpop.f32.mrb[77].mxu1 }
0x1a11   : > { %v4312_v62 = vsel %vm491_vm0, %v4306_v11, -inf }
0x1a12   : > { %4313 = vmax.xlane.f32.xlu0 %v4312_v62 }
0x1a13   : > { %v4199_v3 = vpop.f32.mrb[78].mxu1 }
0x1a14   : > { %v4307_v6 = vsel %vm11819_vm8, %v4199_v3, -1e+30  ;;  %v9610_v20 = vpop.f32.mrb[79].mxu1 }
0x1a15   : > { %v4315_v46 = vsel %vm491_vm0, %v4307_v6, -inf }
0x1a16   : > { %4316 = vmax.xlane.f32.xlu0 %v4315_v46 }
0x1a17   : > { %v4204_v9 = vpop.f32.mrb[80].mxu1  ;;  %v4292_v8 = vpop.f32.mrb[74].mxu0 }
0x1a18   : > { %v4309_v25 = vsel %vm11819_vm8, %v4292_v8, -1e+30  ;;  %v9613_v26 = vpop.f32.mrb[81].mxu1  ;;  %v9622_v39 = vpop.f32.mrb[75].mxu0  ;;  %v4308_v21 = vsel %vm11819_vm8, %v4204_v9, -1e+30 }
0x1a19   : > { %v4321_v51 = vsel %vm491_vm0, %v4309_v25, -inf  ;;  %v4318_v31 = vsel %vm498_vm1, %v4308_v21, -inf }
0x1a1a   : > { %4322 = vmax.xlane.f32.xlu1 %v4321_v51 }
0x1a1b   : > { %v4297_v24 = vpop.f32.mrb[76].mxu0 }
0x1a1c   : > { %v4310_v17 = vsel %vm11819_vm8, %v4297_v24, -1e+30  ;;  %v9625_v52 = vpop.f32.mrb[77].mxu0 }
0x1a1d   : > { %v4324_v28 = vsel %vm491_vm0, %v4310_v17, -inf }
0x1a1e   : > { %4325 = vmax.xlane.f32.xlu0 %v4324_v28 }
0x1a1f   : > { %v4302_v33 = vpop.f32.mrb[78].mxu0 }
0x1a20   : > { %v4311_v61 = vsel %vm11819_vm8, %v4302_v33, -1e+30  ;;  %v9628_v12 = vpop.f32.mrb[79].mxu0 }
0x1a21   : > { %v4327_v48 = vsel %vm498_vm1, %v4311_v61, -inf }
0x1a22   : > { %4328 = vmax.xlane.f32.xlu1 %v4327_v48  ;;  %4319 = vmax.xlane.f32.xlu0 %v4318_v31 }
0x1a33   : > { %10599 = vrot.lane.b32.xlu1 %v12434_v41, %s11095_s26 }
0x1a37   : > { %4382 = vrot.lane.b32.xlu1 %v12426_v34, %s11095_s26 }
0x1a9f   : > { %v4314_v7 = vpop.xlane.xlu0 %4313 }
0x1aa0   : > { %v4330_v44 = vsub.f32 %v4306_v11, %v4314_v7 }
0x1aa2   : > { %v4336_v58 = vmul.f32 1.442695, %v4330_v44 }
0x1aa3   : > { %v4317_v16 = vpop.xlane.xlu0 %4316 }
0x1aa4   : > { %10824 = vpow2.f32 %v4336_v58  ;;  %v4331_v35 = vsub.f32 %v4307_v6, %v4317_v16 }
0x1aa6   : > { %v4338_v50 = vmul.f32 1.442695, %v4331_v35 }
0x1aa7   : > { %v4323_v13 = vpop.xlane.xlu1 %4322 }
0x1aa8   : > { %10826 = vpow2.f32 %v4338_v50  ;;  %v4333_v5 = vsub.f32 %v4309_v25, %v4323_v13  ;;  %v8653_v13 = vld [vmem:[%s13557_s10 + $0x30] sm:$0xff] }
0x1aaa   : > { %v4342_v27 = vmul.f32 1.442695, %v4333_v5  ;;  %v8654_v5 = vld [vmem:[%s13557_s10 + $0x38] sm:$0xff] }
0x1aab   : > { %v4326_v45 = vpop.xlane.xlu0 %4325 }
0x1aac   : > { %10828 = vpow2.f32 %v4342_v27  ;;  %v4334_v53 = vsub.f32 %v4310_v17, %v4326_v45 }
0x1aae   : > { %v12498_v36 = vpop.eup %10824  ;;  %v4344_v41 = vmul.f32 1.442695, %v4334_v53 }
0x1aaf   : > { %v4329_v22 = vpop.xlane.xlu1 %4328  ;;  %v4320_v42 = vpop.xlane.xlu0 %4319  ;;  %v4348_v34 = vsel %vm491_vm0, %v12498_v36, 0.0 }
0x1ab0   : > { %10830 = vpow2.f32 %v4344_v41  ;;  %v4335_v63 = vsub.f32 %v4311_v61, %v4329_v22  ;;  %v4332_v55 = vsub.f32 %v4308_v21, %v4320_v42  ;;  %4349 = vadd.xlane.f32.xlu0 %v4348_v34  ;;  %v10301_v41 = vpack.c.bf16 %v8654_v5, %v8653_v13 }
0x1ab2   : > { %v12502_v60 = vpop.eup %10826  ;;  %v4346_v11 = vmul.f32 1.442695, %v4335_v63  ;;  %v4340_v2 = vmul.f32 1.442695, %v4332_v55  ;;  %v8651_v55 = vld [vmem:[%s13557_s10 + $0x20] sm:$0xff] }
0x1ab3   : > { %v10600_v62 = vpop.permute.xlu1 %10599  ;;  %v4351_v3 = vsel %vm491_vm0, %v12502_v60, 0.0 }
0x1ab4   : > { %10832 = vpow2.f32 %v4346_v11  ;;  %v10602_v6 = vunpack.i.h.bf16 %v10600_v62  ;;  %v10601_v20 = vunpack.i.l.bf16 %v10600_v62  ;;  %4352 = vadd.xlane.f32.xlu0 %v4351_v3 }
0x1ab5   : > { %10834 = vpow2.f32 %v4340_v2 }
0x1ab6   : > { %v10829_v46 = vpop.eup %10828  ;;  %v10298_v9 = vpack.c.bf16 %v10602_v6, %v10601_v20 }
0x1ab7   : > { %v4357_v8 = vsel %vm491_vm0, %v10829_v46, 0.0  ;;  %v4383_v52 = vpop.permute.xlu1 %4382 }
0x1ab8   : > { %4358 = vadd.xlane.f32.xlu1 %v4357_v8  ;;  %10299 = vmatpush3.bf16.msra.mxu0 %v10298_v9 }
0x1ab9   : > { %9648 = vmatprep.subr.mxu0 %v11093_v32 }
0x1aba   : > { %v10831_v25 = vpop.eup %10830 }
0x1abb   : > { %v4360_v26 = vsel %vm491_vm0, %v10831_v25, 0.0 }
0x1abc   : > { %4361 = vadd.xlane.f32.xlu1 %v4360_v26 }
0x1abe   : > { %v10833_v39 = vpop.eup %10832 }
0x1abf   : > { %v10835_v51 = vpop.eup %10834  ;;  %v4363_v24 = vsel %vm498_vm1, %v10833_v39, 0.0 }
0x1ac0   : > { %4364 = vadd.xlane.f32.xlu1 %v4363_v24  ;;  %v4354_v17 = vsel %vm498_vm1, %v10835_v51, 0.0 }
0x1ac1   : > { %4355 = vadd.xlane.f32.xlu0 %v4354_v17 }
0x1ad1   : > { %4481 = vrot.lane.b32.xlu1 %v12436_v40, %s11095_s26 }
0x1ad7   : > { %10594 = vrot.lane.b32.xlu0 %v12424_v29, %s11095_s26 }
0x1b3d   : > { %v4350_v28 = vpop.xlane.xlu0 %4349 }
0x1b41   : > { %v4353_v61 = vpop.xlane.xlu0 %4352 }
0x1b45   : > { %v4359_v21 = vpop.xlane.xlu1 %4358 }
0x1b46   : > { %10836 = vrcp.f32 %v4359_v21 }
0x1b49   : > { %v4362_v33 = vpop.xlane.xlu1 %4361 }
0x1b4a   : > { %10838 = vrcp.f32 %v4362_v33 }
0x1b4b   : > { %10840 = vrcp.f32 %v4350_v28 }
0x1b4d   : > { %v4365_v12 = vpop.xlane.xlu1 %4364 }
0x1b4e   : > { %10842 = vrcp.f32 %v4365_v12  ;;  %v4356_v31 = vpop.xlane.xlu0 %4355 }
0x1b4f   : > { %10844 = vrcp.f32 %v4353_v61 }
0x1b50   : > { %v10837_v48 = vpop.eup %10836  ;;  %10846 = vrcp.f32 %v4356_v31  ;;  %v4765_v31 = vrot.slane %v12407_v47, %v12264_v43 }
0x1b51   : > { %v4375_v7 = vmul.f32 %v10837_v48, %v10829_v46  ;;  %v4482_v44 = vpop.permute.xlu1 %4481 }
0x1b52   : > { %v10595_v58 = vpop.permute.xlu0 %10594  ;;  %9649 = vmatpush3.msk.msra.mxu0 %vm503_vm2, %v4482_v44 }
0x1b53   : > { %v10597_v40 = vunpack.i.h.bf16 %v10595_v58  ;;  %v10596_v29 = vunpack.i.l.bf16 %v10595_v58  ;;  %9651 = vmatmul.mubr.msk.f32.vlgmr.msra.gmra.mrb[80].mxu0 %vm491_vm0, %v4375_v7  ;;  %10303 = vmatprep.subr.bf16.mxu0 %v11091_v30 }
0x1b54   : > { %v10839_v16 = vpop.eup %10838  ;;  %9653 = vmatprep.mubr.msk.f32.mxu0 %vm11092_vm3, %v11093_v32 }
0x1b55   : > { %v10295_v35 = vpack.c.bf16 %v10597_v40, %v10596_v29  ;;  %v4376_v50 = vmul.f32 %v10839_v16, %v10831_v25  ;;  %v10841_v27 = vpop.eup %10840 }
0x1b56   : > { %v4372_v22 = vmul.f32 %v10841_v27, %v12498_v36 }
0x1b57   : > { %10296 = vmatpush3.bf16.msra.mxu1 %v10295_v35  ;;  %9654 = vmatmul.mubr.msk.f32.gmra.mrb[82].mxu0 %vm491_vm0, %v4376_v50 }
0x1b58   : > { %v10843_v45 = vpop.eup %10842  ;;  %9633 = vmatprep.subr.mxu1 %v11093_v32  ;;  %9656 = vmatprep.mubr.msk.f32.mxu0 %vm11092_vm3, %v11093_v32 }
0x1b59   : > { %v4377_v53 = vmul.f32 %v10843_v45, %v10833_v39  ;;  %v10845_v42 = vpop.eup %10844 }
0x1b5a   : > { %v4373_v34 = vmul.f32 %v10845_v42, %v12502_v60  ;;  %v10847_v36 = vpop.eup %10846  ;;  %v8652_v60 = vld [vmem:[%s13557_s10 + $0x28] sm:$0xff] }
0x1b5b   : > { %9634 = vmatpush3.msk.msra.mxu1 %vm503_vm2, %v4383_v52  ;;  %9657 = vmatmul.mubr.msk.f32.gmra.mrb[84].mxu0 %vm491_vm0, %v4377_v53  ;;  %v4374_v63 = vmul.f32 %v10847_v36, %v10835_v51  ;;  %v10304_v11 = vpack.c.bf16 %v8652_v60, %v8651_v55 }
0x1b5c   : > { %9636 = vmatmul.mubr.msk.f32.vlgmr.msra.gmra.mrb[82].mxu1 %vm491_vm0, %v4372_v22  ;;  %10300 = vmatprep.subr.bf16.mxu1 %v11091_v30 }
0x1b5d   : > { %9638 = vmatprep.mubr.msk.f32.mxu1 %vm11092_vm3, %v11093_v32  ;;  %10302 = vmatpush3.bf16.msra.mxu1 %v10301_v41 }
0x1b5e   : > { %9676 = vmatprep.mubr.msk.f32.mxu0 %vm11092_vm3, %v11093_v32  ;;  %10306 = vmatprep.subr.bf16.mxu1 %v11091_v30 }
0x1b5f   : > { %10305 = vmatpush3.bf16.msra.mxu0 %v10304_v11 }
0x1b60   : > { %9639 = vmatmul.mubr.msk.f32.gmra.mrb[84].mxu1 %vm491_vm0, %v4373_v34  ;;  %10312 = vmatprep.subr.bf16.mxu0 %v11091_v30 }
0x1b61   : > { %9641 = vmatprep.mubr.msk.f32.mxu1 %vm11092_vm3, %v11093_v32 }
0x1b64   : > { %9642 = vmatmul.mubr.msk.f32.gmra.mrb[86].mxu1 %vm491_vm0, %v4374_v63 }
0x1b65   : > { %9663 = vmatprep.mubr.msk.f32.mxu1 %vm11092_vm3, %v11093_v32 }
0x1c26   : > { %v4562_v2 = vpop.f32.mrb[80].mxu0 }
0x1c27   : > { %v9652_v62 = vpop.f32.mrb[81].mxu0  ;;  %9664 = vmatmul.mubr.msk.f32.vlgmr.msra.gmra.mrb[88].mxu1 %vm564_vm4, %v4562_v2 }
0x1c28   : > { %9666 = vmatprep.mubr.msk.f32.mxu1 %vm11092_vm3, %v11093_v32 }
0x1c2a   : > { %v4567_v3 = vpop.f32.mrb[82].mxu0 }
0x1c2b   : > { %v9655_v6 = vpop.f32.mrb[83].mxu0  ;;  %9667 = vmatmul.mubr.msk.f32.gmra.mrb[90].mxu1 %vm564_vm4, %v4567_v3 }
0x1c2c   : > { %9669 = vmatprep.mubr.msk.f32.mxu1 %vm11092_vm3, %v11093_v32 }
0x1c2e   : > { %v4572_v20 = vpop.f32.mrb[84].mxu0 }
0x1c2f   : > { %v4463_v46 = vpop.f32.mrb[82].mxu1  ;;  %v9658_v9 = vpop.f32.mrb[85].mxu0  ;;  %9670 = vmatmul.mubr.msk.f32.gmra.mrb[92].mxu1 %vm564_vm4, %v4572_v20 }
0x1c30   : > { %v9637_v8 = vpop.f32.mrb[83].mxu1  ;;  %9677 = vmatmul.mubr.msk.f32.vlgmr.msra.gmra.mrb[86].mxu0 %vm564_vm4, %v4463_v46  ;;  %9693 = vmatprep.mubr.msk.f32.mxu1 %vm11092_vm3, %v11093_v32  ;;  %v8661_v46 = vld [vmem:[%s13558_s11 + $0x20] sm:$0xff]  ;;  %v8662_v9 = vld [vmem:[%s13558_s11 + $0x28] sm:$0xff] }
0x1c31   : > { %9679 = vmatprep.mubr.msk.f32.mxu0 %vm11092_vm3, %v11093_v32  ;;  %v8663_v8 = vld [vmem:[%s13558_s11 + $0x30] sm:$0xff] }
0x1c33   : > { %v4468_v25 = vpop.f32.mrb[84].mxu1 }
0x1c34   : > { %v9640_v26 = vpop.f32.mrb[85].mxu1  ;;  %9680 = vmatmul.mubr.msk.f32.gmra.mrb[88].mxu0 %vm564_vm4, %v4468_v25  ;;  %v10307_v25 = vpack.c.bf16 %v8662_v9, %v8661_v46 }
0x1c35   : > { %9682 = vmatprep.mubr.msk.f32.mxu0 %vm11092_vm3, %v11093_v32  ;;  %v8664_v26 = vld [vmem:[%s13558_s11 + $0x38] sm:$0xff] }
0x1c36   : > { %10308 = vmatpush3.bf16.msra.mxu1 %v10307_v25 }
0x1c37   : > { %v4473_v39 = vpop.f32.mrb[86].mxu1  ;;  %10309 = vmatprep.subr.bf16.mxu1 %v11091_v30 }
0x1c38   : > { %v9643_v51 = vpop.f32.mrb[87].mxu1  ;;  %9683 = vmatmul.mubr.msk.f32.gmra.mrb[90].mxu0 %vm564_vm4, %v4473_v39  ;;  %v10310_v39 = vpack.c.bf16 %v8664_v26, %v8663_v8 }
0x1c39   : > { %9718 = vmatprep.mubr.msk.f32.mxu0 %vm11092_vm3, %v11093_v32 }
0x1c3a   : > { %10311 = vmatpush3.bf16.msra.mxu1 %v10310_v39 }
0x1c3b   : > { %10324 = vmatprep.subr.bf16.mxu1 %v11091_v30 }
0x1cfa   : > { %v4656_v24 = vpop.f32.mrb[88].mxu1 }
0x1cfb   : > { %v9665_v17 = vpop.f32.mrb[89].mxu1 }
0x1cfe   : > { %v4661_v52 = vpop.f32.mrb[90].mxu1 }
0x1cff   : > { %v9668_v28 = vpop.f32.mrb[91].mxu1 }
0x1d02   : > { %v4666_v21 = vpop.f32.mrb[92].mxu1 }
0x1d03   : > { %v4745_v33 = vpop.f32.mrb[86].mxu0  ;;  %v9671_v61 = vpop.f32.mrb[93].mxu1 }
0x1d04   : > { %v4746_v12 = vadd.f32 %v4745_v33, %v4656_v24  ;;  %v9678_v48 = vpop.f32.mrb[87].mxu0 }
0x1d06   : > { %v4759_v7 = vadd.f32 %v4746_v12, %v12370_v59 }
0x1d07   : > { %v4750_v44 = vpop.f32.mrb[88].mxu0 }
0x1d08   : > { %v12575_v58 = vadd.f32 %v4765_v31, %v4759_v7  ;;  %v4751_v40 = vadd.f32 %v4750_v44, %v4661_v52  ;;  %v9681_v29 = vpop.f32.mrb[89].mxu0  ;;  %v4818_v44 = vrot.slane %v12407_v47, %v12307_v57 }
0x1d0a   : > { %v4760_v16 = vadd.f32 %v4751_v40, %v12375_v23  ;;  %v4769_v35 = vsel %vm2648_vm15, %v12575_v58, 0.0 }
0x1d0b   : > { %v4755_v50 = vpop.f32.mrb[90].mxu0  ;;  %4770 = vadd.xlane.f32.xlu0 %v4769_v35 }
0x1d0c   : > { %v12580_v13 = vadd.f32 %v4765_v31, %v4760_v16  ;;  %v4756_v5 = vadd.f32 %v4755_v50, %v4666_v21  ;;  %v9684_v27 = vpop.f32.mrb[91].mxu0 }
0x1d0e   : > { %v4761_v45 = vadd.f32 %v4756_v5, %v12380_v14  ;;  %v4772_v59 = vsel %vm2648_vm15, %v12580_v13, 0.0 }
0x1d0f   : > { %4773 = vadd.xlane.f32.xlu1 %v4772_v59 }
0x1d10   : > { %v12585_v53 = vadd.f32 %v4765_v31, %v4761_v45  ;;  %v4811_v31 = vrot.slane %v12407_v47, %v12304_v49 }
0x1d12   : > { %v4775_v23 = vsel %vm2825_vm14, %v12585_v53, 0.0 }
0x1d13   : > { %4776 = vadd.xlane.f32.xlu0 %v4775_v23 }
0x1d98   : > { %v4771_v41 = vpop.xlane.xlu0 %4770 }
0x1d99   : > { %v4778_v22 = vmul.f32 0.03125, %v4771_v41  ;;  %v8668_v41 = vld [vmem:[%s13559_s12 + $0x40] sm:$0xff] }
0x1d9b   : > { %v4781_v42 = vsub.f32 %v12575_v58, %v4778_v22  ;;  %v8669_v22 = vld [vmem:[%s13559_s12 + $0x48] sm:$0xff] }
0x1d9c   : > { %v4774_v34 = vpop.xlane.xlu1 %4773 }
0x1d9d   : > { %v4779_v36 = vmul.f32 0.03125, %v4774_v34  ;;  %v4784_v63 = vmul.f32 %v4781_v42, %v4781_v42  ;;  %v8670_v34 = vld [vmem:[%s13559_s12 + $0x50] sm:$0xff] }
0x1d9f   : > { %v4782_v55 = vsub.f32 %v12580_v13, %v4779_v36  ;;  %v4787_v14 = vsel %vm2648_vm15, %v4784_v63, 0.0  ;;  %v8671_v36 = vld [vmem:[%s13559_s12 + $0x58] sm:$0xff] }
0x1da0   : > { %4788 = vadd.xlane.f32.xlu0 %v4787_v14  ;;  %v4777_v60 = vpop.xlane.xlu0 %4776  ;;  %v10316_v63 = vpack.c.bf16 %v8671_v36, %v8670_v34  ;;  %v8673_v14 = vld [vmem:[%s13559_s12 + $0x68] sm:$0xff] }
0x1da1   : > { %v4780_v11 = vmul.f32 0.03125, %v4777_v60  ;;  %v4785_v2 = vmul.f32 %v4782_v55, %v4782_v55 }
0x1da3   : > { %v4783_v62 = vsub.f32 %v12585_v53, %v4780_v11  ;;  %v4790_v3 = vsel %vm2648_vm15, %v4785_v2, 0.0  ;;  %v8674_v11 = vld [vmem:[%s13559_s12 + $0x70] sm:$0xff]  ;;  %v8675_v2 = vld [vmem:[%s13559_s12 + $0x78] sm:$0xff] }
0x1da4   : > { %4791 = vadd.xlane.f32.xlu0 %v4790_v3  ;;  %v4830_v3 = vrot.slane %v12407_v47, %v12351_v0 }
0x1da5   : > { %v4786_v6 = vmul.f32 %v4783_v62, %v4783_v62 }
0x1da7   : > { %v4793_v20 = vsel %vm2825_vm14, %v4786_v6, 0.0 }
0x1da8   : > { %4794 = vadd.xlane.f32.xlu1 %v4793_v20 }
0x1e2d   : > { %v4789_v51 = vpop.xlane.xlu0 %4788 }
0x1e2e   : > { %v4796_v24 = vmul.f32 0.03125, %v4789_v51 }
0x1e30   : > { %v4799_v17 = vadd.f32 1e-05, %v4796_v24 }
0x1e31   : > { %v4792_v52 = vpop.xlane.xlu0 %4791 }
0x1e32   : > { %10848 = vrsqrt.f32 %v4799_v17  ;;  %v4797_v28 = vmul.f32 0.03125, %v4792_v52 }
0x1e34   : > { %v4800_v21 = vadd.f32 1e-05, %v4797_v28 }
0x1e35   : > { %v4795_v33 = vpop.xlane.xlu1 %4794 }
0x1e36   : > { %10850 = vrsqrt.f32 %v4800_v21  ;;  %v4798_v61 = vmul.f32 0.03125, %v4795_v33 }
0x1e38   : > { %v4801_v12 = vadd.f32 1e-05, %v4798_v61 }
0x1e3a   : > { %10852 = vrsqrt.f32 %v4801_v12 }
0x1e3c   : > { %v10849_v48 = vpop.eup %10848 }
0x1e3d   : > { %v4805_v7 = vmul.f32 %v10849_v48, %v4781_v42  ;;  %v10313_v42 = vpack.c.bf16 %v8669_v22, %v8668_v41 }
0x1e3f   : > { %v4812_v40 = vmul.f32 %v4811_v31, %v4805_v7  ;;  %10314 = vmatpush3.bf16.msra.mxu0 %v10313_v42 }
0x1e40   : > { %v10851_v29 = vpop.eup %10850  ;;  %10315 = vmatprep.subr.bf16.mxu0 %v11091_v30 }
0x1e41   : > { %v4819_v16 = vadd.f32 %v4818_v44, %v4812_v40  ;;  %v4806_v35 = vmul.f32 %v10851_v29, %v4782_v55  ;;  %v8672_v55 = vld [vmem:[%s13559_s12 + $0x60] sm:$0xff] }
0x1e42   : > { %v10319_v60 = vpack.c.bf16 %v8673_v14, %v8672_v55 }
0x1e43   : > { %9694 = vmatmul.mubr.msk.f32.vlgmr.msra.gmra.mrb[94].mxu1 %vm2648_vm15, %v4819_v16  ;;  %v4813_v50 = vmul.f32 %v4811_v31, %v4806_v35  ;;  %10317 = vmatpush3.bf16.msra.mxu0 %v10316_v63  ;;  %v5051_v63 = vrot.slane %v12407_v47, %v12365_v1 }
0x1e44   : > { %v10853_v5 = vpop.eup %10852  ;;  %9696 = vmatprep.mubr.msk.f32.mxu1 %vm11092_vm3, %v11093_v32  ;;  %10318 = vmatprep.subr.bf16.mxu0 %v11091_v30 }
0x1e45   : > { %v4820_v27 = vadd.f32 %v4818_v44, %v4813_v50  ;;  %v4807_v45 = vmul.f32 %v10853_v5, %v4783_v62  ;;  %v10322_v62 = vpack.c.bf16 %v8675_v2, %v8674_v11 }
0x1e47   : > { %9697 = vmatmul.mubr.msk.f32.gmra.mrb[96].mxu1 %vm2648_vm15, %v4820_v27  ;;  %v4814_v59 = vmul.f32 %v4811_v31, %v4807_v45  ;;  %10320 = vmatpush3.bf16.msra.mxu0 %v10319_v60 }
0x1e48   : > { %9699 = vmatprep.mubr.msk.f32.mxu1 %vm11092_vm3, %v11093_v32  ;;  %10321 = vmatprep.subr.bf16.mxu0 %v11091_v30 }
0x1e49   : > { %v4821_v23 = vadd.f32 %v4818_v44, %v4814_v59 }
0x1e4b   : > { %9700 = vmatmul.mubr.msk.f32.gmra.mrb[98].mxu1 %vm2648_vm15, %v4821_v23  ;;  %10323 = vmatpush3.bf16.msra.mxu0 %v10322_v62 }
0x1e4c   : > { %9735 = vmatprep.mubr.msk.f32.mxu1 %vm11092_vm3, %v11093_v32  ;;  %10330 = vmatprep.subr.bf16.mxu0 %v11091_v30 }
0x1f16   : > { %v4906_v6 = vpop.f32.mrb[94].mxu1 }
0x1f17   : > { %v4907_v20 = vadd.f32 %v4906_v6, %v4830_v3  ;;  %v9695_v46 = vpop.f32.mrb[95].mxu1 }
0x1f19   : > { %v4920_v9 = vmul.f32 %v4907_v20, %v4907_v20 }
0x1f1a   : > { %v4911_v8 = vpop.f32.mrb[96].mxu1 }
0x1f1b   : > { %v4923_v25 = vmul.f32 %v4920_v9, %v4907_v20  ;;  %v4912_v26 = vadd.f32 %v4911_v8, %v4830_v3  ;;  %v9698_v39 = vpop.f32.mrb[97].mxu1 }
0x1f1d   : > { %v4926_v51 = vmul.f32 0.044715, %v4923_v25  ;;  %v4921_v24 = vmul.f32 %v4912_v26, %v4912_v26 }
0x1f1e   : > { %v4916_v17 = vpop.f32.mrb[98].mxu1 }
0x1f1f   : > { %v4929_v52 = vadd.f32 %v4926_v51, %v4907_v20  ;;  %v4924_v28 = vmul.f32 %v4921_v24, %v4912_v26  ;;  %v4917_v21 = vadd.f32 %v4916_v17, %v4830_v3  ;;  %v9701_v33 = vpop.f32.mrb[99].mxu1 }
0x1f21   : > { %v4932_v61 = vmul.f32 0.7978846, %v4929_v52  ;;  %v4927_v12 = vmul.f32 0.044715, %v4924_v28  ;;  %v4922_v31 = vmul.f32 %v4917_v21, %v4917_v21 }
0x1f23   : > { %10854 = vtanh.f32 %v4932_v61  ;;  %v4930_v48 = vadd.f32 %v4927_v12, %v4912_v26  ;;  %v4925_v7 = vmul.f32 %v4922_v31, %v4917_v21 }
0x1f25   : > { %v4933_v44 = vmul.f32 0.7978846, %v4930_v48  ;;  %v4928_v40 = vmul.f32 0.044715, %v4925_v7  ;;  %v8680_v7 = vld [vmem:[%s13556_s9 + $0x40] sm:$0xff] }
0x1f27   : > { %10856 = vtanh.f32 %v4933_v44  ;;  %v4931_v29 = vadd.f32 %v4928_v40, %v4917_v21  ;;  %v8681_v44 = vld [vmem:[%s13556_s9 + $0x48] sm:$0xff]  ;;  %v8682_v40 = vld [vmem:[%s13556_s9 + $0x50] sm:$0xff] }
0x1f29   : > { %v4934_v16 = vmul.f32 0.7978846, %v4931_v29  ;;  %v10325_v29 = vpack.c.bf16 %v8681_v44, %v8680_v7 }
0x1f2b   : > { %10858 = vtanh.f32 %v4934_v16  ;;  %v8683_v16 = vld [vmem:[%s13556_s9 + $0x58] sm:$0xff]  ;;  %10326 = vmatpush3.bf16.msra.mxu1 %v10325_v29 }
0x1f2c   : > { %10327 = vmatprep.subr.bf16.mxu1 %v11091_v30 }
0x1f2d   : > { %v10855_v35 = vpop.eup %10854 }
0x1f2e   : > { %v4938_v50 = vadd.f32 1.0, %v10855_v35  ;;  %v10328_v35 = vpack.c.bf16 %v8683_v16, %v8682_v40 }
0x1f30   : > { %v4941_v5 = vmul.f32 0.5, %v4938_v50  ;;  %10329 = vmatpush3.bf16.msra.mxu1 %v10328_v35 }
0x1f31   : > { %v10857_v27 = vpop.eup %10856  ;;  %10334 = vmatprep.subr.bf16.mxu1 %v11091_v30 }
0x1f32   : > { %v4944_v45 = vmul.f32 %v4941_v5, %v4907_v20  ;;  %v4939_v59 = vadd.f32 1.0, %v10857_v27 }
0x1f34   : > { %9719 = vmatmul.mubr.msk.f32.vlgmr.msra.gmra.mrb[92].mxu0 %vm2652_vm7, %v4944_v45  ;;  %v4942_v23 = vmul.f32 0.5, %v4939_v59 }
0x1f35   : > { %v10859_v41 = vpop.eup %10858  ;;  %9721 = vmatprep.mubr.msk.f32.mxu0 %vm11092_vm3, %v11093_v32 }
0x1f36   : > { %v4945_v22 = vmul.f32 %v4942_v23, %v4912_v26  ;;  %v4940_v42 = vadd.f32 1.0, %v10859_v41 }
0x1f38   : > { %9722 = vmatmul.mubr.msk.f32.gmra.mrb[94].mxu0 %vm2652_vm7, %v4945_v22  ;;  %v4943_v34 = vmul.f32 0.5, %v4940_v42  ;;  %v12701_v42 = vld [vmem:[%s13560_s13 + $0x10] sm:$0xff] }
0x1f39   : > { %9724 = vmatprep.mubr.msk.f32.mxu0 %vm11092_vm3, %v11093_v32 }
0x1f3a   : > { %v4946_v36 = vmul.f32 %v4943_v34, %v4917_v21 }
0x1f3c   : > { %9725 = vmatmul.mubr.msk.f32.gmra.mrb[96].mxu0 %vm2652_vm7, %v4946_v36  ;;  %v5099_v36 = vrot.slane %v12701_v42, %v12089_v38 }
0x1f3d   : > { %9750 = vmatprep.mubr.msk.f32.mxu0 %vm11092_vm3, %v11093_v32 }
0x2007   : > { %v5031_v55 = vpop.f32.mrb[92].mxu0 }
0x2008   : > { %v5045_v14 = vadd.f32 %v5031_v55, %v12575_v58  ;;  %v9720_v60 = vpop.f32.mrb[93].mxu0 }
0x200a   : > { %v12664_v11 = vadd.f32 %v5051_v63, %v5045_v14  ;;  %v5106_v14 = vrot.slane %v12701_v42, %v12097_v18 }
0x200b   : > { %v5036_v2 = vpop.f32.mrb[94].mxu0 }
0x200c   : > { %v5046_v62 = vadd.f32 %v5036_v2, %v12580_v13  ;;  %v9723_v3 = vpop.f32.mrb[95].mxu0  ;;  %v5057_v6 = vsel %vm2648_vm15, %v12664_v11, 0.0 }
0x200d   : > { %5058 = vadd.xlane.f32.xlu0 %v5057_v6 }
0x200e   : > { %v12669_v20 = vadd.f32 %v5051_v63, %v5046_v62 }
0x200f   : > { %v5041_v46 = vpop.f32.mrb[96].mxu0 }
0x2010   : > { %v5047_v9 = vadd.f32 %v5041_v46, %v12585_v53  ;;  %v9726_v47 = vpop.f32.mrb[97].mxu0  ;;  %v5060_v58 = vsel %vm2648_vm15, %v12669_v20, 0.0 }
0x2011   : > { %5061 = vadd.xlane.f32.xlu1 %v5060_v58 }
0x2012   : > { %v12674_v8 = vadd.f32 %v5051_v63, %v5047_v9 }
0x2014   : > { %v5063_v13 = vsel %vm2825_vm14, %v12674_v8, 0.0 }
0x2015   : > { %5064 = vadd.xlane.f32.xlu0 %v5063_v13 }
0x209a   : > { %v5059_v25 = vpop.xlane.xlu0 %5058 }
0x209b   : > { %v5066_v26 = vmul.f32 0.03125, %v5059_v25 }
0x209d   : > { %v5069_v39 = vsub.f32 %v12664_v11, %v5066_v26  ;;  %v5118_v26 = vrot.slane %v12701_v42, %v12113_v4 }
0x209e   : > { %v5062_v51 = vpop.xlane.xlu1 %5061 }
0x209f   : > { %v5067_v24 = vmul.f32 0.03125, %v5062_v51  ;;  %v5072_v17 = vmul.f32 %v5069_v39, %v5069_v39 }
0x20a1   : > { %v5070_v53 = vsub.f32 %v12669_v20, %v5067_v24  ;;  %v5075_v52 = vsel %vm2648_vm15, %v5072_v17, 0.0 }
0x20a2   : > { %5076 = vadd.xlane.f32.xlu1 %v5075_v52  ;;  %v5065_v28 = vpop.xlane.xlu0 %5064 }
0x20a3   : > { %v5068_v21 = vmul.f32 0.03125, %v5065_v28  ;;  %v5073_v33 = vmul.f32 %v5070_v53, %v5070_v53 }
0x20a5   : > { %v5071_v61 = vsub.f32 %v12674_v8, %v5068_v21  ;;  %v5078_v12 = vsel %vm2648_vm15, %v5073_v33, 0.0 }
0x20a6   : > { %5079 = vadd.xlane.f32.xlu0 %v5078_v12 }
0x20a7   : > { %v5074_v31 = vmul.f32 %v5071_v61, %v5071_v61 }
0x20a9   : > { %v5081_v48 = vsel %vm2825_vm14, %v5074_v31, 0.0 }
0x20aa   : > { %5082 = vadd.xlane.f32.xlu1 %v5081_v48 }
0x212f   : > { %v5077_v50 = vpop.xlane.xlu1 %5076 }
0x2130   : > { %v5084_v5 = vmul.f32 0.03125, %v5077_v50 }
0x2132   : > { %v5087_v27 = vadd.f32 1e-05, %v5084_v5 }
0x2133   : > { %v5080_v45 = vpop.xlane.xlu0 %5079 }
0x2134   : > { %10860 = vrsqrt.f32 %v5087_v27  ;;  %v5085_v59 = vmul.f32 0.03125, %v5080_v45 }
0x2136   : > { %v5088_v23 = vadd.f32 1e-05, %v5085_v59 }
0x2137   : > { %v5083_v41 = vpop.xlane.xlu1 %5082 }
0x2138   : > { %10862 = vrsqrt.f32 %v5088_v23  ;;  %v5086_v22 = vmul.f32 0.03125, %v5083_v41 }
0x213a   : > { %v5089_v34 = vadd.f32 1e-05, %v5086_v22 }
0x213c   : > { %10864 = vrsqrt.f32 %v5089_v34 }
0x213e   : > { %v10861_v63 = vpop.eup %10860 }
0x213f   : > { %v5093_v55 = vmul.f32 %v10861_v63, %v5069_v39 }
0x2141   : > { %v5100_v60 = vmul.f32 %v5099_v36, %v5093_v55 }
0x2142   : > { %v10863_v2 = vpop.eup %10862 }
0x2143   : > { %v5107_v62 = vadd.f32 %v5106_v14, %v5100_v60  ;;  %v5094_v3 = vmul.f32 %v10863_v2, %v5070_v53 }
0x2145   : > { %9736 = vmatmul.mubr.msk.f32.vlgmr.msra.gmra.mrb[100].mxu1 %vm2648_vm15, %v5107_v62  ;;  %v5101_v6 = vmul.f32 %v5099_v36, %v5094_v3 }
0x2146   : > { %v10865_v46 = vpop.eup %10864  ;;  %9738 = vmatprep.mubr.msk.f32.mxu1 %vm11092_vm3, %v11093_v32 }
0x2147   : > { %v5108_v9 = vadd.f32 %v5106_v14, %v5101_v6  ;;  %v5095_v47 = vmul.f32 %v10865_v46, %v5071_v61 }
0x2149   : > { %9739 = vmatmul.mubr.msk.f32.gmra.mrb[102].mxu1 %vm2648_vm15, %v5108_v9  ;;  %v5102_v58 = vmul.f32 %v5099_v36, %v5095_v47 }
0x214a   : > { %9741 = vmatprep.mubr.msk.f32.mxu1 %vm11092_vm3, %v11093_v32 }
0x214b   : > { %v5109_v13 = vadd.f32 %v5106_v14, %v5102_v58 }
0x214d   : > { %9742 = vmatmul.mubr.msk.f32.gmra.mrb[104].mxu1 %vm2648_vm15, %v5109_v13 }
0x214e   : > { %9765 = vmatprep.mubr.msk.f32.mxu1 %vm11092_vm3, %v11093_v32 }
0x2218   : > { %v5194_v25 = vpop.f32.mrb[100].mxu1 }
0x2219   : > { %v9737_v39 = vpop.f32.mrb[101].mxu1  ;;  %v5195_v24 = vadd.f32 %v5194_v25, %v5118_v26 }
0x221b   : > { %v5208_v61 = vmul.f32 0.25, %v5195_v24 }
0x221c   : > { %v5199_v51 = vpop.f32.mrb[102].mxu1 }
0x221d   : > { %v5200_v17 = vadd.f32 %v5199_v51, %v5118_v26  ;;  %v9740_v53 = vpop.f32.mrb[103].mxu1 }
0x221f   : > { %v12718_v52 = vpack.i.bf16 %v5200_v17, %v5195_v24  ;;  %v5209_v16 = vmul.f32 0.25, %v5200_v17 }
0x2220   : > { %v5204_v28 = vpop.f32.mrb[104].mxu1 }
0x2221   : > { %v12720_v21 = vadd.f32 %v5204_v28, %v5118_v26  ;;  %10604 = vrot.lane.b32.xlu0 %v12718_v52, %s11098_s25  ;;  %v9743_v33 = vpop.f32.mrb[105].mxu1 }
0x2223   : > { %5227 = vrot.lane.b32.xlu1 %v12720_v21, %s11098_s25  ;;  %v5210_v12 = vmul.f32 0.25, %v12720_v21 }
0x2225   : > { %5233 = vrot.lane.b32.xlu0 %v12720_v21, %s11097_s28 }
0x2227   : > { %10609 = vrot.lane.b32.xlu1 %v12718_v52, %s11097_s28 }
0x2229   : > { %5214 = vrot.lane.b32.xlu0 %v5208_v61, %s11098_s25 }
0x222d   : > { %5218 = vrot.lane.b32.xlu0 %v5210_v12, %s11098_s25 }
0x2293   : > { %v12733_v31 = vpop.permute.xlu0 %10604 }
0x2294   : > { %10614 = vrot.lane.b32.xlu1 %v12733_v31, %s11097_s28 }
0x2295   : > { %v12735_v48 = vpop.permute.xlu1 %5227 }
0x2297   : > { %v5234_v35 = vpop.permute.xlu0 %5233 }
0x2298   : > { %5331 = vrot.lane.b32.xlu1 %v12735_v48, %s11097_s28 }
0x2299   : > { %v10610_v7 = vpop.permute.xlu1 %10609 }
0x229a   : > { %v10612_v44 = vunpack.i.h.bf16 %v10610_v7  ;;  %v10611_v40 = vunpack.i.l.bf16 %v10610_v7 }
0x229b   : > { %v5215_v23 = vpop.permute.xlu0 %5214 }
0x229c   : > { %v10331_v29 = vpack.c.bf16 %v10612_v44, %v10611_v40  ;;  %5216 = vrot.lane.b32.xlu1 %v5209_v16, %s11098_s25 }
0x229e   : > { %10333 = vmatpush3.bf16.xpose.msk.msra.mxu0 %vm12142_vm12, %v10331_v29 }
0x229f   : > { %9748 = vmatprep.subr.mxu0 %v11093_v32  ;;  %v5219_v22 = vpop.permute.xlu0 %5218 }
0x22a6   : > { %9749 = vmatpush3.xpose.msk.msra.mxu0 %vm564_vm4, %v5234_v35 }
0x22a7   : > { %10338 = vmatprep.subr.bf16.mxu0 %v11091_v30 }
0x22a9   : > { %9751 = vmatmul.mubr.msk.f32.vlgmr.msra.gmra.mrb[98].mxu0 %vm564_vm4, %v5208_v61 }
0x22aa   : > { %9753 = vmatprep.mubr.msk.f32.mxu0 %vm11092_vm3, %v11093_v32 }
0x22ad   : > { %9754 = vmatmul.mubr.msk.f32.gmra.mrb[100].mxu0 %vm564_vm4, %v5209_v16 }
0x22ae   : > { %9756 = vmatprep.mubr.msk.f32.mxu0 %vm11092_vm3, %v11093_v32 }
0x22b1   : > { %9757 = vmatmul.mubr.msk.f32.gmra.mrb[102].mxu0 %vm564_vm4, %v5210_v12 }
0x22b2   : > { %9780 = vmatprep.mubr.msk.f32.mxu0 %vm11092_vm3, %v11093_v32 }
0x2306   : > { %v10615_v50 = vpop.permute.xlu1 %10614 }
0x2307   : > { %v10617_v5 = vunpack.i.h.bf16 %v10615_v50  ;;  %v10616_v27 = vunpack.i.l.bf16 %v10615_v50 }
0x2309   : > { %v10335_v45 = vpack.c.bf16 %v10617_v5, %v10616_v27 }
0x230a   : > { %v5332_v59 = vpop.permute.xlu1 %5331 }
0x230b   : > { %10337 = vmatpush3.bf16.xpose.msk.msra.mxu1 %vm12142_vm12, %v10335_v45 }
0x230c   : > { %9763 = vmatprep.subr.mxu1 %v11093_v32 }
0x230e   : > { %v5217_v41 = vpop.permute.xlu1 %5216 }
0x2313   : > { %9764 = vmatpush3.xpose.msk.msra.mxu1 %vm564_vm4, %v5332_v59 }
0x2314   : > { %10341 = vmatprep.subr.bf16.mxu1 %v11091_v30 }
0x2316   : > { %9766 = vmatmul.mubr.msk.f32.vlgmr.msra.gmra.mrb[106].mxu1 %vm564_vm4, %v5215_v23 }
0x2317   : > { %9768 = vmatprep.mubr.msk.f32.mxu1 %vm11092_vm3, %v11093_v32 }
0x231a   : > { %9769 = vmatmul.mubr.msk.f32.gmra.mrb[108].mxu1 %vm564_vm4, %v5217_v41 }
0x231b   : > { %9771 = vmatprep.mubr.msk.f32.mxu1 %vm11092_vm3, %v11093_v32 }
0x231e   : > { %9772 = vmatmul.mubr.msk.f32.gmra.mrb[110].mxu1 %vm564_vm4, %v5219_v22 }
0x231f   : > { %9795 = vmatprep.mubr.msk.f32.mxu1 %vm11092_vm3, %v11093_v32 }
0x237c   : > { %v5313_v34 = vpop.f32.mrb[98].mxu0 }
0x237d   : > { %v5425_v36 = vsel %vm11819_vm8, %v5313_v34, -1e+30  ;;  %v9752_v63 = vpop.f32.mrb[99].mxu0 }
0x237e   : > { %v5431_v55 = vsel %vm491_vm0, %v5425_v36, -inf }
0x237f   : > { %5432 = vmax.xlane.f32.xlu1 %v5431_v55 }
0x2380   : > { %v5318_v14 = vpop.f32.mrb[100].mxu0 }
0x2381   : > { %v5426_v60 = vsel %vm11819_vm8, %v5318_v14, -1e+30  ;;  %v9755_v2 = vpop.f32.mrb[101].mxu0 }
0x2382   : > { %v5434_v62 = vsel %vm491_vm0, %v5426_v60, -inf }
0x2383   : > { %5435 = vmax.xlane.f32.xlu0 %v5434_v62 }
0x2384   : > { %v5323_v3 = vpop.f32.mrb[102].mxu0 }
0x2385   : > { %v5427_v6 = vsel %vm11819_vm8, %v5323_v3, -1e+30  ;;  %v9758_v46 = vpop.f32.mrb[103].mxu0 }
0x2386   : > { %v5437_v9 = vsel %vm498_vm1, %v5427_v6, -inf }
0x2387   : > { %5438 = vmax.xlane.f32.xlu1 %v5437_v9 }
0x2398   : > { %10619 = vrot.lane.b32.xlu1 %v12718_v52, %s11095_s26 }
0x23e9   : > { %v5411_v47 = vpop.f32.mrb[106].mxu1 }
0x23ea   : > { %v5428_v58 = vsel %vm11819_vm8, %v5411_v47, -1e+30  ;;  %v9767_v13 = vpop.f32.mrb[107].mxu1 }
0x23eb   : > { %v5440_v25 = vsel %vm491_vm0, %v5428_v58, -inf }
0x23ec   : > { %5441 = vmax.xlane.f32.xlu0 %v5440_v25 }
0x23ed   : > { %v5416_v26 = vpop.f32.mrb[108].mxu1 }
0x23ee   : > { %v5429_v39 = vsel %vm11819_vm8, %v5416_v26, -1e+30  ;;  %v9770_v51 = vpop.f32.mrb[109].mxu1 }
0x23ef   : > { %v5443_v24 = vsel %vm491_vm0, %v5429_v39, -inf }
0x23f0   : > { %5444 = vmax.xlane.f32.xlu0 %v5443_v24 }
0x23f1   : > { %v5421_v17 = vpop.f32.mrb[110].mxu1 }
0x23f2   : > { %v5430_v53 = vsel %vm11819_vm8, %v5421_v17, -1e+30  ;;  %v9773_v52 = vpop.f32.mrb[111].mxu1 }
0x23f3   : > { %v5446_v28 = vsel %vm498_vm1, %v5430_v53, -inf }
0x23f4   : > { %5447 = vmax.xlane.f32.xlu0 %v5446_v28 }
0x240c   : > { %v5433_v33 = vpop.xlane.xlu1 %5432 }
0x240d   : > { %v5449_v61 = vsub.f32 %v5425_v36, %v5433_v33  ;;  %v8709_v33 = vld [vmem:[%s13557_s10 + $0x50] sm:$0xff] }
0x240f   : > { %v5455_v12 = vmul.f32 1.442695, %v5449_v61  ;;  %v8710_v61 = vld [vmem:[%s13557_s10 + $0x58] sm:$0xff] }
0x2410   : > { %v5436_v7 = vpop.xlane.xlu0 %5435 }
0x2411   : > { %10866 = vpow2.f32 %v5455_v12  ;;  %v5450_v44 = vsub.f32 %v5426_v60, %v5436_v7  ;;  %v10345_v12 = vpack.c.bf16 %v8710_v61, %v8709_v33 }
0x2413   : > { %v5457_v40 = vmul.f32 1.442695, %v5450_v44 }
0x2414   : > { %v5439_v29 = vpop.xlane.xlu1 %5438 }
0x2415   : > { %10868 = vpow2.f32 %v5457_v40  ;;  %v5451_v16 = vsub.f32 %v5427_v6, %v5439_v29 }
0x2417   : > { %v5459_v35 = vmul.f32 1.442695, %v5451_v16 }
0x2418   : > { %v10620_v50 = vpop.permute.xlu1 %10619 }
0x2419   : > { %10870 = vpow2.f32 %v5459_v35  ;;  %v10622_v5 = vunpack.i.h.bf16 %v10620_v50  ;;  %v10621_v27 = vunpack.i.l.bf16 %v10620_v50 }
0x241b   : > { %v10867_v45 = vpop.eup %10866  ;;  %v10339_v59 = vpack.c.bf16 %v10622_v5, %v10621_v27  ;;  %v8707_v5 = vld [vmem:[%s13557_s10 + $0x40] sm:$0xff]  ;;  %v8708_v27 = vld [vmem:[%s13557_s10 + $0x48] sm:$0xff] }
0x241c   : > { %v5467_v23 = vsel %vm491_vm0, %v10867_v45, 0.0 }
0x241d   : > { %5468 = vadd.xlane.f32.xlu1 %v5467_v23  ;;  %10340 = vmatpush3.bf16.msra.mxu0 %v10339_v59  ;;  %v10348_v59 = vpack.c.bf16 %v8708_v27, %v8707_v5 }
0x241e   : > { %9778 = vmatprep.subr.mxu0 %v11093_v32 }
0x241f   : > { %v10869_v41 = vpop.eup %10868 }
0x2420   : > { %v5470_v22 = vsel %vm491_vm0, %v10869_v41, 0.0 }
0x2421   : > { %5471 = vadd.xlane.f32.xlu1 %v5470_v22 }
0x2423   : > { %v10871_v34 = vpop.eup %10870 }
0x2424   : > { %v5473_v36 = vsel %vm498_vm1, %v10871_v34, 0.0 }
0x2425   : > { %5474 = vadd.xlane.f32.xlu1 %v5473_v36 }
0x2436   : > { %5501 = vrot.lane.b32.xlu1 %v12720_v21, %s11095_s26 }
0x243a   : > { %5600 = vrot.lane.b32.xlu1 %v12735_v48, %s11095_s26 }
0x2479   : > { %v5442_v63 = vpop.xlane.xlu0 %5441 }
0x247a   : > { %v5452_v55 = vsub.f32 %v5428_v58, %v5442_v63 }
0x247c   : > { %v5461_v14 = vmul.f32 1.442695, %v5452_v55 }
0x247d   : > { %v5445_v60 = vpop.xlane.xlu0 %5444 }
0x247e   : > { %10872 = vpow2.f32 %v5461_v14  ;;  %v5453_v2 = vsub.f32 %v5429_v39, %v5445_v60 }
0x2480   : > { %v5463_v62 = vmul.f32 1.442695, %v5453_v2 }
0x2481   : > { %v5448_v3 = vpop.xlane.xlu0 %5447 }
0x2482   : > { %10874 = vpow2.f32 %v5463_v62  ;;  %v5454_v6 = vsub.f32 %v5430_v53, %v5448_v3 }
0x2484   : > { %v5465_v46 = vmul.f32 1.442695, %v5454_v6 }
0x2486   : > { %10876 = vpow2.f32 %v5465_v46 }
0x2488   : > { %v10873_v9 = vpop.eup %10872 }
0x2489   : > { %v5476_v47 = vsel %vm491_vm0, %v10873_v9, 0.0 }
0x248a   : > { %5477 = vadd.xlane.f32.xlu0 %v5476_v47 }
0x248c   : > { %v10875_v21 = vpop.eup %10874 }
0x248d   : > { %v5479_v13 = vsel %vm491_vm0, %v10875_v21, 0.0 }
0x248e   : > { %5480 = vadd.xlane.f32.xlu0 %v5479_v13 }
0x2490   : > { %v10877_v48 = vpop.eup %10876 }
0x2491   : > { %v5482_v58 = vsel %vm498_vm1, %v10877_v48, 0.0 }
0x2492   : > { %5483 = vadd.xlane.f32.xlu0 %v5482_v58 }
0x24a8   : > { %10624 = vrot.lane.b32.xlu0 %v12733_v31, %s11095_s26 }
0x24aa   : > { %v5469_v25 = vpop.xlane.xlu1 %5468 }
0x24ab   : > { %10878 = vrcp.f32 %v5469_v25 }
0x24ae   : > { %v5472_v26 = vpop.xlane.xlu1 %5471 }
0x24af   : > { %10880 = vrcp.f32 %v5472_v26 }
0x24b2   : > { %v5475_v39 = vpop.xlane.xlu1 %5474 }
0x24b3   : > { %10882 = vrcp.f32 %v5475_v39 }
0x24b5   : > { %v10879_v51 = vpop.eup %10878 }
0x24b6   : > { %v5491_v24 = vmul.f32 %v10879_v51, %v10867_v45  ;;  %v5502_v17 = vpop.permute.xlu1 %5501 }
0x24b7   : > { %9779 = vmatpush3.msk.msra.mxu0 %vm503_vm2, %v5502_v17 }
0x24b8   : > { %9781 = vmatmul.mubr.msk.f32.vlgmr.msra.gmra.mrb[104].mxu0 %vm491_vm0, %v5491_v24  ;;  %10344 = vmatprep.subr.bf16.mxu0 %v11091_v30 }
0x24b9   : > { %v10881_v53 = vpop.eup %10880  ;;  %9783 = vmatprep.mubr.msk.f32.mxu0 %vm11092_vm3, %v11093_v32  ;;  %10346 = vmatpush3.bf16.msra.mxu0 %v10345_v12 }
0x24ba   : > { %v5492_v52 = vmul.f32 %v10881_v53, %v10869_v41  ;;  %10350 = vmatprep.subr.bf16.mxu0 %v11091_v30  ;;  %v5601_v23 = vpop.permute.xlu1 %5600  ;;  %v5884_v53 = vrot.slane %v12701_v42, %v12264_v43 }
0x24bc   : > { %9784 = vmatmul.mubr.msk.f32.gmra.mrb[106].mxu0 %vm491_vm0, %v5492_v52 }
0x24bd   : > { %v10883_v31 = vpop.eup %10882  ;;  %9786 = vmatprep.mubr.msk.f32.mxu0 %vm11092_vm3, %v11093_v32 }
0x24be   : > { %v5493_v28 = vmul.f32 %v10883_v31, %v10871_v34 }
0x24c0   : > { %9787 = vmatmul.mubr.msk.f32.gmra.mrb[108].mxu0 %vm491_vm0, %v5493_v28 }
0x24c1   : > { %9808 = vmatprep.mubr.msk.f32.mxu0 %vm11092_vm3, %v11093_v32 }
0x2517   : > { %v5478_v7 = vpop.xlane.xlu0 %5477 }
0x2518   : > { %10884 = vrcp.f32 %v5478_v7 }
0x251b   : > { %v5481_v44 = vpop.xlane.xlu0 %5480 }
0x251c   : > { %10886 = vrcp.f32 %v5481_v44 }
0x251f   : > { %v5484_v40 = vpop.xlane.xlu0 %5483 }
0x2520   : > { %10888 = vrcp.f32 %v5484_v40 }
0x2522   : > { %v10885_v45 = vpop.eup %10884 }
0x2523   : > { %v10625_v29 = vpop.permute.xlu0 %10624  ;;  %v5494_v41 = vmul.f32 %v10885_v45, %v10873_v9 }
0x2524   : > { %v10627_v16 = vunpack.i.h.bf16 %v10625_v29  ;;  %v10626_v35 = vunpack.i.l.bf16 %v10625_v29 }
0x2526   : > { %v10342_v50 = vpack.c.bf16 %v10627_v16, %v10626_v35  ;;  %v10887_v22 = vpop.eup %10886 }
0x2527   : > { %v5495_v34 = vmul.f32 %v10887_v22, %v10875_v21 }
0x2528   : > { %10343 = vmatpush3.bf16.msra.mxu1 %v10342_v50 }
0x2529   : > { %9793 = vmatprep.subr.mxu1 %v11093_v32 }
0x252a   : > { %v10889_v36 = vpop.eup %10888 }
0x252b   : > { %v5496_v63 = vmul.f32 %v10889_v36, %v10877_v48 }
0x252c   : > { %9794 = vmatpush3.msk.msra.mxu1 %vm503_vm2, %v5601_v23 }
0x252d   : > { %9796 = vmatmul.mubr.msk.f32.vlgmr.msra.gmra.mrb[112].mxu1 %vm491_vm0, %v5494_v41  ;;  %10347 = vmatprep.subr.bf16.mxu1 %v11091_v30 }
0x252e   : > { %9798 = vmatprep.mubr.msk.f32.mxu1 %vm11092_vm3, %v11093_v32  ;;  %10349 = vmatpush3.bf16.msra.mxu1 %v10348_v59 }
0x252f   : > { %10356 = vmatprep.subr.bf16.mxu1 %v11091_v30 }
0x2531   : > { %9799 = vmatmul.mubr.msk.f32.gmra.mrb[114].mxu1 %vm491_vm0, %v5495_v34 }
0x2532   : > { %9801 = vmatprep.mubr.msk.f32.mxu1 %vm11092_vm3, %v11093_v32 }
0x2535   : > { %9802 = vmatmul.mubr.msk.f32.gmra.mrb[116].mxu1 %vm491_vm0, %v5496_v63 }
0x2536   : > { %9821 = vmatprep.mubr.msk.f32.mxu1 %vm11092_vm3, %v11093_v32 }
0x258b   : > { %v5582_v55 = vpop.f32.mrb[104].mxu0 }
0x258c   : > { %v9782_v14 = vpop.f32.mrb[105].mxu0  ;;  %9822 = vmatmul.mubr.msk.f32.vlgmr.msra.gmra.mrb[118].mxu1 %vm564_vm4, %v5582_v55 }
0x258d   : > { %9824 = vmatprep.mubr.msk.f32.mxu1 %vm11092_vm3, %v11093_v32 }
0x258f   : > { %v5587_v60 = vpop.f32.mrb[106].mxu0 }
0x2590   : > { %v9785_v2 = vpop.f32.mrb[107].mxu0  ;;  %9825 = vmatmul.mubr.msk.f32.gmra.mrb[120].mxu1 %vm564_vm4, %v5587_v60 }
0x2591   : > { %9827 = vmatprep.mubr.msk.f32.mxu1 %vm11092_vm3, %v11093_v32 }
0x2593   : > { %v5592_v62 = vpop.f32.mrb[108].mxu0 }
0x2594   : > { %v9788_v3 = vpop.f32.mrb[109].mxu0  ;;  %9828 = vmatmul.mubr.msk.f32.gmra.mrb[122].mxu1 %vm564_vm4, %v5592_v62 }
0x2595   : > { %9863 = vmatprep.mubr.msk.f32.mxu1 %vm11092_vm3, %v11093_v32  ;;  %v8717_v3 = vld [vmem:[%s13558_s11 + $0x40] sm:$0xff] }
0x2600   : > { %v5681_v6 = vpop.f32.mrb[112].mxu1 }
0x2601   : > { %v9797_v46 = vpop.f32.mrb[113].mxu1  ;;  %9809 = vmatmul.mubr.msk.f32.vlgmr.msra.gmra.mrb[110].mxu0 %vm564_vm4, %v5681_v6  ;;  %v8718_v6 = vld [vmem:[%s13558_s11 + $0x48] sm:$0xff] }
0x2602   : > { %9811 = vmatprep.mubr.msk.f32.mxu0 %vm11092_vm3, %v11093_v32  ;;  %v10351_v46 = vpack.c.bf16 %v8718_v6, %v8717_v3 }
0x2604   : > { %v5686_v9 = vpop.f32.mrb[114].mxu1  ;;  %10352 = vmatpush3.bf16.msra.mxu0 %v10351_v46 }
0x2605   : > { %v9800_v47 = vpop.f32.mrb[115].mxu1  ;;  %9812 = vmatmul.mubr.msk.f32.gmra.mrb[112].mxu0 %vm564_vm4, %v5686_v9  ;;  %v8719_v9 = vld [vmem:[%s13558_s11 + $0x50] sm:$0xff]  ;;  %10353 = vmatprep.subr.bf16.mxu0 %v11091_v30 }
0x2606   : > { %9814 = vmatprep.mubr.msk.f32.mxu0 %vm11092_vm3, %v11093_v32  ;;  %v8720_v47 = vld [vmem:[%s13558_s11 + $0x58] sm:$0xff] }
0x2608   : > { %v5691_v21 = vpop.f32.mrb[116].mxu1 }
0x2609   : > { %v9803_v13 = vpop.f32.mrb[117].mxu1  ;;  %9815 = vmatmul.mubr.msk.f32.gmra.mrb[114].mxu0 %vm564_vm4, %v5691_v21  ;;  %v10354_v21 = vpack.c.bf16 %v8720_v47, %v8719_v9 }
0x260a   : > { %9838 = vmatprep.mubr.msk.f32.mxu0 %vm11092_vm3, %v11093_v32 }
0x260b   : > { %10355 = vmatpush3.bf16.msra.mxu0 %v10354_v21 }
0x260c   : > { %10368 = vmatprep.subr.bf16.mxu0 %v11091_v30 }
0x265f   : > { %v5864_v48 = vpop.f32.mrb[118].mxu1 }
0x2660   : > { %v9823_v58 = vpop.f32.mrb[119].mxu1 }
0x2663   : > { %v5869_v25 = vpop.f32.mrb[120].mxu1 }
0x2664   : > { %v9826_v26 = vpop.f32.mrb[121].mxu1 }
0x2667   : > { %v5874_v39 = vpop.f32.mrb[122].mxu1 }
0x2668   : > { %v9829_v51 = vpop.f32.mrb[123].mxu1 }
0x26d4   : > { %v5775_v24 = vpop.f32.mrb[110].mxu0 }
0x26d5   : > { %v5865_v17 = vadd.f32 %v5864_v48, %v5775_v24  ;;  %v9810_v52 = vpop.f32.mrb[111].mxu0 }
0x26d7   : > { %v5878_v31 = vadd.f32 %v5865_v17, %v12664_v11 }
0x26d8   : > { %v5780_v28 = vpop.f32.mrb[112].mxu0 }
0x26d9   : > { %v12861_v33 = vadd.f32 %v5884_v53, %v5878_v31  ;;  %v5870_v61 = vadd.f32 %v5869_v25, %v5780_v28  ;;  %v9813_v12 = vpop.f32.mrb[113].mxu0  ;;  %v5937_v31 = vrot.slane %v12701_v42, %v12307_v57 }
0x26db   : > { %v5879_v7 = vadd.f32 %v5870_v61, %v12669_v20  ;;  %v5888_v44 = vsel %vm2648_vm15, %v12861_v33, 0.0 }
0x26dc   : > { %v5785_v40 = vpop.f32.mrb[114].mxu0  ;;  %5889 = vadd.xlane.f32.xlu1 %v5888_v44 }
0x26dd   : > { %v12866_v29 = vadd.f32 %v5884_v53, %v5879_v7  ;;  %v5875_v16 = vadd.f32 %v5874_v39, %v5785_v40  ;;  %v9816_v35 = vpop.f32.mrb[115].mxu0 }
0x26df   : > { %v5880_v50 = vadd.f32 %v5875_v16, %v12674_v8  ;;  %v5891_v11 = vsel %vm2648_vm15, %v12866_v29, 0.0 }
0x26e0   : > { %5892 = vadd.xlane.f32.xlu0 %v5891_v11 }
0x26e1   : > { %v12871_v5 = vadd.f32 %v5884_v53, %v5880_v50  ;;  %v5930_v53 = vrot.slane %v12701_v42, %v12304_v49 }
0x26e3   : > { %v5894_v20 = vsel %vm2825_vm14, %v12871_v5, 0.0 }
0x26e4   : > { %5895 = vadd.xlane.f32.xlu0 %v5894_v20 }
0x2769   : > { %v5890_v27 = vpop.xlane.xlu1 %5889 }
0x276a   : > { %v5897_v45 = vmul.f32 0.03125, %v5890_v27  ;;  %v8724_v27 = vld [vmem:[%s13559_s12 + $0x80] sm:$0xff] }
0x276c   : > { %v5900_v59 = vsub.f32 %v12861_v33, %v5897_v45  ;;  %v8725_v45 = vld [vmem:[%s13559_s12 + $0x88] sm:$0xff] }
0x276d   : > { %v5893_v23 = vpop.xlane.xlu0 %5892 }
0x276e   : > { %v5898_v41 = vmul.f32 0.03125, %v5893_v23  ;;  %v5903_v22 = vmul.f32 %v5900_v59, %v5900_v59  ;;  %v8726_v23 = vld [vmem:[%s13559_s12 + $0x90] sm:$0xff] }
0x2770   : > { %v5901_v34 = vsub.f32 %v12866_v29, %v5898_v41  ;;  %v5906_v8 = vsel %vm2648_vm15, %v5903_v22, 0.0  ;;  %v8727_v41 = vld [vmem:[%s13559_s12 + $0x98] sm:$0xff] }
0x2771   : > { %5907 = vadd.xlane.f32.xlu0 %v5906_v8  ;;  %v5896_v36 = vpop.xlane.xlu0 %5895  ;;  %v10360_v22 = vpack.c.bf16 %v8727_v41, %v8726_v23  ;;  %v8729_v8 = vld [vmem:[%s13559_s12 + $0xa8] sm:$0xff] }
0x2772   : > { %v5899_v63 = vmul.f32 0.03125, %v5896_v36  ;;  %v5904_v55 = vmul.f32 %v5901_v34, %v5901_v34 }
0x2774   : > { %v5902_v14 = vsub.f32 %v12871_v5, %v5899_v63  ;;  %v5909_v60 = vsel %vm2648_vm15, %v5904_v55, 0.0  ;;  %v8730_v63 = vld [vmem:[%s13559_s12 + $0xb0] sm:$0xff]  ;;  %v8731_v55 = vld [vmem:[%s13559_s12 + $0xb8] sm:$0xff] }
0x2775   : > { %5910 = vadd.xlane.f32.xlu1 %v5909_v60  ;;  %v5949_v60 = vrot.slane %v12701_v42, %v12351_v0 }
0x2776   : > { %v5905_v2 = vmul.f32 %v5902_v14, %v5902_v14 }
0x2778   : > { %v5912_v62 = vsel %vm2825_vm14, %v5905_v2, 0.0 }
0x2779   : > { %5913 = vadd.xlane.f32.xlu0 %v5912_v62 }
0x27fe   : > { %v5908_v13 = vpop.xlane.xlu0 %5907 }
0x27ff   : > { %v5915_v48 = vmul.f32 0.03125, %v5908_v13 }
0x2801   : > { %v5918_v58 = vadd.f32 1e-05, %v5915_v48 }
0x2802   : > { %v5911_v25 = vpop.xlane.xlu1 %5910 }
0x2803   : > { %10890 = vrsqrt.f32 %v5918_v58  ;;  %v5916_v26 = vmul.f32 0.03125, %v5911_v25 }
0x2805   : > { %v5919_v39 = vadd.f32 1e-05, %v5916_v26 }
0x2806   : > { %v5914_v51 = vpop.xlane.xlu0 %5913 }
0x2807   : > { %10892 = vrsqrt.f32 %v5919_v39  ;;  %v5917_v24 = vmul.f32 0.03125, %v5914_v51 }
0x2809   : > { %v5920_v17 = vadd.f32 1e-05, %v5917_v24 }
0x280b   : > { %10894 = vrsqrt.f32 %v5920_v17 }
0x280d   : > { %v10891_v52 = vpop.eup %10890 }
0x280e   : > { %v5924_v28 = vmul.f32 %v10891_v52, %v5900_v59  ;;  %v10357_v59 = vpack.c.bf16 %v8725_v45, %v8724_v27 }
0x2810   : > { %v5931_v61 = vmul.f32 %v5930_v53, %v5924_v28  ;;  %10358 = vmatpush3.bf16.msra.mxu1 %v10357_v59 }
0x2811   : > { %v10893_v12 = vpop.eup %10892  ;;  %10359 = vmatprep.subr.bf16.mxu1 %v11091_v30 }
0x2812   : > { %v5938_v7 = vadd.f32 %v5937_v31, %v5931_v61  ;;  %v5925_v44 = vmul.f32 %v10893_v12, %v5901_v34  ;;  %v8728_v34 = vld [vmem:[%s13559_s12 + $0xa0] sm:$0xff] }
0x2813   : > { %v10363_v36 = vpack.c.bf16 %v8729_v8, %v8728_v34 }
0x2814   : > { %9839 = vmatmul.mubr.msk.f32.vlgmr.msra.gmra.mrb[116].mxu0 %vm2648_vm15, %v5938_v7  ;;  %v5932_v40 = vmul.f32 %v5930_v53, %v5925_v44  ;;  %10361 = vmatpush3.bf16.msra.mxu1 %v10360_v22  ;;  %v6170_v22 = vrot.slane %v12701_v42, %v12365_v1 }
0x2815   : > { %v10895_v16 = vpop.eup %10894  ;;  %9841 = vmatprep.mubr.msk.f32.mxu0 %vm11092_vm3, %v11093_v32  ;;  %10362 = vmatprep.subr.bf16.mxu1 %v11091_v30 }
0x2816   : > { %v5939_v35 = vadd.f32 %v5937_v31, %v5932_v40  ;;  %v5926_v50 = vmul.f32 %v10895_v16, %v5902_v14  ;;  %v10366_v14 = vpack.c.bf16 %v8731_v55, %v8730_v63 }
0x2818   : > { %9842 = vmatmul.mubr.msk.f32.gmra.mrb[118].mxu0 %vm2648_vm15, %v5939_v35  ;;  %v5933_v11 = vmul.f32 %v5930_v53, %v5926_v50  ;;  %10364 = vmatpush3.bf16.msra.mxu1 %v10363_v36 }
0x2819   : > { %9844 = vmatprep.mubr.msk.f32.mxu0 %vm11092_vm3, %v11093_v32  ;;  %10365 = vmatprep.subr.bf16.mxu1 %v11091_v30 }
0x281a   : > { %v5940_v20 = vadd.f32 %v5937_v31, %v5933_v11 }
0x281c   : > { %9845 = vmatmul.mubr.msk.f32.gmra.mrb[120].mxu0 %vm2648_vm15, %v5940_v20  ;;  %10367 = vmatpush3.bf16.msra.mxu1 %v10366_v14 }
0x281d   : > { %9880 = vmatprep.mubr.msk.f32.mxu0 %vm11092_vm3, %v11093_v32  ;;  %10374 = vmatprep.subr.bf16.mxu1 %v11091_v30 }
0x28e7   : > { %v6025_v2 = vpop.f32.mrb[116].mxu0 }
0x28e8   : > { %v6026_v62 = vadd.f32 %v6025_v2, %v5949_v60  ;;  %v9840_v3 = vpop.f32.mrb[117].mxu0 }
0x28ea   : > { %v6039_v6 = vmul.f32 %v6026_v62, %v6026_v62 }
0x28eb   : > { %v6030_v46 = vpop.f32.mrb[118].mxu0 }
0x28ec   : > { %v6042_v9 = vmul.f32 %v6039_v6, %v6026_v62  ;;  %v6031_v47 = vadd.f32 %v6030_v46, %v5949_v60  ;;  %v9843_v21 = vpop.f32.mrb[119].mxu0 }
0x28ee   : > { %v6045_v13 = vmul.f32 0.044715, %v6042_v9  ;;  %v6040_v48 = vmul.f32 %v6031_v47, %v6031_v47 }
0x28ef   : > { %v6035_v58 = vpop.f32.mrb[120].mxu0 }
0x28f0   : > { %v6048_v25 = vadd.f32 %v6045_v13, %v6026_v62  ;;  %v6043_v26 = vmul.f32 %v6040_v48, %v6031_v47  ;;  %v6036_v39 = vadd.f32 %v6035_v58, %v5949_v60  ;;  %v9846_v51 = vpop.f32.mrb[121].mxu0 }
0x28f2   : > { %v6051_v24 = vmul.f32 0.7978846, %v6048_v25  ;;  %v6046_v17 = vmul.f32 0.044715, %v6043_v26  ;;  %v6041_v53 = vmul.f32 %v6036_v39, %v6036_v39 }
0x28f4   : > { %10896 = vtanh.f32 %v6051_v24  ;;  %v6049_v52 = vadd.f32 %v6046_v17, %v6031_v47  ;;  %v6044_v31 = vmul.f32 %v6041_v53, %v6036_v39 }
0x28f6   : > { %v6052_v28 = vmul.f32 0.7978846, %v6049_v52  ;;  %v6047_v61 = vmul.f32 0.044715, %v6044_v31  ;;  %v8736_v31 = vld [vmem:[%s13556_s9 + $0x60] sm:$0xff] }
0x28f8   : > { %10898 = vtanh.f32 %v6052_v28  ;;  %v6050_v12 = vadd.f32 %v6047_v61, %v6036_v39  ;;  %v8737_v28 = vld [vmem:[%s13556_s9 + $0x68] sm:$0xff] }
0x28f9   : > { %v10369_v61 = vpack.c.bf16 %v8737_v28, %v8736_v31 }
0x28fa   : > { %v6053_v7 = vmul.f32 0.7978846, %v6050_v12  ;;  %v8738_v12 = vld [vmem:[%s13556_s9 + $0x70] sm:$0xff] }
0x28fb   : > { %10370 = vmatpush3.bf16.msra.mxu0 %v10369_v61 }
0x28fc   : > { %10900 = vtanh.f32 %v6053_v7  ;;  %v8739_v7 = vld [vmem:[%s13556_s9 + $0x78] sm:$0xff]  ;;  %10371 = vmatprep.subr.bf16.mxu0 %v11091_v30 }
0x28fe   : > { %v10897_v44 = vpop.eup %10896 }
0x28ff   : > { %v6057_v40 = vadd.f32 1.0, %v10897_v44  ;;  %v10372_v44 = vpack.c.bf16 %v8739_v7, %v8738_v12 }
0x2901   : > { %v6060_v16 = vmul.f32 0.5, %v6057_v40  ;;  %10373 = vmatpush3.bf16.msra.mxu0 %v10372_v44 }
0x2902   : > { %v10899_v35 = vpop.eup %10898  ;;  %10378 = vmatprep.subr.bf16.mxu0 %v11091_v30 }
0x2903   : > { %v6063_v50 = vmul.f32 %v6060_v16, %v6026_v62  ;;  %v6058_v11 = vadd.f32 1.0, %v10899_v35 }
0x2905   : > { %9864 = vmatmul.mubr.msk.f32.vlgmr.msra.gmra.mrb[124].mxu1 %vm2652_vm7, %v6063_v50  ;;  %v6061_v20 = vmul.f32 0.5, %v6058_v11 }
0x2906   : > { %v10901_v27 = vpop.eup %10900  ;;  %9866 = vmatprep.mubr.msk.f32.mxu1 %vm11092_vm3, %v11093_v32 }
0x2907   : > { %v6064_v45 = vmul.f32 %v6061_v20, %v6031_v47  ;;  %v6059_v59 = vadd.f32 1.0, %v10901_v27 }
0x2909   : > { %9867 = vmatmul.mubr.msk.f32.gmra.mrb[126].mxu1 %vm2652_vm7, %v6064_v45  ;;  %v6062_v23 = vmul.f32 0.5, %v6059_v59  ;;  %v12987_v59 = vld [vmem:[%s13560_s13 + $0x18] sm:$0xff] }
0x290a   : > { %9869 = vmatprep.mubr.msk.f32.mxu1 %vm11092_vm3, %v11093_v32 }
0x290b   : > { %v6065_v41 = vmul.f32 %v6062_v23, %v6036_v39 }
0x290d   : > { %9870 = vmatmul.mubr.msk.f32.gmra.mrb[128].mxu1 %vm2652_vm7, %v6065_v41  ;;  %v6218_v41 = vrot.slane %v12987_v59, %v12089_v38 }
0x290e   : > { %9895 = vmatprep.mubr.msk.f32.mxu1 %vm11092_vm3, %v11093_v32 }
0x29d8   : > { %v6150_v34 = vpop.f32.mrb[124].mxu1 }
0x29d9   : > { %v6164_v8 = vadd.f32 %v6150_v34, %v12861_v33  ;;  %v9865_v36 = vpop.f32.mrb[125].mxu1  ;;  %v6225_v34 = vrot.slane %v12987_v59, %v12097_v18 }
0x29db   : > { %v12950_v63 = vadd.f32 %v6170_v22, %v6164_v8 }
0x29dc   : > { %v6155_v55 = vpop.f32.mrb[126].mxu1 }
0x29dd   : > { %v6165_v14 = vadd.f32 %v6155_v55, %v12866_v29  ;;  %v9868_v60 = vpop.f32.mrb[127].mxu1  ;;  %v6176_v2 = vsel %vm2648_vm15, %v12950_v63, 0.0 }
0x29de   : > { %6177 = vadd.xlane.f32.xlu1 %v6176_v2 }
0x29df   : > { %v12955_v62 = vadd.f32 %v6170_v22, %v6165_v14 }
0x29e0   : > { %v6160_v3 = vpop.f32.mrb[128].mxu1 }
0x29e1   : > { %v6166_v6 = vadd.f32 %v6160_v3, %v12871_v5  ;;  %v9871_v42 = vpop.f32.mrb[129].mxu1  ;;  %v6179_v33 = vsel %vm2648_vm15, %v12955_v62, 0.0 }
0x29e2   : > { %6180 = vadd.xlane.f32.xlu0 %v6179_v33 }
0x29e3   : > { %v12960_v46 = vadd.f32 %v6170_v22, %v6166_v6 }
0x29e5   : > { %v6182_v29 = vsel %vm2825_vm14, %v12960_v46, 0.0 }
0x29e6   : > { %6183 = vadd.xlane.f32.xlu1 %v6182_v29 }
0x2a6b   : > { %v6178_v9 = vpop.xlane.xlu1 %6177 }
0x2a6c   : > { %v6185_v47 = vmul.f32 0.03125, %v6178_v9 }
0x2a6e   : > { %v6188_v21 = vsub.f32 %v12950_v63, %v6185_v47  ;;  %v6237_v47 = vrot.slane %v12987_v59, %v12113_v4 }
0x2a6f   : > { %v6181_v13 = vpop.xlane.xlu0 %6180 }
0x2a70   : > { %v6186_v48 = vmul.f32 0.03125, %v6181_v13  ;;  %v6191_v58 = vmul.f32 %v6188_v21, %v6188_v21 }
0x2a72   : > { %v6189_v5 = vsub.f32 %v12955_v62, %v6186_v48  ;;  %v6194_v25 = vsel %vm2648_vm15, %v6191_v58, 0.0 }
0x2a73   : > { %6195 = vadd.xlane.f32.xlu0 %v6194_v25  ;;  %v6184_v26 = vpop.xlane.xlu1 %6183 }
0x2a74   : > { %v6187_v39 = vmul.f32 0.03125, %v6184_v26  ;;  %v6192_v51 = vmul.f32 %v6189_v5, %v6189_v5 }
0x2a76   : > { %v6190_v24 = vsub.f32 %v12960_v46, %v6187_v39  ;;  %v6197_v17 = vsel %vm2648_vm15, %v6192_v51, 0.0 }
0x2a77   : > { %6198 = vadd.xlane.f32.xlu1 %v6197_v17 }
0x2a78   : > { %v6193_v53 = vmul.f32 %v6190_v24, %v6190_v24 }
0x2a7a   : > { %v6200_v52 = vsel %vm2825_vm14, %v6193_v53, 0.0 }
0x2a7b   : > { %6201 = vadd.xlane.f32.xlu0 %v6200_v52 }
0x2b00   : > { %v6196_v40 = vpop.xlane.xlu0 %6195 }
0x2b01   : > { %v6203_v16 = vmul.f32 0.03125, %v6196_v40 }
0x2b03   : > { %v6206_v35 = vadd.f32 1e-05, %v6203_v16 }
0x2b04   : > { %v6199_v50 = vpop.xlane.xlu1 %6198 }
0x2b05   : > { %10902 = vrsqrt.f32 %v6206_v35  ;;  %v6204_v11 = vmul.f32 0.03125, %v6199_v50 }
0x2b07   : > { %v6207_v20 = vadd.f32 1e-05, %v6204_v11 }
0x2b08   : > { %v6202_v27 = vpop.xlane.xlu0 %6201 }
0x2b09   : > { %10904 = vrsqrt.f32 %v6207_v20  ;;  %v6205_v45 = vmul.f32 0.03125, %v6202_v27 }
0x2b0b   : > { %v6208_v23 = vadd.f32 1e-05, %v6205_v45 }
0x2b0d   : > { %10906 = vrsqrt.f32 %v6208_v23 }
0x2b0f   : > { %v10903_v22 = vpop.eup %10902 }
0x2b10   : > { %v6212_v8 = vmul.f32 %v10903_v22, %v6188_v21 }
0x2b12   : > { %v6219_v36 = vmul.f32 %v6218_v41, %v6212_v8 }
0x2b13   : > { %v10905_v55 = vpop.eup %10904 }
0x2b14   : > { %v6226_v14 = vadd.f32 %v6225_v34, %v6219_v36  ;;  %v6213_v60 = vmul.f32 %v10905_v55, %v6189_v5 }
0x2b16   : > { %9881 = vmatmul.mubr.msk.f32.vlgmr.msra.gmra.mrb[122].mxu0 %vm2648_vm15, %v6226_v14  ;;  %v6220_v2 = vmul.f32 %v6218_v41, %v6213_v60 }
0x2b17   : > { %v10907_v3 = vpop.eup %10906  ;;  %9883 = vmatprep.mubr.msk.f32.mxu0 %vm11092_vm3, %v11093_v32 }
0x2b18   : > { %v6227_v6 = vadd.f32 %v6225_v34, %v6220_v2  ;;  %v6214_v42 = vmul.f32 %v10907_v3, %v6190_v24 }
0x2b1a   : > { %9884 = vmatmul.mubr.msk.f32.gmra.mrb[124].mxu0 %vm2648_vm15, %v6227_v6  ;;  %v6221_v33 = vmul.f32 %v6218_v41, %v6214_v42 }
0x2b1b   : > { %9886 = vmatprep.mubr.msk.f32.mxu0 %vm11092_vm3, %v11093_v32 }
0x2b1c   : > { %v6228_v29 = vadd.f32 %v6225_v34, %v6221_v33 }
0x2b1e   : > { %9887 = vmatmul.mubr.msk.f32.gmra.mrb[126].mxu0 %vm2648_vm15, %v6228_v29 }
0x2b1f   : > { %9910 = vmatprep.mubr.msk.f32.mxu0 %vm11092_vm3, %v11093_v32 }
0x2be9   : > { %v6313_v9 = vpop.f32.mrb[122].mxu0 }
0x2bea   : > { %v9882_v21 = vpop.f32.mrb[123].mxu0  ;;  %v6314_v48 = vadd.f32 %v6313_v9, %v6237_v47 }
0x2bec   : > { %v6327_v12 = vmul.f32 0.25, %v6314_v48 }
0x2bed   : > { %v6318_v13 = vpop.f32.mrb[124].mxu0 }
0x2bee   : > { %v6319_v58 = vadd.f32 %v6318_v13, %v6237_v47  ;;  %v9885_v5 = vpop.f32.mrb[125].mxu0 }
0x2bf0   : > { %v13004_v25 = vpack.i.bf16 %v6319_v58, %v6314_v48  ;;  %v6328_v28 = vmul.f32 0.25, %v6319_v58 }
0x2bf1   : > { %v6323_v26 = vpop.f32.mrb[126].mxu0 }
0x2bf2   : > { %v13006_v39 = vadd.f32 %v6323_v26, %v6237_v47  ;;  %10629 = vrot.lane.b32.xlu1 %v13004_v25, %s11098_s25  ;;  %v9888_v51 = vpop.f32.mrb[127].mxu0 }
0x2bf4   : > { %6346 = vrot.lane.b32.xlu0 %v13006_v39, %s11098_s25  ;;  %v6329_v7 = vmul.f32 0.25, %v13006_v39 }
0x2bf6   : > { %10634 = vrot.lane.b32.xlu1 %v13004_v25, %s11097_s28 }
0x2c64   : > { %v13014_v24 = vpop.permute.xlu1 %10629 }
0x2c65   : > { %10639 = vrot.lane.b32.xlu1 %v13014_v24, %s11097_s28 }
0x2c66   : > { %v13016_v17 = vpop.permute.xlu0 %6346 }
0x2c67   : > { %6450 = vrot.lane.b32.xlu0 %v13016_v17, %s11097_s28 }
0x2c68   : > { %v10635_v53 = vpop.permute.xlu1 %10634 }
0x2c69   : > { %v10637_v52 = vunpack.i.h.bf16 %v10635_v53  ;;  %v10636_v31 = vunpack.i.l.bf16 %v10635_v53  ;;  %6352 = vrot.lane.b32.xlu1 %v13006_v39, %s11097_s28 }
0x2c6b   : > { %v10375_v61 = vpack.c.bf16 %v10637_v52, %v10636_v31  ;;  %6335 = vrot.lane.b32.xlu0 %v6328_v28, %s11098_s25 }
0x2c6d   : > { %10377 = vmatpush3.bf16.xpose.msk.msra.mxu1 %vm12142_vm12, %v10375_v61  ;;  %6333 = vrot.lane.b32.xlu1 %v6327_v12, %s11098_s25 }
0x2c6e   : > { %9893 = vmatprep.subr.mxu1 %v11093_v32 }
0x2c71   : > { %6337 = vrot.lane.b32.xlu1 %v6329_v7, %s11098_s25 }
0x2cd7   : > { %v10640_v44 = vpop.permute.xlu1 %10639 }
0x2cd8   : > { %v10642_v40 = vunpack.i.h.bf16 %v10640_v44  ;;  %v10641_v16 = vunpack.i.l.bf16 %v10640_v44 }
0x2cd9   : > { %v6451_v11 = vpop.permute.xlu0 %6450 }
0x2cda   : > { %v10379_v35 = vpack.c.bf16 %v10642_v40, %v10641_v16 }
0x2cdb   : > { %v6353_v50 = vpop.permute.xlu1 %6352 }
0x2cdc   : > { %9894 = vmatpush3.xpose.msk.msra.mxu1 %vm564_vm4, %v6353_v50  ;;  %10381 = vmatpush3.bf16.xpose.msk.msra.mxu0 %vm12142_vm12, %v10379_v35 }
0x2cdd   : > { %9908 = vmatprep.subr.mxu0 %v11093_v32  ;;  %10382 = vmatprep.subr.bf16.mxu1 %v11091_v30  ;;  %v6336_v27 = vpop.permute.xlu0 %6335 }
0x2cdf   : > { %9896 = vmatmul.mubr.msk.f32.vlgmr.msra.gmra.mrb[130].mxu1 %vm564_vm4, %v6327_v12  ;;  %v6334_v20 = vpop.permute.xlu1 %6333 }
0x2ce0   : > { %9898 = vmatprep.mubr.msk.f32.mxu1 %vm11092_vm3, %v11093_v32 }
0x2ce3   : > { %9899 = vmatmul.mubr.msk.f32.gmra.mrb[132].mxu1 %vm564_vm4, %v6328_v28  ;;  %v6338_v45 = vpop.permute.xlu1 %6337 }
0x2ce4   : > { %9909 = vmatpush3.xpose.msk.msra.mxu0 %vm564_vm4, %v6451_v11  ;;  %9901 = vmatprep.mubr.msk.f32.mxu1 %vm11092_vm3, %v11093_v32 }
0x2ce5   : > { %10385 = vmatprep.subr.bf16.mxu0 %v11091_v30 }
0x2ce7   : > { %9902 = vmatmul.mubr.msk.f32.gmra.mrb[134].mxu1 %vm564_vm4, %v6329_v7  ;;  %9911 = vmatmul.mubr.msk.f32.vlgmr.msra.gmra.mrb[128].mxu0 %vm564_vm4, %v6334_v20 }
0x2ce8   : > { %9913 = vmatprep.mubr.msk.f32.mxu0 %vm11092_vm3, %v11093_v32  ;;  %9925 = vmatprep.mubr.msk.f32.mxu1 %vm11092_vm3, %v11093_v32 }
0x2ceb   : > { %9914 = vmatmul.mubr.msk.f32.gmra.mrb[130].mxu0 %vm564_vm4, %v6336_v27 }
0x2cec   : > { %9916 = vmatprep.mubr.msk.f32.mxu0 %vm11092_vm3, %v11093_v32 }
0x2cef   : > { %9917 = vmatmul.mubr.msk.f32.gmra.mrb[132].mxu0 %vm564_vm4, %v6338_v45 }
0x2cf0   : > { %9940 = vmatprep.mubr.msk.f32.mxu0 %vm11092_vm3, %v11093_v32 }
0x2db2   : > { %v6432_v23 = vpop.f32.mrb[130].mxu1 }
0x2db3   : > { %v6544_v41 = vsel %vm11819_vm8, %v6432_v23, -1e+30  ;;  %v9897_v22 = vpop.f32.mrb[131].mxu1 }
0x2db4   : > { %v6550_v34 = vsel %vm491_vm0, %v6544_v41, -inf }
0x2db5   : > { %6551 = vmax.xlane.f32.xlu0 %v6550_v34 }
0x2db6   : > { %v6437_v8 = vpop.f32.mrb[132].mxu1 }
0x2db7   : > { %v6545_v36 = vsel %vm11819_vm8, %v6437_v8, -1e+30  ;;  %v9900_v55 = vpop.f32.mrb[133].mxu1 }
0x2db8   : > { %v6553_v14 = vsel %vm491_vm0, %v6545_v36, -inf }
0x2db9   : > { %6554 = vmax.xlane.f32.xlu0 %v6553_v14 }
0x2dba   : > { %v6442_v60 = vpop.f32.mrb[134].mxu1  ;;  %v6530_v2 = vpop.f32.mrb[128].mxu0 }
0x2dbb   : > { %v6547_v3 = vsel %vm11819_vm8, %v6530_v2, -1e+30  ;;  %v9903_v6 = vpop.f32.mrb[135].mxu1  ;;  %v9912_v42 = vpop.f32.mrb[129].mxu0  ;;  %v6546_v13 = vsel %vm11819_vm8, %v6442_v60, -1e+30 }
0x2dbc   : > { %v6559_v33 = vsel %vm491_vm0, %v6547_v3, -inf  ;;  %v6556_v26 = vsel %vm498_vm1, %v6546_v13, -inf }
0x2dbd   : > { %6560 = vmax.xlane.f32.xlu1 %v6559_v33 }
0x2dbe   : > { %v6535_v29 = vpop.f32.mrb[130].mxu0 }
0x2dbf   : > { %v6548_v9 = vsel %vm11819_vm8, %v6535_v29, -1e+30  ;;  %v9915_v47 = vpop.f32.mrb[131].mxu0 }
0x2dc0   : > { %v6562_v21 = vsel %vm491_vm0, %v6548_v9, -inf }
0x2dc1   : > { %6563 = vmax.xlane.f32.xlu0 %v6562_v21 }
0x2dc2   : > { %v6540_v48 = vpop.f32.mrb[132].mxu0 }
0x2dc3   : > { %v6549_v58 = vsel %vm11819_vm8, %v6540_v48, -1e+30  ;;  %v9918_v5 = vpop.f32.mrb[133].mxu0 }
0x2dc4   : > { %v6565_v51 = vsel %vm498_vm1, %v6549_v58, -inf }
0x2dc5   : > { %6566 = vmax.xlane.f32.xlu1 %v6565_v51  ;;  %6557 = vmax.xlane.f32.xlu0 %v6556_v26 }
0x2dd6   : > { %10649 = vrot.lane.b32.xlu1 %v13014_v24, %s11095_s26 }
0x2dda   : > { %6620 = vrot.lane.b32.xlu1 %v13006_v39, %s11095_s26 }
0x2e42   : > { %v6552_v53 = vpop.xlane.xlu0 %6551 }
0x2e43   : > { %v6568_v52 = vsub.f32 %v6544_v41, %v6552_v53 }
0x2e45   : > { %v6574_v31 = vmul.f32 1.442695, %v6568_v52 }
0x2e46   : > { %v6555_v28 = vpop.xlane.xlu0 %6554 }
0x2e47   : > { %10908 = vpow2.f32 %v6574_v31  ;;  %v6569_v61 = vsub.f32 %v6545_v36, %v6555_v28 }
0x2e49   : > { %v6576_v12 = vmul.f32 1.442695, %v6569_v61 }
0x2e4a   : > { %v6561_v7 = vpop.xlane.xlu1 %6560 }
0x2e4b   : > { %10910 = vpow2.f32 %v6576_v12  ;;  %v6571_v44 = vsub.f32 %v6547_v3, %v6561_v7  ;;  %v8765_v7 = vld [vmem:[%s13557_s10 + $0x70] sm:$0xff] }
0x2e4d   : > { %v6580_v40 = vmul.f32 1.442695, %v6571_v44  ;;  %v8766_v44 = vld [vmem:[%s13557_s10 + $0x78] sm:$0xff] }
0x2e4e   : > { %v6564_v16 = vpop.xlane.xlu0 %6563 }
0x2e4f   : > { %10912 = vpow2.f32 %v6580_v40  ;;  %v6572_v35 = vsub.f32 %v6548_v9, %v6564_v16 }
0x2e51   : > { %v13078_v50 = vpop.eup %10908  ;;  %v6582_v24 = vmul.f32 1.442695, %v6572_v35 }
0x2e52   : > { %v6567_v11 = vpop.xlane.xlu1 %6566  ;;  %v6558_v20 = vpop.xlane.xlu0 %6557  ;;  %v6586_v39 = vsel %vm491_vm0, %v13078_v50, 0.0 }
0x2e53   : > { %10914 = vpow2.f32 %v6582_v24  ;;  %v6573_v27 = vsub.f32 %v6549_v58, %v6567_v11  ;;  %v6570_v45 = vsub.f32 %v6546_v13, %v6558_v20  ;;  %6587 = vadd.xlane.f32.xlu0 %v6586_v39  ;;  %v10389_v24 = vpack.c.bf16 %v8766_v44, %v8765_v7 }
0x2e55   : > { %v13082_v23 = vpop.eup %10910  ;;  %v6584_v41 = vmul.f32 1.442695, %v6573_v27  ;;  %v6578_v22 = vmul.f32 1.442695, %v6570_v45  ;;  %v8763_v45 = vld [vmem:[%s13557_s10 + $0x60] sm:$0xff] }
0x2e56   : > { %v10650_v34 = vpop.permute.xlu1 %10649  ;;  %v6589_v8 = vsel %vm491_vm0, %v13082_v23, 0.0 }
0x2e57   : > { %10916 = vpow2.f32 %v6584_v41  ;;  %v10652_v36 = vunpack.i.h.bf16 %v10650_v34  ;;  %v10651_v55 = vunpack.i.l.bf16 %v10650_v34  ;;  %6590 = vadd.xlane.f32.xlu0 %v6589_v8 }
0x2e58   : > { %10918 = vpow2.f32 %v6578_v22 }
0x2e59   : > { %v10913_v14 = vpop.eup %10912  ;;  %v10386_v60 = vpack.c.bf16 %v10652_v36, %v10651_v55 }
0x2e5a   : > { %v6595_v2 = vsel %vm491_vm0, %v10913_v14, 0.0  ;;  %v6621_v47 = vpop.permute.xlu1 %6620 }
0x2e5b   : > { %6596 = vadd.xlane.f32.xlu1 %v6595_v2  ;;  %10387 = vmatpush3.bf16.msra.mxu0 %v10386_v60 }
0x2e5c   : > { %9938 = vmatprep.subr.mxu0 %v11093_v32 }
0x2e5d   : > { %v10915_v3 = vpop.eup %10914 }
0x2e5e   : > { %v6598_v6 = vsel %vm491_vm0, %v10915_v3, 0.0 }
0x2e5f   : > { %6599 = vadd.xlane.f32.xlu1 %v6598_v6 }
0x2e61   : > { %v10917_v42 = vpop.eup %10916 }
0x2e62   : > { %v10919_v33 = vpop.eup %10918  ;;  %v6601_v29 = vsel %vm498_vm1, %v10917_v42, 0.0 }
0x2e63   : > { %6602 = vadd.xlane.f32.xlu1 %v6601_v29  ;;  %v6592_v9 = vsel %vm498_vm1, %v10919_v33, 0.0 }
0x2e64   : > { %6593 = vadd.xlane.f32.xlu0 %v6592_v9 }
0x2e74   : > { %6719 = vrot.lane.b32.xlu1 %v13016_v17, %s11095_s26 }
0x2e7a   : > { %10644 = vrot.lane.b32.xlu0 %v13004_v25, %s11095_s26 }
0x2ee0   : > { %v6588_v21 = vpop.xlane.xlu0 %6587 }
0x2ee4   : > { %v6591_v58 = vpop.xlane.xlu0 %6590 }
0x2ee8   : > { %v6597_v13 = vpop.xlane.xlu1 %6596 }
0x2ee9   : > { %10920 = vrcp.f32 %v6597_v13 }
0x2eec   : > { %v6600_v48 = vpop.xlane.xlu1 %6599 }
0x2eed   : > { %10922 = vrcp.f32 %v6600_v48 }
0x2eee   : > { %10924 = vrcp.f32 %v6588_v21 }
0x2ef0   : > { %v6603_v5 = vpop.xlane.xlu1 %6602 }
0x2ef1   : > { %10926 = vrcp.f32 %v6603_v5  ;;  %v6594_v26 = vpop.xlane.xlu0 %6593 }
0x2ef2   : > { %10928 = vrcp.f32 %v6591_v58 }
0x2ef3   : > { %v10921_v51 = vpop.eup %10920  ;;  %10930 = vrcp.f32 %v6594_v26  ;;  %v7003_v26 = vrot.slane %v12987_v59, %v12264_v43 }
0x2ef4   : > { %v6613_v53 = vmul.f32 %v10921_v51, %v10913_v14  ;;  %v6720_v52 = vpop.permute.xlu1 %6719 }
0x2ef5   : > { %v10645_v31 = vpop.permute.xlu0 %10644  ;;  %9939 = vmatpush3.msk.msra.mxu0 %vm503_vm2, %v6720_v52 }
0x2ef6   : > { %v10647_v17 = vunpack.i.h.bf16 %v10645_v31  ;;  %v10646_v25 = vunpack.i.l.bf16 %v10645_v31  ;;  %9941 = vmatmul.mubr.msk.f32.vlgmr.msra.gmra.mrb[134].mxu0 %vm491_vm0, %v6613_v53  ;;  %10391 = vmatprep.subr.bf16.mxu0 %v11091_v30 }
0x2ef7   : > { %v10923_v28 = vpop.eup %10922  ;;  %9943 = vmatprep.mubr.msk.f32.mxu0 %vm11092_vm3, %v11093_v32 }
0x2ef8   : > { %v10383_v61 = vpack.c.bf16 %v10647_v17, %v10646_v25  ;;  %v6614_v12 = vmul.f32 %v10923_v28, %v10915_v3  ;;  %v10925_v40 = vpop.eup %10924 }
0x2ef9   : > { %v6610_v11 = vmul.f32 %v10925_v40, %v13078_v50 }
0x2efa   : > { %10384 = vmatpush3.bf16.msra.mxu1 %v10383_v61  ;;  %9944 = vmatmul.mubr.msk.f32.gmra.mrb[136].mxu0 %vm491_vm0, %v6614_v12 }
0x2efb   : > { %v10927_v16 = vpop.eup %10926  ;;  %9923 = vmatprep.subr.mxu1 %v11093_v32  ;;  %9946 = vmatprep.mubr.msk.f32.mxu0 %vm11092_vm3, %v11093_v32 }
0x2efc   : > { %v6615_v35 = vmul.f32 %v10927_v16, %v10917_v42  ;;  %v10929_v20 = vpop.eup %10928 }
0x2efd   : > { %v6611_v39 = vmul.f32 %v10929_v20, %v13082_v23  ;;  %v10931_v50 = vpop.eup %10930  ;;  %v8764_v23 = vld [vmem:[%s13557_s10 + $0x68] sm:$0xff] }
0x2efe   : > { %9924 = vmatpush3.msk.msra.mxu1 %vm503_vm2, %v6621_v47  ;;  %9947 = vmatmul.mubr.msk.f32.gmra.mrb[138].mxu0 %vm491_vm0, %v6615_v35  ;;  %v6612_v27 = vmul.f32 %v10931_v50, %v10919_v33  ;;  %v10392_v41 = vpack.c.bf16 %v8764_v23, %v8763_v45 }
0x2eff   : > { %9926 = vmatmul.mubr.msk.f32.vlgmr.msra.gmra.mrb[136].mxu1 %vm491_vm0, %v6610_v11  ;;  %10388 = vmatprep.subr.bf16.mxu1 %v11091_v30 }
0x2f00   : > { %9928 = vmatprep.mubr.msk.f32.mxu1 %vm11092_vm3, %v11093_v32  ;;  %10390 = vmatpush3.bf16.msra.mxu1 %v10389_v24 }
0x2f01   : > { %9966 = vmatprep.mubr.msk.f32.mxu0 %vm11092_vm3, %v11093_v32  ;;  %10394 = vmatprep.subr.bf16.mxu1 %v11091_v30 }
0x2f02   : > { %10393 = vmatpush3.bf16.msra.mxu0 %v10392_v41 }
0x2f03   : > { %9929 = vmatmul.mubr.msk.f32.gmra.mrb[138].mxu1 %vm491_vm0, %v6611_v39  ;;  %10400 = vmatprep.subr.bf16.mxu0 %v11091_v30 }
0x2f04   : > { %9931 = vmatprep.mubr.msk.f32.mxu1 %vm11092_vm3, %v11093_v32 }
0x2f07   : > { %9932 = vmatmul.mubr.msk.f32.gmra.mrb[140].mxu1 %vm491_vm0, %v6612_v27 }
0x2f08   : > { %9953 = vmatprep.mubr.msk.f32.mxu1 %vm11092_vm3, %v11093_v32 }
0x2fc9   : > { %v6800_v22 = vpop.f32.mrb[134].mxu0 }
0x2fca   : > { %v9942_v34 = vpop.f32.mrb[135].mxu0  ;;  %9954 = vmatmul.mubr.msk.f32.vlgmr.msra.gmra.mrb[142].mxu1 %vm564_vm4, %v6800_v22 }
0x2fcb   : > { %9956 = vmatprep.mubr.msk.f32.mxu1 %vm11092_vm3, %v11093_v32 }
0x2fcd   : > { %v6805_v8 = vpop.f32.mrb[136].mxu0 }
0x2fce   : > { %v9945_v36 = vpop.f32.mrb[137].mxu0  ;;  %9957 = vmatmul.mubr.msk.f32.gmra.mrb[144].mxu1 %vm564_vm4, %v6805_v8 }
0x2fcf   : > { %9959 = vmatprep.mubr.msk.f32.mxu1 %vm11092_vm3, %v11093_v32 }
0x2fd1   : > { %v6810_v55 = vpop.f32.mrb[138].mxu0 }
0x2fd2   : > { %v6701_v14 = vpop.f32.mrb[136].mxu1  ;;  %v9948_v60 = vpop.f32.mrb[139].mxu0  ;;  %9960 = vmatmul.mubr.msk.f32.gmra.mrb[146].mxu1 %vm564_vm4, %v6810_v55 }
0x2fd3   : > { %v9927_v2 = vpop.f32.mrb[137].mxu1  ;;  %9967 = vmatmul.mubr.msk.f32.vlgmr.msra.gmra.mrb[140].mxu0 %vm564_vm4, %v6701_v14  ;;  %9983 = vmatprep.mubr.msk.f32.mxu1 %vm11092_vm3, %v11093_v32  ;;  %v8773_v14 = vld [vmem:[%s13558_s11 + $0x60] sm:$0xff]  ;;  %v8774_v60 = vld [vmem:[%s13558_s11 + $0x68] sm:$0xff] }
0x2fd4   : > { %9969 = vmatprep.mubr.msk.f32.mxu0 %vm11092_vm3, %v11093_v32  ;;  %v10395_v2 = vpack.c.bf16 %v8774_v60, %v8773_v14 }
0x2fd6   : > { %v6706_v3 = vpop.f32.mrb[138].mxu1  ;;  %10396 = vmatpush3.bf16.msra.mxu1 %v10395_v2 }
0x2fd7   : > { %v9930_v6 = vpop.f32.mrb[139].mxu1  ;;  %9970 = vmatmul.mubr.msk.f32.gmra.mrb[142].mxu0 %vm564_vm4, %v6706_v3  ;;  %v8775_v3 = vld [vmem:[%s13558_s11 + $0x70] sm:$0xff]  ;;  %10397 = vmatprep.subr.bf16.mxu1 %v11091_v30 }
0x2fd8   : > { %9972 = vmatprep.mubr.msk.f32.mxu0 %vm11092_vm3, %v11093_v32  ;;  %v8776_v6 = vld [vmem:[%s13558_s11 + $0x78] sm:$0xff] }
0x2fda   : > { %v6711_v42 = vpop.f32.mrb[140].mxu1 }
0x2fdb   : > { %v9933_v33 = vpop.f32.mrb[141].mxu1  ;;  %9973 = vmatmul.mubr.msk.f32.gmra.mrb[144].mxu0 %vm564_vm4, %v6711_v42  ;;  %v10398_v42 = vpack.c.bf16 %v8776_v6, %v8775_v3 }
0x2fdc   : > { %10008 = vmatprep.mubr.msk.f32.mxu0 %vm11092_vm3, %v11093_v32 }
0x2fdd   : > { %10399 = vmatpush3.bf16.msra.mxu1 %v10398_v42 }
0x2fde   : > { %10412 = vmatprep.subr.bf16.mxu1 %v11091_v30 }
0x309d   : > { %v6894_v29 = vpop.f32.mrb[142].mxu1 }
0x309e   : > { %v9955_v9 = vpop.f32.mrb[143].mxu1 }
0x30a1   : > { %v6899_v47 = vpop.f32.mrb[144].mxu1 }
0x30a2   : > { %v9958_v21 = vpop.f32.mrb[145].mxu1 }
0x30a5   : > { %v6904_v13 = vpop.f32.mrb[146].mxu1 }
0x30a6   : > { %v6983_v48 = vpop.f32.mrb[140].mxu0  ;;  %v9961_v58 = vpop.f32.mrb[147].mxu1 }
0x30a7   : > { %v6984_v5 = vadd.f32 %v6983_v48, %v6894_v29  ;;  %v9968_v51 = vpop.f32.mrb[141].mxu0 }
0x30a9   : > { %v6997_v53 = vadd.f32 %v6984_v5, %v12950_v63 }
0x30aa   : > { %v6988_v52 = vpop.f32.mrb[142].mxu0 }
0x30ab   : > { %v13155_v31 = vadd.f32 %v7003_v26, %v6997_v53  ;;  %v6989_v17 = vadd.f32 %v6988_v52, %v6899_v47  ;;  %v9971_v25 = vpop.f32.mrb[143].mxu0  ;;  %v7056_v53 = vrot.slane %v12987_v59, %v12307_v57 }
0x30ad   : > { %v6998_v28 = vadd.f32 %v6989_v17, %v12955_v62  ;;  %v7007_v61 = vsel %vm2648_vm15, %v13155_v31, 0.0 }
0x30ae   : > { %v6993_v12 = vpop.f32.mrb[144].mxu0  ;;  %7008 = vadd.xlane.f32.xlu0 %v7007_v61 }
0x30af   : > { %v13160_v7 = vadd.f32 %v7003_v26, %v6998_v28  ;;  %v6994_v44 = vadd.f32 %v6993_v12, %v6904_v13  ;;  %v9974_v40 = vpop.f32.mrb[145].mxu0 }
0x30b1   : > { %v6999_v16 = vadd.f32 %v6994_v44, %v12960_v46  ;;  %v7010_v63 = vsel %vm2648_vm15, %v13160_v7, 0.0 }
0x30b2   : > { %7011 = vadd.xlane.f32.xlu1 %v7010_v63 }
0x30b3   : > { %v13165_v35 = vadd.f32 %v7003_v26, %v6999_v16  ;;  %v7049_v26 = vrot.slane %v12987_v59, %v12304_v49 }
0x30b5   : > { %v7013_v62 = vsel %vm2825_vm14, %v13165_v35, 0.0 }
0x30b6   : > { %7014 = vadd.xlane.f32.xlu0 %v7013_v62 }
0x313b   : > { %v7009_v24 = vpop.xlane.xlu0 %7008 }
0x313c   : > { %v7016_v11 = vmul.f32 0.03125, %v7009_v24  ;;  %v8780_v24 = vld [vmem:[%s13559_s12 + $0xc0] sm:$0xff] }
0x313e   : > { %v7019_v20 = vsub.f32 %v13155_v31, %v7016_v11  ;;  %v8781_v11 = vld [vmem:[%s13559_s12 + $0xc8] sm:$0xff] }
0x313f   : > { %v7012_v39 = vpop.xlane.xlu1 %7011 }
0x3140   : > { %v7017_v50 = vmul.f32 0.03125, %v7012_v39  ;;  %v7022_v27 = vmul.f32 %v7019_v20, %v7019_v20  ;;  %v8782_v39 = vld [vmem:[%s13559_s12 + $0xd0] sm:$0xff] }
0x3142   : > { %v7020_v45 = vsub.f32 %v13160_v7, %v7017_v50  ;;  %v7025_v46 = vsel %vm2648_vm15, %v7022_v27, 0.0  ;;  %v8783_v50 = vld [vmem:[%s13559_s12 + $0xd8] sm:$0xff] }
0x3143   : > { %7026 = vadd.xlane.f32.xlu0 %v7025_v46  ;;  %v7015_v23 = vpop.xlane.xlu0 %7014  ;;  %v10404_v27 = vpack.c.bf16 %v8783_v50, %v8782_v39  ;;  %v8785_v46 = vld [vmem:[%s13559_s12 + $0xe8] sm:$0xff] }
0x3144   : > { %v7018_v41 = vmul.f32 0.03125, %v7015_v23  ;;  %v7023_v22 = vmul.f32 %v7020_v45, %v7020_v45 }
0x3146   : > { %v7021_v34 = vsub.f32 %v13165_v35, %v7018_v41  ;;  %v7028_v8 = vsel %vm2648_vm15, %v7023_v22, 0.0  ;;  %v8786_v41 = vld [vmem:[%s13559_s12 + $0xf0] sm:$0xff]  ;;  %v8787_v22 = vld [vmem:[%s13559_s12 + $0xf8] sm:$0xff] }
0x3147   : > { %7029 = vadd.xlane.f32.xlu0 %v7028_v8  ;;  %v7068_v8 = vrot.slane %v12987_v59, %v12351_v0 }
0x3148   : > { %v7024_v36 = vmul.f32 %v7021_v34, %v7021_v34 }
0x314a   : > { %v7031_v55 = vsel %vm2825_vm14, %v7024_v36, 0.0 }
0x314b   : > { %7032 = vadd.xlane.f32.xlu1 %v7031_v55 }
0x31d0   : > { %v7027_v33 = vpop.xlane.xlu0 %7026 }
0x31d1   : > { %v7034_v29 = vmul.f32 0.03125, %v7027_v33 }
0x31d3   : > { %v7037_v9 = vadd.f32 1e-05, %v7034_v29 }
0x31d4   : > { %v7030_v47 = vpop.xlane.xlu0 %7029 }
0x31d5   : > { %10932 = vrsqrt.f32 %v7037_v9  ;;  %v7035_v21 = vmul.f32 0.03125, %v7030_v47 }
0x31d7   : > { %v7038_v13 = vadd.f32 1e-05, %v7035_v21 }
0x31d8   : > { %v7033_v48 = vpop.xlane.xlu1 %7032 }
0x31d9   : > { %10934 = vrsqrt.f32 %v7038_v13  ;;  %v7036_v58 = vmul.f32 0.03125, %v7033_v48 }
0x31db   : > { %v7039_v5 = vadd.f32 1e-05, %v7036_v58 }
0x31dd   : > { %10936 = vrsqrt.f32 %v7039_v5 }
0x31df   : > { %v10933_v51 = vpop.eup %10932 }
0x31e0   : > { %v7043_v52 = vmul.f32 %v10933_v51, %v7019_v20  ;;  %v10401_v20 = vpack.c.bf16 %v8781_v11, %v8780_v24 }
0x31e2   : > { %v7050_v17 = vmul.f32 %v7049_v26, %v7043_v52  ;;  %10402 = vmatpush3.bf16.msra.mxu0 %v10401_v20 }
0x31e3   : > { %v10935_v25 = vpop.eup %10934  ;;  %10403 = vmatprep.subr.bf16.mxu0 %v11091_v30 }
0x31e4   : > { %v7057_v28 = vadd.f32 %v7056_v53, %v7050_v17  ;;  %v7044_v61 = vmul.f32 %v10935_v25, %v7020_v45  ;;  %v8784_v45 = vld [vmem:[%s13559_s12 + $0xe0] sm:$0xff] }
0x31e5   : > { %v10407_v23 = vpack.c.bf16 %v8785_v46, %v8784_v45 }
0x31e6   : > { %9984 = vmatmul.mubr.msk.f32.vlgmr.msra.gmra.mrb[148].mxu1 %vm2648_vm15, %v7057_v28  ;;  %v7051_v12 = vmul.f32 %v7049_v26, %v7044_v61  ;;  %10405 = vmatpush3.bf16.msra.mxu0 %v10404_v27  ;;  %v7289_v27 = vrot.slane %v12987_v59, %v12365_v1 }
0x31e7   : > { %v10937_v44 = vpop.eup %10936  ;;  %9986 = vmatprep.mubr.msk.f32.mxu1 %vm11092_vm3, %v11093_v32  ;;  %10406 = vmatprep.subr.bf16.mxu0 %v11091_v30 }
0x31e8   : > { %v7058_v40 = vadd.f32 %v7056_v53, %v7051_v12  ;;  %v7045_v16 = vmul.f32 %v10937_v44, %v7021_v34  ;;  %v10410_v34 = vpack.c.bf16 %v8787_v22, %v8786_v41 }
0x31ea   : > { %9987 = vmatmul.mubr.msk.f32.gmra.mrb[150].mxu1 %vm2648_vm15, %v7058_v40  ;;  %v7052_v63 = vmul.f32 %v7049_v26, %v7045_v16  ;;  %10408 = vmatpush3.bf16.msra.mxu0 %v10407_v23 }
0x31eb   : > { %9989 = vmatprep.mubr.msk.f32.mxu1 %vm11092_vm3, %v11093_v32  ;;  %10409 = vmatprep.subr.bf16.mxu0 %v11091_v30 }
0x31ec   : > { %v7059_v62 = vadd.f32 %v7056_v53, %v7052_v63 }
0x31ee   : > { %9990 = vmatmul.mubr.msk.f32.gmra.mrb[152].mxu1 %vm2648_vm15, %v7059_v62  ;;  %10411 = vmatpush3.bf16.msra.mxu0 %v10410_v34 }
0x31ef   : > { %10025 = vmatprep.mubr.msk.f32.mxu1 %vm11092_vm3, %v11093_v32  ;;  %10418 = vmatprep.subr.bf16.mxu0 %v11091_v30 }
0x32b9   : > { %v7144_v36 = vpop.f32.mrb[148].mxu1 }
0x32ba   : > { %v7145_v55 = vadd.f32 %v7144_v36, %v7068_v8  ;;  %v9985_v14 = vpop.f32.mrb[149].mxu1 }
0x32bc   : > { %v7158_v60 = vmul.f32 %v7145_v55, %v7145_v55 }
0x32bd   : > { %v7149_v2 = vpop.f32.mrb[150].mxu1 }
0x32be   : > { %v7161_v3 = vmul.f32 %v7158_v60, %v7145_v55  ;;  %v7150_v6 = vadd.f32 %v7149_v2, %v7068_v8  ;;  %v9988_v42 = vpop.f32.mrb[151].mxu1 }
0x32c0   : > { %v7164_v33 = vmul.f32 0.044715, %v7161_v3  ;;  %v7159_v29 = vmul.f32 %v7150_v6, %v7150_v6 }
0x32c1   : > { %v7154_v9 = vpop.f32.mrb[152].mxu1 }
0x32c2   : > { %v7167_v47 = vadd.f32 %v7164_v33, %v7145_v55  ;;  %v7162_v21 = vmul.f32 %v7159_v29, %v7150_v6  ;;  %v7155_v13 = vadd.f32 %v7154_v9, %v7068_v8  ;;  %v9991_v48 = vpop.f32.mrb[153].mxu1 }
0x32c4   : > { %v7170_v58 = vmul.f32 0.7978846, %v7167_v47  ;;  %v7165_v5 = vmul.f32 0.044715, %v7162_v21  ;;  %v7160_v26 = vmul.f32 %v7155_v13, %v7155_v13 }
0x32c6   : > { %10938 = vtanh.f32 %v7170_v58  ;;  %v7168_v51 = vadd.f32 %v7165_v5, %v7150_v6  ;;  %v7163_v53 = vmul.f32 %v7160_v26, %v7155_v13 }
0x32c8   : > { %v7171_v52 = vmul.f32 0.7978846, %v7168_v51  ;;  %v7166_v17 = vmul.f32 0.044715, %v7163_v53  ;;  %v8792_v53 = vld [vmem:[%s13556_s9 + $0x80] sm:$0xff] }
0x32ca   : > { %10940 = vtanh.f32 %v7171_v52  ;;  %v7169_v25 = vadd.f32 %v7166_v17, %v7155_v13  ;;  %v8793_v52 = vld [vmem:[%s13556_s9 + $0x88] sm:$0xff] }
0x32cb   : > { %v10413_v17 = vpack.c.bf16 %v8793_v52, %v8792_v53 }
0x32cc   : > { %v7172_v28 = vmul.f32 0.7978846, %v7169_v25  ;;  %v8794_v25 = vld [vmem:[%s13556_s9 + $0x90] sm:$0xff] }
0x32cd   : > { %10414 = vmatpush3.bf16.msra.mxu1 %v10413_v17 }
0x32ce   : > { %10942 = vtanh.f32 %v7172_v28  ;;  %v8795_v28 = vld [vmem:[%s13556_s9 + $0x98] sm:$0xff]  ;;  %10415 = vmatprep.subr.bf16.mxu1 %v11091_v30 }
0x32d0   : > { %v10939_v61 = vpop.eup %10938 }
0x32d1   : > { %v7176_v12 = vadd.f32 1.0, %v10939_v61  ;;  %v10416_v61 = vpack.c.bf16 %v8795_v28, %v8794_v25 }
0x32d3   : > { %v7179_v44 = vmul.f32 0.5, %v7176_v12  ;;  %10417 = vmatpush3.bf16.msra.mxu1 %v10416_v61 }
0x32d4   : > { %v10941_v40 = vpop.eup %10940  ;;  %10422 = vmatprep.subr.bf16.mxu1 %v11091_v30 }
0x32d5   : > { %v7182_v16 = vmul.f32 %v7179_v44, %v7145_v55  ;;  %v7177_v63 = vadd.f32 1.0, %v10941_v40 }
0x32d7   : > { %10009 = vmatmul.mubr.msk.f32.vlgmr.msra.gmra.mrb[146].mxu0 %vm2652_vm7, %v7182_v16  ;;  %v7180_v62 = vmul.f32 0.5, %v7177_v63 }
0x32d8   : > { %v10943_v24 = vpop.eup %10942  ;;  %10011 = vmatprep.mubr.msk.f32.mxu0 %vm11092_vm3, %v11093_v32 }
0x32d9   : > { %v7183_v11 = vmul.f32 %v7180_v62, %v7150_v6  ;;  %v7178_v20 = vadd.f32 1.0, %v10943_v24 }
0x32db   : > { %10012 = vmatmul.mubr.msk.f32.gmra.mrb[148].mxu0 %vm2652_vm7, %v7183_v11  ;;  %v7181_v39 = vmul.f32 0.5, %v7178_v20  ;;  %v13281_v20 = vld [vmem:[%s13560_s13 + $0x20] sm:$0xff] }
0x32dc   : > { %10014 = vmatprep.mubr.msk.f32.mxu0 %vm11092_vm3, %v11093_v32 }
0x32dd   : > { %v7184_v50 = vmul.f32 %v7181_v39, %v7155_v13 }
0x32df   : > { %10015 = vmatmul.mubr.msk.f32.gmra.mrb[150].mxu0 %vm2652_vm7, %v7184_v50  ;;  %v7337_v50 = vrot.slane %v13281_v20, %v12089_v38 }
0x32e0   : > { %10040 = vmatprep.mubr.msk.f32.mxu0 %vm11092_vm3, %v11093_v32 }
0x33aa   : > { %v7269_v45 = vpop.f32.mrb[146].mxu0 }
0x33ab   : > { %v7283_v46 = vadd.f32 %v7269_v45, %v13155_v31  ;;  %v10010_v23 = vpop.f32.mrb[147].mxu0  ;;  %v7344_v45 = vrot.slane %v13281_v20, %v12097_v18 }
0x33ad   : > { %v13244_v41 = vadd.f32 %v7289_v27, %v7283_v46 }
0x33ae   : > { %v7274_v22 = vpop.f32.mrb[148].mxu0 }
0x33af   : > { %v7284_v34 = vadd.f32 %v7274_v22, %v13160_v7  ;;  %v10013_v8 = vpop.f32.mrb[149].mxu0  ;;  %v7295_v36 = vsel %vm2648_vm15, %v13244_v41, 0.0 }
0x33b0   : > { %7296 = vadd.xlane.f32.xlu0 %v7295_v36 }
0x33b1   : > { %v13249_v55 = vadd.f32 %v7289_v27, %v7284_v34 }
0x33b2   : > { %v7279_v14 = vpop.f32.mrb[150].mxu0 }
0x33b3   : > { %v7285_v60 = vadd.f32 %v7279_v14, %v13165_v35  ;;  %v10016_v59 = vpop.f32.mrb[151].mxu0  ;;  %v7298_v31 = vsel %vm2648_vm15, %v13249_v55, 0.0 }
0x33b4   : > { %7299 = vadd.xlane.f32.xlu1 %v7298_v31 }
0x33b5   : > { %v13254_v2 = vadd.f32 %v7289_v27, %v7285_v60 }
0x33b7   : > { %v7301_v7 = vsel %vm2825_vm14, %v13254_v2, 0.0 }
0x33b8   : > { %7302 = vadd.xlane.f32.xlu0 %v7301_v7  ;;  %v7356_v7 = vrot.slane %v13281_v20, %v12113_v4 }
0x343d   : > { %v7297_v3 = vpop.xlane.xlu0 %7296 }
0x343e   : > { %v7304_v6 = vmul.f32 0.03125, %v7297_v3 }
0x3440   : > { %v7307_v42 = vsub.f32 %v13244_v41, %v7304_v6 }
0x3441   : > { %v7300_v33 = vpop.xlane.xlu1 %7299 }
0x3442   : > { %v7305_v29 = vmul.f32 0.03125, %v7300_v33  ;;  %v7310_v9 = vmul.f32 %v7307_v42, %v7307_v42 }
0x3444   : > { %v7308_v35 = vsub.f32 %v13249_v55, %v7305_v29  ;;  %v7313_v47 = vsel %vm2648_vm15, %v7310_v9, 0.0 }
0x3445   : > { %7314 = vadd.xlane.f32.xlu1 %v7313_v47  ;;  %v7303_v21 = vpop.xlane.xlu0 %7302 }
0x3446   : > { %v7306_v13 = vmul.f32 0.03125, %v7303_v21  ;;  %v7311_v48 = vmul.f32 %v7308_v35, %v7308_v35 }
0x3448   : > { %v7309_v58 = vsub.f32 %v13254_v2, %v7306_v13  ;;  %v7316_v5 = vsel %vm2648_vm15, %v7311_v48, 0.0 }
0x3449   : > { %7317 = vadd.xlane.f32.xlu0 %v7316_v5 }
0x344a   : > { %v7312_v26 = vmul.f32 %v7309_v58, %v7309_v58 }
0x344c   : > { %v7319_v51 = vsel %vm2825_vm14, %v7312_v26, 0.0 }
0x344d   : > { %7320 = vadd.xlane.f32.xlu1 %v7319_v51 }
0x34d2   : > { %v7315_v12 = vpop.xlane.xlu1 %7314 }
0x34d3   : > { %v7322_v44 = vmul.f32 0.03125, %v7315_v12 }
0x34d5   : > { %v7325_v40 = vadd.f32 1e-05, %v7322_v44 }
0x34d6   : > { %v7318_v16 = vpop.xlane.xlu0 %7317 }
0x34d7   : > { %10944 = vrsqrt.f32 %v7325_v40  ;;  %v7323_v63 = vmul.f32 0.03125, %v7318_v16 }
0x34d9   : > { %v7326_v62 = vadd.f32 1e-05, %v7323_v63 }
0x34da   : > { %v7321_v24 = vpop.xlane.xlu1 %7320 }
0x34db   : > { %10946 = vrsqrt.f32 %v7326_v62  ;;  %v7324_v11 = vmul.f32 0.03125, %v7321_v24 }
0x34dd   : > { %v7327_v39 = vadd.f32 1e-05, %v7324_v11 }
0x34df   : > { %10948 = vrsqrt.f32 %v7327_v39 }
0x34e1   : > { %v10945_v27 = vpop.eup %10944 }
0x34e2   : > { %v7331_v46 = vmul.f32 %v10945_v27, %v7307_v42 }
0x34e4   : > { %v7338_v23 = vmul.f32 %v7337_v50, %v7331_v46 }
0x34e5   : > { %v10947_v22 = vpop.eup %10946 }
0x34e6   : > { %v7345_v34 = vadd.f32 %v7344_v45, %v7338_v23  ;;  %v7332_v8 = vmul.f32 %v10947_v22, %v7308_v35 }
0x34e8   : > { %10026 = vmatmul.mubr.msk.f32.vlgmr.msra.gmra.mrb[154].mxu1 %vm2648_vm15, %v7345_v34  ;;  %v7339_v36 = vmul.f32 %v7337_v50, %v7332_v8 }
0x34e9   : > { %v10949_v14 = vpop.eup %10948  ;;  %10028 = vmatprep.mubr.msk.f32.mxu1 %vm11092_vm3, %v11093_v32 }
0x34ea   : > { %v7346_v60 = vadd.f32 %v7344_v45, %v7339_v36  ;;  %v7333_v59 = vmul.f32 %v10949_v14, %v7309_v58 }
0x34ec   : > { %10029 = vmatmul.mubr.msk.f32.gmra.mrb[156].mxu1 %vm2648_vm15, %v7346_v60  ;;  %v7340_v38 = vmul.f32 %v7337_v50, %v7333_v59 }
0x34ed   : > { %10031 = vmatprep.mubr.msk.f32.mxu1 %vm11092_vm3, %v11093_v32 }
0x34ee   : > { %v7347_v18 = vadd.f32 %v7344_v45, %v7340_v38 }
0x34f0   : > { %10032 = vmatmul.mubr.msk.f32.gmra.mrb[158].mxu1 %vm2648_vm15, %v7347_v18 }
0x34f1   : > { %10055 = vmatprep.mubr.msk.f32.mxu1 %vm11092_vm3, %v11093_v32 }
0x35bb   : > { %v7432_v31 = vpop.f32.mrb[154].mxu1 }
0x35bc   : > { %v10027_v3 = vpop.f32.mrb[155].mxu1  ;;  %v7433_v42 = vadd.f32 %v7432_v31, %v7356_v7 }
0x35be   : > { %v7446_v4 = vmul.f32 0.25, %v7433_v42 }
0x35bf   : > { %v7437_v6 = vpop.f32.mrb[156].mxu1 }
0x35c0   : > { %v7438_v33 = vadd.f32 %v7437_v6, %v7356_v7  ;;  %v10030_v29 = vpop.f32.mrb[157].mxu1 }
0x35c2   : > { %v13298_v9 = vpack.i.bf16 %v7438_v33, %v7433_v42  ;;  %v7447_v52 = vmul.f32 0.25, %v7438_v33 }
0x35c3   : > { %v7442_v35 = vpop.f32.mrb[158].mxu1 }
0x35c4   : > { %v13300_v47 = vadd.f32 %v7442_v35, %v7356_v7  ;;  %10654 = vrot.lane.b32.xlu0 %v13298_v9, %s11098_s25  ;;  %v10033_v21 = vpop.f32.mrb[159].mxu1 }
0x35c6   : > { %7465 = vrot.lane.b32.xlu1 %v13300_v47, %s11098_s25  ;;  %v7448_v13 = vmul.f32 0.25, %v13300_v47 }
0x35c8   : > { %7471 = vrot.lane.b32.xlu0 %v13300_v47, %s11097_s28 }
0x35ca   : > { %10659 = vrot.lane.b32.xlu1 %v13298_v9, %s11097_s28 }
0x35cc   : > { %7452 = vrot.lane.b32.xlu0 %v7446_v4, %s11098_s25 }
0x35d0   : > { %7456 = vrot.lane.b32.xlu0 %v7448_v13, %s11098_s25 }
0x3636   : > { %v13313_v48 = vpop.permute.xlu0 %10654 }
0x3637   : > { %10664 = vrot.lane.b32.xlu1 %v13313_v48, %s11097_s28 }
0x3638   : > { %v13315_v58 = vpop.permute.xlu1 %7465 }
0x363a   : > { %v7472_v17 = vpop.permute.xlu0 %7471 }
0x363b   : > { %7569 = vrot.lane.b32.xlu1 %v13315_v58, %s11097_s28 }
0x363c   : > { %v10660_v5 = vpop.permute.xlu1 %10659 }
0x363d   : > { %v10662_v26 = vunpack.i.h.bf16 %v10660_v5  ;;  %v10661_v51 = vunpack.i.l.bf16 %v10660_v5 }
0x363e   : > { %v7453_v40 = vpop.permute.xlu0 %7452 }
0x363f   : > { %v10419_v53 = vpack.c.bf16 %v10662_v26, %v10661_v51  ;;  %7454 = vrot.lane.b32.xlu1 %v7447_v52, %s11098_s25  ;;  %s13579_s25 = sld [smem:[#allocation12_spill]] }
0x3641   : > { %10421 = vmatpush3.bf16.xpose.msk.msra.mxu0 %vm12142_vm12, %v10419_v53 }
0x3642   : > { %10038 = vmatprep.subr.mxu0 %v11093_v32  ;;  %v7457_v10 = vpop.permute.xlu0 %7456 }
0x3645   : > { %s486_s15 = scalar_lea.vmem %s13579_s25, %s10458_s0 }
0x3649   : > { %10039 = vmatpush3.xpose.msk.msra.mxu0 %vm564_vm4, %v7472_v17 }
0x364a   : > { %10426 = vmatprep.subr.bf16.mxu0 %v11091_v30 }
0x364c   : > { %10041 = vmatmul.mubr.msk.f32.vlgmr.msra.gmra.mrb[152].mxu0 %vm564_vm4, %v7446_v4 }
0x364d   : > { %10043 = vmatprep.mubr.msk.f32.mxu0 %vm11092_vm3, %v11093_v32 }
0x3650   : > { %10044 = vmatmul.mubr.msk.f32.gmra.mrb[154].mxu0 %vm564_vm4, %v7447_v52 }
0x3651   : > { %10046 = vmatprep.mubr.msk.f32.mxu0 %vm11092_vm3, %v11093_v32 }
0x3654   : > { %10047 = vmatmul.mubr.msk.f32.gmra.mrb[156].mxu0 %vm564_vm4, %v7448_v13 }
0x3655   : > { %10070 = vmatprep.mubr.msk.f32.mxu0 %vm11092_vm3, %v11093_v32 }
0x36a9   : > { %v10665_v25 = vpop.permute.xlu1 %10664 }
0x36aa   : > { %v10667_v28 = vunpack.i.h.bf16 %v10665_v25  ;;  %v10666_v61 = vunpack.i.l.bf16 %v10665_v25 }
0x36ac   : > { %v10423_v12 = vpack.c.bf16 %v10667_v28, %v10666_v61 }
0x36ad   : > { %v7570_v44 = vpop.permute.xlu1 %7569 }
0x36ae   : > { %10425 = vmatpush3.bf16.xpose.msk.msra.mxu1 %vm12142_vm12, %v10423_v12 }
0x36af   : > { %10053 = vmatprep.subr.mxu1 %v11093_v32 }
0x36b1   : > { %v7455_v16 = vpop.permute.xlu1 %7454 }
0x36b6   : > { %10054 = vmatpush3.xpose.msk.msra.mxu1 %vm564_vm4, %v7570_v44 }
0x36b7   : > { %10429 = vmatprep.subr.bf16.mxu1 %v11091_v30 }
0x36b9   : > { %10056 = vmatmul.mubr.msk.f32.vlgmr.msra.gmra.mrb[160].mxu1 %vm564_vm4, %v7453_v40 }
0x36ba   : > { %10058 = vmatprep.mubr.msk.f32.mxu1 %vm11092_vm3, %v11093_v32 }
0x36bd   : > { %10059 = vmatmul.mubr.msk.f32.gmra.mrb[162].mxu1 %vm564_vm4, %v7455_v16 }
0x36be   : > { %10061 = vmatprep.mubr.msk.f32.mxu1 %vm11092_vm3, %v11093_v32 }
0x36c1   : > { %10062 = vmatmul.mubr.msk.f32.gmra.mrb[164].mxu1 %vm564_vm4, %v7457_v10 }
0x36c2   : > { %10085 = vmatprep.mubr.msk.f32.mxu1 %vm11092_vm3, %v11093_v32 }
0x371f   : > { %v7551_v63 = vpop.f32.mrb[152].mxu0 }
0x3720   : > { %v7663_v62 = vsel %vm11819_vm8, %v7551_v63, -1e+30  ;;  %v10042_v24 = vpop.f32.mrb[153].mxu0 }
0x3721   : > { %v7669_v11 = vsel %vm491_vm0, %v7663_v62, -inf }
0x3722   : > { %7670 = vmax.xlane.f32.xlu1 %v7669_v11 }
0x3723   : > { %v7556_v39 = vpop.f32.mrb[154].mxu0 }
0x3724   : > { %v7664_v50 = vsel %vm11819_vm8, %v7556_v39, -1e+30  ;;  %v10045_v27 = vpop.f32.mrb[155].mxu0 }
0x3725   : > { %v7672_v45 = vsel %vm491_vm0, %v7664_v50, -inf }
0x3726   : > { %7673 = vmax.xlane.f32.xlu0 %v7672_v45 }
0x3727   : > { %v7561_v46 = vpop.f32.mrb[156].mxu0 }
0x3728   : > { %v7665_v23 = vsel %vm11819_vm8, %v7561_v46, -1e+30  ;;  %v10048_v22 = vpop.f32.mrb[157].mxu0 }
0x3729   : > { %v7675_v34 = vsel %vm498_vm1, %v7665_v23, -inf }
0x372a   : > { %7676 = vmax.xlane.f32.xlu1 %v7675_v34 }
0x373b   : > { %10669 = vrot.lane.b32.xlu1 %v13298_v9, %s11095_s26 }
0x378c   : > { %v7649_v8 = vpop.f32.mrb[160].mxu1 }
0x378d   : > { %v7666_v36 = vsel %vm11819_vm8, %v7649_v8, -1e+30  ;;  %v10057_v14 = vpop.f32.mrb[161].mxu1 }
0x378e   : > { %v7678_v60 = vsel %vm491_vm0, %v7666_v36, -inf }
0x378f   : > { %7679 = vmax.xlane.f32.xlu0 %v7678_v60 }
0x3790   : > { %v7654_v59 = vpop.f32.mrb[162].mxu1 }
0x3791   : > { %v7667_v38 = vsel %vm11819_vm8, %v7654_v59, -1e+30  ;;  %v10060_v18 = vpop.f32.mrb[163].mxu1 }
0x3792   : > { %v7681_v31 = vsel %vm491_vm0, %v7667_v38, -inf }
0x3793   : > { %7682 = vmax.xlane.f32.xlu0 %v7681_v31  ;;  %v8821_v31 = vld [vmem:[%s13557_s10 + $0x90] sm:$0xff] }
0x3794   : > { %v7659_v7 = vpop.f32.mrb[164].mxu1 }
0x3795   : > { %v7668_v3 = vsel %vm11819_vm8, %v7659_v7, -1e+30  ;;  %v10063_v6 = vpop.f32.mrb[165].mxu1  ;;  %v8822_v7 = vld [vmem:[%s13557_s10 + $0x98] sm:$0xff] }
0x3796   : > { %v7684_v42 = vsel %vm498_vm1, %v7668_v3, -inf }
0x3797   : > { %7685 = vmax.xlane.f32.xlu0 %v7684_v42 }
0x37af   : > { %v7671_v33 = vpop.xlane.xlu1 %7670 }
0x37b0   : > { %v7687_v29 = vsub.f32 %v7663_v62, %v7671_v33 }
0x37b2   : > { %v7693_v9 = vmul.f32 1.442695, %v7687_v29 }
0x37b3   : > { %v7674_v35 = vpop.xlane.xlu0 %7673 }
0x37b4   : > { %10950 = vpow2.f32 %v7693_v9  ;;  %v7688_v21 = vsub.f32 %v7664_v50, %v7674_v35 }
0x37b6   : > { %v7695_v4 = vmul.f32 1.442695, %v7688_v21 }
0x37b7   : > { %v7677_v13 = vpop.xlane.xlu1 %7676 }
0x37b8   : > { %10952 = vpow2.f32 %v7695_v4  ;;  %v7689_v5 = vsub.f32 %v7665_v23, %v7677_v13  ;;  %v8819_v4 = vld [vmem:[%s13557_s10 + $0x80] sm:$0xff]  ;;  %v8820_v13 = vld [vmem:[%s13557_s10 + $0x88] sm:$0xff] }
0x37ba   : > { %v7697_v26 = vmul.f32 1.442695, %v7689_v5 }
0x37bb   : > { %v10670_v51 = vpop.permute.xlu1 %10669 }
0x37bc   : > { %10954 = vpow2.f32 %v7697_v26  ;;  %v10672_v53 = vunpack.i.h.bf16 %v10670_v51  ;;  %v10671_v19 = vunpack.i.l.bf16 %v10670_v51  ;;  %v10436_v26 = vpack.c.bf16 %v8820_v13, %v8819_v4 }
0x37be   : > { %v10951_v52 = vpop.eup %10950  ;;  %v10427_v17 = vpack.c.bf16 %v10672_v53, %v10671_v19 }
0x37bf   : > { %v7705_v25 = vsel %vm491_vm0, %v10951_v52, 0.0 }
0x37c0   : > { %7706 = vadd.xlane.f32.xlu1 %v7705_v25  ;;  %10428 = vmatpush3.bf16.msra.mxu0 %v10427_v17 }
0x37c1   : > { %10068 = vmatprep.subr.mxu0 %v11093_v32 }
0x37c2   : > { %v10953_v28 = vpop.eup %10952 }
0x37c3   : > { %v7708_v61 = vsel %vm491_vm0, %v10953_v28, 0.0 }
0x37c4   : > { %7709 = vadd.xlane.f32.xlu1 %v7708_v61 }
0x37c6   : > { %v10955_v12 = vpop.eup %10954 }
0x37c7   : > { %v7711_v44 = vsel %vm498_vm1, %v10955_v12, 0.0 }
0x37c8   : > { %7712 = vadd.xlane.f32.xlu1 %v7711_v44 }
0x37d9   : > { %7739 = vrot.lane.b32.xlu1 %v13300_v47, %s11095_s26 }
0x37dd   : > { %7838 = vrot.lane.b32.xlu1 %v13315_v58, %s11095_s26 }
0x381c   : > { %v7680_v40 = vpop.xlane.xlu0 %7679 }
0x381d   : > { %v7690_v16 = vsub.f32 %v7666_v36, %v7680_v40 }
0x381f   : > { %v7699_v10 = vmul.f32 1.442695, %v7690_v16 }
0x3820   : > { %v7683_v63 = vpop.xlane.xlu0 %7682 }
0x3821   : > { %10956 = vpow2.f32 %v7699_v10  ;;  %v7691_v62 = vsub.f32 %v7667_v38, %v7683_v63 }
0x3823   : > { %v7701_v24 = vmul.f32 1.442695, %v7691_v62 }
0x3824   : > { %v7686_v11 = vpop.xlane.xlu0 %7685 }
0x3825   : > { %10958 = vpow2.f32 %v7701_v24  ;;  %v7692_v39 = vsub.f32 %v7668_v3, %v7686_v11  ;;  %v10433_v3 = vpack.c.bf16 %v8822_v7, %v8821_v31 }
0x3827   : > { %v7703_v50 = vmul.f32 1.442695, %v7692_v39 }
0x3829   : > { %10960 = vpow2.f32 %v7703_v50 }
0x382b   : > { %v10957_v27 = vpop.eup %10956 }
0x382c   : > { %v7714_v45 = vsel %vm491_vm0, %v10957_v27, 0.0 }
0x382d   : > { %7715 = vadd.xlane.f32.xlu0 %v7714_v45 }
0x382f   : > { %v10959_v47 = vpop.eup %10958 }
0x3830   : > { %v7717_v46 = vsel %vm491_vm0, %v10959_v47, 0.0 }
0x3831   : > { %7718 = vadd.xlane.f32.xlu0 %v7717_v46 }
0x3833   : > { %v10961_v58 = vpop.eup %10960 }
0x3834   : > { %v7720_v23 = vsel %vm498_vm1, %v10961_v58, 0.0 }
0x3835   : > { %7721 = vadd.xlane.f32.xlu0 %v7720_v23 }
0x384b   : > { %10674 = vrot.lane.b32.xlu0 %v13313_v48, %s11095_s26 }
0x384d   : > { %v7707_v22 = vpop.xlane.xlu1 %7706 }
0x384e   : > { %10962 = vrcp.f32 %v7707_v22 }
0x3851   : > { %v7710_v34 = vpop.xlane.xlu1 %7709 }
0x3852   : > { %10964 = vrcp.f32 %v7710_v34  ;;  %v8122_v34 = vrot.slane %v13281_v20, %v12264_v43 }
0x3855   : > { %v7713_v8 = vpop.xlane.xlu1 %7712 }
0x3856   : > { %10966 = vrcp.f32 %v7713_v8 }
0x3858   : > { %v10963_v36 = vpop.eup %10962 }
0x3859   : > { %v7729_v14 = vmul.f32 %v10963_v36, %v10951_v52  ;;  %v7740_v60 = vpop.permute.xlu1 %7739 }
0x385a   : > { %10069 = vmatpush3.msk.msra.mxu0 %vm503_vm2, %v7740_v60 }
0x385b   : > { %10071 = vmatmul.mubr.msk.f32.vlgmr.msra.gmra.mrb[158].mxu0 %vm491_vm0, %v7729_v14  ;;  %10432 = vmatprep.subr.bf16.mxu0 %v11091_v30 }
0x385c   : > { %v10965_v59 = vpop.eup %10964  ;;  %10073 = vmatprep.mubr.msk.f32.mxu0 %vm11092_vm3, %v11093_v32  ;;  %10434 = vmatpush3.bf16.msra.mxu0 %v10433_v3 }
0x385d   : > { %v7730_v38 = vmul.f32 %v10965_v59, %v10953_v28  ;;  %10438 = vmatprep.subr.bf16.mxu0 %v11091_v30  ;;  %v7839_v51 = vpop.permute.xlu1 %7838 }
0x385f   : > { %10074 = vmatmul.mubr.msk.f32.gmra.mrb[160].mxu0 %vm491_vm0, %v7730_v38 }
0x3860   : > { %v10967_v48 = vpop.eup %10966  ;;  %10076 = vmatprep.mubr.msk.f32.mxu0 %vm11092_vm3, %v11093_v32 }
0x3861   : > { %v7731_v18 = vmul.f32 %v10967_v48, %v10955_v12 }
0x3863   : > { %10077 = vmatmul.mubr.msk.f32.gmra.mrb[162].mxu0 %vm491_vm0, %v7731_v18 }
0x3864   : > { %10098 = vmatprep.mubr.msk.f32.mxu0 %vm11092_vm3, %v11093_v32 }
0x38ba   : > { %v7716_v6 = vpop.xlane.xlu0 %7715 }
0x38bb   : > { %10968 = vrcp.f32 %v7716_v6 }
0x38be   : > { %v7719_v42 = vpop.xlane.xlu0 %7718 }
0x38bf   : > { %10970 = vrcp.f32 %v7719_v42 }
0x38c2   : > { %v7722_v33 = vpop.xlane.xlu0 %7721 }
0x38c3   : > { %10972 = vrcp.f32 %v7722_v33 }
0x38c5   : > { %v10969_v5 = vpop.eup %10968 }
0x38c6   : > { %v10675_v29 = vpop.permute.xlu0 %10674  ;;  %v7732_v53 = vmul.f32 %v10969_v5, %v10957_v27 }
0x38c7   : > { %v10677_v9 = vunpack.i.h.bf16 %v10675_v29  ;;  %v10676_v35 = vunpack.i.l.bf16 %v10675_v29 }
0x38c9   : > { %v10430_v21 = vpack.c.bf16 %v10677_v9, %v10676_v35  ;;  %v10971_v19 = vpop.eup %10970 }
0x38ca   : > { %v7733_v52 = vmul.f32 %v10971_v19, %v10959_v47 }
0x38cb   : > { %10431 = vmatpush3.bf16.msra.mxu1 %v10430_v21 }
0x38cc   : > { %10083 = vmatprep.subr.mxu1 %v11093_v32 }
0x38cd   : > { %v10973_v17 = vpop.eup %10972 }
0x38ce   : > { %v7734_v25 = vmul.f32 %v10973_v17, %v10961_v58 }
0x38cf   : > { %10084 = vmatpush3.msk.msra.mxu1 %vm503_vm2, %v7839_v51 }
0x38d0   : > { %10086 = vmatmul.mubr.msk.f32.vlgmr.msra.gmra.mrb[166].mxu1 %vm491_vm0, %v7732_v53  ;;  %10435 = vmatprep.subr.bf16.mxu1 %v11091_v30 }
0x38d1   : > { %10088 = vmatprep.mubr.msk.f32.mxu1 %vm11092_vm3, %v11093_v32  ;;  %10437 = vmatpush3.bf16.msra.mxu1 %v10436_v26 }
0x38d2   : > { %10444 = vmatprep.subr.bf16.mxu1 %v11091_v30 }
0x38d4   : > { %10089 = vmatmul.mubr.msk.f32.gmra.mrb[168].mxu1 %vm491_vm0, %v7733_v52 }
0x38d5   : > { %10091 = vmatprep.mubr.msk.f32.mxu1 %vm11092_vm3, %v11093_v32 }
0x38d8   : > { %10092 = vmatmul.mubr.msk.f32.gmra.mrb[170].mxu1 %vm491_vm0, %v7734_v25  ;;  %v8829_v25 = vld [vmem:[%s13558_s11 + $0x80] sm:$0xff] }
0x38d9   : > { %10111 = vmatprep.mubr.msk.f32.mxu1 %vm11092_vm3, %v11093_v32 }
0x392e   : > { %v7820_v28 = vpop.f32.mrb[158].mxu0 }
0x392f   : > { %v10072_v61 = vpop.f32.mrb[159].mxu0  ;;  %10112 = vmatmul.mubr.msk.f32.vlgmr.msra.gmra.mrb[172].mxu1 %vm564_vm4, %v7820_v28  ;;  %v8830_v28 = vld [vmem:[%s13558_s11 + $0x88] sm:$0xff] }
0x3930   : > { %10114 = vmatprep.mubr.msk.f32.mxu1 %vm11092_vm3, %v11093_v32  ;;  %v10439_v61 = vpack.c.bf16 %v8830_v28, %v8829_v25 }
0x3932   : > { %v7825_v12 = vpop.f32.mrb[160].mxu0 }
0x3933   : > { %v10075_v44 = vpop.f32.mrb[161].mxu0  ;;  %10115 = vmatmul.mubr.msk.f32.gmra.mrb[174].mxu1 %vm564_vm4, %v7825_v12  ;;  %v8831_v12 = vld [vmem:[%s13558_s11 + $0x90] sm:$0xff] }
0x3934   : > { %10117 = vmatprep.mubr.msk.f32.mxu1 %vm11092_vm3, %v11093_v32  ;;  %v8832_v44 = vld [vmem:[%s13558_s11 + $0x98] sm:$0xff] }
0x3936   : > { %v7830_v40 = vpop.f32.mrb[162].mxu0 }
0x3937   : > { %v10078_v16 = vpop.f32.mrb[163].mxu0  ;;  %10118 = vmatmul.mubr.msk.f32.gmra.mrb[176].mxu1 %vm564_vm4, %v7830_v40  ;;  %v10442_v40 = vpack.c.bf16 %v8832_v44, %v8831_v12 }
0x3938   : > { %10153 = vmatprep.mubr.msk.f32.mxu1 %vm11092_vm3, %v11093_v32 }
0x39a3   : > { %v7919_v10 = vpop.f32.mrb[166].mxu1 }
0x39a4   : > { %v10087_v63 = vpop.f32.mrb[167].mxu1  ;;  %10099 = vmatmul.mubr.msk.f32.vlgmr.msra.gmra.mrb[164].mxu0 %vm564_vm4, %v7919_v10 }
0x39a5   : > { %10101 = vmatprep.mubr.msk.f32.mxu0 %vm11092_vm3, %v11093_v32  ;;  %10440 = vmatpush3.bf16.msra.mxu0 %v10439_v61 }
0x39a6   : > { %10441 = vmatprep.subr.bf16.mxu0 %v11091_v30 }
0x39a7   : > { %v7924_v62 = vpop.f32.mrb[168].mxu1 }
0x39a8   : > { %v10090_v24 = vpop.f32.mrb[169].mxu1  ;;  %10102 = vmatmul.mubr.msk.f32.gmra.mrb[166].mxu0 %vm564_vm4, %v7924_v62 }
0x39a9   : > { %10104 = vmatprep.mubr.msk.f32.mxu0 %vm11092_vm3, %v11093_v32  ;;  %10443 = vmatpush3.bf16.msra.mxu0 %v10442_v40 }
0x39ab   : > { %v7929_v11 = vpop.f32.mrb[170].mxu1 }
0x39ac   : > { %v10093_v39 = vpop.f32.mrb[171].mxu1  ;;  %10105 = vmatmul.mubr.msk.f32.gmra.mrb[168].mxu0 %vm564_vm4, %v7929_v11 }
0x39ad   : > { %10128 = vmatprep.mubr.msk.f32.mxu0 %vm11092_vm3, %v11093_v32 }
0x3a02   : > { %v8102_v50 = vpop.f32.mrb[172].mxu1 }
0x3a03   : > { %v10113_v27 = vpop.f32.mrb[173].mxu1 }
0x3a06   : > { %v8107_v45 = vpop.f32.mrb[174].mxu1 }
0x3a07   : > { %v10116_v47 = vpop.f32.mrb[175].mxu1 }
0x3a0a   : > { %v8112_v46 = vpop.f32.mrb[176].mxu1 }
0x3a0b   : > { %v10119_v58 = vpop.f32.mrb[177].mxu1 }
0x3a77   : > { %v8013_v23 = vpop.f32.mrb[164].mxu0 }
0x3a78   : > { %v8103_v22 = vadd.f32 %v8102_v50, %v8013_v23  ;;  %v10100_v8 = vpop.f32.mrb[165].mxu0 }
0x3a7a   : > { %v8116_v36 = vadd.f32 %v8103_v22, %v13244_v41 }
0x3a7b   : > { %v8018_v14 = vpop.f32.mrb[166].mxu0 }
0x3a7c   : > { %v13441_v60 = vadd.f32 %v8122_v34, %v8116_v36  ;;  %v8108_v59 = vadd.f32 %v8107_v45, %v8018_v14  ;;  %v10103_v38 = vpop.f32.mrb[167].mxu0  ;;  %v8168_v45 = vrot.slane %v13281_v20, %v12304_v49 }
0x3a7e   : > { %v8117_v48 = vadd.f32 %v8108_v59, %v13249_v55  ;;  %v8126_v18 = vsel %vm2648_vm15, %v13441_v60, 0.0 }
0x3a7f   : > { %v8023_v31 = vpop.f32.mrb[168].mxu0  ;;  %8127 = vadd.xlane.f32.xlu1 %v8126_v18  ;;  %v8837_v18 = vld [vmem:[%s13559_s12 + $0x108] sm:$0xff] }
0x3a80   : > { %v13446_v7 = vadd.f32 %v8122_v34, %v8117_v48  ;;  %v8113_v3 = vadd.f32 %v8112_v46, %v8023_v31  ;;  %v10106_v6 = vpop.f32.mrb[169].mxu0  ;;  %v8175_v46 = vrot.slane %v13281_v20, %v12307_v57  ;;  %v8836_v48 = vld [vmem:[%s13559_s12 + $0x100] sm:$0xff] }
0x3a81   : > { %v10445_v31 = vpack.c.bf16 %v8837_v18, %v8836_v48  ;;  %v8839_v6 = vld [vmem:[%s13559_s12 + $0x118] sm:$0xff] }
0x3a82   : > { %v8118_v43 = vadd.f32 %v8113_v3, %v13254_v2  ;;  %v8129_v41 = vsel %vm2648_vm15, %v13446_v7, 0.0  ;;  %v8838_v3 = vld [vmem:[%s13559_s12 + $0x110] sm:$0xff] }
0x3a83   : > { %8130 = vadd.xlane.f32.xlu0 %v8129_v41  ;;  %10446 = vmatpush3.bf16.msra.mxu1 %v10445_v31  ;;  %v8840_v41 = vld [vmem:[%s13559_s12 + $0x120] sm:$0xff] }
0x3a84   : > { %v13451_v42 = vadd.f32 %v8122_v34, %v8118_v43  ;;  %10447 = vmatprep.subr.bf16.mxu1 %v11091_v30  ;;  %v10448_v43 = vpack.c.bf16 %v8839_v6, %v8838_v3 }
0x3a86   : > { %v8132_v55 = vsel %vm2825_vm14, %v13451_v42, 0.0 }
0x3a87   : > { %8133 = vadd.xlane.f32.xlu0 %v8132_v55  ;;  %10449 = vmatpush3.bf16.msra.mxu1 %v10448_v43  ;;  %v8841_v55 = vld [vmem:[%s13559_s12 + $0x128] sm:$0xff] }
0x3a88   : > { %10450 = vmatprep.subr.bf16.mxu1 %v11091_v30 }
0x3b0c   : > { %v8128_v33 = vpop.xlane.xlu1 %8127 }
0x3b0d   : > { %v8135_v29 = vmul.f32 0.03125, %v8128_v33  ;;  %v10451_v33 = vpack.c.bf16 %v8841_v55, %v8840_v41 }
0x3b0f   : > { %v8138_v9 = vsub.f32 %v13441_v60, %v8135_v29  ;;  %10452 = vmatpush3.bf16.msra.mxu1 %v10451_v33  ;;  %v8842_v29 = vld [vmem:[%s13559_s12 + $0x130] sm:$0xff] }
0x3b10   : > { %v8131_v35 = vpop.xlane.xlu0 %8130  ;;  %10453 = vmatprep.subr.bf16.mxu1 %v11091_v30 }
0x3b11   : > { %v8136_v21 = vmul.f32 0.03125, %v8131_v35  ;;  %v8141_v4 = vmul.f32 %v8138_v9, %v8138_v9 }
0x3b13   : > { %v8139_v13 = vsub.f32 %v13446_v7, %v8136_v21  ;;  %v8144_v2 = vsel %vm2648_vm15, %v8141_v4, 0.0  ;;  %v8187_v21 = vrot.slane %v13281_v20, %v12351_v0 }
0x3b14   : > { %8145 = vadd.xlane.f32.xlu0 %v8144_v2  ;;  %v8134_v5 = vpop.xlane.xlu0 %8133 }
0x3b15   : > { %v8137_v26 = vmul.f32 0.03125, %v8134_v5  ;;  %v8142_v51 = vmul.f32 %v8139_v13, %v8139_v13 }
0x3b17   : > { %v8140_v53 = vsub.f32 %v13451_v42, %v8137_v26  ;;  %v8147_v19 = vsel %vm2648_vm15, %v8142_v51, 0.0 }
0x3b18   : > { %8148 = vadd.xlane.f32.xlu1 %v8147_v19 }
0x3b19   : > { %v8143_v52 = vmul.f32 %v8140_v53, %v8140_v53 }
0x3b1b   : > { %v8150_v17 = vsel %vm2825_vm14, %v8143_v52, 0.0 }
0x3b1c   : > { %8151 = vadd.xlane.f32.xlu0 %v8150_v17 }
0x3ba1   : > { %v8146_v16 = vpop.xlane.xlu0 %8145 }
0x3ba2   : > { %v8153_v10 = vmul.f32 0.03125, %v8146_v16 }
0x3ba4   : > { %v8156_v63 = vadd.f32 1e-05, %v8153_v10 }
0x3ba5   : > { %v8149_v62 = vpop.xlane.xlu1 %8148 }
0x3ba6   : > { %10974 = vrsqrt.f32 %v8156_v63  ;;  %v8154_v24 = vmul.f32 0.03125, %v8149_v62 }
0x3ba8   : > { %v8157_v11 = vadd.f32 1e-05, %v8154_v24 }
0x3ba9   : > { %v8152_v39 = vpop.xlane.xlu0 %8151 }
0x3baa   : > { %10976 = vrsqrt.f32 %v8157_v11  ;;  %v8155_v50 = vmul.f32 0.03125, %v8152_v39 }
0x3bac   : > { %v8158_v27 = vadd.f32 1e-05, %v8155_v50 }
0x3bae   : > { %10978 = vrsqrt.f32 %v8158_v27 }
0x3bb0   : > { %v10975_v47 = vpop.eup %10974 }
0x3bb1   : > { %v8162_v58 = vmul.f32 %v10975_v47, %v8138_v9  ;;  %v8843_v9 = vld [vmem:[%s13559_s12 + $0x138] sm:$0xff] }
0x3bb2   : > { %v10454_v35 = vpack.c.bf16 %v8843_v9, %v8842_v29 }
0x3bb3   : > { %v8169_v23 = vmul.f32 %v8168_v45, %v8162_v58 }
0x3bb4   : > { %v10977_v22 = vpop.eup %10976  ;;  %10455 = vmatpush3.bf16.msra.mxu1 %v10454_v35 }
0x3bb5   : > { %v8176_v34 = vadd.f32 %v8175_v46, %v8169_v23  ;;  %v8163_v8 = vmul.f32 %v10977_v22, %v8139_v13 }
0x3bb7   : > { %10129 = vmatmul.mubr.msk.f32.vlgmr.msra.gmra.mrb[170].mxu0 %vm2648_vm15, %v8176_v34  ;;  %v8170_v36 = vmul.f32 %v8168_v45, %v8163_v8 }
0x3bb8   : > { %v10979_v14 = vpop.eup %10978  ;;  %10131 = vmatprep.mubr.msk.f32.mxu0 %vm11092_vm3, %v11093_v32 }
0x3bb9   : > { %v8177_v59 = vadd.f32 %v8175_v46, %v8170_v36  ;;  %v8164_v38 = vmul.f32 %v10979_v14, %v8140_v53  ;;  %v8408_v14 = vrot.slane %v13281_v20, %v12365_v1 }
0x3bbb   : > { %10132 = vmatmul.mubr.msk.f32.gmra.mrb[172].mxu0 %vm2648_vm15, %v8177_v59  ;;  %v8171_v49 = vmul.f32 %v8168_v45, %v8164_v38 }
0x3bbc   : > { %10134 = vmatprep.mubr.msk.f32.mxu0 %vm11092_vm3, %v11093_v32 }
0x3bbd   : > { %v8178_v57 = vadd.f32 %v8175_v46, %v8171_v49 }
0x3bbf   : > { %10135 = vmatmul.mubr.msk.f32.gmra.mrb[174].mxu0 %vm2648_vm15, %v8178_v57 }
0x3c8a   : > { %v8263_v4 = vpop.f32.mrb[170].mxu0 }
0x3c8b   : > { %v8264_v13 = vadd.f32 %v8263_v4, %v8187_v21  ;;  %v10130_v2 = vpop.f32.mrb[171].mxu0 }
0x3c8d   : > { %v8277_v5 = vmul.f32 %v8264_v13, %v8264_v13 }
0x3c8e   : > { %v8268_v26 = vpop.f32.mrb[172].mxu0 }
0x3c8f   : > { %v8280_v51 = vmul.f32 %v8277_v5, %v8264_v13  ;;  %v8269_v53 = vadd.f32 %v8268_v26, %v8187_v21  ;;  %v10133_v19 = vpop.f32.mrb[173].mxu0 }
0x3c91   : > { %v8283_v52 = vmul.f32 0.044715, %v8280_v51  ;;  %v8278_v17 = vmul.f32 %v8269_v53, %v8269_v53 }
0x3c92   : > { %v8273_v25 = vpop.f32.mrb[174].mxu0 }
0x3c93   : > { %v8286_v28 = vadd.f32 %v8283_v52, %v8264_v13  ;;  %v8281_v61 = vmul.f32 %v8278_v17, %v8269_v53  ;;  %v8274_v12 = vadd.f32 %v8273_v25, %v8187_v21  ;;  %v10136_v30 = vpop.f32.mrb[175].mxu0 }
0x3c95   : > { %v8289_v44 = vmul.f32 0.7978846, %v8286_v28  ;;  %v8284_v40 = vmul.f32 0.044715, %v8281_v61  ;;  %v8279_v16 = vmul.f32 %v8274_v12, %v8274_v12 }
0x3c97   : > { %10980 = vtanh.f32 %v8289_v44  ;;  %v8287_v0 = vadd.f32 %v8284_v40, %v8269_v53  ;;  %v8282_v10 = vmul.f32 %v8279_v16, %v8274_v12 }
0x3c99   : > { %v8290_v63 = vmul.f32 0.7978846, %v8287_v0  ;;  %v8285_v62 = vmul.f32 0.044715, %v8282_v10 }
0x3c9b   : > { %10982 = vtanh.f32 %v8290_v63  ;;  %v8288_v24 = vadd.f32 %v8285_v62, %v8274_v12 }
0x3c9d   : > { %v8291_v11 = vmul.f32 0.7978846, %v8288_v24 }
0x3c9f   : > { %10984 = vtanh.f32 %v8291_v11 }
0x3ca1   : > { %v10981_v39 = vpop.eup %10980 }
0x3ca2   : > { %v8295_v50 = vadd.f32 1.0, %v10981_v39 }
0x3ca4   : > { %v8298_v27 = vmul.f32 0.5, %v8295_v50 }
0x3ca5   : > { %v10983_v45 = vpop.eup %10982 }
0x3ca6   : > { %v8301_v47 = vmul.f32 %v8298_v27, %v8264_v13  ;;  %v8296_v46 = vadd.f32 1.0, %v10983_v45 }
0x3ca8   : > { %10154 = vmatmul.mubr.msk.f32.vlgmr.msra.gmra.mrb[178].mxu1 %vm2652_vm7, %v8301_v47  ;;  %v8299_v58 = vmul.f32 0.5, %v8296_v46 }
0x3ca9   : > { %v10985_v23 = vpop.eup %10984  ;;  %10156 = vmatprep.mubr.msk.f32.mxu1 %vm11092_vm3, %v11093_v32 }
0x3caa   : > { %v8302_v22 = vmul.f32 %v8299_v58, %v8269_v53  ;;  %v8297_v34 = vadd.f32 1.0, %v10985_v23 }
0x3cac   : > { %10157 = vmatmul.mubr.msk.f32.gmra.mrb[180].mxu1 %vm2652_vm7, %v8302_v22  ;;  %v8300_v8 = vmul.f32 0.5, %v8297_v34 }
0x3cad   : > { %10159 = vmatprep.mubr.msk.f32.mxu1 %vm11092_vm3, %v11093_v32 }
0x3cae   : > { %v8303_v36 = vmul.f32 %v8300_v8, %v8274_v12 }
0x3cb0   : > { %10160 = vmatmul.mubr.msk.f32.gmra.mrb[182].mxu1 %vm2652_vm7, %v8303_v36 }
0x3d7b   : > { %v8388_v59 = vpop.f32.mrb[178].mxu1 }
0x3d7c   : > { %v8402_v38 = vadd.f32 %v8388_v59, %v13441_v60  ;;  %v10155_v49 = vpop.f32.mrb[179].mxu1 }
0x3d7e   : > { %v8409_v57 = vadd.f32 %v8408_v14, %v8402_v38 }
0x3d7f   : > { %v8393_v48 = vpop.f32.mrb[180].mxu1 }
0x3d80   : > { %v8412_v32 = vsel %vm2443_vm9, %v8409_v57, 0.0  ;;  %v8403_v18 = vadd.f32 %v8393_v48, %v13446_v7  ;;  %v10158_v31 = vpop.f32.mrb[181].mxu1 }
0x3d81   : > { %v8415_v1 = vsel %vm2648_vm15, %v8412_v32, 0.0 }
0x3d82   : > { %8419 = vst [vmem:[%s486_s15] sm:$0xff] %v8415_v1  ;;  %v8410_v20 = vadd.f32 %v8408_v14, %v8403_v18 }
0x3d83   : > { %v8398_v60 = vpop.f32.mrb[182].mxu1 }
0x3d84   : > { %v8413_v3 = vsel %vm2444_vm10, %v8410_v20, 0.0  ;;  %v8404_v6 = vadd.f32 %v8398_v60, %v13451_v42  ;;  %v10161_v43 = vpop.f32.mrb[183].mxu1 }
0x3d85   : > { %v8416_v41 = vsel %vm2648_vm15, %v8413_v3, 0.0 }
0x3d86   : > { %8420 = vst [vmem:[%s486_s15 + $0x8] sm:$0xff] %v8416_v41  ;;  %v8411_v54 = vadd.f32 %v8408_v14, %v8404_v6 }
0x3d88   : > { %v8414_v7 = vsel %vm2445_vm13, %v8411_v54, 0.0 }
0x3d89   : > { %v8417_v55 = vsel %vm2648_vm15, %v8414_v7, 0.0 }
0x3d8a   : > { %v8418_v33 = vsel %vm503_vm2, %v8417_v55, 0.0 }
0x3d8b   : > { %8421 = vst [vmem:[%s486_s15 + $0x10] sm:$0xff] %v8418_v33 }
0x3d8c PF: > { %s13580_s16 = sld [smem:[#allocation11_spill]] }
0x3d92   : > { %s27_s15 = sadd.s32 1, %s13580_s16  }
0x3d93   : > { %p24_p5 = scmp.ge.s32.totalorder %s27_s15, 4  }
0x3d95   :  { %26 = sbr.rel (!%p24_p5) target bundleno = 5 (0x5), region = 142 }
0x3d9c   :  { %8443 = vsyncpa [#allocation5], 1 }
0x3d9d   :  { %8445 = vsyncpa [#allocation5 + $0x1], 1 }
0x3d9e   :  { %8446 = vsyncpa [#allocation7], 1 }

</bundles_post_ra>
